<compile_context>
chip_gen: v5e
topology: v5e:2x2
jax: 0.10.0
libtpu: 0.0.40
codegen_flags: <defaults>
</compile_context>

<pallas_src>
import functools

import jax
import jax.numpy as jnp
from jax.experimental import pallas as pl
from jax.experimental.pallas import tpu as pltpu

EPS = 1e-5  # torch.nn.InstanceNorm2d default eps


# ---------------------------------------------------------------------------
# Pallas kernel
# ---------------------------------------------------------------------------
def _inorm_affine(y, factor, bias):
    """y: (N, Cp) f32; factor/bias: (1, Cp).  InstanceNorm(affine=False) * factor + bias.

    Two-pass statistics (mean, then centered second moment) for numerical robustness.
    """
    inv_n = 1.0 / y.shape[0]
    mean = jnp.sum(y, axis=0, keepdims=True) * inv_n
    d = y - mean
    var = jnp.sum(d * d, axis=0, keepdims=True) * inv_n
    return d * jax.lax.rsqrt(var + EPS) * factor + bias


def residual_block_kernel(x_ref, p1_ref, p2_ref,
                          w1_ref, b1_ref, w2_ref, b2_ref,
                          o_ref, xpad_ref, y_ref, *, strip_rows):
    _, H, W, Cp = x_ref.shape            # one sample per block, NHWC, lane-dense Cp
    TH = strip_rows                      # rows per im2col strip (divides H)
    n_strips = H // TH
    cdt = xpad_ref.dtype                 # MXU operand dtype (compute_dtype)
    x3 = x_ref[0].astype(jnp.float32)    # (H, W, Cp) residual / IN math stays f32

    def conv3x3(h3, w_ref, bias):
        # Cast ONCE before im2col; the pad scratch and the patch stay in compute dtype.
        hc = h3.astype(cdt)
        # Reflection pad (1 px) written in place into the persistent VMEM scratch.
        # Assumes H >= 2 and W >= 2 (same requirement as nn.ReflectionPad2d(1)).
        xpad_ref[1:H + 1, 1:W + 1, :] = hc
        xpad_ref[1:H + 1, 0:1, :] = hc[:, 1:2, :]                  # left  col = col 1
        xpad_ref[1:H + 1, W + 1:W + 2, :] = hc[:, W - 2:W - 1, :]  # right col = col W-2
        xpad_ref[0:1, :, :] = xpad_ref[2:3, :, :]                  # top row (incl. corners)
        xpad_ref[H + 1:H + 2, :, :] = xpad_ref[H - 1:H, :, :]      # bottom row

        w_slab = w_ref[...]              # (9*Cp, Cp) compute dtype

        def strip(s, carry):
            r0 = s * TH                  # first output row of this strip
            cols = []
            for kh in range(3):
                # one VMEM load per kh band; kw shifts are register-level slices
                band = xpad_ref[pl.ds(r0 + kh, TH), :, :]          # (TH, W+2, Cp)
                for kw in range(3):
                    cols.append(band[:, kw:kw + W, :])             # (TH, W, Cp)
            # bounded im2col patch: (TH*W, 9*Cp) in compute dtype
            patch = jnp.concatenate(cols, axis=2).reshape(TH * W, 9 * Cp)
            y_ref[pl.ds(r0 * W, TH * W), :] = (
                jnp.dot(patch, w_slab, preferred_element_type=jnp.float32) + bias)
            return carry

        if n_strips <= 8:                # short static loop -> straight-line code
            for s in range(n_strips):
                strip(s, 0)
        else:                            # bounded live range for many strips
            jax.lax.fori_loop(0, n_strips, strip, 0)
        return y_ref[...]                # (H*W, Cp) f32

    p1 = p1_ref[0]                       # (2, Cp)
    p2 = p2_ref[0]
    f1, bi1 = p1[0:1, :], p1[1:2, :]     # (1, Cp) each
    f2, bi2 = p2[0:1, :], p2[1:2, :]

    # conv1 -> conditional IN -> ReLU
    y1 = conv3x3(x3, w1_ref, b1_ref[...])
    h1 = jnp.maximum(_inorm_affine(y1, f1, bi1), 0.0)

    # conv2 -> conditional IN  (y_ref re-use is safe: the y1 load above is sequenced
    # before conv2's stores by Pallas state ordering)
    y2 = conv3x3(h1.reshape(H, W, Cp), w2_ref, b2_ref[...])
    h2 = _inorm_affine(y2, f2, bi2)

    # residual add + lane-dense (unmasked) store
    o_ref[0] = (h2.reshape(H, W, Cp) + x3).astype(o_ref.dtype)


# ---------------------------------------------------------------------------
# Wrapper: layout / padding / parameter prepacking (plain XLA), pallas_call
# ---------------------------------------------------------------------------
def residual_block(x, label, params, *, compute_dtype=jnp.bfloat16,
                   patch_budget_bytes=2 << 20):
    """x: (B, C, H, W) NCHW, label: (B, dim_label) -> (B, C, H, W).

    compute_dtype: MXU operand dtype for the conv matmuls (bf16 default, 2-4x MXU
    throughput); accumulation and InstanceNorm statistics are always f32.
    """
    B, C, H, W = x.shape
    Cp = ((C + 127) // 128) * 128        # lane-dense channel padding
    pc = Cp - C
    cdt = jnp.dtype(compute_dtype)

    # TODO(synk): for C << 128 (e.g. the self-test's C=4) lane-padding to 128 wastes most
    # MXU FLOPs/VMEM; map channels x a spatial factor onto the lane axis, or reserve this
    # kernel for C in {128, 256, ...}.
    # TODO(synk): when residual blocks are chained, keep activations in (B, H, W, Cp)
    # layout across blocks and do the NCHW<->NHWC transpose + channel pad/unpad only at
    # the chain boundaries (each round trip costs ~a kernel's worth of HBM traffic).

    # NCHW -> NHWC, pad channels so they sit densely on the 128-wide lane axis.
    # Zero-padded channels stay exactly zero end-to-end (zero weights/bias/factor).
    x_p = jnp.pad(jnp.transpose(x, (0, 2, 3, 1)),
                  ((0, 0), (0, 0), (0, 0), (0, pc)))

    def prep_conv_w(w):  # (Co, Ci, 3, 3) -> (9*Cp, Cp) im2col slab, tap-major / ci inner
        w9 = jnp.transpose(w, (2, 3, 1, 0)).reshape(9, C, C)       # [tap, ci, co]
        w9 = jnp.pad(w9, ((0, 0), (0, pc), (0, pc)))
        return w9.reshape(9 * Cp, Cp).astype(compute_dtype)

    def prep_param(fw, fb):  # fc_make_param hoisted out of the kernel (plain XLA, f32)
        p = label.astype(jnp.float32) @ fw.T + fb                  # (B, 2C)
        fac = jnp.pad(p[:, :C], ((0, 0), (0, pc)))
        bia = jnp.pad(p[:, C:], ((0, 0), (0, pc)))
        return jnp.stack([fac, bia], axis=1)                       # (B, 2, Cp)

    w1 = prep_conv_w(params["w1"])
    w2 = prep_conv_w(params["w2"])
    b1 = jnp.pad(params["b1"], (0, pc)).reshape(1, Cp).astype(jnp.float32)
    b2 = jnp.pad(params["b2"], (0, pc)).reshape(1, Cp).astype(jnp.float32)
    p1 = prep_param(params["fw1"], params["fb1"])
    p2 = prep_param(params["fw2"], params["fb2"])

    # Row-strip size: largest divisor of H whose (TH*W, 9*Cp) compute-dtype patch stays
    # under the per-strip budget (bounds the 9x im2col blow-up instead of materializing
    # the whole patch).
    row_bytes = W * 9 * Cp * cdt.itemsize
    cap = max(1, patch_budget_bytes // row_bytes)
    TH = max(d for d in range(1, H + 1) if H % d == 0 and d <= cap)

    # Explicit scoped-VMEM budget (defaults are only 16 MiB on v5e / 32 MiB on v6e,v7x).
    est = (2 * 2 * H * W * Cp * x.dtype.itemsize          # x + out blocks, double-buffered
           + 2 * 2 * 9 * Cp * Cp * cdt.itemsize           # two weight slabs, double-buffered
           + 2 * 2 * 3 * Cp * 4                           # IN factor/bias + conv-bias blocks
           + (H + 2) * (W + 2) * Cp * cdt.itemsize        # reflection-pad scratch
           + H * W * Cp * 4                               # y scratch (f32)
           + 2 * TH * W * 9 * Cp * cdt.itemsize           # patch strip (+ concat temp)
           + 4 * H * W * Cp * 4)                          # y1/h1/h2/out f32 live values
    try:
        phys = int(pltpu.get_tpu_info().vmem_capacity_bytes)   # 64 MiB on v7x, 128 on v5e/v6e
    except Exception:
        phys = 64 << 20                                        # assume the tightest (v7x)
    vmem_limit = int(min(int(phys * 0.8), max(2 * est, 16 << 20)))
    # TODO(synk): if 2*est exceeds ~0.8*physical VMEM (large H*W, esp. v7x's 64 MiB), add
    # a row-tiled "parallel" grid axis with a 1-row halo and split IN into a stats pass +
    # normalize pass instead of whole-sample residency.
    # TODO(synk): single-buffer the constant weight/bias operands (pl.Buffered(1) pipeline
    # mode, or a one-shot ANY->VMEM copy) for extra v7x VMEM headroom.
    # TODO(synk): for small H*W, pack several samples per grid step (M = BS*H*W per matmul,
    # per-sample IN stats) to amortize the ~0.35us per-grid-step overhead.

    kernel = functools.partial(residual_block_kernel, strip_rows=TH)
    full2 = lambda b: (0, 0)
    out_p = pl.pallas_call(
        kernel,
        out_shape=jax.ShapeDtypeStruct((B, H, W, Cp), x.dtype),
        grid=(B,),
        in_specs=[
            pl.BlockSpec((1, H, W, Cp), lambda b: (b, 0, 0, 0)),   # x (per sample)
            pl.BlockSpec((1, 2, Cp), lambda b: (b, 0, 0)),         # IN factor/bias 1
            pl.BlockSpec((1, 2, Cp), lambda b: (b, 0, 0)),         # IN factor/bias 2
            pl.BlockSpec((9 * Cp, Cp), full2),                     # conv1 weight slab
            pl.BlockSpec((1, Cp), full2),                          # conv1 bias
            pl.BlockSpec((9 * Cp, Cp), full2),                     # conv2 weight slab
            pl.BlockSpec((1, Cp), full2),                          # conv2 bias
        ],
        out_specs=pl.BlockSpec((1, H, W, Cp), lambda b: (b, 0, 0, 0)),
        scratch_shapes=[pltpu.VMEM((H + 2, W + 2, Cp), compute_dtype),  # reflection pad
                        pltpu.VMEM((H * W, Cp), jnp.float32)],          # conv output y
        compiler_params=pltpu.CompilerParams(
            dimension_semantics=("parallel",),      # independent samples -> v7x 2 TCs
            vmem_limit_bytes=vmem_limit),
    )(x_p, p1, p2, w1, b1, w2, b2)

    return jnp.transpose(out_p[..., :C], (0, 3, 1, 2))


# ---------------------------------------------------------------------------
# Deterministic parameter init (shapes follow the PyTorch module __init__)
# ---------------------------------------------------------------------------
def make_residual_block_params(channels, dim_label, key):
    C, L = channels, dim_label
    ks = jax.random.split(key, 6)
    kconv = 1.0 / jnp.sqrt(C * 9.0)
    kfc = 1.0 / jnp.sqrt(float(L))
    w1 = jax.random.uniform(ks[0], (C, C, 3, 3), jnp.float32, -kconv, kconv)
    b1 = jax.random.uniform(ks[1], (C,), jnp.float32, -kconv, kconv)
    w2 = jax.random.uniform(ks[2], (C, C, 3, 3), jnp.float32, -kconv, kconv)
    b2 = jax.random.uniform(ks[3], (C,), jnp.float32, -kconv, kconv)
    fw1 = jax.random.uniform(ks[4], (2 * C, L), jnp.float32, -kfc, kfc)
    fw2 = jax.random.uniform(ks[5], (2 * C, L), jnp.float32, -kfc, kfc)
    # fc_make_param sets bias[:C] = 1 (factor), bias[C:] = 0 (bias)
    fb = jnp.concatenate([jnp.ones((C,), jnp.float32), jnp.zeros((C,), jnp.float32)])
    return dict(w1=w1, b1=b1, fw1=fw1, fb1=fb, w2=w2, b2=b2, fw2=fw2, fb2=fb)


# ---------------------------------------------------------------------------
# Pure-JAX reference (mirrors the PyTorch forward) for verification
# ---------------------------------------------------------------------------
def residual_block_ref(x, label, params, *, conv_dtype=jnp.float32):
    C = x.shape[1]

    def conv(inp, w, b):
        xp = jnp.pad(inp, ((0, 0), (0, 0), (1, 1), (1, 1)), mode="reflect")
        y = jax.lax.conv_general_dilated(
            xp.astype(conv_dtype), w.astype(conv_dtype),
            window_strides=(1, 1), padding="VALID",
            dimension_numbers=("NCHW", "OIHW", "NCHW"),
            preferred_element_type=jnp.float32)
        return y + b.reshape(1, -1, 1, 1)

    def inorm(y, p):
        factor = p[:, :C].reshape(p.shape[0], C, 1, 1)
        bias = p[:, C:].reshape(p.shape[0], C, 1, 1)
        mean = jnp.mean(y, axis=(2, 3), keepdims=True)
        var = jnp.mean((y - mean) ** 2, axis=(2, 3), keepdims=True)
        return (y - mean) / jnp.sqrt(var + EPS) * factor + bias

    p1 = label @ params["fw1"].T + params["fb1"]
    p2 = label @ params["fw2"].T + params["fb2"]
    h = jnp.maximum(inorm(conv(x, params["w1"], params["b1"]), p1), 0.0)
    h = inorm(conv(h, params["w2"], params["b2"]), p2)
    return h + x


if __name__ == "__main__":
    key = jax.random.PRNGKey(0)
    kx, kl, kp = jax.random.split(key, 3)
    B, C, H, W, L = 2, 4, 16, 16, 8   # batch, channels, spatial, dim_label

    x = jax.random.normal(kx, (B, C, H, W), jnp.float32)
    label = jax.random.normal(kl, (B, L), jnp.float32)
    params = make_residual_block_params(C, L, kp)

    # 1) f32 MXU operands: tight numerical check against the f32 reference.
    fwd_f32 = jax.jit(functools.partial(residual_block, compute_dtype=jnp.float32))
    out_f32 = fwd_f32(x, label, params)
    jax.block_until_ready(out_f32)
    ref_f32 = residual_block_ref(x, label, params)
    err_f32 = float(jnp.max(jnp.abs(out_f32 - ref_f32)))
    assert out_f32.shape == (B, C, H, W) and out_f32.dtype == jnp.float32
    assert err_f32 < 1e-3, f"f32 mismatch vs reference, max abs err = {err_f32}"

    # 2) default bf16 MXU operands: check against a reference with bf16-quantized conv
    #    operands (same quantization; both accumulate in f32).
    fwd_bf16 = jax.jit(residual_block)
    out_bf16 = fwd_bf16(x, label, params)
    jax.block_until_ready(out_bf16)
    ref_bf16 = residual_block_ref(x, label, params, conv_dtype=jnp.bfloat16)
    err_bf16 = float(jnp.max(jnp.abs(out_bf16 - ref_bf16)))
    assert out_bf16.shape == (B, C, H, W) and out_bf16.dtype == jnp.float32
    assert err_bf16 < 5e-2, f"bf16 mismatch vs bf16 reference, max abs err = {err_bf16}"

    print("KERNEL_OK")
</pallas_src>

<mosaic_0001>
module attributes {stable_mosaic.version = 11 : i64} {
  func.func @residual_block_kernel(%arg0: i32, %arg1: memref<1x16x16x128xf32, #tpu.memory_space<vmem>>, %arg2: memref<1x2x128xf32, #tpu.memory_space<vmem>>, %arg3: memref<1x2x128xf32, #tpu.memory_space<vmem>>, %arg4: memref<1152x128xf32, #tpu.memory_space<vmem>>, %arg5: memref<1x128xf32, #tpu.memory_space<vmem>>, %arg6: memref<1152x128xf32, #tpu.memory_space<vmem>>, %arg7: memref<1x128xf32, #tpu.memory_space<vmem>>, %arg8: memref<1x16x16x128xf32, #tpu.memory_space<vmem>>, %arg9: memref<18x18x128xf32, #tpu.memory_space<vmem>>, %arg10: memref<256x128xf32, #tpu.memory_space<vmem>>) attributes {dimension_semantics = [#tpu.dimension_semantics<parallel>], iteration_bounds = array<i64: 2>, scalar_prefetch = 0 : i64, scratch_operands = 2 : i64, tpu.core_type = #tpu.core_type<tc>, window_params = [{transform_indices = @transform_0, window_bounds = array<i64: 1, 16, 16, 128>}, {transform_indices = @transform_1, window_bounds = array<i64: 1, 2, 128>}, {transform_indices = @transform_2, window_bounds = array<i64: 1, 2, 128>}, {pipeline_mode = #tpu.pipeline_mode<synchronous>, transform_indices = @transform_3, window_bounds = array<i64: 1152, 128>}, {pipeline_mode = #tpu.pipeline_mode<synchronous>, transform_indices = @transform_4, window_bounds = array<i64: 1, 128>}, {pipeline_mode = #tpu.pipeline_mode<synchronous>, transform_indices = @transform_5, window_bounds = array<i64: 1152, 128>}, {pipeline_mode = #tpu.pipeline_mode<synchronous>, transform_indices = @transform_6, window_bounds = array<i64: 1, 128>}, {transform_indices = @transform_7, window_bounds = array<i64: 1, 16, 16, 128>}]} {
    %c0 = arith.constant 0 : index
    %c0_0 = arith.constant 0 : index
    %c0_1 = arith.constant 0 : index
    %c0_2 = arith.constant 0 : index
    %0 = vector.load %arg1[%c0, %c0_0, %c0_1, %c0_2] : memref<1x16x16x128xf32, #tpu.memory_space<vmem>>, vector<1x16x16x128xf32>
    %1 = vector.shape_cast %0 : vector<1x16x16x128xf32> to vector<16x16x128xf32>
    %c0_3 = arith.constant 0 : index
    %c0_4 = arith.constant 0 : index
    %c0_5 = arith.constant 0 : index
    %2 = vector.load %arg2[%c0_3, %c0_4, %c0_5] : memref<1x2x128xf32, #tpu.memory_space<vmem>>, vector<1x2x128xf32>
    %3 = vector.shape_cast %2 : vector<1x2x128xf32> to vector<2x128xf32>
    %c0_6 = arith.constant 0 : index
    %c0_7 = arith.constant 0 : index
    %c0_8 = arith.constant 0 : index
    %4 = vector.load %arg3[%c0_6, %c0_7, %c0_8] : memref<1x2x128xf32, #tpu.memory_space<vmem>>, vector<1x2x128xf32>
    %5 = vector.shape_cast %4 : vector<1x2x128xf32> to vector<2x128xf32>
    %6 = vector.extract_strided_slice %3 {offsets = [0, 0], sizes = [1, 128], strides = [1, 1]} : vector<2x128xf32> to vector<1x128xf32>
    %7 = vector.extract_strided_slice %3 {offsets = [1, 0], sizes = [1, 128], strides = [1, 1]} : vector<2x128xf32> to vector<1x128xf32>
    %8 = vector.extract_strided_slice %5 {offsets = [0, 0], sizes = [1, 128], strides = [1, 1]} : vector<2x128xf32> to vector<1x128xf32>
    %9 = vector.extract_strided_slice %5 {offsets = [1, 0], sizes = [1, 128], strides = [1, 1]} : vector<2x128xf32> to vector<1x128xf32>
    %c0_9 = arith.constant 0 : index
    %c0_10 = arith.constant 0 : index
    %10 = vector.load %arg5[%c0_9, %c0_10] : memref<1x128xf32, #tpu.memory_space<vmem>>, vector<1x128xf32>
    %c1 = arith.constant 1 : index
    %c1_11 = arith.constant 1 : index
    %c0_12 = arith.constant 0 : index
    %11 = vector.load %arg9[%c1, %c1_11, %c0_12] : memref<18x18x128xf32, #tpu.memory_space<vmem>>, vector<16x16x128xf32>
    tpu.vector_store %arg9[%c1, %c1_11, %c0_12], %1 {strides = array<i32>} : memref<18x18x128xf32, #tpu.memory_space<vmem>>, vector<16x16x128xf32>,
    %12 = vector.extract_strided_slice %1 {offsets = [0, 1, 0], sizes = [16, 1, 128], strides = [1, 1, 1]} : vector<16x16x128xf32> to vector<16x1x128xf32>
    %c1_13 = arith.constant 1 : index
    %c0_14 = arith.constant 0 : index
    %c0_15 = arith.constant 0 : index
    %13 = vector.load %arg9[%c1_13, %c0_14, %c0_15] : memref<18x18x128xf32, #tpu.memory_space<vmem>>, vector<16x1x128xf32>
    tpu.vector_store %arg9[%c1_13, %c0_14, %c0_15], %12 {strides = array<i32>} : memref<18x18x128xf32, #tpu.memory_space<vmem>>, vector<16x1x128xf32>,
    %14 = vector.extract_strided_slice %1 {offsets = [0, 14, 0], sizes = [16, 1, 128], strides = [1, 1, 1]} : vector<16x16x128xf32> to vector<16x1x128xf32>
    %c1_16 = arith.constant 1 : index
    %c17 = arith.constant 17 : index
    %c0_17 = arith.constant 0 : index
    %15 = vector.load %arg9[%c1_16, %c17, %c0_17] : memref<18x18x128xf32, #tpu.memory_space<vmem>>, vector<16x1x128xf32>
    tpu.vector_store %arg9[%c1_16, %c17, %c0_17], %14 {strides = array<i32>} : memref<18x18x128xf32, #tpu.memory_space<vmem>>, vector<16x1x128xf32>,
    %c2 = arith.constant 2 : index
    %c0_18 = arith.constant 0 : index
    %c0_19 = arith.constant 0 : index
    %16 = vector.load %arg9[%c2, %c0_18, %c0_19] : memref<18x18x128xf32, #tpu.memory_space<vmem>>, vector<1x18x128xf32>
    %c0_20 = arith.constant 0 : index
    %c0_21 = arith.constant 0 : index
    %c0_22 = arith.constant 0 : index
    %17 = vector.load %arg9[%c0_20, %c0_21, %c0_22] : memref<18x18x128xf32, #tpu.memory_space<vmem>>, vector<1x18x128xf32>
    tpu.vector_store %arg9[%c0_20, %c0_21, %c0_22], %16 {strides = array<i32>} : memref<18x18x128xf32, #tpu.memory_space<vmem>>, vector<1x18x128xf32>,
    %c15 = arith.constant 15 : index
    %c0_23 = arith.constant 0 : index
    %c0_24 = arith.constant 0 : index
    %18 = vector.load %arg9[%c15, %c0_23, %c0_24] : memref<18x18x128xf32, #tpu.memory_space<vmem>>, vector<1x18x128xf32>
    %c17_25 = arith.constant 17 : index
    %c0_26 = arith.constant 0 : index
    %c0_27 = arith.constant 0 : index
    %19 = vector.load %arg9[%c17_25, %c0_26, %c0_27] : memref<18x18x128xf32, #tpu.memory_space<vmem>>, vector<1x18x128xf32>
    tpu.vector_store %arg9[%c17_25, %c0_26, %c0_27], %18 {strides = array<i32>} : memref<18x18x128xf32, #tpu.memory_space<vmem>>, vector<1x18x128xf32>,
    %c0_28 = arith.constant 0 : index
    %c0_29 = arith.constant 0 : index
    %20 = vector.load %arg4[%c0_28, %c0_29] : memref<1152x128xf32, #tpu.memory_space<vmem>>, vector<1152x128xf32>
    %c0_30 = arith.constant 0 : index
    %c0_31 = arith.constant 0 : index
    %c0_32 = arith.constant 0 : index
    %21 = vector.load %arg9[%c0_30, %c0_31, %c0_32] : memref<18x18x128xf32, #tpu.memory_space<vmem>>, vector<16x18x128xf32>
    %22 = vector.extract_strided_slice %21 {offsets = [0, 0, 0], sizes = [16, 16, 128], strides = [1, 1, 1]} : vector<16x18x128xf32> to vector<16x16x128xf32>
    %23 = vector.extract_strided_slice %21 {offsets = [0, 1, 0], sizes = [16, 16, 128], strides = [1, 1, 1]} : vector<16x18x128xf32> to vector<16x16x128xf32>
    %24 = vector.extract_strided_slice %21 {offsets = [0, 2, 0], sizes = [16, 16, 128], strides = [1, 1, 1]} : vector<16x18x128xf32> to vector<16x16x128xf32>
    %c1_33 = arith.constant 1 : index
    %c0_34 = arith.constant 0 : index
    %c0_35 = arith.constant 0 : index
    %25 = vector.load %arg9[%c1_33, %c0_34, %c0_35] : memref<18x18x128xf32, #tpu.memory_space<vmem>>, vector<16x18x128xf32>
    %26 = vector.extract_strided_slice %25 {offsets = [0, 0, 0], sizes = [16, 16, 128], strides = [1, 1, 1]} : vector<16x18x128xf32> to vector<16x16x128xf32>
    %27 = vector.extract_strided_slice %25 {offsets = [0, 1, 0], sizes = [16, 16, 128], strides = [1, 1, 1]} : vector<16x18x128xf32> to vector<16x16x128xf32>
    %28 = vector.extract_strided_slice %25 {offsets = [0, 2, 0], sizes = [16, 16, 128], strides = [1, 1, 1]} : vector<16x18x128xf32> to vector<16x16x128xf32>
    %c2_36 = arith.constant 2 : index
    %c0_37 = arith.constant 0 : index
    %c0_38 = arith.constant 0 : index
    %29 = vector.load %arg9[%c2_36, %c0_37, %c0_38] : memref<18x18x128xf32, #tpu.memory_space<vmem>>, vector<16x18x128xf32>
    %30 = vector.extract_strided_slice %29 {offsets = [0, 0, 0], sizes = [16, 16, 128], strides = [1, 1, 1]} : vector<16x18x128xf32> to vector<16x16x128xf32>
    %31 = vector.extract_strided_slice %29 {offsets = [0, 1, 0], sizes = [16, 16, 128], strides = [1, 1, 1]} : vector<16x18x128xf32> to vector<16x16x128xf32>
    %32 = vector.extract_strided_slice %29 {offsets = [0, 2, 0], sizes = [16, 16, 128], strides = [1, 1, 1]} : vector<16x18x128xf32> to vector<16x16x128xf32>
    %33 = tpu.concatenate %22, %23, %24, %26, %27, %28, %30, %31, %32 in 2 : vector<16x16x128xf32>, vector<16x16x128xf32>, vector<16x16x128xf32>, vector<16x16x128xf32>, vector<16x16x128xf32>, vector<16x16x128xf32>, vector<16x16x128xf32>, vector<16x16x128xf32>, vector<16x16x128xf32> -> vector<16x16x1152xf32>
    %34 = vector.shape_cast %33 : vector<16x16x1152xf32> to vector<256x1152xf32>
    %cst = arith.constant dense<0.000000e+00> : vector<256x128xf32>
    %35 = tpu.matmul %34, %20, %cst {dimension_numbers = #tpu.dot_dimension_numbers<[1], [0], [0], [1], [0, 0, 1, 1], [], []>} : vector<256x1152xf32>, vector<1152x128xf32>, vector<256x128xf32> -> vector<256x128xf32>
    %36 = vector.broadcast %10 : vector<1x128xf32> to vector<256x128xf32>
    %37 = arith.addf %35, %36 : vector<256x128xf32>
    %c0_39 = arith.constant 0 : index
    %c0_40 = arith.constant 0 : index
    %38 = vector.load %arg10[%c0_39, %c0_40] : memref<256x128xf32, #tpu.memory_space<vmem>>, vector<256x128xf32>
    tpu.vector_store %arg10[%c0_39, %c0_40], %37 {strides = array<i32>} : memref<256x128xf32, #tpu.memory_space<vmem>>, vector<256x128xf32>,
    %c0_41 = arith.constant 0 : index
    %c0_42 = arith.constant 0 : index
    %39 = vector.load %arg10[%c0_41, %c0_42] : memref<256x128xf32, #tpu.memory_space<vmem>>, vector<256x128xf32>
    %cst_43 = arith.constant dense<0.000000e+00> : vector<128xf32>
    %40 = vector.multi_reduction <add>, %39, %cst_43 [0] : vector<256x128xf32> to vector<128xf32>
    %41 = vector.shape_cast %40 : vector<128xf32> to vector<1x128xf32>
    %cst_44 = arith.constant 3.906250e-03 : f32
    %42 = vector.broadcast %cst_44 : f32 to vector<1x128xf32>
    %43 = arith.mulf %41, %42 : vector<1x128xf32>
    %44 = vector.broadcast %43 : vector<1x128xf32> to vector<256x128xf32>
    %45 = arith.subf %39, %44 : vector<256x128xf32>
    %46 = arith.mulf %45, %45 : vector<256x128xf32>
    %cst_45 = arith.constant dense<0.000000e+00> : vector<128xf32>
    %47 = vector.multi_reduction <add>, %46, %cst_45 [0] : vector<256x128xf32> to vector<128xf32>
    %48 = vector.shape_cast %47 : vector<128xf32> to vector<1x128xf32>
    %cst_46 = arith.constant 3.906250e-03 : f32
    %49 = vector.broadcast %cst_46 : f32 to vector<1x128xf32>
    %50 = arith.mulf %48, %49 : vector<1x128xf32>
    %cst_47 = arith.constant 9.99999974E-6 : f32
    %51 = vector.broadcast %cst_47 : f32 to vector<1x128xf32>
    %52 = arith.addf %50, %51 : vector<1x128xf32>
    %53 = math.rsqrt %52 : vector<1x128xf32>
    %54 = vector.broadcast %53 : vector<1x128xf32> to vector<256x128xf32>
    %55 = arith.mulf %45, %54 : vector<256x128xf32>
    %56 = vector.broadcast %6 : vector<1x128xf32> to vector<256x128xf32>
    %57 = arith.mulf %55, %56 : vector<256x128xf32>
    %58 = vector.broadcast %7 : vector<1x128xf32> to vector<256x128xf32>
    %59 = arith.addf %57, %58 : vector<256x128xf32>
    %cst_48 = arith.constant 0.000000e+00 : f32
    %60 = vector.broadcast %cst_48 : f32 to vector<256x128xf32>
    %61 = arith.maximumf %59, %60 : vector<256x128xf32>
    %62 = vector.shape_cast %61 : vector<256x128xf32> to vector<16x16x128xf32>
    %c0_49 = arith.constant 0 : index
    %c0_50 = arith.constant 0 : index
    %63 = vector.load %arg7[%c0_49, %c0_50] : memref<1x128xf32, #tpu.memory_space<vmem>>, vector<1x128xf32>
    %c1_51 = arith.constant 1 : index
    %c1_52 = arith.constant 1 : index
    %c0_53 = arith.constant 0 : index
    %64 = vector.load %arg9[%c1_51, %c1_52, %c0_53] : memref<18x18x128xf32, #tpu.memory_space<vmem>>, vector<16x16x128xf32>
    tpu.vector_store %arg9[%c1_51, %c1_52, %c0_53], %62 {strides = array<i32>} : memref<18x18x128xf32, #tpu.memory_space<vmem>>, vector<16x16x128xf32>,
    %65 = vector.extract_strided_slice %62 {offsets = [0, 1, 0], sizes = [16, 1, 128], strides = [1, 1, 1]} : vector<16x16x128xf32> to vector<16x1x128xf32>
    %c1_54 = arith.constant 1 : index
    %c0_55 = arith.constant 0 : index
    %c0_56 = arith.constant 0 : index
    %66 = vector.load %arg9[%c1_54, %c0_55, %c0_56] : memref<18x18x128xf32, #tpu.memory_space<vmem>>, vector<16x1x128xf32>
    tpu.vector_store %arg9[%c1_54, %c0_55, %c0_56], %65 {strides = array<i32>} : memref<18x18x128xf32, #tpu.memory_space<vmem>>, vector<16x1x128xf32>,
    %67 = vector.extract_strided_slice %62 {offsets = [0, 14, 0], sizes = [16, 1, 128], strides = [1, 1, 1]} : vector<16x16x128xf32> to vector<16x1x128xf32>
    %c1_57 = arith.constant 1 : index
    %c17_58 = arith.constant 17 : index
    %c0_59 = arith.constant 0 : index
    %68 = vector.load %arg9[%c1_57, %c17_58, %c0_59] : memref<18x18x128xf32, #tpu.memory_space<vmem>>, vector<16x1x128xf32>
    tpu.vector_store %arg9[%c1_57, %c17_58, %c0_59], %67 {strides = array<i32>} : memref<18x18x128xf32, #tpu.memory_space<vmem>>, vector<16x1x128xf32>,
    %c2_60 = arith.constant 2 : index
    %c0_61 = arith.constant 0 : index
    %c0_62 = arith.constant 0 : index
    %69 = vector.load %arg9[%c2_60, %c0_61, %c0_62] : memref<18x18x128xf32, #tpu.memory_space<vmem>>, vector<1x18x128xf32>
    %c0_63 = arith.constant 0 : index
    %c0_64 = arith.constant 0 : index
    %c0_65 = arith.constant 0 : index
    %70 = vector.load %arg9[%c0_63, %c0_64, %c0_65] : memref<18x18x128xf32, #tpu.memory_space<vmem>>, vector<1x18x128xf32>
    tpu.vector_store %arg9[%c0_63, %c0_64, %c0_65], %69 {strides = array<i32>} : memref<18x18x128xf32, #tpu.memory_space<vmem>>, vector<1x18x128xf32>,
    %c15_66 = arith.constant 15 : index
    %c0_67 = arith.constant 0 : index
    %c0_68 = arith.constant 0 : index
    %71 = vector.load %arg9[%c15_66, %c0_67, %c0_68] : memref<18x18x128xf32, #tpu.memory_space<vmem>>, vector<1x18x128xf32>
    %c17_69 = arith.constant 17 : index
    %c0_70 = arith.constant 0 : index
    %c0_71 = arith.constant 0 : index
    %72 = vector.load %arg9[%c17_69, %c0_70, %c0_71] : memref<18x18x128xf32, #tpu.memory_space<vmem>>, vector<1x18x128xf32>
    tpu.vector_store %arg9[%c17_69, %c0_70, %c0_71], %71 {strides = array<i32>} : memref<18x18x128xf32, #tpu.memory_space<vmem>>, vector<1x18x128xf32>,
    %c0_72 = arith.constant 0 : index
    %c0_73 = arith.constant 0 : index
    %73 = vector.load %arg6[%c0_72, %c0_73] : memref<1152x128xf32, #tpu.memory_space<vmem>>, vector<1152x128xf32>
    %c0_74 = arith.constant 0 : index
    %c0_75 = arith.constant 0 : index
    %c0_76 = arith.constant 0 : index
    %74 = vector.load %arg9[%c0_74, %c0_75, %c0_76] : memref<18x18x128xf32, #tpu.memory_space<vmem>>, vector<16x18x128xf32>
    %75 = vector.extract_strided_slice %74 {offsets = [0, 0, 0], sizes = [16, 16, 128], strides = [1, 1, 1]} : vector<16x18x128xf32> to vector<16x16x128xf32>
    %76 = vector.extract_strided_slice %74 {offsets = [0, 1, 0], sizes = [16, 16, 128], strides = [1, 1, 1]} : vector<16x18x128xf32> to vector<16x16x128xf32>
    %77 = vector.extract_strided_slice %74 {offsets = [0, 2, 0], sizes = [16, 16, 128], strides = [1, 1, 1]} : vector<16x18x128xf32> to vector<16x16x128xf32>
    %c1_77 = arith.constant 1 : index
    %c0_78 = arith.constant 0 : index
    %c0_79 = arith.constant 0 : index
    %78 = vector.load %arg9[%c1_77, %c0_78, %c0_79] : memref<18x18x128xf32, #tpu.memory_space<vmem>>, vector<16x18x128xf32>
    %79 = vector.extract_strided_slice %78 {offsets = [0, 0, 0], sizes = [16, 16, 128], strides = [1, 1, 1]} : vector<16x18x128xf32> to vector<16x16x128xf32>
    %80 = vector.extract_strided_slice %78 {offsets = [0, 1, 0], sizes = [16, 16, 128], strides = [1, 1, 1]} : vector<16x18x128xf32> to vector<16x16x128xf32>
    %81 = vector.extract_strided_slice %78 {offsets = [0, 2, 0], sizes = [16, 16, 128], strides = [1, 1, 1]} : vector<16x18x128xf32> to vector<16x16x128xf32>
    %c2_80 = arith.constant 2 : index
    %c0_81 = arith.constant 0 : index
    %c0_82 = arith.constant 0 : index
    %82 = vector.load %arg9[%c2_80, %c0_81, %c0_82] : memref<18x18x128xf32, #tpu.memory_space<vmem>>, vector<16x18x128xf32>
    %83 = vector.extract_strided_slice %82 {offsets = [0, 0, 0], sizes = [16, 16, 128], strides = [1, 1, 1]} : vector<16x18x128xf32> to vector<16x16x128xf32>
    %84 = vector.extract_strided_slice %82 {offsets = [0, 1, 0], sizes = [16, 16, 128], strides = [1, 1, 1]} : vector<16x18x128xf32> to vector<16x16x128xf32>
    %85 = vector.extract_strided_slice %82 {offsets = [0, 2, 0], sizes = [16, 16, 128], strides = [1, 1, 1]} : vector<16x18x128xf32> to vector<16x16x128xf32>
    %86 = tpu.concatenate %75, %76, %77, %79, %80, %81, %83, %84, %85 in 2 : vector<16x16x128xf32>, vector<16x16x128xf32>, vector<16x16x128xf32>, vector<16x16x128xf32>, vector<16x16x128xf32>, vector<16x16x128xf32>, vector<16x16x128xf32>, vector<16x16x128xf32>, vector<16x16x128xf32> -> vector<16x16x1152xf32>
    %87 = vector.shape_cast %86 : vector<16x16x1152xf32> to vector<256x1152xf32>
    %cst_83 = arith.constant dense<0.000000e+00> : vector<256x128xf32>
    %88 = tpu.matmul %87, %73, %cst_83 {dimension_numbers = #tpu.dot_dimension_numbers<[1], [0], [0], [1], [0, 0, 1, 1], [], []>} : vector<256x1152xf32>, vector<1152x128xf32>, vector<256x128xf32> -> vector<256x128xf32>
    %89 = vector.broadcast %63 : vector<1x128xf32> to vector<256x128xf32>
    %90 = arith.addf %88, %89 : vector<256x128xf32>
    %c0_84 = arith.constant 0 : index
    %c0_85 = arith.constant 0 : index
    %91 = vector.load %arg10[%c0_84, %c0_85] : memref<256x128xf32, #tpu.memory_space<vmem>>, vector<256x128xf32>
    tpu.vector_store %arg10[%c0_84, %c0_85], %90 {strides = array<i32>} : memref<256x128xf32, #tpu.memory_space<vmem>>, vector<256x128xf32>,
    %c0_86 = arith.constant 0 : index
    %c0_87 = arith.constant 0 : index
    %92 = vector.load %arg10[%c0_86, %c0_87] : memref<256x128xf32, #tpu.memory_space<vmem>>, vector<256x128xf32>
    %cst_88 = arith.constant dense<0.000000e+00> : vector<128xf32>
    %93 = vector.multi_reduction <add>, %92, %cst_88 [0] : vector<256x128xf32> to vector<128xf32>
    %94 = vector.shape_cast %93 : vector<128xf32> to vector<1x128xf32>
    %cst_89 = arith.constant 3.906250e-03 : f32
    %95 = vector.broadcast %cst_89 : f32 to vector<1x128xf32>
    %96 = arith.mulf %94, %95 : vector<1x128xf32>
    %97 = vector.broadcast %96 : vector<1x128xf32> to vector<256x128xf32>
    %98 = arith.subf %92, %97 : vector<256x128xf32>
    %99 = arith.mulf %98, %98 : vector<256x128xf32>
    %cst_90 = arith.constant dense<0.000000e+00> : vector<128xf32>
    %100 = vector.multi_reduction <add>, %99, %cst_90 [0] : vector<256x128xf32> to vector<128xf32>
    %101 = vector.shape_cast %100 : vector<128xf32> to vector<1x128xf32>
    %cst_91 = arith.constant 3.906250e-03 : f32
    %102 = vector.broadcast %cst_91 : f32 to vector<1x128xf32>
    %103 = arith.mulf %101, %102 : vector<1x128xf32>
    %cst_92 = arith.constant 9.99999974E-6 : f32
    %104 = vector.broadcast %cst_92 : f32 to vector<1x128xf32>
    %105 = arith.addf %103, %104 : vector<1x128xf32>
    %106 = math.rsqrt %105 : vector<1x128xf32>
    %107 = vector.broadcast %106 : vector<1x128xf32> to vector<256x128xf32>
    %108 = arith.mulf %98, %107 : vector<256x128xf32>
    %109 = vector.broadcast %8 : vector<1x128xf32> to vector<256x128xf32>
    %110 = arith.mulf %108, %109 : vector<256x128xf32>
    %111 = vector.broadcast %9 : vector<1x128xf32> to vector<256x128xf32>
    %112 = arith.addf %110, %111 : vector<256x128xf32>
    %113 = vector.shape_cast %112 : vector<256x128xf32> to vector<16x16x128xf32>
    %114 = arith.addf %113, %1 : vector<16x16x128xf32>
    %c0_93 = arith.constant 0 : index
    %c0_94 = arith.constant 0 : index
    %c0_95 = arith.constant 0 : index
    %c0_96 = arith.constant 0 : index
    %115 = vector.load %arg8[%c0_93, %c0_94, %c0_95, %c0_96] : memref<1x16x16x128xf32, #tpu.memory_space<vmem>>, vector<1x16x16x128xf32>
    %116 = vector.shape_cast %115 : vector<1x16x16x128xf32> to vector<16x16x128xf32>
    %117 = vector.shape_cast %114 : vector<16x16x128xf32> to vector<1x16x16x128xf32>
    tpu.vector_store %arg8[%c0_93, %c0_94, %c0_95, %c0_96], %117 {strides = array<i32>} : memref<1x16x16x128xf32, #tpu.memory_space<vmem>>, vector<1x16x16x128xf32>,
    return
  }
  func.func @transform_0(%arg0: i32) -> (i32, i32, i32, i32) {
    %c0_i32 = arith.constant 0 : i32
    %c0_i32_0 = arith.constant 0 : i32
    %c0_i32_1 = arith.constant 0 : i32
    %c0_i32_2 = arith.constant 0 : i32
    return %arg0, %c0_i32, %c0_i32_0, %c0_i32_1 : i32, i32, i32, i32
  }
  func.func @transform_1(%arg0: i32) -> (i32, i32, i32) {
    %c0_i32 = arith.constant 0 : i32
    %c0_i32_0 = arith.constant 0 : i32
    %c0_i32_1 = arith.constant 0 : i32
    return %arg0, %c0_i32, %c0_i32_0 : i32, i32, i32
  }
  func.func @transform_2(%arg0: i32) -> (i32, i32, i32) {
    %c0_i32 = arith.constant 0 : i32
    %c0_i32_0 = arith.constant 0 : i32
    %c0_i32_1 = arith.constant 0 : i32
    return %arg0, %c0_i32, %c0_i32_0 : i32, i32, i32
  }
  func.func @transform_3(%arg0: i32) -> (i32, i32) {
    %c0_i32 = arith.constant 0 : i32
    %c0_i32_0 = arith.constant 0 : i32
    %c0_i32_1 = arith.constant 0 : i32
    return %c0_i32, %c0_i32_0 : i32, i32
  }
  func.func @transform_4(%arg0: i32) -> (i32, i32) {
    %c0_i32 = arith.constant 0 : i32
    %c0_i32_0 = arith.constant 0 : i32
    %c0_i32_1 = arith.constant 0 : i32
    return %c0_i32, %c0_i32_0 : i32, i32
  }
  func.func @transform_5(%arg0: i32) -> (i32, i32) {
    %c0_i32 = arith.constant 0 : i32
    %c0_i32_0 = arith.constant 0 : i32
    %c0_i32_1 = arith.constant 0 : i32
    return %c0_i32, %c0_i32_0 : i32, i32
  }
  func.func @transform_6(%arg0: i32) -> (i32, i32) {
    %c0_i32 = arith.constant 0 : i32
    %c0_i32_0 = arith.constant 0 : i32
    %c0_i32_1 = arith.constant 0 : i32
    return %c0_i32, %c0_i32_0 : i32, i32
  }
  func.func @transform_7(%arg0: i32) -> (i32, i32, i32, i32) {
    %c0_i32 = arith.constant 0 : i32
    %c0_i32_0 = arith.constant 0 : i32
    %c0_i32_1 = arith.constant 0 : i32
    %c0_i32_2 = arith.constant 0 : i32
    return %arg0, %c0_i32, %c0_i32_0, %c0_i32_1 : i32, i32, i32, i32
  }
}

</mosaic_0001>

<bundles_post_ra>
// kernel: residual_block.1
= control target key start
LH: loop header
LB: loop body
LE: loop exit
PB: predicated region body
PF: predicated region fallthrough
CT: control target
= control target key end

     0   :  { %s5713_s24 = smov 0   ;;  %s10171_s0 = inlined_call_operand.vmem [shape: f32[2,16,16,128], index: 0, kind: input, shape index: {}]   ;;  %s10172_s1 = inlined_call_operand.vmem [shape: f32[2,2,128], index: 1, kind: input, shape index: {}]   ;;  %s10173_s2 = inlined_call_operand.vmem [shape: f32[2,2,128], index: 2, kind: input, shape index: {}]   ;;  %s10174_s3 = inlined_call_operand.vmem [shape: f32[1152,128], index: 3, kind: input, shape index: {}]   ;;  %s10175_s4 = inlined_call_operand.vmem [shape: f32[1,128], index: 4, kind: input, shape index: {}]   ;;  %s10176_s5 = inlined_call_operand.vmem [shape: f32[1152,128], index: 5, kind: input, shape index: {}]   ;;  %s10177_s6 = inlined_call_operand.vmem [shape: f32[1,128], index: 6, kind: input, shape index: {}]   ;;  %s10178_s7 = inlined_call_operand.vmem [shape: f32[2,16,16,128], index: 7, kind: output, shape index: {}]  }
   0x1 LB: > { %s5556_s25 = sadd.s32 4294967295, %s5671_s24   ;;  %p5560_p0 = scmp.ge.s32.totalorder %s5671_s24, 1  ;;  %s5671_s24 = sphi %s5713_s24, %s17_s24  }
   0x2   : > { %p255_p1 = scmp.lt.s32.totalorder %s5671_s24, 3 }
   0x4   : > { %p256_p2 = pnand %p5560_p0, %p255_p1 }
   0x6   : > { %259 = sbr.rel (%p256_p2) target bundleno = 2041 (0x7f9), region = 48 }
   0xb   : > { %v443_v0 = vld [vmem:[%s10174_s3 + $0x78] sm:$0xff]  ;;  %v442_v1 = vld [vmem:[%s10174_s3 + $0x70] sm:$0xff]  ;;  %p295_p3 = scmp.lt.s32.totalorder %s5556_s25, 1  ;;  %v441_v4 = vld [vmem:[%s10174_s3 + $0x68] sm:$0xff]  ;;  %vm764_vm0 = vcmask 1046528   ;;  %vm877_vm1 = vcmask 1045504  }
   0xc   : > { %v459_v2 = vld [vmem:[%s10174_s3 + $0xf8] sm:$0xff]  ;;  %5571 = vmatpush.msra.mxu2 %v443_v0  ;;  %v458_v3 = vld [vmem:[%s10174_s3 + $0xf0] sm:$0xff]  ;;  %v457_v5 = vld [vmem:[%s10174_s3 + $0xe8] sm:$0xff]  ;;  %1537 = vmatpush.msra.mxu0 %v443_v0 }
   0xd   : > { %5587 = vmatpush.msra.mxu3 %v459_v2  ;;  %1650 = vmatpush.msra.mxu1 %v459_v2  ;;  %s10619_s25 = smov (!%p295_p3, %s5556_s25), 1  ;;  %v440_v6 = vld [vmem:[%s10174_s3 + $0x60] sm:$0xff]  ;;  %v439_v8 = vld [vmem:[%s10174_s3 + $0x58] sm:$0xff]  ;;  %v438_v10 = vld [vmem:[%s10174_s3 + $0x50] sm:$0xff] }
   0xe   : > { %5572 = vmatpush.msra.mxu2 %v442_v1  ;;  %v456_v7 = vld [vmem:[%s10174_s3 + $0xe0] sm:$0xff]  ;;  %1538 = vmatpush.msra.mxu0 %v442_v1  ;;  %s5569_s19 = sshll.u32 %s10619_s25, 8  ;;  %v455_v9 = vld [vmem:[%s10174_s3 + $0xd8] sm:$0xff]  ;;  %v454_v11 = vld [vmem:[%s10174_s3 + $0xd0] sm:$0xff] }
   0xf   : > { %5588 = vmatpush.msra.mxu3 %v458_v3  ;;  %1651 = vmatpush.msra.mxu1 %v458_v3  ;;  %s5759_s28 = scalar_lea.vmem %s10171_s0, %s5569_s19  ;;  %v437_v12 = vld [vmem:[%s10174_s3 + $0x48] sm:$0xff]  ;;  %v436_v15 = vld [vmem:[%s10174_s3 + $0x40] sm:$0xff]  ;;  %v435_v19 = vld [vmem:[%s10174_s3 + $0x38] sm:$0xff]  ;;  %s10016_s29 = scalar_lea.vmem %s10178_s7, %s5569_s19 }
  0x10   : > { %5573 = vmatpush.msra.mxu2 %v441_v4  ;;  %1539 = vmatpush.msra.mxu0 %v441_v4  ;;  %v453_v13 = vld [vmem:[%s10174_s3 + $0xc8] sm:$0xff]  ;;  %v5774_v14 = vld [vmem:[%s5759_s28 + $0x70] sm:$0xff]  ;;  %v452_v16 = vld [vmem:[%s10174_s3 + $0xc0] sm:$0xff] }
  0x11   : > { %5589 = vmatpush.msra.mxu3 %v457_v5  ;;  %1652 = vmatpush.msra.mxu1 %v457_v5  ;;  %10267 = vst [vmem:[#allocation4_spill] sm:$0xff] %v5774_v14  ;;  %v5785_v17 = vld [vmem:[%s5759_s28 + $0x78] sm:$0xff]  ;;  %v5789_v18 = vld [vmem:[%s5759_s28 + $0x10] sm:$0xff]  ;;  %v5810_v24 = vld [vmem:[%s5759_s28 + $0x80] sm:$0xff] }
  0x12   : > { %5574 = vmatpush.msra.mxu2 %v440_v6  ;;  %1540 = vmatpush.msra.mxu0 %v440_v6  ;;  %363 = vst [vmem:[#allocation2 + $0xc1] sm:$0xff] %v5774_v14  ;;  %v451_v20 = vld [vmem:[%s10174_s3 + $0xb8] sm:$0xff]  ;;  %v434_v22 = vld [vmem:[%s10174_s3 + $0x30] sm:$0xff]  ;;  %v433_v25 = vld [vmem:[%s10174_s3 + $0x28] sm:$0xff] }
  0x13   : > { %5590 = vmatpush.msra.mxu3 %v456_v7  ;;  %1653 = vmatpush.msra.mxu1 %v456_v7  ;;  %388 = vst [vmem:[#allocation2 + $0xbf] sm:$0x2] %v5774_v14  ;;  %v5799_v21 = vld [vmem:[%s5759_s28 + $0x18] sm:$0xff]  ;;  %v450_v23 = vld [vmem:[%s10174_s3 + $0xb0] sm:$0xff]  ;;  %v449_v26 = vld [vmem:[%s10174_s3 + $0xa8] sm:$0xff] }
  0x14   : > { %5575 = vmatpush.msra.mxu2 %v439_v8  ;;  %1541 = vmatpush.msra.mxu0 %v439_v8  ;;  %10268 = vst [vmem:[#allocation5_spill] sm:$0xff] %v5785_v17  ;;  %v5821_v27 = vld [vmem:[%s5759_s28 + $0x88] sm:$0xff]  ;;  %v432_v28 = vld [vmem:[%s10174_s3 + $0x20] sm:$0xff]  ;;  %v431_v31 = vld [vmem:[%s10174_s3 + $0x18] sm:$0xff] }
  0x15   : > { %5591 = vmatpush.msra.mxu3 %v455_v9  ;;  %1654 = vmatpush.msra.mxu1 %v455_v9  ;;  %364 = vst [vmem:[#allocation2 + $0xc9] sm:$0xff] %v5785_v17  ;;  %v448_v29 = vld [vmem:[%s10174_s3 + $0xa0] sm:$0xff]  ;;  %v447_v32 = vld [vmem:[%s10174_s3 + $0x98] sm:$0xff]  ;;  %v5845_v35 = vld [vmem:[%s5759_s28 + $0x8] sm:$0xff] }
  0x16   : > { %5576 = vmatpush.msra.mxu2 %v438_v10  ;;  %1542 = vmatpush.msra.mxu0 %v438_v10  ;;  %10269 = vst [vmem:[#allocation6_spill] sm:$0xff] %v5789_v18  ;;  %v5832_v30 = vld [vmem:[%s5759_s28] sm:$0xff]  ;;  %v430_v36 = vld [vmem:[%s10174_s3 + $0x10] sm:$0xff]  ;;  %v429_v42 = vld [vmem:[%s10174_s3 + $0x8] sm:$0xff] }
  0x17   : > { %5592 = vmatpush.msra.mxu3 %v454_v11  ;;  %1655 = vmatpush.msra.mxu1 %v454_v11  ;;  %404 = vst [vmem:[#allocation2 + $0xcb] sm:$0x40] %v5785_v17  ;;  %v446_v37 = vld [vmem:[%s10174_s3 + $0x90] sm:$0xff]  ;;  %v445_v43 = vld [vmem:[%s10174_s3 + $0x88] sm:$0xff]  ;;  %v5872_v46 = vld [vmem:[%s5759_s28 + $0x98] sm:$0xff] }
  0x18   : > { %5577 = vmatpush.msra.mxu2 %v437_v12  ;;  %1543 = vmatpush.msra.mxu0 %v437_v12  ;;  %10270 = vst [vmem:[#allocation7_spill] sm:$0xff] %v5799_v21  ;;  %v5858_v41 = vld [vmem:[%s5759_s28 + $0x90] sm:$0xff]  ;;  %v428_v47 = vld [vmem:[%s10174_s3] sm:$0xff]  ;;  %v475_v49 = vld [vmem:[%s10174_s3 + $0x178] sm:$0xff] }
  0x19   : > { %5593 = vmatpush.msra.mxu3 %v453_v13  ;;  %1656 = vmatpush.msra.mxu1 %v453_v13  ;;  %351 = vst [vmem:[#allocation2 + $0x31] sm:$0xff] %v5789_v18  ;;  %v444_v48 = vld [vmem:[%s10174_s3 + $0x80] sm:$0xff]  ;;  %v491_v51 = vld [vmem:[%s10174_s3 + $0x1f8] sm:$0xff]  ;;  %v474_v55 = vld [vmem:[%s10174_s3 + $0x170] sm:$0xff] }
  0x1a   : > { %5578 = vmatpush.msra.mxu2 %v436_v15  ;;  %1544 = vmatpush.msra.mxu0 %v436_v15  ;;  %382 = vst [vmem:[#allocation2 + $0x2f] sm:$0x2] %v5789_v18  ;;  %v596_v33 = vld [vmem:[#allocation2 + $0xc0] sm:$0xff]  ;;  %v490_v57 = vld [vmem:[%s10174_s3 + $0x1f0] sm:$0xff]  ;;  %v507_v58 = vld [vmem:[%s10174_s3 + $0x278] sm:$0xff] }
  0x1b   : > { %5594 = vmatpush.msra.mxu3 %v452_v16  ;;  %1657 = vmatpush.msra.mxu1 %v452_v16  ;;  %10271 = vst [vmem:[#allocation8_spill] sm:$0xff] %v5810_v24  ;;  %v805_v38 = vrot.slane %v596_v33, 1  ;;  %v473_v60 = vld [vmem:[%s10174_s3 + $0x168] sm:$0xff]  ;;  %v506_v62 = vld [vmem:[%s10174_s3 + $0x270] sm:$0xff]  ;;  %v472_v0 = vld [vmem:[%s10174_s3 + $0x160] sm:$0xff] }
  0x1c   : > { %5579 = vmatpush.msra.mxu2 %v435_v19  ;;  %352 = vst [vmem:[#allocation2 + $0x39] sm:$0xff] %v5799_v21  ;;  %1545 = vmatpush.msra.mxu0 %v435_v19  ;;  %v5841_v34 = vld [vmem:[#allocation2 + $0xc8] sm:$0xff]  ;;  %v488_v3 = vld [vmem:[%s10174_s3 + $0x1e0] sm:$0xff]  ;;  %v471_v9 = vld [vmem:[%s10174_s3 + $0x158] sm:$0xff] }
  0x1d   : > { %5595 = vmatpush.msra.mxu3 %v451_v20  ;;  %1658 = vmatpush.msra.mxu1 %v451_v20  ;;  %398 = vst [vmem:[#allocation2 + $0x3b] sm:$0x40] %v5799_v21  ;;  %v806_v39 = vrot.slane %v5841_v34, 1  ;;  %v489_v61 = vld [vmem:[%s10174_s3 + $0x1e8] sm:$0xff]  ;;  %v5935_v7 = vld [vmem:[%s5759_s28 + $0xa0] sm:$0xff]  ;;  %v487_v10 = vld [vmem:[%s10174_s3 + $0x1d8] sm:$0xff] }
  0x1e   : > { %10272 = vst [vmem:[#allocation9_spill] sm:$0xff] %v5821_v27  ;;  %5580 = vmatpush.msra.mxu2 %v434_v22  ;;  %1546 = vmatpush.msra.mxu0 %v434_v22  ;;  %v598_v52 = vld [vmem:[#allocation2 + $0xd0] sm:$0x3]  ;;  %v505_v4 = vld [vmem:[%s10174_s3 + $0x268] sm:$0xff]  ;;  %v504_v13 = vld [vmem:[%s10174_s3 + $0x260] sm:$0xff] }
  0x1f   : > { %5596 = vmatpush.msra.mxu3 %v450_v23  ;;  %365 = vst [vmem:[#allocation2 + $0xd9] sm:$0xff] %v5810_v24  ;;  %1659 = vmatpush.msra.mxu1 %v450_v23  ;;  %v807_v50 = vsel %vm764_vm0, %v805_v38, %v806_v39  ;;  %v808_v56 = vrot.slane %v598_v52, 1  ;;  %v5938_v8 = vld [vmem:[%s5759_s28 + $0xa8] sm:$0xff]  ;;  %v470_v15 = vld [vmem:[%s10174_s3 + $0x150] sm:$0xff]  ;;  %v503_v23 = vld [vmem:[%s10174_s3 + $0x258] sm:$0xff] }
  0x20   : > { %389 = vst [vmem:[#allocation2 + $0xd7] sm:$0x2] %v5810_v24  ;;  %5581 = vmatpush.msra.mxu2 %v433_v25  ;;  %1547 = vmatpush.msra.mxu0 %v433_v25  ;;  %v486_v19 = vld [vmem:[%s10174_s3 + $0x1d0] sm:$0xff]  ;;  %v5994_v38 = vld [vmem:[%s5759_s28 + $0x28] sm:$0xff] }
  0x21   : > { %10273 = vst [vmem:[#allocation10_spill] sm:$0xff] %v5832_v30  ;;  %5597 = vmatpush.msra.mxu3 %v449_v26  ;;  %1660 = vmatpush.msra.mxu1 %v449_v26  ;;  %v5866_v44 = vld [vmem:[#allocation2 + $0x30] sm:$0xff]  ;;  %v809_v1 = vsel %vm764_vm0, %v806_v39, %v808_v56  ;;  %v501_v52 = vld [vmem:[%s10174_s3 + $0x248] sm:$0xff] }
  0x22   : > { %366 = vst [vmem:[#allocation2 + $0xe1] sm:$0xff] %v5821_v27  ;;  %5582 = vmatpush.msra.mxu2 %v432_v28  ;;  %1548 = vmatpush.msra.mxu0 %v432_v28  ;;  %v765_v53 = vrot.slane %v5866_v44, 1  ;;  %v643_v21 = vld [vmem:[#allocation2 + $0xd0] sm:$0x3] }
  0x23   : > { %405 = vst [vmem:[#allocation2 + $0xe3] sm:$0x40] %v5821_v27  ;;  %5598 = vmatpush.msra.mxu3 %v448_v29  ;;  %1661 = vmatpush.msra.mxu1 %v448_v29  ;;  %v5868_v45 = vld [vmem:[#allocation2 + $0x38] sm:$0xff] }
  0x24   : > { %10274 = vst [vmem:[#allocation11_spill] sm:$0xff] %v5845_v35  ;;  %5583 = vmatpush.msra.mxu2 %v431_v31  ;;  %v416_v40 = vld [vmem:[#allocation2 + $0x40] sm:$0x3]  ;;  %1549 = vmatpush.msra.mxu0 %v431_v31  ;;  %v5891_v54 = vrot.slane %v5868_v45, 1  ;;  %v469_v31 = vld [vmem:[%s10174_s3 + $0x148] sm:$0xff] }
  0x25   : > { %349 = vst [vmem:[#allocation2 + $0x19] sm:$0xff] %v5832_v30  ;;  %5599 = vmatpush.msra.mxu3 %v447_v32  ;;  %1662 = vmatpush.msra.mxu1 %v447_v32  ;;  %v485_v32 = vld [vmem:[%s10174_s3 + $0x1c8] sm:$0xff] }
  0x26   : > { %381 = vst [vmem:[#allocation2 + $0x17] sm:$0x2] %v5832_v30  ;;  %5584 = vmatpush.msra.mxu2 %v430_v36  ;;  %1550 = vmatpush.msra.mxu0 %v430_v36  ;;  %v5906_v59 = vsel %vm764_vm0, %v765_v53, %v5891_v54  ;;  %v5986_v36 = vld [vmem:[%s5759_s28 + $0x20] sm:$0xff] }
  0x27   : > { %350 = vst [vmem:[#allocation2 + $0x21] sm:$0xff] %v5845_v35  ;;  %5600 = vmatpush.msra.mxu3 %v446_v37  ;;  %1663 = vmatpush.msra.mxu1 %v446_v37  ;;  %v599_v2 = vld [vmem:[#allocation2 + $0xd8] sm:$0xff]  ;;  %v5617_v30 = vld [vmem:[#allocation2 + $0xc0] sm:$0xff] }
  0x28   : > { %10275 = vst [vmem:[#allocation12_spill] sm:$0xff] %v5858_v41  ;;  %5585 = vmatpush.msra.mxu2 %v429_v42  ;;  %1551 = vmatpush.msra.mxu0 %v429_v42  ;;  %v810_v11 = vrot.slane %v599_v2, 1 }
  0x29   : > { %419 = vst [vmem:[#allocation2 + $0x10] sm:$0x3] %v416_v40  ;;  %5601 = vmatpush.msra.mxu3 %v445_v43  ;;  %1664 = vmatpush.msra.mxu1 %v445_v43  ;;  %v5931_v5 = vld [vmem:[#allocation2 + $0xe0] sm:$0xff] }
  0x2a   : > { %397 = vst [vmem:[#allocation2 + $0x23] sm:$0x40] %v5845_v35  ;;  %5586 = vmatpush.msra.mxu2 %v428_v47  ;;  %1552 = vmatpush.msra.mxu0 %v428_v47  ;;  %v811_v12 = vrot.slane %v5931_v5, 1  ;;  %v601_v26 = vld [vmem:[#allocation2 + $0xe8] sm:$0x3] }
  0x2b   : > { %10276 = vst [vmem:[#allocation13_spill] sm:$0xff] %v5872_v46  ;;  %5602 = vmatpush.msra.mxu3 %v444_v48  ;;  %1601 = vmatmul.f32.vlgmr.msra.gmra.mxu2 %v596_v33  ;;  %v813_v33 = vrot.slane %v601_v26, 1 }
  0x2c   : > { %367 = vst [vmem:[#allocation2 + $0xf1] sm:$0xff] %v5858_v41  ;;  %1714 = vmatmul.f32.vlgmr.msra.gmra.mxu3 %v807_v50  ;;  %1763 = vmatpush.msrb.mxu2 %v475_v49  ;;  %v812_v25 = vsel %vm764_vm0, %v810_v11, %v811_v12  ;;  %v6009_v49 = vld [vmem:[%s5759_s28 + $0xb8] sm:$0xff]  ;;  %v468_v50 = vld [vmem:[%s10174_s3 + $0x140] sm:$0xff]  ;;  %v6058_v11 = vld [vmem:[%s5759_s28 + $0xc8] sm:$0xff] }
  0x2d   : > { %390 = vst [vmem:[#allocation2 + $0xef] sm:$0x2] %v5858_v41  ;;  %1876 = vmatpush.msrb.mxu3 %v491_v51  ;;  %1665 = vmatpush.msra.mxu1 %v444_v48  ;;  %v5964_v20 = vld [vmem:[#allocation2 + $0x18] sm:$0xff]  ;;  %v814_v40 = vsel %vm764_vm0, %v811_v12, %v813_v33  ;;  %v6006_v48 = vld [vmem:[%s5759_s28 + $0xb0] sm:$0xff]  ;;  %v484_v51 = vld [vmem:[%s10174_s3 + $0x1c0] sm:$0xff] }
  0x2e   : > { %368 = vst [vmem:[#allocation2 + $0xf9] sm:$0xff] %v5872_v46  ;;  %1764 = vmatpush.msrb.mxu2 %v474_v55  ;;  %1553 = vmatmul.f32.vlgmr.msra.gmra.mxu0 %v5866_v44  ;;  %v5966_v22 = vld [vmem:[#allocation2 + $0x20] sm:$0xff]  ;;  %v770_v28 = vrot.slane %v5964_v20, 1  ;;  %v466_v12 = vld [vmem:[%s10174_s3 + $0x130] sm:$0xff] }
  0x2f   : > { %406 = vst [vmem:[#allocation2 + $0xfb] sm:$0x40] %v5872_v46  ;;  %1877 = vmatpush.msrb.mxu3 %v490_v57  ;;  %1989 = vmatpush.msrb.mxu0 %v507_v58  ;;  %v5974_v29 = vrot.slane %v5966_v22, 1 }
  0x30   : > { %v5918_v63 = vld [vmem:[#allocation2 + $0x10] sm:$0x3]  ;;  %1666 = vmatmul.f32.vlgmr.msra.gmra.mxu1 %v5906_v59  ;;  %1765 = vmatpush.msrb.mxu2 %v473_v60  ;;  %10277 = vst [vmem:[#allocation14_spill] sm:$0xff] %v5935_v7  ;;  %v467_v60 = vld [vmem:[%s10174_s3 + $0x138] sm:$0xff] }
  0x31   : > { %1878 = vmatpush.msrb.mxu3 %v489_v61  ;;  %1990 = vmatpush.msrb.mxu0 %v506_v62  ;;  %v768_v6 = vrot.slane %v5918_v63, 1  ;;  %10278 = vst [vmem:[#allocation15_spill] sm:$0xff] %v5938_v8  ;;  %v5990_v37 = vsel %vm764_vm0, %v770_v28, %v5974_v29  ;;  %v5997_v39 = vld [vmem:[#allocation2 + $0x28] sm:$0x3]  ;;  %v483_v61 = vld [vmem:[%s10174_s3 + $0x1b8] sm:$0xff] }
  0x32   : > { %1766 = vmatpush.msrb.mxu2 %v472_v0  ;;  %369 = vst [vmem:[#allocation2 + $0x109] sm:$0xff] %v5935_v7  ;;  %v773_v47 = vrot.slane %v5997_v39, 1  ;;  %v500_v0 = vld [vmem:[%s10174_s3 + $0x240] sm:$0xff] }
  0x33   : > { %1604 = vmatmul.f32.gmra.mxu2 %v5841_v34  ;;  %391 = vst [vmem:[#allocation2 + $0x107] sm:$0x2] %v5935_v7  ;;  %1879 = vmatpush.msrb.mxu3 %v488_v3  ;;  %v769_v16 = vsel %vm764_vm0, %v5891_v54, %v768_v6  ;;  %v502_v34 = vld [vmem:[%s10174_s3 + $0x250] sm:$0xff]  ;;  %v6046_v3 = vld [vmem:[#allocation2 + $0x40] sm:$0x3] }
  0x34   : > { %1717 = vmatmul.f32.gmra.mxu3 %v809_v1  ;;  %1991 = vmatpush.msrb.mxu0 %v505_v4  ;;  %370 = vst [vmem:[#allocation2 + $0x111] sm:$0xff] %v5938_v8  ;;  %v602_v42 = vld [vmem:[#allocation2 + $0xf0] sm:$0xff]  ;;  %v774_v56 = vsel %vm764_vm0, %v5974_v29, %v773_v47  ;;  %v6095_v47 = vld [vmem:[%s5759_s28 + $0x40] sm:$0xff] }
  0x35   : > { %1767 = vmatpush.msrb.mxu2 %v471_v9  ;;  %407 = vst [vmem:[#allocation2 + $0x113] sm:$0x40] %v5938_v8  ;;  %1880 = vmatpush.msrb.mxu3 %v487_v10  ;;  %v603_v43 = vld [vmem:[#allocation2 + $0xf8] sm:$0xff]  ;;  %v815_v53 = vrot.slane %v602_v42, 1  ;;  %v6039_v1 = vld [vmem:[%s5759_s28 + $0x30] sm:$0xff]  ;;  %v778_v9 = vrot.slane %v6046_v3, 1 }
  0x36   : > { %1556 = vmatmul.f32.gmra.mxu0 %v5868_v45  ;;  %10279 = vst [vmem:[#allocation16_spill] sm:$0xff] %v5986_v36  ;;  %v816_v55 = vrot.slane %v603_v43, 1  ;;  %v604_v58 = vld [vmem:[#allocation2 + $0x100] sm:$0x3] }
  0x37   : > { %1992 = vmatpush.msrb.mxu0 %v504_v13  ;;  %1768 = vmatpush.msrb.mxu2 %v470_v15  ;;  %353 = vst [vmem:[#allocation2 + $0x49] sm:$0xff] %v5986_v36  ;;  %v818_v62 = vrot.slane %v604_v58, 1  ;;  %v6055_v10 = vld [vmem:[%s5759_s28 + $0xc0] sm:$0xff]  ;;  %v482_v13 = vld [vmem:[%s10174_s3 + $0x1b0] sm:$0xff]  ;;  %v499_v15 = vld [vmem:[%s10174_s3 + $0x238] sm:$0xff] }
  0x38   : > { %1669 = vmatmul.f32.gmra.mxu1 %v769_v16  ;;  %1881 = vmatpush.msrb.mxu3 %v486_v19  ;;  %10280 = vst [vmem:[#allocation17_spill] sm:$0xff] %v5994_v38  ;;  %v817_v57 = vsel %vm764_vm0, %v815_v53, %v816_v55  ;;  %v6115_v58 = vld [vmem:[%s5759_s28 + $0xd0] sm:$0xff] }
  0x39   : > { %1993 = vmatpush.msrb.mxu0 %v503_v23  ;;  %1769 = vmatpush.msrb.mxu2 %v469_v31  ;;  %383 = vst [vmem:[#allocation2 + $0x47] sm:$0x2] %v5986_v36  ;;  %v819_v4 = vsel %vm764_vm0, %v816_v55, %v818_v62  ;;  %v779_v23 = vsel %vm764_vm0, %v5891_v54, %v778_v9  ;;  %v480_v62 = vld [vmem:[%s10174_s3 + $0x1a0] sm:$0xff] }
  0x3a   : > { %1882 = vmatpush.msrb.mxu3 %v485_v32  ;;  %354 = vst [vmem:[#allocation2 + $0x51] sm:$0xff] %v5994_v38 }
  0x3b   : > { %1607 = vmatmul.f32.gmra.mxu2 %v599_v2  ;;  %1994 = vmatpush.msrb.mxu0 %v502_v34  ;;  %399 = vst [vmem:[#allocation2 + $0x53] sm:$0x40] %v5994_v38  ;;  %v6043_v2 = vld [vmem:[%s5759_s28 + $0x38] sm:$0xff]  ;;  %v606_v6 = vld [vmem:[#allocation2 + $0x110] sm:$0xff]  ;;  %v465_v34 = vld [vmem:[%s10174_s3 + $0x128] sm:$0xff] }
  0x3c   : > { %1720 = vmatmul.f32.gmra.mxu3 %v812_v25  ;;  %10281 = vst [vmem:[#allocation18_spill] sm:$0xff] %v6006_v48  ;;  %1770 = vmatpush.msrb.mxu2 %v468_v50  ;;  %v821_v19 = vrot.slane %v606_v6, 1  ;;  %v607_v31 = vld [vmem:[#allocation2 + $0x118] sm:$0x3] }
  0x3d   : > { %10282 = vst [vmem:[#allocation19_spill] sm:$0xff] %v6009_v49  ;;  %1883 = vmatpush.msrb.mxu3 %v484_v51  ;;  %1995 = vmatpush.msrb.mxu0 %v501_v52  ;;  %v6103_v51 = vld [vmem:[%s5759_s28 + $0x48] sm:$0xff] }
  0x3e   : > { %1559 = vmatmul.f32.gmra.mxu0 %v5964_v20  ;;  %371 = vst [vmem:[#allocation2 + $0x121] sm:$0xff] %v6006_v48  ;;  %1771 = vmatpush.msrb.mxu2 %v467_v60  ;;  %v6118_v60 = vld [vmem:[%s5759_s28 + $0xd8] sm:$0xff] }
  0x3f   : > { %392 = vst [vmem:[#allocation2 + $0x11f] sm:$0x2] %v6006_v48  ;;  %1884 = vmatpush.msrb.mxu3 %v483_v61  ;;  %1996 = vmatpush.msrb.mxu0 %v500_v0  ;;  %v464_v61 = vld [vmem:[%s10174_s3 + $0x120] sm:$0xff]  ;;  %v497_v0 = vld [vmem:[%s10174_s3 + $0x228] sm:$0xff] }
  0x40   : > { %1672 = vmatmul.f32.gmra.mxu1 %v5990_v37  ;;  %372 = vst [vmem:[#allocation2 + $0x129] sm:$0xff] %v6009_v49  ;;  %1772 = vmatpush.msrb.mxu2 %v466_v12  ;;  %v6076_v25 = vld [vmem:[#allocation2 + $0x48] sm:$0xff] }
  0x41   : > { %408 = vst [vmem:[#allocation2 + $0x12b] sm:$0x40] %v6009_v49  ;;  %1885 = vmatpush.msrb.mxu3 %v482_v13  ;;  %1997 = vmatpush.msrb.mxu0 %v499_v15  ;;  %v6078_v26 = vld [vmem:[#allocation2 + $0x50] sm:$0xff]  ;;  %v780_v32 = vrot.slane %v6076_v25, 1 }
  0x42   : > { %10283 = vst [vmem:[#allocation20_spill] sm:$0xff] %v6039_v1  ;;  %v6083_v33 = vrot.slane %v6078_v26, 1  ;;  %1773 = vmatpush.msrb.mxu2 %v465_v34  ;;  %v6106_v52 = vld [vmem:[#allocation2 + $0x58] sm:$0x3]  ;;  %v6155_v34 = vld [vmem:[%s5759_s28 + $0x50] sm:$0xff] }
  0x43   : > { %1610 = vmatmul.f32.gmra.mxu2 %v5931_v5  ;;  %355 = vst [vmem:[#allocation2 + $0x61] sm:$0xff] %v6039_v1  ;;  %v605_v5 = vld [vmem:[#allocation2 + $0x108] sm:$0xff] }
  0x44   : > { %1723 = vmatmul.f32.gmra.mxu3 %v814_v40  ;;  %10284 = vst [vmem:[#allocation21_spill] sm:$0xff] %v6043_v2  ;;  %v820_v16 = vrot.slane %v605_v5, 1  ;;  %v481_v40 = vld [vmem:[%s10174_s3 + $0x1a8] sm:$0xff]  ;;  %v6099_v50 = vsel %vm764_vm0, %v780_v32, %v6083_v33  ;;  %1774 = vmatpush.msrb.mxu2 %v464_v61  ;;  %v496_v32 = vld [vmem:[%s10174_s3 + $0x220] sm:$0xff] }
  0x45   : > { %384 = vst [vmem:[#allocation2 + $0x5f] sm:$0x2] %v6039_v1  ;;  %1886 = vmatpush.msrb.mxu3 %v481_v40 }
  0x46   : > { %1562 = vmatmul.f32.gmra.mxu0 %v5966_v22  ;;  %356 = vst [vmem:[#allocation2 + $0x69] sm:$0xff] %v6043_v2  ;;  %v822_v28 = vsel %vm764_vm0, %v820_v16, %v821_v19  ;;  %v608_v55 = vld [vmem:[#allocation2 + $0x120] sm:$0xff] }
  0x47   : > { %400 = vst [vmem:[#allocation2 + $0x6b] sm:$0x40] %v6043_v2  ;;  %1887 = vmatpush.msrb.mxu3 %v480_v62  ;;  %v6175_v62 = vld [vmem:[%s5759_s28 + $0xe0] sm:$0xff] }
  0x48   : > { %1675 = vmatmul.f32.gmra.mxu1 %v774_v56  ;;  %10285 = vst [vmem:[#allocation22_spill] sm:$0xff] %v6055_v10  ;;  %v609_v56 = vld [vmem:[#allocation2 + $0x128] sm:$0xff]  ;;  %v610_v15 = vld [vmem:[#allocation2 + $0x130] sm:$0x3] }
  0x49   : > { %10286 = vst [vmem:[#allocation23_spill] sm:$0xff] %v6058_v11 }
  0x4a   : > { %373 = vst [vmem:[#allocation2 + $0x139] sm:$0xff] %v6055_v10 }
  0x4b   : > { %1613 = vmatmul.f32.gmra.mxu2 %v602_v42  ;;  %393 = vst [vmem:[#allocation2 + $0x137] sm:$0x2] %v6055_v10  ;;  %v823_v42 = vrot.slane %v607_v31, 1  ;;  %v828_v31 = vrot.slane %v610_v15, 1 }
  0x4c   : > { %1726 = vmatmul.f32.gmra.mxu3 %v817_v57  ;;  %374 = vst [vmem:[#allocation2 + $0x141] sm:$0xff] %v6058_v11  ;;  %v783_v57 = vrot.slane %v6106_v52, 1  ;;  %v6136_v9 = vld [vmem:[#allocation2 + $0x60] sm:$0xff] }
  0x4d   : > { %409 = vst [vmem:[#allocation2 + $0x143] sm:$0x40] %v6058_v11  ;;  %v824_v53 = vsel %vm764_vm0, %v821_v19, %v823_v42  ;;  %v6138_v12 = vld [vmem:[#allocation2 + $0x68] sm:$0xff]  ;;  %v785_v16 = vrot.slane %v6136_v9, 1  ;;  %v6163_v42 = vld [vmem:[%s5759_s28 + $0x58] sm:$0xff] }
  0x4e   : > { %1565 = vmatmul.f32.gmra.mxu0 %v5866_v44  ;;  %10287 = vst [vmem:[#allocation24_spill] sm:$0xff] %v6095_v47  ;;  %v6143_v19 = vrot.slane %v6138_v12, 1 }
  0x4f   : > { %357 = vst [vmem:[#allocation2 + $0x79] sm:$0xff] %v6095_v47 }
  0x50   : > { %1678 = vmatmul.f32.gmra.mxu1 %v5906_v59  ;;  %10288 = vst [vmem:[#allocation25_spill] sm:$0xff] %v6103_v51  ;;  %v6159_v40 = vsel %vm764_vm0, %v785_v16, %v6143_v19  ;;  %v522_v16 = vld [vmem:[%s10174_s3 + $0x2f0] sm:$0xff] }
  0x51   : > { %385 = vst [vmem:[#allocation2 + $0x77] sm:$0x2] %v6095_v47 }
  0x52   : > { %358 = vst [vmem:[#allocation2 + $0x81] sm:$0xff] %v6103_v51 }
  0x53   : > { %1616 = vmatmul.f32.gmra.mxu2 %v603_v43  ;;  %v498_v43 = vld [vmem:[%s10174_s3 + $0x230] sm:$0xff]  ;;  %401 = vst [vmem:[#allocation2 + $0x83] sm:$0x40] %v6103_v51 }
  0x54   : > { %1729 = vmatmul.f32.gmra.mxu3 %v819_v4  ;;  %1998 = vmatpush.msrb.mxu0 %v498_v43  ;;  %10289 = vst [vmem:[#allocation26_spill] sm:$0xff] %v6115_v58  ;;  %v825_v4 = vrot.slane %v608_v55, 1  ;;  %v6166_v43 = vld [vmem:[#allocation2 + $0x70] sm:$0x3] }
  0x55   : > { %10290 = vst [vmem:[#allocation27_spill] sm:$0xff] %v6118_v60  ;;  %v788_v61 = vrot.slane %v6166_v43, 1 }
  0x56   : > { %1568 = vmatmul.f32.gmra.mxu0 %v5868_v45  ;;  %375 = vst [vmem:[#allocation2 + $0x151] sm:$0xff] %v6115_v58 }
  0x57   : > { %394 = vst [vmem:[#allocation2 + $0x14f] sm:$0x2] %v6115_v58  ;;  %1999 = vmatpush.msrb.mxu0 %v497_v0  ;;  %v6178_v0 = vld [vmem:[%s5759_s28 + $0xe8] sm:$0xff] }
  0x58   : > { %1681 = vmatmul.f32.gmra.mxu1 %v779_v23  ;;  %376 = vst [vmem:[#allocation2 + $0x159] sm:$0xff] %v6118_v60  ;;  %v463_v23 = vld [vmem:[%s10174_s3 + $0x118] sm:$0xff] }
  0x59   : > { %410 = vst [vmem:[#allocation2 + $0x15b] sm:$0x40] %v6118_v60  ;;  %1775 = vmatpush.msrb.mxu2 %v463_v23  ;;  %2000 = vmatpush.msrb.mxu0 %v496_v32  ;;  %v789_v23 = vsel %vm764_vm0, %v6143_v19, %v788_v61  ;;  %v461_v61 = vld [vmem:[%s10174_s3 + $0x108] sm:$0xff] }
  0x5a   : > { %10291 = vst [vmem:[#allocation28_spill] sm:$0xff] %v6155_v34 }
  0x5b   : > { %1619 = vmatmul.f32.gmra.mxu2 %v605_v5  ;;  %v826_v5 = vrot.slane %v609_v56, 1  ;;  %359 = vst [vmem:[#allocation2 + $0x91] sm:$0xff] %v6155_v34 }
  0x5c   : > { %1732 = vmatmul.f32.gmra.mxu3 %v822_v28  ;;  %v479_v28 = vld [vmem:[%s10174_s3 + $0x198] sm:$0xff]  ;;  %10292 = vst [vmem:[#allocation29_spill] sm:$0xff] %v6163_v42 }
  0x5d   : > { %v827_v13 = vsel %vm764_vm0, %v825_v4, %v826_v5  ;;  %1888 = vmatpush.msrb.mxu3 %v479_v28  ;;  %386 = vst [vmem:[#allocation2 + $0x8f] sm:$0x2] %v6155_v34  ;;  %v462_v4 = vld [vmem:[%s10174_s3 + $0x110] sm:$0xff]  ;;  %v6202_v28 = vld [vmem:[#allocation2 + $0x78] sm:$0xff] }
  0x5e   : > { %1571 = vmatmul.f32.gmra.mxu0 %v6076_v25  ;;  %360 = vst [vmem:[#allocation2 + $0x99] sm:$0xff] %v6163_v42  ;;  %1776 = vmatpush.msrb.mxu2 %v462_v4  ;;  %v790_v4 = vrot.slane %v6202_v28, 1 }
  0x5f   : > { %402 = vst [vmem:[#allocation2 + $0x9b] sm:$0x40] %v6163_v42 }
  0x60   : > { %1684 = vmatmul.f32.gmra.mxu1 %v6099_v50  ;;  %10293 = vst [vmem:[#allocation30_spill] sm:$0xff] %v6175_v62  ;;  %1777 = vmatpush.msrb.mxu2 %v461_v61  ;;  %v6237_v61 = vld [vmem:[%s5759_s28 + $0x60] sm:$0xff] }
  0x61   : > { %10294 = vst [vmem:[#allocation31_spill] sm:$0xff] %v6178_v0  ;;  %v616_v10 = vld [vmem:[#allocation2 + $0x160] sm:$0x3] }
  0x62   : > { %377 = vst [vmem:[#allocation2 + $0x169] sm:$0xff] %v6175_v62 }
  0x63   : > { %1622 = vmatmul.f32.gmra.mxu2 %v606_v6  ;;  %v784_v6 = vsel %vm764_vm0, %v6083_v33, %v783_v57  ;;  %v612_v57 = vld [vmem:[#allocation2 + $0x140] sm:$0xff]  ;;  %395 = vst [vmem:[#allocation2 + $0x167] sm:$0x2] %v6175_v62 }
  0x64   : > { %1735 = vmatmul.f32.gmra.mxu3 %v824_v53  ;;  %v829_v53 = vsel %vm764_vm0, %v826_v5, %v828_v31  ;;  %v478_v5 = vld [vmem:[%s10174_s3 + $0x190] sm:$0xff]  ;;  %v831_v15 = vrot.slane %v612_v57, 1  ;;  %378 = vst [vmem:[#allocation2 + $0x171] sm:$0xff] %v6178_v0  ;;  %v6204_v31 = vld [vmem:[#allocation2 + $0x80] sm:$0xff] }
  0x65   : > { %1889 = vmatpush.msrb.mxu3 %v478_v5  ;;  %411 = vst [vmem:[#allocation2 + $0x173] sm:$0x40] %v6178_v0  ;;  %v6209_v5 = vrot.slane %v6204_v31, 1  ;;  %v518_v0 = vld [vmem:[%s10174_s3 + $0x2d0] sm:$0xff]  ;;  %v6269_v11 = vld [vmem:[#allocation2 + $0x98] sm:$0xff] }
  0x66   : > { %1574 = vmatmul.f32.gmra.mxu0 %v6078_v26  ;;  %10295 = vst [vmem:[#allocation32_spill] sm:$0xff] %v6237_v61  ;;  %v6267_v58 = vld [vmem:[#allocation2 + $0x90] sm:$0xff] }
  0x67   : > { %361 = vst [vmem:[#allocation2 + $0xa9] sm:$0xff] %v6237_v61  ;;  %v795_v49 = vrot.slane %v6267_v58, 1 }
  0x68   : > { %1687 = vmatmul.f32.gmra.mxu1 %v784_v6  ;;  %v495_v6 = vld [vmem:[%s10174_s3 + $0x218] sm:$0xff]  ;;  %387 = vst [vmem:[#allocation2 + $0xa7] sm:$0x2] %v6237_v61 }
  0x69   : > { %2001 = vmatpush.msrb.mxu0 %v495_v6  ;;  %v521_v6 = vld [vmem:[%s10174_s3 + $0x2e8] sm:$0xff] }
  0x6b   : > { %1625 = vmatmul.f32.gmra.mxu2 %v608_v55  ;;  %v611_v55 = vld [vmem:[#allocation2 + $0x138] sm:$0xff]  ;;  %v618_v48 = vld [vmem:[#allocation2 + $0x170] sm:$0xff] }
  0x6c   : > { %1738 = vmatmul.f32.gmra.mxu3 %v827_v13  ;;  %v830_v13 = vrot.slane %v611_v55, 1  ;;  %v619_v46 = vld [vmem:[#allocation2 + $0x178] sm:$0x3] }
  0x6d   : > { %v843_v41 = vrot.slane %v619_v46, 1  ;;  %v570_v46 = vld [vmem:[%s10174_s3 + $0x470] sm:$0xff] }
  0x6e   : > { %1577 = vmatmul.f32.gmra.mxu0 %v6136_v9  ;;  %v832_v32 = vsel %vm764_vm0, %v830_v13, %v831_v15 }
  0x6f   : > { %v6319_v8 = vld [vmem:[#allocation2 + $0xa8] sm:$0xff] }
  0x70   : > { %1690 = vmatmul.f32.gmra.mxu1 %v6159_v40 }
  0x73   : > { %1628 = vmatmul.f32.gmra.mxu2 %v609_v56  ;;  %v523_v56 = vld [vmem:[%s10174_s3 + $0x2f8] sm:$0xff] }
  0x74   : > { %1741 = vmatmul.f32.gmra.mxu3 %v829_v53  ;;  %2102 = vmatpush.msrb.mxu1 %v523_v56  ;;  %v613_v53 = vld [vmem:[#allocation2 + $0x148] sm:$0x3] }
  0x75   : > { %v833_v13 = vrot.slane %v613_v53, 1  ;;  %v477_v56 = vld [vmem:[%s10174_s3 + $0x188] sm:$0xff]  ;;  %v519_v53 = vld [vmem:[%s10174_s3 + $0x2d8] sm:$0xff] }
  0x76   : > { %1580 = vmatmul.f32.gmra.mxu0 %v6138_v12  ;;  %2103 = vmatpush.msrb.mxu1 %v522_v16  ;;  %v520_v16 = vld [vmem:[%s10174_s3 + $0x2e0] sm:$0xff] }
  0x77   : > { %1890 = vmatpush.msrb.mxu3 %v477_v56  ;;  %v614_v56 = vld [vmem:[#allocation2 + $0x150] sm:$0xff] }
  0x78   : > { %1693 = vmatmul.f32.gmra.mxu1 %v789_v23  ;;  %v6228_v23 = vsel %vm764_vm0, %v790_v4, %v6209_v5  ;;  %v834_v4 = vsel %vm764_vm0, %v831_v15, %v833_v13  ;;  %v460_v15 = vld [vmem:[%s10174_s3 + $0x100] sm:$0xff]  ;;  %v517_v13 = vld [vmem:[%s10174_s3 + $0x2c8] sm:$0xff]  ;;  %v835_v62 = vrot.slane %v614_v56, 1 }
  0x79   : > { %2104 = vmatpush.msrb.mxu1 %v521_v6  ;;  %v6240_v6 = vld [vmem:[%s5759_s28 + $0x68] sm:$0xff]  ;;  %1778 = vmatpush.msrb.mxu2 %v460_v15 }
  0x7a   : > { %10296 = vst [vmem:[#allocation33_spill] sm:$0xff] %v6240_v6 }
  0x7b   : > { %1631 = vmatmul.f32.gmra.mxu2 %v611_v55  ;;  %v494_v55 = vld [vmem:[%s10174_s3 + $0x210] sm:$0xff]  ;;  %2105 = vmatpush.msrb.mxu1 %v520_v16  ;;  %362 = vst [vmem:[#allocation2 + $0xb1] sm:$0xff] %v6240_v6 }
  0x7c   : > { %1744 = vmatmul.f32.gmra.mxu3 %v832_v32  ;;  %v6230_v32 = vld [vmem:[#allocation2 + $0x88] sm:$0x3]  ;;  %2002 = vmatpush.msrb.mxu0 %v494_v55  ;;  %v615_v55 = vld [vmem:[#allocation2 + $0x158] sm:$0xff]  ;;  %403 = vst [vmem:[#allocation2 + $0xb3] sm:$0x40] %v6240_v6 }
  0x7d   : > { %v793_v16 = vrot.slane %v6230_v32, 1  ;;  %2106 = vmatpush.msrb.mxu1 %v519_v53  ;;  %v476_v53 = vld [vmem:[%s10174_s3 + $0x180] sm:$0xff]  ;;  %v836_v60 = vrot.slane %v615_v55, 1 }
  0x7e   : > { %1583 = vmatmul.f32.gmra.mxu0 %v6202_v28  ;;  %1891 = vmatpush.msrb.mxu3 %v476_v53  ;;  %v515_v53 = vld [vmem:[%s10174_s3 + $0x2b8] sm:$0xff] }
  0x7f   : > { %2107 = vmatpush.msrb.mxu1 %v518_v0  ;;  %v516_v0 = vld [vmem:[%s10174_s3 + $0x2c0] sm:$0xff]  ;;  %v837_v15 = vsel %vm764_vm0, %v835_v62, %v836_v60  ;;  %v539_v62 = vld [vmem:[%s10174_s3 + $0x378] sm:$0xff] }
  0x80   : > { %1696 = vmatmul.f32.gmra.mxu1 %v6228_v23  ;;  %2215 = vmatpush.msra.mxu2 %v539_v62  ;;  %v617_v62 = vld [vmem:[#allocation2 + $0x168] sm:$0xff] }
  0x81   : > { %2108 = vmatpush.msrb.mxu1 %v517_v13  ;;  %v514_v13 = vld [vmem:[%s10174_s3 + $0x2b0] sm:$0xff] }
  0x83   : > { %1634 = vmatmul.f32.gmra.mxu2 %v612_v57  ;;  %v493_v57 = vld [vmem:[%s10174_s3 + $0x208] sm:$0xff]  ;;  %2109 = vmatpush.msrb.mxu1 %v516_v0 }
  0x84   : > { %1747 = vmatmul.f32.gmra.mxu3 %v834_v4  ;;  %v794_v4 = vsel %vm764_vm0, %v6209_v5, %v793_v16  ;;  %2003 = vmatpush.msrb.mxu0 %v493_v57  ;;  %v6277_v16 = vrot.slane %v6269_v11, 1  ;;  %v492_v57 = vld [vmem:[%s10174_s3 + $0x200] sm:$0xff] }
  0x85   : > { %2110 = vmatpush.msrb.mxu1 %v515_v53 }
  0x86   : > { %1586 = vmatmul.f32.gmra.mxu0 %v6204_v31  ;;  %v6296_v0 = vsel %vm764_vm0, %v795_v49, %v6277_v16 }
  0x87   : > { %2004 = vmatpush.msrb.mxu0 %v492_v57  ;;  %2111 = vmatpush.msrb.mxu1 %v514_v13  ;;  %v512_v57 = vld [vmem:[%s10174_s3 + $0x2a0] sm:$0xff]  ;;  %v511_v13 = vld [vmem:[%s10174_s3 + $0x298] sm:$0xff] }
  0x88   : > { %1699 = vmatmul.f32.gmra.mxu1 %v794_v4  ;;  %v838_v4 = vrot.slane %v616_v10, 1  ;;  %v513_v10 = vld [vmem:[%s10174_s3 + $0x2a8] sm:$0xff] }
  0x89   : > { %2112 = vmatpush.msrb.mxu1 %v513_v10 }
  0x8a   : > { %v839_v53 = vsel %vm764_vm0, %v836_v60, %v838_v4  ;;  %v571_v60 = vld [vmem:[%s10174_s3 + $0x478] sm:$0xff]  ;;  %v840_v4 = vrot.slane %v617_v62, 1 }
  0x8b   : > { %1637 = vmatmul.f32.gmra.mxu2 %v614_v56  ;;  %v555_v56 = vld [vmem:[%s10174_s3 + $0x3f8] sm:$0xff]  ;;  %2113 = vmatpush.msrb.mxu1 %v512_v57  ;;  %v800_v57 = vrot.slane %v6319_v8, 1 }
  0x8c   : > { %1750 = vmatmul.f32.gmra.mxu3 %v837_v15  ;;  %v6299_v15 = vld [vmem:[#allocation2 + $0xa0] sm:$0x3]  ;;  %2441 = vmatpush.msra.mxu0 %v571_v60 }
  0x8d   : > { %2328 = vmatpush.msra.mxu3 %v555_v56  ;;  %v798_v49 = vrot.slane %v6299_v15, 1  ;;  %v841_v56 = vrot.slane %v618_v48, 1  ;;  %2114 = vmatpush.msrb.mxu1 %v511_v13  ;;  %v508_v13 = vld [vmem:[%s10174_s3 + $0x280] sm:$0xff] }
  0x8e   : > { %1589 = vmatmul.f32.gmra.mxu0 %v6267_v58 }
  0x8f   : > { %v799_v10 = vsel %vm764_vm0, %v6277_v16, %v798_v49  ;;  %v842_v7 = vsel %vm764_vm0, %v840_v4, %v841_v56  ;;  %v509_v49 = vld [vmem:[%s10174_s3 + $0x288] sm:$0xff]  ;;  %v538_v4 = vld [vmem:[%s10174_s3 + $0x370] sm:$0xff]  ;;  %2442 = vmatpush.msra.mxu0 %v570_v46  ;;  %v881_v46 = vrot.slane %v5918_v63, 2 }
  0x90   : > { %1702 = vmatmul.f32.gmra.mxu1 %v6296_v0  ;;  %2216 = vmatpush.msra.mxu2 %v538_v4  ;;  %v6374_v4 = vld [vmem:[%s10175_s4] ss:$0 sm:$0xff] }
  0x93   : > { %1640 = vmatmul.f32.gmra.mxu2 %v615_v55  ;;  %v6321_v55 = vld [vmem:[#allocation2 + $0xb0] sm:$0xff] }
  0x94   : > { %1753 = vmatmul.f32.gmra.mxu3 %v839_v53  ;;  %v510_v53 = vld [vmem:[%s10174_s3 + $0x290] sm:$0xff]  ;;  %v6329_v60 = vrot.slane %v6321_v55, 1 }
  0x95   : > { %2115 = vmatpush.msrb.mxu1 %v510_v53 }
  0x96   : > { %1592 = vmatmul.f32.gmra.mxu0 %v6269_v11  ;;  %v6345_v53 = vsel %vm764_vm0, %v800_v57, %v6329_v60  ;;  %v878_v57 = vrot.slane %v5866_v44, 2 }
  0x97   : > { %2116 = vmatpush.msrb.mxu1 %v509_v49  ;;  %v6358_v49 = vrot.slane %v5868_v45, 2 }
  0x98   : > { %1705 = vmatmul.f32.gmra.mxu1 %v799_v10  ;;  %v554_v10 = vld [vmem:[%s10174_s3 + $0x3f0] sm:$0xff] }
  0x99   : > { %2329 = vmatpush.msra.mxu3 %v554_v10  ;;  %2117 = vmatpush.msrb.mxu1 %v508_v13  ;;  %v1151_v13 = vrot.slane %v5966_v22, 2  ;;  %v537_v10 = vld [vmem:[%s10174_s3 + $0x368] sm:$0xff]  ;;  %v882_v61 = vsel %vm877_vm1, %v6358_v49, %v881_v46  ;;  %v552_v46 = vld [vmem:[%s10174_s3 + $0x3e0] sm:$0xff] }
  0x9a   : > { %2217 = vmatpush.msra.mxu2 %v537_v10 }
  0x9b   : > { %1643 = vmatmul.f32.gmra.mxu2 %v617_v62  ;;  %v844_v62 = vsel %vm764_vm0, %v841_v56, %v843_v41  ;;  %v1150_v56 = vrot.slane %v5964_v20, 2 }
  0x9c   : > { %1756 = vmatmul.f32.gmra.mxu3 %v842_v7  ;;  %v6348_v7 = vld [vmem:[#allocation2 + $0xb8] sm:$0x3] }
  0x9d   : > { %v803_v27 = vrot.slane %v6348_v7, 1 }
  0x9e   : > { %1595 = vmatmul.f32.gmra.mxu0 %v6319_v8 }
  0x9f   : > { %v804_v41 = vsel %vm764_vm0, %v6329_v60, %v803_v27 }
  0xa0   : > { %1708 = vmatmul.f32.gmra.mxu1 %v6345_v53 }
  0xa3   : > { %1646 = vmatmul.f32.gmra.mxu2 %v618_v48  ;;  %v6365_v48 = vsel %vm877_vm1, %v878_v57, %v6358_v49  ;;  %v622_v57 = vld [vmem:[#allocation2 + $0x28] sm:$0x3] }
  0xa4   : > { %1759 = vmatmul.f32.gmra.mxu3 %v844_v62  ;;  %v553_v62 = vld [vmem:[%s10174_s3 + $0x3e8] sm:$0xff]  ;;  %v1041_v6 = vrot.slane %v622_v57, 1  ;;  %v1153_v63 = vrot.slane %v622_v57, 2  ;;  %v886_v57 = vrot.slane %v5997_v39, 2 }
  0xa5   : > { %2330 = vmatpush.msra.mxu3 %v553_v62 }
  0xa6   : > { %1598 = vmatmul.f32.gmra.mxu0 %v6321_v55  ;;  %v1154_v62 = vsel %vm877_vm1, %v1151_v13, %v1153_v63  ;;  %v625_v63 = vld [vmem:[#allocation2 + $0x40] sm:$0x3] }
  0xa7   : > { %2331 = vmatpush.msra.mxu3 %v552_v46 }
  0xa8   : > { %1711 = vmatmul.f32.gmra.mxu1 %v804_v41  ;;  %v1152_v41 = vsel %vm877_vm1, %v1150_v56, %v1151_v13  ;;  %v1042_v56 = vsel %vm764_vm0, %v5974_v29, %v1041_v6  ;;  %v536_v6 = vld [vmem:[%s10174_s3 + $0x360] sm:$0xff] }
  0xa9   : > { %2218 = vmatpush.msra.mxu2 %v536_v6 }
  0xab   : > { %1779 = vmatmul.f32.vlgmr.msrb.gmra.mxu2 %v6365_v48  ;;  %v6376_v27 = vpop.f32.mrf.mxu0 }
  0xac   : > { %1892 = vmatmul.f32.vlgmr.msrb.gmra.mxu3 %v5964_v20 }
  0xad   : > { %v6385_v20 = vpop.f32.mrf.mxu1 }
  0xae   : > { %v1602_v24 = vpop.f32.mrf.mxu2  ;;  %2005 = vmatmul.f32.vlgmr.msrb.gmra.mxu0 %v5990_v37 }
  0xaf   : > { %v1715_v17 = vpop.f32.mrf.mxu3  ;;  %v1603_v14 = vadd.f32 %v6374_v4, %v1602_v24  ;;  %v569_v24 = vld [vmem:[%s10174_s3 + $0x468] sm:$0xff] }
  0xb0   : > { %2118 = vmatmul.f32.vlgmr.msrb.gmra.mxu1 %v1152_v41  ;;  %2443 = vmatpush.msra.mxu0 %v569_v24 }
  0xb1   : > { %v6392_v42 = vadd.f32 %v1715_v17, %v1603_v14 }
  0xb3   : > { %1782 = vmatmul.f32.gmra.mxu2 %v882_v61  ;;  %v6395_v10 = vpop.f32.mrf.mxu0 }
  0xb4   : > { %1895 = vmatmul.f32.gmra.mxu3 %v5966_v22 }
  0xb5   : > { %v6402_v37 = vpop.f32.mrf.mxu1 }
  0xb6   : > { %v1605_v14 = vpop.f32.mrf.mxu2  ;;  %2008 = vmatmul.f32.gmra.mxu0 %v1042_v56 }
  0xb7   : > { %v1718_v17 = vpop.f32.mrf.mxu3  ;;  %v1606_v61 = vadd.f32 %v6374_v4, %v1605_v14  ;;  %v887_v14 = vsel %vm877_vm1, %v1151_v13, %v886_v57 }
  0xb8   : > { %2121 = vmatmul.f32.gmra.mxu1 %v1154_v62  ;;  %v1046_v62 = vrot.slane %v625_v63, 1 }
  0xb9   : > { %v6406_v22 = vadd.f32 %v1718_v17, %v1606_v61  ;;  %v1158_v61 = vrot.slane %v625_v63, 2 }
  0xba   : > { %v1047_v6 = vsel %vm764_vm0, %v5891_v54, %v1046_v62  ;;  %v1160_v54 = vrot.slane %v6076_v25, 2  ;;  %v535_v62 = vld [vmem:[%s10174_s3 + $0x358] sm:$0xff] }
  0xbb   : > { %1785 = vmatmul.f32.gmra.mxu2 %v1152_v41  ;;  %v6409_v29 = vpop.f32.mrf.mxu0  ;;  %v1159_v13 = vsel %vm877_vm1, %v6358_v49, %v1158_v61  ;;  %v891_v61 = vrot.slane %v6046_v3, 2 }
  0xbc   : > { %1898 = vmatmul.f32.gmra.mxu3 %v5866_v44  ;;  %2219 = vmatpush.msra.mxu2 %v535_v62 }
  0xbd   : > { %v6418_v56 = vpop.f32.mrf.mxu1 }
  0xbe   : > { %v1608_v41 = vpop.f32.mrf.mxu2  ;;  %2011 = vmatmul.f32.gmra.mxu0 %v5906_v59  ;;  %v568_v59 = vld [vmem:[%s10174_s3 + $0x460] sm:$0xff] }
  0xbf   : > { %v1721_v24 = vpop.f32.mrf.mxu3  ;;  %v1609_v44 = vadd.f32 %v6374_v4, %v1608_v41  ;;  %2444 = vmatpush.msra.mxu0 %v568_v59 }
  0xc0   : > { %2124 = vmatmul.f32.gmra.mxu1 %v6365_v48 }
  0xc1   : > { %v6424_v17 = vadd.f32 %v1721_v24, %v1609_v44  ;;  %v1161_v24 = vrot.slane %v6078_v26, 2 }
  0xc3   : > { %1788 = vmatmul.f32.gmra.mxu2 %v887_v14  ;;  %v6427_v39 = vpop.f32.mrf.mxu0  ;;  %v551_v14 = vld [vmem:[%s10174_s3 + $0x3d8] sm:$0xff] }
  0xc4   : > { %1901 = vmatmul.f32.gmra.mxu3 %v5868_v45 }
  0xc5   : > { %v6434_v46 = vpop.f32.mrf.mxu1  ;;  %2332 = vmatpush.msra.mxu3 %v551_v14 }
  0xc6   : > { %v1611_v57 = vpop.f32.mrf.mxu2  ;;  %2014 = vmatmul.f32.gmra.mxu0 %v1047_v6  ;;  %v628_v6 = vld [vmem:[#allocation2 + $0x58] sm:$0x3] }
  0xc7   : > { %v1724_v63 = vpop.f32.mrf.mxu3  ;;  %v1612_v45 = vadd.f32 %v6374_v4, %v1611_v57  ;;  %v1163_v3 = vrot.slane %v628_v6, 2 }
  0xc8   : > { %2127 = vmatmul.f32.gmra.mxu1 %v1159_v13 }
  0xc9   : > { %v6439_v41 = vadd.f32 %v1724_v63, %v1612_v45  ;;  %v1051_v63 = vrot.slane %v628_v6, 1  ;;  %v892_v45 = vsel %vm877_vm1, %v6358_v49, %v891_v61  ;;  %v1164_v49 = vsel %vm877_vm1, %v1161_v24, %v1163_v3 }
  0xca   : > { %v896_v3 = vrot.slane %v6106_v52, 2 }
  0xcb   : > { %1791 = vmatmul.f32.gmra.mxu2 %v6365_v48  ;;  %v6445_v44 = vpop.f32.mrf.mxu0  ;;  %v1162_v48 = vsel %vm877_vm1, %v1160_v54, %v1161_v24  ;;  %v1052_v54 = vsel %vm764_vm0, %v6083_v33, %v1051_v63  ;;  %v1166_v33 = vrot.slane %v6138_v12, 2  ;;  %v534_v63 = vld [vmem:[%s10174_s3 + $0x350] sm:$0xff] }
  0xcc   : > { %1904 = vmatmul.f32.gmra.mxu3 %v6076_v25  ;;  %2220 = vmatpush.msra.mxu2 %v534_v63 }
  0xcd   : > { %v6454_v59 = vpop.f32.mrf.mxu1 }
  0xce   : > { %v1614_v25 = vpop.f32.mrf.mxu2  ;;  %2017 = vmatmul.f32.gmra.mxu0 %v6099_v50  ;;  %v567_v50 = vld [vmem:[%s10174_s3 + $0x458] sm:$0xff] }
  0xcf   : > { %v1727_v13 = vpop.f32.mrf.mxu3  ;;  %v1615_v57 = vadd.f32 %v6374_v4, %v1614_v25  ;;  %2445 = vmatpush.msra.mxu0 %v567_v50 }
  0xd0   : > { %2130 = vmatmul.f32.gmra.mxu1 %v1162_v48 }
  0xd1   : > { %v6461_v34 = vadd.f32 %v1727_v13, %v1615_v57  ;;  %v1165_v13 = vrot.slane %v6136_v9, 2 }
  0xd3   : > { %1794 = vmatmul.f32.gmra.mxu2 %v892_v45  ;;  %v6464_v62 = vpop.f32.mrf.mxu0  ;;  %v550_v45 = vld [vmem:[%s10174_s3 + $0x3d0] sm:$0xff] }
  0xd4   : > { %1907 = vmatmul.f32.gmra.mxu3 %v6078_v26 }
  0xd5   : > { %v6471_v14 = vpop.f32.mrf.mxu1  ;;  %2333 = vmatpush.msra.mxu3 %v550_v45 }
  0xd6   : > { %v1617_v61 = vpop.f32.mrf.mxu2  ;;  %2020 = vmatmul.f32.gmra.mxu0 %v1052_v54  ;;  %v631_v54 = vld [vmem:[#allocation2 + $0x70] sm:$0x3] }
  0xd7   : > { %v1730_v25 = vpop.f32.mrf.mxu3  ;;  %v1618_v6 = vadd.f32 %v6374_v4, %v1617_v61  ;;  %v1168_v52 = vrot.slane %v631_v54, 2 }
  0xd8   : > { %2133 = vmatmul.f32.gmra.mxu1 %v1164_v49 }
  0xd9   : > { %v6475_v26 = vadd.f32 %v1730_v25, %v1618_v6  ;;  %v1056_v25 = vrot.slane %v631_v54, 1  ;;  %v897_v6 = vsel %vm877_vm1, %v1161_v24, %v896_v3  ;;  %v1169_v24 = vsel %vm877_vm1, %v1166_v33, %v1168_v52 }
  0xda   : > { %v901_v52 = vrot.slane %v6166_v43, 2 }
  0xdb   : > { %1797 = vmatmul.f32.gmra.mxu2 %v1162_v48  ;;  %v6480_v57 = vpop.f32.mrf.mxu0  ;;  %v1167_v48 = vsel %vm877_vm1, %v1165_v13, %v1166_v33  ;;  %v1057_v13 = vsel %vm764_vm0, %v6143_v19, %v1056_v25  ;;  %v1171_v19 = vrot.slane %v6204_v31, 2  ;;  %v533_v25 = vld [vmem:[%s10174_s3 + $0x348] sm:$0xff] }
  0xdc   : > { %1910 = vmatmul.f32.gmra.mxu3 %v6136_v9  ;;  %2221 = vmatpush.msra.mxu2 %v533_v25 }
  0xdd   : > { %v6489_v50 = vpop.f32.mrf.mxu1 }
  0xde   : > { %v1620_v9 = vpop.f32.mrf.mxu2  ;;  %2023 = vmatmul.f32.gmra.mxu0 %v6159_v40  ;;  %v566_v40 = vld [vmem:[%s10174_s3 + $0x450] sm:$0xff] }
  0xdf   : > { %v1733_v49 = vpop.f32.mrf.mxu3  ;;  %v1621_v61 = vadd.f32 %v6374_v4, %v1620_v9  ;;  %2446 = vmatpush.msra.mxu0 %v566_v40 }
  0xe0   : > { %2136 = vmatmul.f32.gmra.mxu1 %v1167_v48 }
  0xe1   : > { %v6495_v51 = vadd.f32 %v1733_v49, %v1621_v61  ;;  %v1170_v49 = vrot.slane %v6202_v28, 2 }
  0xe3   : > { %1800 = vmatmul.f32.gmra.mxu2 %v897_v6  ;;  %v6498_v63 = vpop.f32.mrf.mxu0  ;;  %v549_v6 = vld [vmem:[%s10174_s3 + $0x3c8] sm:$0xff] }
  0xe4   : > { %1913 = vmatmul.f32.gmra.mxu3 %v6138_v12 }
  0xe5   : > { %v6505_v45 = vpop.f32.mrf.mxu1  ;;  %2334 = vmatpush.msra.mxu3 %v549_v6 }
  0xe6   : > { %v1623_v3 = vpop.f32.mrf.mxu2  ;;  %2026 = vmatmul.f32.gmra.mxu0 %v1057_v13  ;;  %v634_v13 = vld [vmem:[#allocation2 + $0x88] sm:$0x3] }
  0xe7   : > { %v1736_v9 = vpop.f32.mrf.mxu3  ;;  %v1624_v54 = vadd.f32 %v6374_v4, %v1623_v3  ;;  %v1173_v43 = vrot.slane %v634_v13, 2 }
  0xe8   : > { %2139 = vmatmul.f32.gmra.mxu1 %v1169_v24 }
  0xe9   : > { %v6509_v12 = vadd.f32 %v1736_v9, %v1624_v54  ;;  %v1061_v9 = vrot.slane %v634_v13, 1  ;;  %v902_v54 = vsel %vm877_vm1, %v1166_v33, %v901_v52  ;;  %v1174_v33 = vsel %vm877_vm1, %v1171_v19, %v1173_v43 }
  0xea   : > { %v906_v43 = vrot.slane %v6230_v32, 2 }
  0xeb   : > { %1803 = vmatmul.f32.gmra.mxu2 %v1167_v48  ;;  %v6514_v61 = vpop.f32.mrf.mxu0  ;;  %v1172_v48 = vsel %vm877_vm1, %v1170_v49, %v1171_v19  ;;  %v1062_v49 = vsel %vm764_vm0, %v6209_v5, %v1061_v9  ;;  %v1176_v5 = vrot.slane %v6269_v11, 2  ;;  %v532_v9 = vld [vmem:[%s10174_s3 + $0x340] sm:$0xff] }
  0xec   : > { %1916 = vmatmul.f32.gmra.mxu3 %v6202_v28  ;;  %2222 = vmatpush.msra.mxu2 %v532_v9 }
  0xed   : > { %v6523_v40 = vpop.f32.mrf.mxu1 }
  0xee   : > { %v1626_v28 = vpop.f32.mrf.mxu2  ;;  %2029 = vmatmul.f32.gmra.mxu0 %v6228_v23  ;;  %v565_v23 = vld [vmem:[%s10174_s3 + $0x448] sm:$0xff] }
  0xef   : > { %v1739_v24 = vpop.f32.mrf.mxu3  ;;  %v1627_v3 = vadd.f32 %v6374_v4, %v1626_v28  ;;  %2447 = vmatpush.msra.mxu0 %v565_v23 }
  0xf0   : > { %2142 = vmatmul.f32.gmra.mxu1 %v1172_v48 }
  0xf1   : > { %v6529_v47 = vadd.f32 %v1739_v24, %v1627_v3  ;;  %v1175_v24 = vrot.slane %v6267_v58, 2 }
  0xf3   : > { %10297 = vst [vmem:[#allocation34_spill] sm:$0xff] %v6529_v47  ;;  %1806 = vmatmul.f32.gmra.mxu2 %v902_v54  ;;  %v6532_v25 = vpop.f32.mrf.mxu0  ;;  %v548_v54 = vld [vmem:[%s10174_s3 + $0x3c0] sm:$0xff] }
  0xf4   : > { %1919 = vmatmul.f32.gmra.mxu3 %v6204_v31 }
  0xf5   : > { %v6539_v6 = vpop.f32.mrf.mxu1  ;;  %2335 = vmatpush.msra.mxu3 %v548_v54 }
  0xf6   : > { %v1629_v52 = vpop.f32.mrf.mxu2  ;;  %2032 = vmatmul.f32.gmra.mxu0 %v1062_v49  ;;  %v637_v49 = vld [vmem:[#allocation2 + $0xa0] sm:$0x3] }
  0xf7   : > { %v1742_v28 = vpop.f32.mrf.mxu3  ;;  %v1630_v13 = vadd.f32 %v6374_v4, %v1629_v52  ;;  %v1178_v32 = vrot.slane %v637_v49, 2 }
  0xf8   : > { %2145 = vmatmul.f32.gmra.mxu1 %v1174_v33 }
  0xf9   : > { %v6543_v31 = vadd.f32 %v1742_v28, %v1630_v13  ;;  %v1066_v28 = vrot.slane %v637_v49, 1  ;;  %v907_v13 = vsel %vm877_vm1, %v1171_v19, %v906_v43  ;;  %v1179_v19 = vsel %vm877_vm1, %v1176_v5, %v1178_v32 }
  0xfa   : > { %v911_v32 = vrot.slane %v6299_v15, 2 }
  0xfb   : > { %10298 = vst [vmem:[#allocation35_spill] sm:$0xff] %v6543_v31  ;;  %1809 = vmatmul.f32.gmra.mxu2 %v1172_v48  ;;  %v6548_v3 = vpop.f32.mrf.mxu0  ;;  %v1177_v48 = vsel %vm877_vm1, %v1175_v24, %v1176_v5  ;;  %v1067_v24 = vsel %vm764_vm0, %v6277_v16, %v1066_v28  ;;  %v1181_v16 = vrot.slane %v6321_v55, 2  ;;  %v531_v28 = vld [vmem:[%s10174_s3 + $0x338] sm:$0xff] }
  0xfc   : > { %1922 = vmatmul.f32.gmra.mxu3 %v6267_v58  ;;  %2223 = vmatpush.msra.mxu2 %v531_v28  ;;  %v5620_v31 = vld [vmem:[#allocation2 + $0xd8] sm:$0xff] }
  0xfd   : > { %v6557_v23 = vpop.f32.mrf.mxu1  ;;  %v923_v47 = vrot.slane %v5620_v31, 2 }
  0xfe   : > { %v1632_v58 = vpop.f32.mrf.mxu2  ;;  %2035 = vmatmul.f32.gmra.mxu0 %v6296_v0  ;;  %v564_v0 = vld [vmem:[%s10174_s3 + $0x440] sm:$0xff] }
  0xff   : > { %v1745_v33 = vpop.f32.mrf.mxu3  ;;  %v1633_v52 = vadd.f32 %v6374_v4, %v1632_v58  ;;  %2448 = vmatpush.msra.mxu0 %v564_v0 }
 0x100   : > { %2148 = vmatmul.f32.gmra.mxu1 %v1177_v48 }
 0x101   : > { %v6563_v2 = vadd.f32 %v1745_v33, %v1633_v52  ;;  %v1180_v33 = vrot.slane %v6319_v8, 2 }
 0x103   : > { %10299 = vst [vmem:[#allocation36_spill] sm:$0xff] %v6563_v2  ;;  %1812 = vmatmul.f32.gmra.mxu2 %v907_v13  ;;  %v6566_v9 = vpop.f32.mrf.mxu0  ;;  %v547_v13 = vld [vmem:[%s10174_s3 + $0x3b8] sm:$0xff] }
 0x104   : > { %1925 = vmatmul.f32.gmra.mxu3 %v6269_v11 }
 0x105   : > { %v6573_v54 = vpop.f32.mrf.mxu1  ;;  %2336 = vmatpush.msra.mxu3 %v547_v13  ;;  %v642_v13 = vld [vmem:[#allocation2 + $0xc8] sm:$0xff] }
 0x106   : > { %v1635_v43 = vpop.f32.mrf.mxu2  ;;  %2038 = vmatmul.f32.gmra.mxu0 %v1067_v24  ;;  %v640_v24 = vld [vmem:[#allocation2 + $0xb8] sm:$0x3] }
 0x107   : > { %v1748_v58 = vpop.f32.mrf.mxu3  ;;  %v1636_v49 = vadd.f32 %v6374_v4, %v1635_v43  ;;  %v1183_v15 = vrot.slane %v640_v24, 2 }
 0x108   : > { %2151 = vmatmul.f32.gmra.mxu1 %v1179_v19 }
 0x109   : > { %v6577_v11 = vadd.f32 %v1748_v58, %v1636_v49  ;;  %v1071_v58 = vrot.slane %v640_v24, 1  ;;  %v912_v49 = vsel %vm877_vm1, %v1176_v5, %v911_v32  ;;  %v563_v5 = vld [vmem:[%s10174_s3 + $0x438] sm:$0xff]  ;;  %v641_v24 = vld [vmem:[#allocation2 + $0xc0] sm:$0xff] }
 0x10a   : > { %2449 = vmatpush.msra.mxu0 %v563_v5 }
 0x10b   : > { %10300 = vst [vmem:[#allocation37_spill] sm:$0xff] %v6577_v11  ;;  %1815 = vmatmul.f32.gmra.mxu2 %v1177_v48  ;;  %v6582_v52 = vpop.f32.mrf.mxu0  ;;  %v1182_v48 = vsel %vm877_vm1, %v1180_v33, %v1181_v16  ;;  %v1072_v33 = vsel %vm764_vm0, %v6329_v60, %v1071_v58  ;;  %v1185_v58 = vrot.slane %v641_v24, 2 }
 0x10c   : > { %1928 = vmatmul.f32.gmra.mxu3 %v6319_v8 }
 0x10d   : > { %v6591_v0 = vpop.f32.mrf.mxu1 }
 0x10e   : > { %v1638_v8 = vpop.f32.mrf.mxu2  ;;  %2041 = vmatmul.f32.gmra.mxu0 %v6345_v53  ;;  %v1184_v53 = vsel %vm877_vm1, %v1181_v16, %v1183_v15 }
 0x10f   : > { %v1751_v19 = vpop.f32.mrf.mxu3  ;;  %v1639_v43 = vadd.f32 %v6374_v4, %v1638_v8 }
 0x110   : > { %2154 = vmatmul.f32.gmra.mxu1 %v1182_v48 }
 0x111   : > { %v6597_v1 = vadd.f32 %v1751_v19, %v1639_v43  ;;  %v1073_v19 = vrot.slane %v641_v24, 1  ;;  %v1074_v43 = vrot.slane %v642_v13, 1 }
 0x113   : > { %10301 = vst [vmem:[#allocation38_spill] sm:$0xff] %v6597_v1  ;;  %1818 = vmatmul.f32.gmra.mxu2 %v912_v49  ;;  %v6600_v28 = vpop.f32.mrf.mxu0  ;;  %v1186_v49 = vrot.slane %v642_v13, 2  ;;  %v1075_v36 = vsel %vm764_vm0, %v1073_v19, %v1074_v43  ;;  %v1076_v19 = vrot.slane %v643_v21, 1  ;;  %v5618_v1 = vld [vmem:[#allocation2 + $0xc8] sm:$0xff] }
 0x114   : > { %1931 = vmatmul.f32.gmra.mxu3 %v6321_v55 }
 0x115   : > { %v6604_v38 = vpop.f32.mrf.mxu1  ;;  %v1077_v35 = vsel %vm764_vm0, %v1074_v43, %v1076_v19 }
 0x116   : > { %v1641_v32 = vpop.f32.mrf.mxu2  ;;  %2044 = vmatmul.f32.gmra.mxu0 %v1072_v33  ;;  %v530_v33 = vld [vmem:[%s10174_s3 + $0x330] sm:$0xff] }
 0x117   : > { %v1754_v8 = vpop.f32.mrf.mxu3  ;;  %v1642_v55 = vadd.f32 %v6374_v4, %v1641_v32  ;;  %v916_v32 = vrot.slane %v6348_v7, 2  ;;  %2224 = vmatpush.msra.mxu2 %v530_v33  ;;  %v1188_v33 = vrot.slane %v643_v21, 2 }
 0x118   : > { %2157 = vmatmul.f32.gmra.mxu1 %v1184_v53  ;;  %v1187_v53 = vsel %vm877_vm1, %v1185_v58, %v1186_v49 }
 0x119   : > { %v6611_v60 = vadd.f32 %v1754_v8, %v1642_v55  ;;  %v917_v18 = vsel %vm877_vm1, %v1181_v16, %v916_v32  ;;  %v562_v16 = vld [vmem:[%s10174_s3 + $0x430] sm:$0xff] }
 0x11a   : > { %2450 = vmatpush.msra.mxu0 %v562_v16  ;;  %v5619_v16 = vld [vmem:[#allocation2 + $0xd0] sm:$0x3] }
 0x11b   : > { %10302 = vst [vmem:[#allocation39_spill] sm:$0xff] %v6611_v60  ;;  %1821 = vmatmul.f32.gmra.mxu2 %v1182_v48  ;;  %v6613_v15 = vpop.f32.mrf.mxu0  ;;  %v546_v48 = vld [vmem:[%s10174_s3 + $0x3b0] sm:$0xff]  ;;  %v918_v60 = vrot.slane %v5617_v30, 2 }
 0x11c   : > { %1934 = vmatmul.f32.gmra.mxu3 %v641_v24 }
 0x11d   : > { %v6620_v5 = vpop.f32.mrf.mxu1  ;;  %2337 = vmatpush.msra.mxu3 %v546_v48  ;;  %v645_v48 = vld [vmem:[#allocation2 + $0xe0] sm:$0xff] }
 0x11e   : > { %v1644_v8 = vpop.f32.mrf.mxu2  ;;  %2047 = vmatmul.f32.gmra.mxu0 %v1075_v36  ;;  %v919_v36 = vrot.slane %v5618_v1, 2  ;;  %v1555_v1 = vadd.f32 %v6374_v4, %v6376_v27 }
 0x11f   : > { %v1757_v24 = vpop.f32.mrf.mxu3  ;;  %v1645_v55 = vadd.f32 %v6374_v4, %v1644_v8  ;;  %v1189_v8 = vsel %vm877_vm1, %v1186_v49, %v1188_v33  ;;  %v529_v33 = vld [vmem:[%s10174_s3 + $0x328] sm:$0xff] }
 0x120   : > { %2160 = vmatmul.f32.gmra.mxu1 %v1187_v53  ;;  %v1079_v53 = vrot.slane %v645_v48, 1  ;;  %v920_v30 = vsel %vm877_vm1, %v918_v60, %v919_v36  ;;  %v646_v60 = vld [vmem:[#allocation2 + $0xe8] sm:$0x3]  ;;  %2225 = vmatpush.msra.mxu2 %v529_v33  ;;  %v1558_v33 = vadd.f32 %v6374_v4, %v6395_v10 }
 0x121   : > { %v6628_v7 = vadd.f32 %v1757_v24, %v1645_v55  ;;  %v1191_v55 = vrot.slane %v645_v48, 2 }
 0x123   : > { %10303 = vst [vmem:[#allocation40_spill] sm:$0xff] %v6628_v7  ;;  %1824 = vmatmul.f32.gmra.mxu2 %v917_v18  ;;  %v6630_v58 = vpop.f32.mrf.mxu0 }
 0x124   : > { %1937 = vmatmul.f32.gmra.mxu3 %v642_v13  ;;  %v644_v13 = vld [vmem:[#allocation2 + $0xd8] sm:$0xff] }
 0x125   : > { %v6633_v11 = vpop.f32.mrf.mxu1  ;;  %v1078_v43 = vrot.slane %v644_v13, 1  ;;  %v1190_v24 = vrot.slane %v644_v13, 2 }
 0x126   : > { %v1647_v21 = vpop.f32.mrf.mxu2  ;;  %2050 = vmatmul.f32.gmra.mxu0 %v1077_v35 }
 0x127   : > { %v1760_v18 = vpop.f32.mrf.mxu3  ;;  %v1648_v32 = vadd.f32 %v6374_v4, %v1647_v21  ;;  %v1080_v35 = vsel %vm764_vm0, %v1078_v43, %v1079_v53  ;;  %v921_v21 = vrot.slane %v5619_v16, 2 }
 0x128   : > { %2163 = vmatmul.f32.gmra.mxu1 %v1189_v8  ;;  %v1668_v8 = vadd.f32 %v6385_v20, %v1555_v1  ;;  %v1193_v1 = vrot.slane %v646_v60, 2 }
 0x129   : > { %v6643_v49 = vadd.f32 %v1760_v18, %v1648_v32  ;;  %v1192_v18 = vsel %vm877_vm1, %v1190_v24, %v1191_v55  ;;  %v922_v7 = vsel %vm877_vm1, %v919_v36, %v921_v21 }
 0x12a   : > { %v1194_v10 = vsel %vm877_vm1, %v1191_v55, %v1193_v1  ;;  %v5622_v1 = vld [vmem:[#allocation2 + $0xe8] sm:$0x3] }
 0x12b   : > { %10304 = vst [vmem:[#allocation41_spill] sm:$0xff] %v6643_v49  ;;  %1827 = vmatmul.f32.gmra.mxu2 %v920_v30  ;;  %v2006_v19 = vpop.f32.mrf.mxu0  ;;  %v1081_v49 = vrot.slane %v646_v60, 1  ;;  %v647_v60 = vld [vmem:[#allocation2 + $0xf0] sm:$0xff] }
 0x12c   : > { %1940 = vmatmul.f32.gmra.mxu3 %v644_v13  ;;  %v545_v13 = vld [vmem:[%s10174_s3 + $0x3a8] sm:$0xff]  ;;  %v1083_v31 = vrot.slane %v647_v60, 1  ;;  %v1195_v55 = vrot.slane %v647_v60, 2 }
 0x12d   : > { %v2119_v27 = vpop.f32.mrf.mxu1  ;;  %2338 = vmatpush.msra.mxu3 %v545_v13  ;;  %v1082_v2 = vsel %vm764_vm0, %v1079_v53, %v1081_v49 }
 0x12e   : > { %v1780_v32 = vpop.f32.mrf.mxu2  ;;  %2053 = vmatmul.f32.gmra.mxu0 %v1080_v35  ;;  %v5621_v35 = vld [vmem:[#allocation2 + $0xe0] sm:$0xff] }
 0x12f   : > { %v1893_v30 = vpop.f32.mrf.mxu3  ;;  %v1781_v43 = vadd.f32 %v1780_v32, %v1668_v8  ;;  %v924_v13 = vrot.slane %v5621_v35, 2  ;;  %v648_v8 = vld [vmem:[#allocation2 + $0xf8] sm:$0xff]  ;;  %v1671_v32 = vadd.f32 %v6402_v37, %v1558_v33  ;;  %v1561_v37 = vadd.f32 %v6374_v4, %v6409_v29 }
 0x130   : > { %2166 = vmatmul.f32.gmra.mxu1 %v1192_v18  ;;  %v1084_v49 = vrot.slane %v648_v8, 1 }
 0x131   : > { %v1894_v20 = vadd.f32 %v1893_v30, %v1781_v43  ;;  %v925_v18 = vsel %vm877_vm1, %v923_v47, %v924_v13  ;;  %v1196_v30 = vrot.slane %v648_v8, 2  ;;  %v649_v47 = vld [vmem:[#allocation2 + $0x100] sm:$0x3]  ;;  %v1674_v35 = vadd.f32 %v6418_v56, %v1561_v37 }
 0x132   : > { %v1564_v56 = vadd.f32 %v6374_v4, %v6427_v39 }
 0x133   : > { %v2007_v16 = vadd.f32 %v2006_v19, %v1894_v20  ;;  %1830 = vmatmul.f32.gmra.mxu2 %v922_v7  ;;  %v2009_v24 = vpop.f32.mrf.mxu0  ;;  %v561_v7 = vld [vmem:[%s10174_s3 + $0x428] sm:$0xff]  ;;  %v1085_v20 = vsel %vm764_vm0, %v1083_v31, %v1084_v49  ;;  %v1198_v31 = vrot.slane %v649_v47, 2 }
 0x134   : > { %1943 = vmatmul.f32.gmra.mxu3 %v645_v48  ;;  %2451 = vmatpush.msra.mxu0 %v561_v7 }
 0x135   : > { %v6659_v36 = vadd.f32 %v2119_v27, %v2007_v16  ;;  %v2122_v21 = vpop.f32.mrf.mxu1  ;;  %v926_v16 = vrot.slane %v5622_v1, 2  ;;  %v651_v1 = vld [vmem:[#allocation2 + $0x110] sm:$0xff]  ;;  %v1199_v39 = vsel %vm877_vm1, %v1196_v30, %v1198_v31  ;;  %v5625_v31 = vld [vmem:[#allocation2 + $0x100] sm:$0x3] }
 0x136   : > { %v1783_v48 = vpop.f32.mrf.mxu2  ;;  %2056 = vmatmul.f32.gmra.mxu0 %v1082_v2  ;;  %v528_v2 = vld [vmem:[%s10174_s3 + $0x320] sm:$0xff] }
 0x137   : > { %v1896_v19 = vpop.f32.mrf.mxu3  ;;  %v1784_v53 = vadd.f32 %v1783_v48, %v1671_v32  ;;  %2226 = vmatpush.msra.mxu2 %v528_v2 }
 0x138   : > { %2169 = vmatmul.f32.gmra.mxu1 %v1194_v10  ;;  %v544_v10 = vld [vmem:[%s10174_s3 + $0x3a0] sm:$0xff] }
 0x139   : > { %v1897_v27 = vadd.f32 %v1896_v19, %v1784_v53  ;;  %2339 = vmatpush.msra.mxu3 %v544_v10  ;;  %v927_v53 = vsel %vm877_vm1, %v924_v13, %v926_v16 }
 0x13b   : > { %v2010_v43 = vadd.f32 %v2009_v24, %v1897_v27  ;;  %1833 = vmatmul.f32.gmra.mxu2 %v925_v18  ;;  %v2012_v33 = vpop.f32.mrf.mxu0  ;;  %v1197_v24 = vsel %vm877_vm1, %v1195_v55, %v1196_v30  ;;  %v5623_v55 = vld [vmem:[#allocation2 + $0xf0] sm:$0xff] }
 0x13c   : > { %1946 = vmatmul.f32.gmra.mxu3 %v647_v60  ;;  %v1086_v60 = vrot.slane %v649_v47, 1 }
 0x13d   : > { %v6673_v29 = vadd.f32 %v2122_v21, %v2010_v43  ;;  %v2125_v32 = vpop.f32.mrf.mxu1  ;;  %v928_v43 = vrot.slane %v5623_v55, 2 }
 0x13e   : > { %v1786_v7 = vpop.f32.mrf.mxu2  ;;  %2059 = vmatmul.f32.gmra.mxu0 %v1085_v20  ;;  %v1087_v27 = vsel %vm764_vm0, %v1084_v49, %v1086_v60  ;;  %v5624_v20 = vld [vmem:[#allocation2 + $0xf8] sm:$0xff] }
 0x13f   : > { %v1899_v48 = vpop.f32.mrf.mxu3  ;;  %v1787_v19 = vadd.f32 %v1786_v7, %v1674_v35  ;;  %v929_v2 = vrot.slane %v5624_v20, 2  ;;  %v1677_v35 = vadd.f32 %v6434_v46, %v1564_v56  ;;  %v1089_v7 = vrot.slane %v651_v1, 1  ;;  %v543_v20 = vld [vmem:[%s10174_s3 + $0x398] sm:$0xff] }
 0x140   : > { %2172 = vmatmul.f32.gmra.mxu1 %v1197_v24  ;;  %v650_v24 = vld [vmem:[#allocation2 + $0x108] sm:$0xff]  ;;  %v1567_v46 = vadd.f32 %v6374_v4, %v6445_v44  ;;  %2340 = vmatpush.msra.mxu3 %v543_v20 }
 0x141   : > { %v1900_v21 = vadd.f32 %v1899_v48, %v1787_v19  ;;  %v1088_v10 = vrot.slane %v650_v24, 1  ;;  %v930_v48 = vsel %vm877_vm1, %v928_v43, %v929_v2  ;;  %v1200_v30 = vrot.slane %v650_v24, 2 }
 0x142   : > { %v1201_v19 = vrot.slane %v651_v1, 2  ;;  %v1680_v55 = vadd.f32 %v6454_v59, %v1567_v46  ;;  %v1570_v59 = vadd.f32 %v6374_v4, %v6464_v62  ;;  %v5626_v46 = vld [vmem:[#allocation2 + $0x108] sm:$0xff] }
 0x143   : > { %v2013_v18 = vadd.f32 %v2012_v33, %v1900_v21  ;;  %1836 = vmatmul.f32.gmra.mxu2 %v927_v53  ;;  %v2015_v37 = vpop.f32.mrf.mxu0  ;;  %v560_v33 = vld [vmem:[%s10174_s3 + $0x420] sm:$0xff]  ;;  %v1090_v56 = vsel %vm764_vm0, %v1088_v10, %v1089_v7  ;;  %v527_v21 = vld [vmem:[%s10174_s3 + $0x318] sm:$0xff] }
 0x144   : > { %1949 = vmatmul.f32.gmra.mxu3 %v648_v8  ;;  %2452 = vmatpush.msra.mxu0 %v560_v33 }
 0x145   : > { %v6684_v13 = vadd.f32 %v2125_v32, %v2013_v18  ;;  %v2128_v16 = vpop.f32.mrf.mxu1  ;;  %v931_v18 = vrot.slane %v5625_v31, 2  ;;  %2227 = vmatpush.msra.mxu2 %v527_v21  ;;  %v1683_v21 = vadd.f32 %v6471_v14, %v1570_v59  ;;  %v1573_v14 = vadd.f32 %v6374_v4, %v6480_v57  ;;  %v5628_v59 = vld [vmem:[#allocation2 + $0x118] sm:$0x3] }
 0x146   : > { %v1789_v8 = vpop.f32.mrf.mxu2  ;;  %2062 = vmatmul.f32.gmra.mxu0 %v1087_v27  ;;  %v652_v27 = vld [vmem:[#allocation2 + $0x118] sm:$0x3] }
 0x147   : > { %v1902_v47 = vpop.f32.mrf.mxu3  ;;  %v1790_v49 = vadd.f32 %v1789_v8, %v1677_v35  ;;  %v1091_v8 = vrot.slane %v652_v27, 1 }
 0x148   : > { %2175 = vmatmul.f32.gmra.mxu1 %v1199_v39 }
 0x149   : > { %v1903_v32 = vadd.f32 %v1902_v47, %v1790_v49  ;;  %v932_v47 = vsel %vm877_vm1, %v929_v2, %v931_v18 }
 0x14b   : > { %v2016_v60 = vadd.f32 %v2015_v37, %v1903_v32  ;;  %1839 = vmatmul.f32.gmra.mxu2 %v930_v48  ;;  %v2018_v53 = vpop.f32.mrf.mxu0  ;;  %v1202_v37 = vsel %vm877_vm1, %v1200_v30, %v1201_v19  ;;  %v1092_v48 = vsel %vm764_vm0, %v1089_v7, %v1091_v8  ;;  %v933_v32 = vrot.slane %v5626_v46, 2  ;;  %v5627_v30 = vld [vmem:[#allocation2 + $0x110] sm:$0xff] }
 0x14c   : > { %1952 = vmatmul.f32.gmra.mxu3 %v650_v24  ;;  %v1203_v24 = vrot.slane %v652_v27, 2  ;;  %v653_v27 = vld [vmem:[#allocation2 + $0x120] sm:$0xff] }
 0x14d   : > { %v6698_v44 = vadd.f32 %v2128_v16, %v2016_v60  ;;  %v2131_v43 = vpop.f32.mrf.mxu1  ;;  %v934_v60 = vrot.slane %v5627_v30, 2 }
 0x14e   : > { %v1792_v35 = vpop.f32.mrf.mxu2  ;;  %2065 = vmatmul.f32.gmra.mxu0 %v1090_v56  ;;  %v654_v56 = vld [vmem:[#allocation2 + $0x128] sm:$0xff]  ;;  %v1204_v62 = vsel %vm877_vm1, %v1201_v19, %v1203_v24  ;;  %v1205_v19 = vrot.slane %v653_v27, 2  ;;  %v655_v24 = vld [vmem:[#allocation2 + $0x130] sm:$0x3] }
 0x14f   : > { %v1905_v39 = vpop.f32.mrf.mxu3  ;;  %v1793_v33 = vadd.f32 %v1792_v35, %v1680_v55  ;;  %v1093_v55 = vrot.slane %v653_v27, 1  ;;  %v935_v20 = vsel %vm877_vm1, %v933_v32, %v934_v60  ;;  %v1206_v35 = vrot.slane %v654_v56, 2 }
 0x150   : > { %2178 = vmatmul.f32.gmra.mxu1 %v1202_v37  ;;  %v1094_v37 = vrot.slane %v654_v56, 1 }
 0x151   : > { %v1906_v16 = vadd.f32 %v1905_v39, %v1793_v33 }
 0x152   : > { %v1095_v8 = vsel %vm764_vm0, %v1093_v55, %v1094_v37  ;;  %v5629_v55 = vld [vmem:[#allocation2 + $0x120] sm:$0xff] }
 0x153   : > { %v2019_v49 = vadd.f32 %v2018_v53, %v1906_v16  ;;  %1842 = vmatmul.f32.gmra.mxu2 %v932_v47  ;;  %v2021_v10 = vpop.f32.mrf.mxu0  ;;  %v559_v53 = vld [vmem:[%s10174_s3 + $0x418] sm:$0xff]  ;;  %v526_v47 = vld [vmem:[%s10174_s3 + $0x310] sm:$0xff]  ;;  %v936_v16 = vrot.slane %v5628_v59, 2 }
 0x154   : > { %1955 = vmatmul.f32.gmra.mxu3 %v651_v1  ;;  %2453 = vmatpush.msra.mxu0 %v559_v53 }
 0x155   : > { %v6709_v2 = vadd.f32 %v2131_v43, %v2019_v49  ;;  %v2134_v31 = vpop.f32.mrf.mxu1  ;;  %2228 = vmatpush.msra.mxu2 %v526_v47  ;;  %v1686_v49 = vadd.f32 %v6489_v50, %v1573_v14  ;;  %v1576_v50 = vadd.f32 %v6374_v4, %v6498_v63  ;;  %v5630_v14 = vld [vmem:[#allocation2 + $0x128] sm:$0xff]  ;;  %v558_v63 = vld [vmem:[%s10174_s3 + $0x410] sm:$0xff]  ;;  %v656_v47 = vld [vmem:[#allocation2 + $0x138] sm:$0xff] }
 0x156   : > { %v1795_v1 = vpop.f32.mrf.mxu2  ;;  %2068 = vmatmul.f32.gmra.mxu0 %v1092_v48  ;;  %v1207_v48 = vsel %vm877_vm1, %v1205_v19, %v1206_v35  ;;  %v657_v19 = vld [vmem:[#allocation2 + $0x140] sm:$0xff]  ;;  %v1098_v59 = vrot.slane %v656_v47, 1 }
 0x157   : > { %v1908_v18 = vpop.f32.mrf.mxu3  ;;  %v1796_v7 = vadd.f32 %v1795_v1, %v1683_v21  ;;  %v1096_v21 = vrot.slane %v655_v24, 1  ;;  %v1208_v1 = vrot.slane %v655_v24, 2  ;;  %2454 = vmatpush.msra.mxu0 %v558_v63 }
 0x158   : > { %2181 = vmatmul.f32.gmra.mxu1 %v1204_v62  ;;  %v937_v62 = vsel %vm877_vm1, %v934_v60, %v936_v16  ;;  %v1689_v60 = vadd.f32 %v6505_v45, %v1576_v50  ;;  %v1099_v16 = vrot.slane %v657_v19, 1  ;;  %v1579_v45 = vadd.f32 %v6374_v4, %v6514_v61  ;;  %v658_v50 = vld [vmem:[#allocation2 + $0x148] sm:$0x3] }
 0x159   : > { %v1909_v43 = vadd.f32 %v1908_v18, %v1796_v7  ;;  %v1097_v7 = vsel %vm764_vm0, %v1094_v37, %v1096_v21  ;;  %v525_v21 = vld [vmem:[%s10174_s3 + $0x308] sm:$0xff] }
 0x15a   : > { %2229 = vmatpush.msra.mxu2 %v525_v21  ;;  %v1692_v4 = vadd.f32 %v6523_v40, %v1579_v45  ;;  %v6758_v40 = vld [vmem:[%s10175_s4] ss:$0 sm:$0xff]  ;;  %v6766_v45 = vld [vmem:[%s5759_s28 + $0xf0] sm:$0xff] }
 0x15b   : > { %v2022_v39 = vadd.f32 %v2021_v10, %v1909_v43  ;;  %1845 = vmatmul.f32.gmra.mxu2 %v935_v20  ;;  %v2024_v33 = vpop.f32.mrf.mxu0  ;;  %v542_v10 = vld [vmem:[%s10174_s3 + $0x390] sm:$0xff]  ;;  %v938_v20 = vrot.slane %v5629_v55, 2  ;;  %v939_v43 = vrot.slane %v5630_v14, 2  ;;  %v1101_v55 = vrot.slane %v658_v50, 1  ;;  %10305 = vst [vmem:[#allocation42_spill] sm:$0xff] %v6766_v45 }
 0x15c   : > { %1958 = vmatmul.f32.gmra.mxu3 %v653_v27  ;;  %v1582_v14 = vadd.f32 %v6758_v40, %v6532_v25  ;;  %379 = vst [vmem:[#allocation2 + $0x181] sm:$0xff] %v6766_v45 }
 0x15d   : > { %v6723_v57 = vadd.f32 %v2134_v31, %v2022_v39  ;;  %2341 = vmatpush.msra.mxu3 %v542_v10  ;;  %v2137_v53 = vpop.f32.mrf.mxu1  ;;  %v940_v24 = vsel %vm877_vm1, %v938_v20, %v939_v43  ;;  %396 = vst [vmem:[#allocation2 + $0x17f] sm:$0x2] %v6766_v45 }
 0x15e   : > { %v1798_v46 = vpop.f32.mrf.mxu2  ;;  %2071 = vmatmul.f32.gmra.mxu0 %v1095_v8  ;;  %v1209_v8 = vsel %vm877_vm1, %v1206_v35, %v1208_v1  ;;  %v1210_v35 = vrot.slane %v656_v47, 2  ;;  %v541_v1 = vld [vmem:[%s10174_s3 + $0x388] sm:$0xff] }
 0x15f   : > { %v1911_v32 = vpop.f32.mrf.mxu3  ;;  %v1799_v30 = vadd.f32 %v1798_v46, %v1686_v49  ;;  %2342 = vmatpush.msra.mxu3 %v541_v1 }
 0x160   : > { %2184 = vmatmul.f32.gmra.mxu1 %v1207_v48  ;;  %v1211_v48 = vrot.slane %v657_v19, 2 }
 0x161   : > { %v1912_v31 = vadd.f32 %v1911_v32, %v1799_v30  ;;  %v1100_v30 = vsel %vm764_vm0, %v1098_v59, %v1099_v16 }
 0x163   : > { %v2025_v18 = vadd.f32 %v2024_v33, %v1912_v31  ;;  %1848 = vmatmul.f32.gmra.mxu2 %v937_v62  ;;  %v2027_v27 = vpop.f32.mrf.mxu0  ;;  %v5631_v62 = vld [vmem:[#allocation2 + $0x130] sm:$0x3]  ;;  %v1212_v31 = vsel %vm877_vm1, %v1210_v35, %v1211_v48  ;;  %v557_v35 = vld [vmem:[%s10174_s3 + $0x408] sm:$0xff] }
 0x164   : > { %1961 = vmatmul.f32.gmra.mxu3 %v654_v56  ;;  %2455 = vmatpush.msra.mxu0 %v557_v35 }
 0x165   : > { %v6734_v39 = vadd.f32 %v2137_v53, %v2025_v18  ;;  %v2140_v10 = vpop.f32.mrf.mxu1  ;;  %v941_v53 = vrot.slane %v5631_v62, 2 }
 0x166   : > { %v1801_v33 = vpop.f32.mrf.mxu2  ;;  %2074 = vmatmul.f32.gmra.mxu0 %v1097_v7 }
 0x167   : > { %v1914_v56 = vpop.f32.mrf.mxu3  ;;  %v1802_v37 = vadd.f32 %v1801_v33, %v1689_v60  ;;  %v942_v20 = vsel %vm877_vm1, %v939_v43, %v941_v53  ;;  %v5633_v43 = vld [vmem:[#allocation2 + $0x138] sm:$0xff] }
 0x168   : > { %2187 = vmatmul.f32.gmra.mxu1 %v1209_v8  ;;  %v1213_v8 = vrot.slane %v658_v50, 2  ;;  %v6779_v50 = vld [vmem:[%s5759_s28 + $0xf8] sm:$0xff]  ;;  %s5563_s28 = sshll.u32 %s10619_s25, 1 }
 0x169   : > { %v1915_v49 = vadd.f32 %v1914_v56, %v1802_v37  ;;  %v1102_v56 = vsel %vm764_vm0, %v1099_v16, %v1101_v55  ;;  %v5634_v37 = vld [vmem:[#allocation2 + $0x140] sm:$0xff]  ;;  %10306 = vst [vmem:[#allocation43_spill] sm:$0xff] %v6779_v50  ;;  %s303_s10 = scalar_lea.vmem %s10172_s1, %s5563_s28  ;;  %s307_s26 = scalar_lea.vmem %s10173_s2, %s5563_s28 }
 0x16a   : > { %v944_v59 = vrot.slane %v5634_v37, 2  ;;  %v1214_v25 = vsel %vm877_vm1, %v1211_v48, %v1213_v8  ;;  %v1585_v48 = vadd.f32 %v6758_v40, %v6548_v3  ;;  %380 = vst [vmem:[#allocation2 + $0x189] sm:$0xff] %v6779_v50  ;;  %v5635_v3 = vld [vmem:[#allocation2 + $0x148] sm:$0x3] }
 0x16b   : > { %v2028_v46 = vadd.f32 %v2027_v27, %v1915_v49  ;;  %1851 = vmatmul.f32.gmra.mxu2 %v940_v24  ;;  %v2030_v32 = vpop.f32.mrf.mxu0  ;;  %v660_v24 = vld [vmem:[#allocation2 + $0x158] sm:$0xff]  ;;  %v1695_v49 = vadd.f32 %v6539_v6, %v1582_v14  ;;  %412 = vst [vmem:[#allocation2 + $0x18b] sm:$0x40] %v6779_v50  ;;  %v540_v14 = vld [vmem:[%s10174_s3 + $0x380] sm:$0xff] }
 0x16c   : > { %1964 = vmatmul.f32.gmra.mxu3 %v656_v47  ;;  %v943_v47 = vrot.slane %v5633_v43, 2  ;;  %v1216_v53 = vrot.slane %v660_v24, 2  ;;  %v1698_v55 = vadd.f32 %v6557_v23, %v1585_v48 }
 0x16d   : > { %v6748_v61 = vadd.f32 %v2140_v10, %v2028_v46  ;;  %v659_v10 = vld [vmem:[#allocation2 + $0x150] sm:$0xff]  ;;  %2343 = vmatpush.msra.mxu3 %v540_v14 }
 0x16e   : > { %v1804_v18 = vpop.f32.mrf.mxu2  ;;  %2077 = vmatmul.f32.gmra.mxu0 %v1100_v30  ;;  %v1104_v30 = vrot.slane %v660_v24, 1  ;;  %v945_v6 = vsel %vm877_vm1, %v943_v47, %v944_v59  ;;  %v1215_v62 = vrot.slane %v659_v10, 2  ;;  %v1588_v47 = vadd.f32 %v6758_v40, %v6566_v9  ;;  %v556_v9 = vld [vmem:[%s10174_s3 + $0x400] sm:$0xff] }
 0x16f   : > { %v1917_v27 = vpop.f32.mrf.mxu3  ;;  %v1805_v7 = vadd.f32 %v1804_v18, %v1692_v4  ;;  %v524_v18 = vld [vmem:[%s10174_s3 + $0x300] sm:$0xff]  ;;  %2456 = vmatpush.msra.mxu0 %v556_v9 }
 0x170   : > { %2190 = vmatmul.f32.gmra.mxu1 %v1212_v31  ;;  %2230 = vmatpush.msra.mxu2 %v524_v18 }
 0x171   : > { %v1918_v60 = vadd.f32 %v1917_v27, %v1805_v7  ;;  %v946_v27 = vrot.slane %v5635_v3, 2  ;;  %v661_v7 = vld [vmem:[#allocation2 + $0x160] sm:$0x3] }
 0x172   : > { %v1218_v23 = vrot.slane %v661_v7, 2 }
 0x173   : > { %v6762_v63 = vadd.f32 %v2030_v32, %v1918_v60  ;;  %1854 = vmatmul.f32.gmra.mxu2 %v942_v20  ;;  %v2033_v33 = vpop.f32.mrf.mxu0  ;;  %v1103_v32 = vrot.slane %v659_v10, 1  ;;  %v1217_v20 = vsel %vm877_vm1, %v1215_v62, %v1216_v53  ;;  %v947_v43 = vsel %vm877_vm1, %v944_v59, %v946_v27  ;;  %v662_v62 = vld [vmem:[#allocation2 + $0x168] sm:$0xff] }
 0x174   : > { %1967 = vmatmul.f32.gmra.mxu3 %v657_v19  ;;  %v1701_v59 = vadd.f32 %v6573_v54, %v1588_v47  ;;  %v1591_v54 = vadd.f32 %v6758_v40, %v6582_v52 }
 0x175   : > { %v1105_v1 = vsel %vm764_vm0, %v1103_v32, %v1104_v30  ;;  %v663_v32 = vld [vmem:[#allocation2 + $0x170] sm:$0xff] }
 0x176   : > { %v1807_v19 = vpop.f32.mrf.mxu2  ;;  %2080 = vmatmul.f32.gmra.mxu0 %v1102_v56  ;;  %v1106_v56 = vrot.slane %v661_v7, 1  ;;  %v1221_v3 = vrot.slane %v663_v32, 2 }
 0x177   : > { %v1920_v16 = vpop.f32.mrf.mxu3  ;;  %v1808_v46 = vadd.f32 %v1807_v19, %v1695_v49  ;;  %v5636_v19 = vld [vmem:[#allocation2 + $0x150] sm:$0xff] }
 0x178   : > { %2193 = vmatmul.f32.gmra.mxu1 %v1214_v25  ;;  %v1107_v35 = vsel %vm764_vm0, %v1104_v30, %v1106_v56  ;;  %v1109_v30 = vrot.slane %v663_v32, 1 }
 0x179   : > { %v1921_v21 = vadd.f32 %v1920_v16, %v1808_v46  ;;  %v948_v16 = vrot.slane %v5636_v19, 2 }
 0x17b   : > { %v6782_v4 = vadd.f32 %v2033_v33, %v1921_v21  ;;  %1857 = vmatmul.f32.gmra.mxu2 %v945_v6  ;;  %v2036_v31 = vpop.f32.mrf.mxu0  ;;  %v1219_v6 = vsel %vm877_vm1, %v1216_v53, %v1218_v23  ;;  %v1220_v53 = vrot.slane %v662_v62, 2  ;;  %v1594_v23 = vadd.f32 %v6758_v40, %v6600_v28 }
 0x17c   : > { %1970 = vmatmul.f32.gmra.mxu3 %v659_v10  ;;  %v5637_v10 = vld [vmem:[#allocation2 + $0x158] sm:$0xff] }
 0x17d   : > { %v949_v46 = vrot.slane %v5637_v10, 2  ;;  %v5639_v10 = vld [vmem:[#allocation2 + $0x168] sm:$0xff] }
 0x17e   : > { %v1810_v60 = vpop.f32.mrf.mxu2  ;;  %2083 = vmatmul.f32.gmra.mxu0 %v1105_v1 }
 0x17f   : > { %v1923_v8 = vpop.f32.mrf.mxu3  ;;  %v1811_v33 = vadd.f32 %v1810_v60, %v1698_v55  ;;  %v950_v1 = vsel %vm877_vm1, %v948_v16, %v949_v46  ;;  %v664_v60 = vld [vmem:[#allocation2 + $0x178] sm:$0x3] }
 0x180   : > { %2196 = vmatmul.f32.gmra.mxu1 %v1217_v20  ;;  %v5638_v20 = vld [vmem:[#allocation2 + $0x160] sm:$0x3]  ;;  %v1111_v47 = vrot.slane %v664_v60, 1 }
 0x181   : > { %v1924_v37 = vadd.f32 %v1923_v8, %v1811_v33  ;;  %v951_v14 = vrot.slane %v5638_v20, 2  ;;  %v1704_v8 = vadd.f32 %v6591_v0, %v1591_v54  ;;  %v1222_v33 = vsel %vm877_vm1, %v1220_v53, %v1221_v3  ;;  %v5641_v20 = vld [vmem:[#allocation2 + $0x178] sm:$0x3] }
 0x182   : > { %v1112_v16 = vsel %vm764_vm0, %v1109_v30, %v1111_v47  ;;  %v1597_v54 = vadd.f32 %v6758_v40, %v6613_v15 }
 0x183   : > { %v6797_v49 = vadd.f32 %v2036_v31, %v1924_v37  ;;  %1860 = vmatmul.f32.gmra.mxu2 %v947_v43  ;;  %v2039_v25 = vpop.f32.mrf.mxu0  ;;  %v1108_v31 = vrot.slane %v662_v62, 1  ;;  %v952_v37 = vsel %vm877_vm1, %v949_v46, %v951_v14  ;;  %v1707_v46 = vadd.f32 %v6604_v38, %v1594_v23 }
 0x184   : > { %1973 = vmatmul.f32.gmra.mxu3 %v660_v24  ;;  %v956_v14 = vrot.slane %v5641_v20, 2 }
 0x185   : > { %v1110_v55 = vsel %vm764_vm0, %v1108_v31, %v1109_v30 }
 0x186   : > { %v1813_v48 = vpop.f32.mrf.mxu2  ;;  %2086 = vmatmul.f32.gmra.mxu0 %v1107_v35  ;;  %v1223_v35 = vrot.slane %v664_v60, 2  ;;  %v667_v60 = vld [vmem:[#allocation2 + $0x190] sm:$0x3] }
 0x187   : > { %v1926_v21 = vpop.f32.mrf.mxu3  ;;  %v1814_v24 = vadd.f32 %v1813_v48, %v1701_v59  ;;  %v953_v59 = vrot.slane %v5639_v10, 2  ;;  %v6819_v48 = vld [vmem:[#allocation2 + $0x188] sm:$0xff] }
 0x188   : > { %2199 = vmatmul.f32.gmra.mxu1 %v1219_v6  ;;  %v5640_v6 = vld [vmem:[#allocation2 + $0x170] sm:$0xff]  ;;  %v6830_v38 = vrot.slane %v6819_v48, 2 }
 0x189   : > { %v1927_v18 = vadd.f32 %v1926_v21, %v1814_v24  ;;  %v954_v9 = vrot.slane %v5640_v6, 2  ;;  %v1224_v21 = vsel %vm877_vm1, %v1221_v3, %v1223_v35  ;;  %v665_v24 = vld [vmem:[#allocation2 + $0x180] sm:$0xff]  ;;  %v669_v35 = vld [vmem:[#allocation2 + $0x38] sm:$0xff] }
 0x18a   : > { %v1225_v53 = vrot.slane %v665_v24, 2  ;;  %v1311_v6 = vrot.slane %v669_v35, 1 }
 0x18b   : > { %v6808_v27 = vadd.f32 %v2039_v25, %v1927_v18  ;;  %1863 = vmatmul.f32.gmra.mxu2 %v950_v1  ;;  %v2042_v7 = vpop.f32.mrf.mxu0  ;;  %v1113_v1 = vrot.slane %v665_v24, 1  ;;  %v955_v30 = vsel %vm877_vm1, %v953_v59, %v954_v9  ;;  %v957_v47 = vsel %vm877_vm1, %v954_v9, %v956_v14 }
 0x18c   : > { %1976 = vmatmul.f32.gmra.mxu3 %v662_v62  ;;  %v1227_v15 = vsel %vm877_vm1, %v1225_v53, %v6830_v38 }
 0x18e   : > { %v1816_v56 = vpop.f32.mrf.mxu2  ;;  %2089 = vmatmul.f32.gmra.mxu0 %v1110_v55 }
 0x18f   : > { %v1929_v43 = vpop.f32.mrf.mxu3  ;;  %v1817_v52 = vadd.f32 %v1816_v56, %v1704_v8  ;;  %v1710_v8 = vadd.f32 %v6620_v5, %v1597_v54 }
 0x190   : > { %2202 = vmatmul.f32.gmra.mxu1 %v1222_v33 }
 0x191   : > { %v1930_v25 = vadd.f32 %v1929_v43, %v1817_v52  ;;  %v1116_v52 = vrot.slane %v667_v60, 1 }
 0x193   : > { %v6816_v19 = vadd.f32 %v2042_v7, %v1930_v25  ;;  %1866 = vmatmul.f32.gmra.mxu2 %v952_v37  ;;  %v2045_v0 = vpop.f32.mrf.mxu0  ;;  %v1600_v37 = vadd.f32 %v6758_v40, %v6630_v58  ;;  %v668_v25 = vld [vmem:[#allocation2 + $0x30] sm:$0xff] }
 0x194   : > { %1979 = vmatmul.f32.gmra.mxu3 %v663_v32  ;;  %v6824_v32 = vrot.slane %v6819_v48, 1  ;;  %v1310_v59 = vrot.slane %v668_v25, 1 }
 0x195   : > { %v1713_v9 = vadd.f32 %v6633_v11, %v1600_v37 }
 0x196   : > { %v1819_v28 = vpop.f32.mrf.mxu2  ;;  %2092 = vmatmul.f32.gmra.mxu0 %v1112_v16  ;;  %v1115_v55 = vsel %vm764_vm0, %v1113_v1, %v6824_v32  ;;  %v1117_v10 = vsel %vm764_vm0, %v6824_v32, %v1116_v52  ;;  %v670_v1 = vld [vmem:[#allocation2 + $0x40] sm:$0x3] }
 0x197   : > { %v1932_v62 = vpop.f32.mrf.mxu3  ;;  %v1820_v31 = vadd.f32 %v1819_v28, %v1707_v46  ;;  %v1422_v28 = vrot.slane %v668_v25, 2  ;;  %v1425_v20 = vrot.slane %v670_v1, 2 }
 0x198   : > { %2205 = vmatmul.f32.gmra.mxu1 %v1224_v21 }
 0x199   : > { %v1933_v18 = vadd.f32 %v1932_v62, %v1820_v31  ;;  %v1423_v62 = vrot.slane %v669_v35, 2 }
 0x19b   : > { %v6832_v3 = vadd.f32 %v2045_v0, %v1933_v18  ;;  %1869 = vmatmul.f32.gmra.mxu2 %v955_v30  ;;  %v2048_v7 = vpop.f32.mrf.mxu0  ;;  %v1228_v0 = vrot.slane %v667_v60, 2  ;;  %v1424_v11 = vsel %vm877_vm1, %v1422_v28, %v1423_v62  ;;  %v1313_v18 = vrot.slane %v670_v1, 1 }
 0x19c   : > { %1982 = vmatmul.f32.gmra.mxu3 %v665_v24  ;;  %v1312_v24 = vsel %vm764_vm0, %v1310_v59, %v1311_v6  ;;  %v673_v59 = vld [vmem:[#allocation2 + $0x58] sm:$0x3] }
 0x19d   : > { %v1229_v58 = vsel %vm877_vm1, %v6830_v38, %v1228_v0  ;;  %v1314_v14 = vsel %vm764_vm0, %v1311_v6, %v1313_v18 }
 0x19e   : > { %v1822_v33 = vpop.f32.mrf.mxu2  ;;  %2095 = vmatmul.f32.gmra.mxu0 %v1115_v55 }
 0x19f   : > { %v1935_v56 = vpop.f32.mrf.mxu3  ;;  %v1823_v43 = vadd.f32 %v1822_v33, %v1710_v8  ;;  %v671_v8 = vld [vmem:[#allocation2 + $0x48] sm:$0xff] }
 0x1a0   : > { %2208 = vmatmul.f32.gmra.mxu1 %v1227_v15  ;;  %v672_v15 = vld [vmem:[#allocation2 + $0x50] sm:$0xff]  ;;  %v1315_v52 = vrot.slane %v671_v8, 1 }
 0x1a1   : > { %v1936_v23 = vadd.f32 %v1935_v56, %v1823_v43  ;;  %v1426_v43 = vsel %vm877_vm1, %v1423_v62, %v1425_v20  ;;  %v1428_v0 = vrot.slane %v672_v15, 2 }
 0x1a3   : > { %v6842_v16 = vadd.f32 %v2048_v7, %v1936_v23  ;;  %1872 = vmatmul.f32.gmra.mxu2 %v957_v47  ;;  %v2051_v5 = vpop.f32.mrf.mxu0  ;;  %v1316_v47 = vrot.slane %v672_v15, 1 }
 0x1a4   : > { %1985 = vmatmul.f32.gmra.mxu3 %v6819_v48 }
 0x1a6   : > { %v1825_v40 = vpop.f32.mrf.mxu2  ;;  %2098 = vmatmul.f32.gmra.mxu0 %v1117_v10 }
 0x1a7   : > { %v1938_v46 = vpop.f32.mrf.mxu3  ;;  %v1826_v21 = vadd.f32 %v1825_v40, %v1713_v9 }
 0x1a8   : > { %2211 = vmatmul.f32.gmra.mxu1 %v1229_v58  ;;  %v1318_v58 = vrot.slane %v673_v59, 1 }
 0x1a9   : > { %v1939_v31 = vadd.f32 %v1938_v46, %v1826_v21 }
 0x1aa   : > { %v1319_v28 = vsel %vm764_vm0, %v1316_v47, %v1318_v58 }
 0x1ab   : > { %v6851_v30 = vadd.f32 %v2051_v5, %v1939_v31  ;;  %2231 = vmatmul.f32.vlgmr.msra.gmra.mxu2 %v668_v25  ;;  %v2054_v54 = vpop.f32.mrf.mxu0  ;;  %v1427_v25 = vrot.slane %v671_v8, 2  ;;  %v1317_v5 = vsel %vm764_vm0, %v1315_v52, %v1316_v47  ;;  %v675_v31 = vld [vmem:[#allocation2 + $0x68] sm:$0xff] }
 0x1ac   : > { %2344 = vmatmul.f32.vlgmr.msra.gmra.mxu3 %v1312_v24  ;;  %v674_v24 = vld [vmem:[#allocation2 + $0x60] sm:$0xff] }
 0x1ad   : > { %v1429_v9 = vsel %vm877_vm1, %v1427_v25, %v1428_v0  ;;  %v1320_v18 = vrot.slane %v674_v24, 1  ;;  %v1432_v20 = vrot.slane %v674_v24, 2 }
 0x1ae   : > { %v1828_v53 = vpop.f32.mrf.mxu2  ;;  %2457 = vmatmul.f32.vlgmr.msra.gmra.mxu0 %v1424_v11 }
 0x1af   : > { %v1941_v7 = vpop.f32.mrf.mxu3  ;;  %v1829_v55 = vadd.f32 %v1828_v53, %v6392_v42  ;;  %v1321_v53 = vrot.slane %v675_v31, 1 }
 0x1b1   : > { %v1942_v60 = vadd.f32 %v1941_v7, %v1829_v55 }
 0x1b3   : > { %v6856_v33 = vadd.f32 %v2054_v54, %v1942_v60  ;;  %2234 = vmatmul.f32.gmra.mxu2 %v669_v35  ;;  %v2057_v56 = vpop.f32.mrf.mxu0  ;;  %v1322_v60 = vsel %vm764_vm0, %v1320_v18, %v1321_v53 }
 0x1b4   : > { %2347 = vmatmul.f32.gmra.mxu3 %v1314_v14  ;;  %v1433_v14 = vrot.slane %v675_v31, 2 }
 0x1b6   : > { %v1831_v37 = vpop.f32.mrf.mxu2  ;;  %2460 = vmatmul.f32.gmra.mxu0 %v1426_v43  ;;  %v1434_v52 = vsel %vm877_vm1, %v1432_v20, %v1433_v14 }
 0x1b7   : > { %v1944_v23 = vpop.f32.mrf.mxu3  ;;  %v1832_v42 = vadd.f32 %v1831_v37, %v6406_v22  ;;  %v1430_v22 = vrot.slane %v673_v59, 2 }
 0x1b9   : > { %v1945_v10 = vadd.f32 %v1944_v23, %v1832_v42  ;;  %v1431_v11 = vsel %vm877_vm1, %v1428_v0, %v1430_v22 }
 0x1bb   : > { %v6861_v6 = vadd.f32 %v2057_v56, %v1945_v10  ;;  %2237 = vmatmul.f32.gmra.mxu2 %v671_v8  ;;  %v2060_v35 = vpop.f32.mrf.mxu0  ;;  %v676_v56 = vld [vmem:[#allocation2 + $0x70] sm:$0x3]  ;;  %v678_v10 = vld [vmem:[#allocation2 + $0x80] sm:$0xff] }
 0x1bc   : > { %2350 = vmatmul.f32.gmra.mxu3 %v1317_v5  ;;  %v1323_v47 = vrot.slane %v676_v56, 1  ;;  %v677_v5 = vld [vmem:[#allocation2 + $0x78] sm:$0xff] }
 0x1bd   : > { %v1325_v58 = vrot.slane %v677_v5, 1  ;;  %v1437_v22 = vrot.slane %v677_v5, 2 }
 0x1be   : > { %v1834_v40 = vpop.f32.mrf.mxu2  ;;  %2463 = vmatmul.f32.gmra.mxu0 %v1429_v9  ;;  %v1324_v25 = vsel %vm764_vm0, %v1321_v53, %v1323_v47 }
 0x1bf   : > { %v1947_v46 = vpop.f32.mrf.mxu3  ;;  %v1835_v21 = vadd.f32 %v1834_v40, %v6424_v17  ;;  %v1326_v40 = vrot.slane %v678_v10, 1 }
 0x1c1   : > { %v1948_v62 = vadd.f32 %v1947_v46, %v1835_v21 }
 0x1c3   : > { %v6866_v1 = vadd.f32 %v2060_v35, %v1948_v62  ;;  %2240 = vmatmul.f32.gmra.mxu2 %v672_v15  ;;  %v2063_v54 = vpop.f32.mrf.mxu0  ;;  %v1327_v62 = vsel %vm764_vm0, %v1325_v58, %v1326_v40 }
 0x1c4   : > { %2353 = vmatmul.f32.gmra.mxu3 %v1319_v28  ;;  %v1438_v28 = vrot.slane %v678_v10, 2 }
 0x1c6   : > { %v1837_v7 = vpop.f32.mrf.mxu2  ;;  %2466 = vmatmul.f32.gmra.mxu0 %v1431_v11  ;;  %v1439_v18 = vsel %vm877_vm1, %v1437_v22, %v1438_v28 }
 0x1c7   : > { %v1950_v55 = vpop.f32.mrf.mxu3  ;;  %v1838_v17 = vadd.f32 %v1837_v7, %v6439_v41  ;;  %v1435_v41 = vrot.slane %v676_v56, 2 }
 0x1c9   : > { %v1951_v8 = vadd.f32 %v1950_v55, %v1838_v17  ;;  %v1436_v9 = vsel %vm877_vm1, %v1433_v14, %v1435_v41 }
 0x1cb   : > { %v6871_v43 = vadd.f32 %v2063_v54, %v1951_v8  ;;  %2243 = vmatmul.f32.gmra.mxu2 %v674_v24  ;;  %v2066_v15 = vpop.f32.mrf.mxu0  ;;  %v679_v54 = vld [vmem:[#allocation2 + $0x88] sm:$0x3]  ;;  %v681_v8 = vld [vmem:[#allocation2 + $0x98] sm:$0xff] }
 0x1cc   : > { %2356 = vmatmul.f32.gmra.mxu3 %v1322_v60  ;;  %v1328_v53 = vrot.slane %v679_v54, 1  ;;  %v680_v60 = vld [vmem:[#allocation2 + $0x90] sm:$0xff] }
 0x1cd   : > { %v1330_v47 = vrot.slane %v680_v60, 1  ;;  %v1442_v41 = vrot.slane %v680_v60, 2 }
 0x1ce   : > { %v1840_v37 = vpop.f32.mrf.mxu2  ;;  %2469 = vmatmul.f32.gmra.mxu0 %v1434_v52  ;;  %v1329_v20 = vsel %vm764_vm0, %v1326_v40, %v1328_v53 }
 0x1cf   : > { %v1953_v23 = vpop.f32.mrf.mxu3  ;;  %v1841_v42 = vadd.f32 %v1840_v37, %v6461_v34  ;;  %v1331_v37 = vrot.slane %v681_v8, 1 }
 0x1d1   : > { %v1954_v0 = vadd.f32 %v1953_v23, %v1841_v42 }
 0x1d3   : > { %v6876_v59 = vadd.f32 %v2066_v15, %v1954_v0  ;;  %2246 = vmatmul.f32.gmra.mxu2 %v675_v31  ;;  %v2069_v35 = vpop.f32.mrf.mxu0  ;;  %v1332_v0 = vsel %vm764_vm0, %v1330_v47, %v1331_v37 }
 0x1d4   : > { %2359 = vmatmul.f32.gmra.mxu3 %v1324_v25  ;;  %v1443_v25 = vrot.slane %v681_v8, 2 }
 0x1d5   : > { %10307 = vst [vmem:[#allocation44_spill] sm:$0xff] %v6876_v59 }
 0x1d6   : > { %v1843_v46 = vpop.f32.mrf.mxu2  ;;  %2472 = vmatmul.f32.gmra.mxu0 %v1436_v9  ;;  %v1444_v58 = vsel %vm877_vm1, %v1442_v41, %v1443_v25 }
 0x1d7   : > { %v1956_v21 = vpop.f32.mrf.mxu3  ;;  %v1844_v34 = vadd.f32 %v1843_v46, %v6475_v26  ;;  %v1440_v26 = vrot.slane %v679_v54, 2  ;;  %v684_v54 = vld [vmem:[#allocation2 + $0xb0] sm:$0xff] }
 0x1d9   : > { %v1957_v24 = vadd.f32 %v1956_v21, %v1844_v34  ;;  %v1441_v52 = vsel %vm877_vm1, %v1438_v28, %v1440_v26  ;;  %v10311_v34 = vld [vmem:[#allocation34_spill] sm:$0xff] }
 0x1db   : > { %v6881_v11 = vadd.f32 %v2069_v35, %v1957_v24  ;;  %2249 = vmatmul.f32.gmra.mxu2 %v677_v5  ;;  %v2072_v31 = vpop.f32.mrf.mxu0  ;;  %v682_v35 = vld [vmem:[#allocation2 + $0xa0] sm:$0x3]  ;;  %v683_v24 = vld [vmem:[#allocation2 + $0xa8] sm:$0xff] }
 0x1dc   : > { %2362 = vmatmul.f32.gmra.mxu3 %v1327_v62  ;;  %v1333_v40 = vrot.slane %v682_v35, 1 }
 0x1dd   : > { %10308 = vst [vmem:[#allocation45_spill] sm:$0xff] %v6881_v11 }
 0x1de   : > { %v1846_v7 = vpop.f32.mrf.mxu2  ;;  %2475 = vmatmul.f32.gmra.mxu0 %v1439_v18  ;;  %v1334_v28 = vsel %vm764_vm0, %v1331_v37, %v1333_v40  ;;  %v685_v37 = vld [vmem:[#allocation2 + $0xb8] sm:$0x3]  ;;  %v686_v40 = vld [vmem:[#allocation2 + $0xc0] sm:$0xff] }
 0x1df   : > { %v1959_v55 = vpop.f32.mrf.mxu3  ;;  %v1847_v17 = vadd.f32 %v1846_v7, %v6495_v51  ;;  %v1335_v7 = vrot.slane %v683_v24, 1 }
 0x1e1   : > { %v1960_v14 = vadd.f32 %v1959_v55, %v1847_v17  ;;  %v1336_v55 = vrot.slane %v684_v54, 1 }
 0x1e3   : > { %v6886_v56 = vadd.f32 %v2072_v31, %v1960_v14  ;;  %2252 = vmatmul.f32.gmra.mxu2 %v678_v10  ;;  %v2075_v15 = vpop.f32.mrf.mxu0 }
 0x1e4   : > { %2365 = vmatmul.f32.gmra.mxu3 %v1329_v20  ;;  %v10313_v20 = vld [vmem:[#allocation35_spill] sm:$0xff] }
 0x1e5   : > { %10309 = vst [vmem:[#allocation46_spill] sm:$0xff] %v6886_v56 }
 0x1e6   : > { %v1849_v23 = vpop.f32.mrf.mxu2  ;;  %2478 = vmatmul.f32.gmra.mxu0 %v1441_v52  ;;  %v1337_v52 = vsel %vm764_vm0, %v1335_v7, %v1336_v55  ;;  %v1452_v7 = vrot.slane %v686_v40, 2 }
 0x1e7   : > { %v1962_v42 = vpop.f32.mrf.mxu3  ;;  %v1850_v51 = vadd.f32 %v1849_v23, %v6509_v12  ;;  %v1445_v12 = vrot.slane %v682_v35, 2  ;;  %v1450_v35 = vrot.slane %v685_v37, 2 }
 0x1e9   : > { %v1963_v5 = vadd.f32 %v1962_v42, %v1850_v51  ;;  %v1446_v53 = vsel %vm877_vm1, %v1443_v25, %v1445_v12  ;;  %v1338_v51 = vrot.slane %v685_v37, 1  ;;  %v1340_v12 = vrot.slane %v686_v40, 1  ;;  %v10319_v37 = vld [vmem:[#allocation38_spill] sm:$0xff] }
 0x1eb   : > { %v6891_v9 = vadd.f32 %v2075_v15, %v1963_v5  ;;  %2255 = vmatmul.f32.gmra.mxu2 %v680_v60  ;;  %v2078_v10 = vpop.f32.mrf.mxu0  ;;  %v1447_v60 = vrot.slane %v683_v24, 2  ;;  %v1448_v15 = vrot.slane %v684_v54, 2 }
 0x1ec   : > { %2368 = vmatmul.f32.gmra.mxu3 %v1332_v0  ;;  %v10315_v0 = vld [vmem:[#allocation36_spill] sm:$0xff] }
 0x1ed   : > { %10310 = vst [vmem:[#allocation47_spill] sm:$0xff] %v6891_v9  ;;  %v1449_v42 = vsel %vm877_vm1, %v1447_v60, %v1448_v15 }
 0x1ee   : > { %v1852_v46 = vpop.f32.mrf.mxu2  ;;  %2481 = vmatmul.f32.gmra.mxu0 %v1444_v58 }
 0x1ef   : > { %v1965_v21 = vpop.f32.mrf.mxu3  ;;  %v1853_v22 = vadd.f32 %v1852_v46, %v10311_v34  ;;  %v687_v46 = vld [vmem:[#allocation2 + $0xc8] sm:$0xff] }
 0x1f1   : > { %v1966_v62 = vadd.f32 %v1965_v21, %v1853_v22  ;;  %v1451_v22 = vsel %vm877_vm1, %v1448_v15, %v1450_v35 }
 0x1f3   : > { %v6896_v31 = vadd.f32 %v2078_v10, %v1966_v62  ;;  %2258 = vmatmul.f32.gmra.mxu2 %v681_v8  ;;  %v2081_v18 = vpop.f32.mrf.mxu0  ;;  %v1339_v10 = vsel %vm764_vm0, %v1336_v55, %v1338_v51 }
 0x1f4   : > { %2371 = vmatmul.f32.gmra.mxu3 %v1334_v28  ;;  %v1341_v28 = vrot.slane %v687_v46, 1 }
 0x1f5   : > { %10312 = vst [vmem:[#allocation34_spill] sm:$0xff] %v6896_v31 }
 0x1f6   : > { %v1855_v17 = vpop.f32.mrf.mxu2  ;;  %2484 = vmatmul.f32.gmra.mxu0 %v1446_v53  ;;  %v1342_v55 = vsel %vm764_vm0, %v1340_v12, %v1341_v28  ;;  %v10321_v12 = vld [vmem:[#allocation39_spill] sm:$0xff] }
 0x1f7   : > { %v1968_v26 = vpop.f32.mrf.mxu3  ;;  %v1856_v14 = vadd.f32 %v1855_v17, %v10313_v20  ;;  %v1453_v17 = vrot.slane %v687_v46, 2  ;;  %v688_v20 = vld [vmem:[#allocation2 + $0xd0] sm:$0x3] }
 0x1f8   : > { %v1343_v15 = vrot.slane %v688_v20, 1 }
 0x1f9   : > { %v1969_v47 = vadd.f32 %v1968_v26, %v1856_v14  ;;  %v1454_v60 = vsel %vm877_vm1, %v1452_v7, %v1453_v17  ;;  %v691_v7 = vld [vmem:[#allocation2 + $0xe8] sm:$0x3] }
 0x1fa   : > { %v1344_v51 = vsel %vm764_vm0, %v1341_v28, %v1343_v15 }
 0x1fb   : > { %v6901_v23 = vadd.f32 %v2081_v18, %v1969_v47  ;;  %2261 = vmatmul.f32.gmra.mxu2 %v683_v24  ;;  %v2084_v8 = vpop.f32.mrf.mxu0  ;;  %v10317_v18 = vld [vmem:[#allocation37_spill] sm:$0xff] }
 0x1fc   : > { %2374 = vmatmul.f32.gmra.mxu3 %v1337_v52 }
 0x1fd   : > { %10314 = vst [vmem:[#allocation35_spill] sm:$0xff] %v6901_v23 }
 0x1fe   : > { %v1858_v41 = vpop.f32.mrf.mxu2  ;;  %2487 = vmatmul.f32.gmra.mxu0 %v1449_v42  ;;  %v1455_v42 = vrot.slane %v688_v20, 2 }
 0x1ff   : > { %v1971_v25 = vpop.f32.mrf.mxu3  ;;  %v1859_v5 = vadd.f32 %v1858_v41, %v10315_v0  ;;  %v690_v0 = vld [vmem:[#allocation2 + $0xe0] sm:$0xff] }
 0x201   : > { %v1972_v58 = vadd.f32 %v1971_v25, %v1859_v5  ;;  %v689_v25 = vld [vmem:[#allocation2 + $0xd8] sm:$0xff] }
 0x203   : > { %v6906_v21 = vadd.f32 %v2084_v8, %v1972_v58  ;;  %2264 = vmatmul.f32.gmra.mxu2 %v684_v54  ;;  %v2087_v34 = vpop.f32.mrf.mxu0  ;;  %v1345_v58 = vrot.slane %v689_v25, 1 }
 0x204   : > { %2377 = vmatmul.f32.gmra.mxu3 %v1339_v10  ;;  %v1456_v10 = vsel %vm877_vm1, %v1453_v17, %v1455_v42  ;;  %v693_v42 = vld [vmem:[#allocation2 + $0xf8] sm:$0xff] }
 0x205   : > { %10316 = vst [vmem:[#allocation36_spill] sm:$0xff] %v6906_v21 }
 0x206   : > { %v1861_v62 = vpop.f32.mrf.mxu2  ;;  %2490 = vmatmul.f32.gmra.mxu0 %v1451_v22 }
 0x207   : > { %v1974_v24 = vpop.f32.mrf.mxu3  ;;  %v1862_v53 = vadd.f32 %v1861_v62, %v10317_v18  ;;  %v1458_v18 = vrot.slane %v690_v0, 2 }
 0x209   : > { %v1975_v26 = vadd.f32 %v1974_v24, %v1862_v53  ;;  %v1457_v24 = vrot.slane %v689_v25, 2 }
 0x20b   : > { %v6911_v14 = vadd.f32 %v2087_v34, %v1975_v26  ;;  %2267 = vmatmul.f32.gmra.mxu2 %v686_v40  ;;  %v2090_v54 = vpop.f32.mrf.mxu0  ;;  %v1346_v40 = vrot.slane %v690_v0, 1  ;;  %v1459_v17 = vsel %vm877_vm1, %v1457_v24, %v1458_v18  ;;  %v1348_v26 = vrot.slane %v691_v7, 1 }
 0x20c   : > { %2380 = vmatmul.f32.gmra.mxu3 %v1342_v55  ;;  %v1463_v24 = vrot.slane %v693_v42, 2 }
 0x20d   : > { %10318 = vst [vmem:[#allocation37_spill] sm:$0xff] %v6911_v14  ;;  %v1347_v28 = vsel %vm764_vm0, %v1345_v58, %v1346_v40  ;;  %v712_v14 = vld [vmem:[#allocation2 + $0x190] sm:$0x3] }
 0x20e   : > { %v1864_v52 = vpop.f32.mrf.mxu2  ;;  %2493 = vmatmul.f32.gmra.mxu0 %v1454_v60  ;;  %v10323_v60 = vld [vmem:[#allocation40_spill] sm:$0xff]  ;;  %v1383_v23 = vrot.slane %v712_v14, 1 }
 0x20f   : > { %v1977_v47 = vpop.f32.mrf.mxu3  ;;  %v1865_v8 = vadd.f32 %v1864_v52, %v10319_v37  ;;  %v1460_v52 = vrot.slane %v691_v7, 2 }
 0x211   : > { %v1978_v41 = vadd.f32 %v1977_v47, %v1865_v8  ;;  %v1349_v47 = vsel %vm764_vm0, %v1346_v40, %v1348_v26  ;;  %v692_v8 = vld [vmem:[#allocation2 + $0xf0] sm:$0xff] }
 0x213   : > { %v6916_v5 = vadd.f32 %v2090_v54, %v1978_v41  ;;  %2270 = vmatmul.f32.gmra.mxu2 %v687_v46  ;;  %v2093_v35 = vpop.f32.mrf.mxu0 }
 0x214   : > { %2383 = vmatmul.f32.gmra.mxu3 %v1344_v51 }
 0x215   : > { %10320 = vst [vmem:[#allocation38_spill] sm:$0xff] %v6916_v5 }
 0x216   : > { %v1867_v34 = vpop.f32.mrf.mxu2  ;;  %2496 = vmatmul.f32.gmra.mxu0 %v1456_v10  ;;  %v1351_v10 = vrot.slane %v693_v42, 1 }
 0x217   : > { %v1980_v22 = vpop.f32.mrf.mxu3  ;;  %v1868_v62 = vadd.f32 %v1867_v34, %v10321_v12 }
 0x219   : > { %v1981_v53 = vadd.f32 %v1980_v22, %v1868_v62  ;;  %v10325_v22 = vld [vmem:[#allocation41_spill] sm:$0xff]  ;;  %v1462_v62 = vrot.slane %v692_v8, 2 }
 0x21b   : > { %v6921_v55 = vadd.f32 %v2093_v35, %v1981_v53  ;;  %2273 = vmatmul.f32.gmra.mxu2 %v689_v25  ;;  %v2096_v46 = vpop.f32.mrf.mxu0  ;;  %v1461_v25 = vsel %vm877_vm1, %v1458_v18, %v1460_v52  ;;  %v1350_v35 = vrot.slane %v692_v8, 1  ;;  %v694_v53 = vld [vmem:[#allocation2 + $0x100] sm:$0x3]  ;;  %v1464_v18 = vsel %vm877_vm1, %v1462_v62, %v1463_v24  ;;  %v695_v52 = vld [vmem:[#allocation2 + $0x108] sm:$0xff] }
 0x21c   : > { %2386 = vmatmul.f32.gmra.mxu3 %v1347_v28 }
 0x21d   : > { %10322 = vst [vmem:[#allocation39_spill] sm:$0xff] %v6921_v55  ;;  %v1352_v40 = vsel %vm764_vm0, %v1350_v35, %v1351_v10 }
 0x21e   : > { %v1870_v20 = vpop.f32.mrf.mxu2  ;;  %2499 = vmatmul.f32.gmra.mxu0 %v1459_v17 }
 0x21f   : > { %v1983_v54 = vpop.f32.mrf.mxu3  ;;  %v1871_v15 = vadd.f32 %v1870_v20, %v10323_v60 }
 0x221   : > { %v1984_v37 = vadd.f32 %v1983_v54, %v1871_v15  ;;  %v1465_v54 = vrot.slane %v694_v53, 2 }
 0x223   : > { %v6926_v51 = vadd.f32 %v2096_v46, %v1984_v37  ;;  %2276 = vmatmul.f32.gmra.mxu2 %v690_v0  ;;  %v2099_v41 = vpop.f32.mrf.mxu0  ;;  %v1353_v46 = vrot.slane %v694_v53, 1 }
 0x224   : > { %2389 = vmatmul.f32.gmra.mxu3 %v1349_v47  ;;  %v696_v47 = vld [vmem:[#allocation2 + $0x110] sm:$0xff] }
 0x225   : > { %10324 = vst [vmem:[#allocation40_spill] sm:$0xff] %v6926_v51  ;;  %v1354_v60 = vsel %vm764_vm0, %v1351_v10, %v1353_v46  ;;  %v1356_v35 = vrot.slane %v696_v47, 1 }
 0x226   : > { %v1873_v58 = vpop.f32.mrf.mxu2  ;;  %2502 = vmatmul.f32.gmra.mxu0 %v1461_v25  ;;  %v1355_v25 = vrot.slane %v695_v52, 1 }
 0x227   : > { %v1986_v34 = vpop.f32.mrf.mxu3  ;;  %v1874_v12 = vadd.f32 %v1873_v58, %v10325_v22  ;;  %v1467_v22 = vrot.slane %v695_v52, 2 }
 0x228   : > { %v1357_v10 = vsel %vm764_vm0, %v1355_v25, %v1356_v35 }
 0x229   : > { %v1987_v28 = vadd.f32 %v1986_v34, %v1874_v12  ;;  %v1468_v12 = vrot.slane %v696_v47, 2 }
 0x22b   : > { %v6931_v7 = vadd.f32 %v2099_v41, %v1987_v28  ;;  %2279 = vmatmul.f32.gmra.mxu2 %v692_v8  ;;  %v2458_v0 = vpop.f32.mrf.mxu0  ;;  %v1466_v41 = vsel %vm877_vm1, %v1463_v24, %v1465_v54  ;;  %v6941_v28 = vpop.f32.mrf.mxu1  ;;  %v1469_v53 = vsel %vm877_vm1, %v1467_v22, %v1468_v12  ;;  %v698_v54 = vld [vmem:[#allocation2 + $0x120] sm:$0xff] }
 0x22c   : > { %2392 = vmatmul.f32.gmra.mxu3 %v1352_v40  ;;  %v697_v40 = vld [vmem:[#allocation2 + $0x118] sm:$0x3] }
 0x22d   : > { %10326 = vst [vmem:[#allocation41_spill] sm:$0xff] %v6931_v7 }
 0x22e   : > { %v2232_v17 = vpop.f32.mrf.mxu2  ;;  %2505 = vmatmul.f32.gmra.mxu0 %v1464_v18 }
 0x22f   : > { %v2345_v26 = vpop.f32.mrf.mxu3  ;;  %v2233_v20 = vadd.f32 %v2232_v17, %v6659_v36  ;;  %v1470_v17 = vrot.slane %v697_v40, 2 }
 0x231   : > { %v2346_v15 = vadd.f32 %v2345_v26, %v2233_v20 }
 0x233   : > { %v6936_v37 = vadd.f32 %v2458_v0, %v2346_v15  ;;  %2282 = vmatmul.f32.gmra.mxu2 %v693_v42  ;;  %v2461_v8 = vpop.f32.mrf.mxu0  ;;  %v1358_v0 = vrot.slane %v697_v40, 1  ;;  %v700_v40 = vld [vmem:[#allocation2 + $0x130] sm:$0x3] }
 0x234   : > { %2395 = vmatmul.f32.gmra.mxu3 %v1354_v60  ;;  %v699_v60 = vld [vmem:[#allocation2 + $0x128] sm:$0xff] }
 0x235   : > { %10327 = vst [vmem:[#allocation48_spill] sm:$0xff] %v6936_v37  ;;  %v1359_v26 = vsel %vm764_vm0, %v1356_v35, %v1358_v0  ;;  %v1361_v25 = vrot.slane %v699_v60, 1  ;;  %v1472_v35 = vrot.slane %v698_v54, 2  ;;  %v1473_v22 = vrot.slane %v699_v60, 2 }
 0x236   : > { %v2235_v58 = vpop.f32.mrf.mxu2  ;;  %2508 = vmatmul.f32.gmra.mxu0 %v1466_v41  ;;  %v1360_v41 = vrot.slane %v698_v54, 1 }
 0x237   : > { %v2348_v34 = vpop.f32.mrf.mxu3  ;;  %v2236_v36 = vadd.f32 %v2235_v58, %v6673_v29  ;;  %v6951_v58 = vpop.f32.mrf.mxu1 }
 0x239   : > { %v2349_v62 = vadd.f32 %v2348_v34, %v2236_v36 }
 0x23b   : > { %v6943_v42 = vadd.f32 %v2461_v8, %v2349_v62  ;;  %2285 = vmatmul.f32.gmra.mxu2 %v695_v52  ;;  %v2464_v24 = vpop.f32.mrf.mxu0  ;;  %v1471_v8 = vsel %vm877_vm1, %v1468_v12, %v1470_v17 }
 0x23c   : > { %2398 = vmatmul.f32.gmra.mxu3 %v1357_v10  ;;  %v1362_v10 = vsel %vm764_vm0, %v1360_v41, %v1361_v25 }
 0x23d   : > { %10328 = vst [vmem:[#allocation49_spill] sm:$0xff] %v6943_v42 }
 0x23e   : > { %v2238_v18 = vpop.f32.mrf.mxu2  ;;  %2511 = vmatmul.f32.gmra.mxu0 %v1469_v53  ;;  %v1363_v53 = vrot.slane %v700_v40, 1 }
 0x23f   : > { %v2351_v46 = vpop.f32.mrf.mxu3  ;;  %v2239_v29 = vadd.f32 %v2238_v18, %v6684_v13 }
 0x240   : > { %v1364_v17 = vsel %vm764_vm0, %v1361_v25, %v1363_v53 }
 0x241   : > { %v2352_v20 = vadd.f32 %v2351_v46, %v2239_v29  ;;  %v6958_v46 = vpop.f32.mrf.mxu1  ;;  %v1475_v29 = vrot.slane %v700_v40, 2 }
 0x243   : > { %v6948_v15 = vadd.f32 %v2464_v24, %v2352_v20  ;;  %2288 = vmatmul.f32.gmra.mxu2 %v696_v47  ;;  %v2467_v52 = vpop.f32.mrf.mxu0  ;;  %v1474_v24 = vsel %vm877_vm1, %v1472_v35, %v1473_v22  ;;  %v701_v20 = vld [vmem:[#allocation2 + $0x138] sm:$0xff]  ;;  %v1476_v41 = vsel %vm877_vm1, %v1473_v22, %v1475_v29 }
 0x244   : > { %2401 = vmatmul.f32.gmra.mxu3 %v1359_v26 }
 0x246   : > { %v2241_v34 = vpop.f32.mrf.mxu2  ;;  %2514 = vmatmul.f32.gmra.mxu0 %v1471_v8 }
 0x247   : > { %v2354_v36 = vpop.f32.mrf.mxu3  ;;  %v2242_v13 = vadd.f32 %v2241_v34, %v6698_v44  ;;  %v1365_v34 = vrot.slane %v701_v20, 1 }
 0x249   : > { %v2355_v62 = vadd.f32 %v2354_v36, %v2242_v13  ;;  %v6967_v40 = vpop.f32.mrf.mxu1 }
 0x24b   : > { %v6955_v47 = vadd.f32 %v2467_v52, %v2355_v62  ;;  %2291 = vmatmul.f32.gmra.mxu2 %v698_v54  ;;  %v2470_v12 = vpop.f32.mrf.mxu0  ;;  %v702_v52 = vld [vmem:[#allocation2 + $0x140] sm:$0xff] }
 0x24c   : > { %2404 = vmatmul.f32.gmra.mxu3 %v1362_v10  ;;  %v1366_v36 = vrot.slane %v702_v52, 1  ;;  %v1477_v10 = vrot.slane %v701_v20, 2  ;;  %v1478_v62 = vrot.slane %v702_v52, 2 }
 0x24e   : > { %v2244_v0 = vpop.f32.mrf.mxu2  ;;  %2517 = vmatmul.f32.gmra.mxu0 %v1474_v24  ;;  %v1367_v25 = vsel %vm764_vm0, %v1365_v34, %v1366_v36  ;;  %v703_v24 = vld [vmem:[#allocation2 + $0x148] sm:$0x3]  ;;  %v1479_v53 = vsel %vm877_vm1, %v1477_v10, %v1478_v62  ;;  %v705_v34 = vld [vmem:[#allocation2 + $0x158] sm:$0xff] }
 0x24f   : > { %v2357_v18 = vpop.f32.mrf.mxu3  ;;  %v2245_v44 = vadd.f32 %v2244_v0, %v6709_v2  ;;  %v1368_v0 = vrot.slane %v703_v24, 1  ;;  %v1480_v29 = vrot.slane %v703_v24, 2  ;;  %v1371_v10 = vrot.slane %v705_v34, 1 }
 0x250   : > { %v1483_v24 = vrot.slane %v705_v34, 2 }
 0x251   : > { %v2358_v26 = vadd.f32 %v2357_v18, %v2245_v44 }
 0x253   : > { %v6962_v8 = vadd.f32 %v2470_v12, %v2358_v26  ;;  %2294 = vmatmul.f32.gmra.mxu2 %v699_v60  ;;  %v2473_v54 = vpop.f32.mrf.mxu0 }
 0x254   : > { %2407 = vmatmul.f32.gmra.mxu3 %v1364_v17  ;;  %v1369_v17 = vsel %vm764_vm0, %v1366_v36, %v1368_v0 }
 0x256   : > { %v2247_v13 = vpop.f32.mrf.mxu2  ;;  %2520 = vmatmul.f32.gmra.mxu0 %v1476_v41  ;;  %v704_v41 = vld [vmem:[#allocation2 + $0x150] sm:$0xff] }
 0x257   : > { %v2360_v35 = vpop.f32.mrf.mxu3  ;;  %v2248_v2 = vadd.f32 %v2247_v13, %v6723_v57  ;;  %v6974_v13 = vpop.f32.mrf.mxu1  ;;  %v1482_v36 = vrot.slane %v704_v41, 2 }
 0x259   : > { %v2361_v12 = vadd.f32 %v2360_v35, %v2248_v2  ;;  %v1481_v35 = vsel %vm877_vm1, %v1478_v62, %v1480_v29  ;;  %v1370_v2 = vrot.slane %v704_v41, 1  ;;  %v1484_v62 = vsel %vm877_vm1, %v1482_v36, %v1483_v24 }
 0x25b   : > { %v6969_v60 = vadd.f32 %v2473_v54, %v2361_v12  ;;  %2297 = vmatmul.f32.gmra.mxu2 %v701_v20  ;;  %v2476_v22 = vpop.f32.mrf.mxu0 }
 0x25c   : > { %2410 = vmatmul.f32.gmra.mxu3 %v1367_v25 }
 0x25e   : > { %v2250_v18 = vpop.f32.mrf.mxu2  ;;  %2523 = vmatmul.f32.gmra.mxu0 %v1479_v53  ;;  %v1372_v53 = vsel %vm764_vm0, %v1370_v2, %v1371_v10 }
 0x25f   : > { %v2363_v44 = vpop.f32.mrf.mxu3  ;;  %v2251_v57 = vadd.f32 %v2250_v18, %v6734_v39  ;;  %v706_v18 = vld [vmem:[#allocation2 + $0x160] sm:$0x3] }
 0x261   : > { %v2364_v26 = vadd.f32 %v2363_v44, %v2251_v57  ;;  %v1373_v44 = vrot.slane %v706_v18, 1  ;;  %v6986_v57 = vpop.f32.mrf.mxu1 }
 0x263   : > { %v6976_v54 = vadd.f32 %v2476_v22, %v2364_v26  ;;  %2300 = vmatmul.f32.gmra.mxu2 %v702_v52  ;;  %v2479_v20 = vpop.f32.mrf.mxu0  ;;  %v1374_v26 = vsel %vm764_vm0, %v1371_v10, %v1373_v44 }
 0x264   : > { %2413 = vmatmul.f32.gmra.mxu3 %v1369_v17  ;;  %v1485_v17 = vrot.slane %v706_v18, 2  ;;  %v709_v18 = vld [vmem:[#allocation2 + $0x178] sm:$0x3] }
 0x265   : > { %v1490_v50 = vrot.slane %v709_v18, 2 }
 0x266   : > { %v2253_v25 = vpop.f32.mrf.mxu2  ;;  %2526 = vmatmul.f32.gmra.mxu0 %v1481_v35  ;;  %v707_v35 = vld [vmem:[#allocation2 + $0x168] sm:$0xff]  ;;  %v1486_v2 = vsel %vm877_vm1, %v1483_v24, %v1485_v17  ;;  %v423_v24 = vld [vmem:[#allocation2 + $0x178] sm:$0x3]  ;;  %v1378_v17 = vrot.slane %v709_v18, 1 }
 0x267   : > { %v2366_v12 = vpop.f32.mrf.mxu3  ;;  %v2254_v39 = vadd.f32 %v2253_v25, %v6748_v61  ;;  %v1375_v25 = vrot.slane %v707_v35, 1  ;;  %v1487_v10 = vrot.slane %v707_v35, 2  ;;  %427 = vst [vmem:[#allocation2 + $0x1a8] sm:$0x3] %v423_v24  ;;  %v710_v24 = vld [vmem:[#allocation2 + $0x180] sm:$0xff] }
 0x268   : > { %v1380_v51 = vrot.slane %v710_v24, 1  ;;  %v1492_v18 = vrot.slane %v710_v24, 2 }
 0x269   : > { %v2367_v0 = vadd.f32 %v2366_v12, %v2254_v39 }
 0x26b   : > { %v6981_v22 = vadd.f32 %v2479_v20, %v2367_v0  ;;  %2303 = vmatmul.f32.gmra.mxu2 %v704_v41  ;;  %v6983_v52 = vpop.f32.mrf.mxu0  ;;  %v6993_v20 = vld [vmem:[#allocation2 + $0x170] sm:$0xff] }
 0x26c   : > { %2416 = vmatmul.f32.gmra.mxu3 %v1372_v53  ;;  %v6999_v12 = vrot.slane %v6993_v20, 1  ;;  %v7005_v53 = vpop.f32.mrf.mxu1  ;;  %v7008_v0 = vrot.slane %v6993_v20, 2 }
 0x26e   : > { %v6988_v29 = vpop.f32.mrf.mxu2  ;;  %2529 = vmatmul.f32.gmra.mxu0 %v1484_v62  ;;  %v1489_v44 = vsel %vm877_vm1, %v1487_v10, %v7008_v0  ;;  %v1491_v10 = vsel %vm877_vm1, %v7008_v0, %v1490_v50  ;;  %v1494_v50 = vsel %vm877_vm1, %v1492_v18, %v6830_v38 }
 0x26f   : > { %v6990_v61 = vpop.f32.mrf.mxu3 }
 0x273   : > { %2306 = vmatmul.f32.gmra.mxu2 %v705_v34  ;;  %v6995_v41 = vpop.f32.mrf.mxu0  ;;  %v1377_v34 = vsel %vm764_vm0, %v1375_v25, %v6999_v12  ;;  %v1379_v25 = vsel %vm764_vm0, %v6999_v12, %v1378_v17  ;;  %v1382_v17 = vsel %vm764_vm0, %v1380_v51, %v6824_v32  ;;  %v1384_v51 = vsel %vm764_vm0, %v6824_v32, %v1383_v23  ;;  %v2991_v32 = vld [vmem:[%s10176_s5 + $0x78] sm:$0xff] }
 0x274   : > { %2419 = vmatmul.f32.gmra.mxu3 %v1374_v26  ;;  %v7022_v45 = vpop.f32.mrf.mxu1  ;;  %4083 = vmatpush.msra.mxu1 %v2991_v32 }
 0x276   : > { %v7001_v39 = vpop.f32.mrf.mxu2  ;;  %2532 = vmatmul.f32.gmra.mxu0 %v1486_v2 }
 0x277   : > { %v7003_v36 = vpop.f32.mrf.mxu3 }
 0x27b   : > { %2309 = vmatmul.f32.gmra.mxu2 %v707_v35  ;;  %v7012_v62 = vpop.f32.mrf.mxu0 }
 0x27c   : > { %2422 = vmatmul.f32.gmra.mxu3 %v1377_v34  ;;  %v7035_v21 = vpop.f32.mrf.mxu1 }
 0x27e   : > { %v7016_v26 = vpop.f32.mrf.mxu2  ;;  %2535 = vmatmul.f32.gmra.mxu0 %v1489_v44 }
 0x27f   : > { %v7018_v2 = vpop.f32.mrf.mxu3 }
 0x283   : > { %2312 = vmatmul.f32.gmra.mxu2 %v6993_v20  ;;  %v7025_v7 = vpop.f32.mrf.mxu0 }
 0x284   : > { %2425 = vmatmul.f32.gmra.mxu3 %v1379_v25  ;;  %v7052_v56 = vpop.f32.mrf.mxu1 }
 0x286   : > { %v7029_v55 = vpop.f32.mrf.mxu2  ;;  %2538 = vmatmul.f32.gmra.mxu0 %v1491_v10  ;;  %v1495_v10 = vrot.slane %v712_v14, 2 }
 0x287   : > { %v7031_v5 = vpop.f32.mrf.mxu3 }
 0x28b   : > { %2315 = vmatmul.f32.gmra.mxu2 %v710_v24  ;;  %v7037_v25 = vpop.f32.mrf.mxu0 }
 0x28c   : > { %2428 = vmatmul.f32.gmra.mxu3 %v1382_v17  ;;  %v1496_v17 = vsel %vm877_vm1, %v6830_v38, %v1495_v10  ;;  %v7067_v10 = vpop.f32.mrf.mxu1 }
 0x28e   : > { %v7041_v31 = vpop.f32.mrf.mxu2  ;;  %2541 = vmatmul.f32.gmra.mxu0 %v1494_v50  ;;  %v715_v50 = vld [vmem:[#allocation2 + $0x1a8] sm:$0x3] }
 0x28f   : > { %v7043_v9 = vpop.f32.mrf.mxu3  ;;  %v1388_v23 = vrot.slane %v715_v50, 1 }
 0x293   : > { %2318 = vmatmul.f32.gmra.mxu2 %v6819_v48  ;;  %v7048_v24 = vpop.f32.mrf.mxu0 }
 0x294   : > { %2431 = vmatmul.f32.gmra.mxu3 %v1384_v51  ;;  %v1500_v51 = vrot.slane %v715_v50, 2  ;;  %v2990_v50 = vld [vmem:[%s10176_s5 + $0x70] sm:$0xff] }
 0x295   : > { %4084 = vmatpush.msra.mxu1 %v2990_v50 }
 0x296   : > { %v7054_v18 = vpop.f32.mrf.mxu2  ;;  %2544 = vmatmul.f32.gmra.mxu0 %v1496_v17  ;;  %v1389_v17 = vsel %vm764_vm0, %v6999_v12, %v1388_v23 }
 0x297   : > { %v7056_v11 = vpop.f32.mrf.mxu3 }
 0x29b   : > { %2321 = vmatmul.f32.gmra.mxu2 %v707_v35  ;;  %v7061_v48 = vpop.f32.mrf.mxu0  ;;  %v1501_v35 = vsel %vm877_vm1, %v7008_v0, %v1500_v51 }
 0x29c   : > { %2434 = vmatmul.f32.gmra.mxu3 %v1377_v34  ;;  %10329 = vst [vmem:[#allocation50_spill] sm:$0xff] %v7061_v48 }
 0x29e   : > { %v7063_v14 = vpop.f32.mrf.mxu2  ;;  %2547 = vmatmul.f32.gmra.mxu0 %v1489_v44  ;;  %v7080_v44 = vpop.f32.mrf.mxu1 }
 0x29f   : > { %v7065_v38 = vpop.f32.mrf.mxu3  ;;  %10331 = vst [vmem:[#allocation52_spill] sm:$0xff] %v7080_v44 }
 0x2a3   : > { %2324 = vmatmul.f32.gmra.mxu2 %v6993_v20  ;;  %v7072_v32 = vpop.f32.mrf.mxu0 }
 0x2a4   : > { %2437 = vmatmul.f32.gmra.mxu3 %v1389_v17  ;;  %10330 = vst [vmem:[#allocation51_spill] sm:$0xff] %v7072_v32  ;;  %v2989_v32 = vld [vmem:[%s10176_s5 + $0x68] sm:$0xff] }
 0x2a5   : > { %4085 = vmatpush.msra.mxu1 %v2989_v32  ;;  %v2988_v32 = vld [vmem:[%s10176_s5 + $0x60] sm:$0xff] }
 0x2a6   : > { %v7076_v34 = vpop.f32.mrf.mxu2  ;;  %2550 = vmatmul.f32.gmra.mxu0 %v1501_v35  ;;  %v7091_v17 = vpop.f32.mrf.mxu1 }
 0x2a7   : > { %v7078_v59 = vpop.f32.mrf.mxu3  ;;  %10334 = vst [vmem:[#allocation55_spill] sm:$0xff] %v7091_v17  ;;  %4086 = vmatpush.msra.mxu1 %v2988_v32  ;;  %v2618_v32 = vadd.f32 %v6943_v42, %v6936_v37 }
 0x2ab   : > { %v7085_v12 = vpop.f32.mrf.mxu0 }
 0x2ac   : > { %10332 = vst [vmem:[#allocation53_spill] sm:$0xff] %v7085_v12 }
 0x2ae   : > { %v7087_v20 = vpop.f32.mrf.mxu2  ;;  %v7104_v12 = vpop.f32.mrf.mxu1 }
 0x2af   : > { %v7089_v23 = vpop.f32.mrf.mxu3  ;;  %10338 = vst [vmem:[#allocation59_spill] sm:$0xff] %v7104_v12 }
 0x2b0   : > { %10333 = vst [vmem:[#allocation54_spill] sm:$0xff] %v7089_v23 }
 0x2b3   : > { %v7093_v0 = vpop.f32.mrf.mxu0 }
 0x2b4   : > { %10335 = vst [vmem:[#allocation56_spill] sm:$0xff] %v7093_v0 }
 0x2b6   : > { %v7095_v51 = vpop.f32.mrf.mxu2 }
 0x2b7   : > { %v7097_v35 = vpop.f32.mrf.mxu3 }
 0x2b8   : > { %10336 = vst [vmem:[#allocation57_spill] sm:$0xff] %v7097_v35  ;;  %v7116_v35 = vpop.f32.mrf.mxu1 }
 0x2b9   : > { %10344 = vst [vmem:[#allocation65_spill] sm:$0xff] %v7116_v35  ;;  %v2144_v35 = vadd.f32 %v6941_v28, %v6762_v63  ;;  %v2150_v63 = vadd.f32 %v6958_v46, %v6797_v49  ;;  %v2156_v49 = vadd.f32 %v6974_v13, %v6816_v19  ;;  %v2162_v19 = vadd.f32 %v7005_v53, %v6842_v16 }
 0x2bb   : > { %v7102_v50 = vpop.f32.mrf.mxu0 }
 0x2bc   : > { %10337 = vst [vmem:[#allocation58_spill] sm:$0xff] %v7102_v50 }
 0x2be   : > { %v7106_v48 = vpop.f32.mrf.mxu2 }
 0x2bf   : > { %10339 = vst [vmem:[#allocation60_spill] sm:$0xff] %v7106_v48  ;;  %v7108_v23 = vpop.f32.mrf.mxu3 }
 0x2c0   : > { %10340 = vst [vmem:[#allocation61_spill] sm:$0xff] %v7108_v23  ;;  %v7127_v23 = vpop.f32.mrf.mxu1 }
 0x2c1   : > { %10347 = vst [vmem:[#allocation68_spill] sm:$0xff] %v7127_v23 }
 0x2c3   : > { %v7110_v17 = vpop.f32.mrf.mxu0 }
 0x2c4   : > { %10341 = vst [vmem:[#allocation62_spill] sm:$0xff] %v7110_v17 }
 0x2c6   : > { %v7112_v0 = vpop.f32.mrf.mxu2 }
 0x2c7   : > { %10342 = vst [vmem:[#allocation63_spill] sm:$0xff] %v7112_v0  ;;  %v7114_v44 = vpop.f32.mrf.mxu3 }
 0x2c8   : > { %10343 = vst [vmem:[#allocation64_spill] sm:$0xff] %v7114_v44  ;;  %v7144_v23 = vpop.f32.mrf.mxu1 }
 0x2cb   : > { %v7121_v50 = vpop.f32.mrf.mxu0 }
 0x2cc   : > { %10345 = vst [vmem:[#allocation66_spill] sm:$0xff] %v7121_v50  ;;  %v2987_v50 = vld [vmem:[%s10176_s5 + $0x58] sm:$0xff] }
 0x2cd   : > { %4087 = vmatpush.msra.mxu1 %v2987_v50 }
 0x2ce   : > { %v7123_v12 = vpop.f32.mrf.mxu2 }
 0x2cf   : > { %v7125_v48 = vpop.f32.mrf.mxu3 }
 0x2d0   : > { %10346 = vst [vmem:[#allocation67_spill] sm:$0xff] %v7125_v48  ;;  %v2147_v48 = vadd.f32 %v6951_v58, %v6782_v4  ;;  %v2153_v4 = vadd.f32 %v6967_v40, %v6808_v27 }
 0x2d2   : > { %v2260_v42 = vadd.f32 %v7001_v39, %v2147_v48  ;;  %v2266_v48 = vadd.f32 %v7029_v55, %v2153_v4 }
 0x2d3   : > { %v7129_v17 = vpop.f32.mrf.mxu0 }
 0x2d4   : > { %10348 = vst [vmem:[#allocation69_spill] sm:$0xff] %v7129_v17  ;;  %v2619_v17 = vadd.f32 %v2618_v32, %v6948_v15  ;;  %v2373_v39 = vadd.f32 %v7003_v36, %v2260_v42  ;;  %v7180_v42 = vpop.f32.mrf.mxu1  ;;  %v2379_v13 = vadd.f32 %v7031_v5, %v2266_v48  ;;  %v2168_v5 = vadd.f32 %v7035_v21, %v6856_v33  ;;  %v10356_v48 = vld [vmem:[#allocation55_spill] sm:$0xff] }
 0x2d6   : > { %v7131_v0 = vpop.f32.mrf.mxu2  ;;  %v2620_v28 = vadd.f32 %v2619_v17, %v6955_v47  ;;  %v2159_v17 = vadd.f32 %v6986_v57, %v6832_v3  ;;  %v7184_v3 = vadd.f32 %v6995_v41, %v2373_v39  ;;  %v2165_v57 = vadd.f32 %v7022_v45, %v6851_v30  ;;  %v10355_v39 = vld [vmem:[#allocation44_spill] sm:$0xff] }
 0x2d7   : > { %10349 = vst [vmem:[#allocation70_spill] sm:$0xff] %v7131_v0  ;;  %v7133_v44 = vpop.f32.mrf.mxu3  ;;  %v2275_v41 = vadd.f32 %v7063_v14, %v2162_v19  ;;  %v7202_v32 = vadd.f32 %v7025_v7, %v2379_v13  ;;  %v2281_v7 = vadd.f32 %v7087_v20, %v2168_v5  ;;  %v10361_v13 = vld [vmem:[#allocation59_spill] sm:$0xff] }
 0x2d8   : > { %10350 = vst [vmem:[#allocation71_spill] sm:$0xff] %v7133_v44  ;;  %v2257_v44 = vadd.f32 %v6988_v29, %v2144_v35  ;;  %v2621_v58 = vadd.f32 %v2620_v28, %v6962_v8  ;;  %v2263_v35 = vadd.f32 %v7016_v26, %v2150_v63  ;;  %v2269_v26 = vadd.f32 %v7041_v31, %v2156_v49 }
 0x2d9   : > { %v2278_v30 = vadd.f32 %v7076_v34, %v2165_v57  ;;  %v2388_v21 = vadd.f32 %v7065_v38, %v2275_v41  ;;  %v2174_v34 = vadd.f32 %v7067_v10, %v6866_v1  ;;  %v10353_v1 = vld [vmem:[#allocation54_spill] sm:$0xff]  ;;  %v10363_v41 = vld [vmem:[#allocation61_spill] sm:$0xff] }
 0x2da   : > { %v2370_v29 = vadd.f32 %v6990_v61, %v2257_v44  ;;  %v2622_v46 = vadd.f32 %v2621_v58, %v6969_v60  ;;  %v2376_v61 = vadd.f32 %v7018_v2, %v2263_v35  ;;  %v2382_v53 = vadd.f32 %v7043_v9, %v2269_v26  ;;  %v10352_v35 = vld [vmem:[#allocation50_spill] sm:$0xff]  ;;  %v10359_v26 = vld [vmem:[#allocation63_spill] sm:$0xff] }
 0x2db   : > { %v7148_v0 = vpop.f32.mrf.mxu0  ;;  %v2171_v9 = vadd.f32 %v7052_v56, %v6861_v6  ;;  %v2391_v6 = vadd.f32 %v7078_v59, %v2278_v30  ;;  %v7231_v49 = vadd.f32 %v10352_v35, %v2388_v21  ;;  %v2394_v10 = vadd.f32 %v10353_v1, %v2281_v7  ;;  %v10364_v30 = vld [vmem:[#allocation46_spill] sm:$0xff]  ;;  %v10366_v21 = vld [vmem:[#allocation56_spill] sm:$0xff] }
 0x2dc   : > { %v2623_v27 = vadd.f32 %v2622_v46, %v6976_v54  ;;  %v7172_v40 = vadd.f32 %v6983_v52, %v2370_v29  ;;  %v2272_v52 = vadd.f32 %v7054_v18, %v2159_v17  ;;  %v7194_v16 = vadd.f32 %v7012_v62, %v2376_v61  ;;  %v2986_v62 = vld [vmem:[%s10176_s5 + $0x50] sm:$0xff]  ;;  %v2197_v20 = vpop.f32.mrf.mxu1  ;;  %v10357_v17 = vld [vmem:[#allocation51_spill] sm:$0xff] }
 0x2dd   : > { %4088 = vmatpush.msra.mxu1 %v2986_v62  ;;  %v7213_v33 = vadd.f32 %v7037_v25, %v2382_v53  ;;  %v2284_v56 = vadd.f32 %v7095_v51, %v2171_v9  ;;  %v10351_v25 = vld [vmem:[#allocation52_spill] sm:$0xff]  ;;  %v2180_v59 = vadd.f32 %v10356_v48, %v10355_v39  ;;  %v10365_v62 = vld [vmem:[#allocation65_spill] sm:$0xff] }
 0x2de   : > { %v7154_v37 = vpop.f32.mrf.mxu2  ;;  %v2624_v55 = vadd.f32 %v2623_v27, %v6981_v22  ;;  %v2385_v45 = vadd.f32 %v7056_v11, %v2272_v52  ;;  %v2177_v4 = vadd.f32 %v10351_v25, %v6871_v43  ;;  %v10354_v46 = vld [vmem:[#allocation60_spill] sm:$0xff]  ;;  %v7239_v27 = vadd.f32 %v10357_v17, %v2391_v6  ;;  %v10358_v43 = vld [vmem:[#allocation57_spill] sm:$0xff]  ;;  %v10368_v6 = vld [vmem:[#allocation70_spill] sm:$0xff] }
 0x2df   : > { %v7156_v50 = vpop.f32.mrf.mxu3  ;;  %v2397_v61 = vadd.f32 %v10358_v43, %v2284_v56  ;;  %v2186_v9 = vadd.f32 %v10365_v62, %v10364_v30  ;;  %v10369_v25 = vld [vmem:[#allocation47_spill] sm:$0xff]  ;;  %v10378_v62 = vld [vmem:[#allocation36_spill] sm:$0xff] }
 0x2e0   : > { %v2625_v2 = vadd.f32 %v2624_v55, %v7172_v40  ;;  %v7223_v28 = vadd.f32 %v7048_v24, %v2385_v45  ;;  %v2287_v24 = vadd.f32 %v10354_v46, %v2174_v34  ;;  %v2290_v19 = vadd.f32 %v10359_v26, %v2177_v4  ;;  %v10360_v55 = vld [vmem:[#allocation45_spill] sm:$0xff]  ;;  %v10367_v34 = vld [vmem:[#allocation64_spill] sm:$0xff] }
 0x2e1   : > { %v2183_v52 = vadd.f32 %v10361_v13, %v10360_v55  ;;  %v7255_v7 = vadd.f32 %v10366_v21, %v2397_v61  ;;  %v10370_v4 = vld [vmem:[#allocation68_spill] sm:$0xff]  ;;  %v2299_v48 = vadd.f32 %v7154_v37, %v2186_v9  ;;  %v10374_v61 = vld [vmem:[#allocation62_spill] sm:$0xff]  ;;  %v2198_v9 = vadd.f32 %v2197_v20, %v10378_v62 }
 0x2e2   : > { %v2626_v18 = vadd.f32 %v2625_v2, %v7184_v3  ;;  %v10362_v2 = vld [vmem:[#allocation53_spill] sm:$0xff]  ;;  %v2400_v5 = vadd.f32 %v10363_v41, %v2287_v24  ;;  %v10372_v24 = vld [vmem:[#allocation67_spill] sm:$0xff] }
 0x2e3   : > { %v7176_v44 = vpop.f32.mrf.mxu0  ;;  %v7247_v53 = vadd.f32 %v10362_v2, %v2394_v10  ;;  %v2296_v56 = vadd.f32 %v10368_v6, %v2183_v52  ;;  %v10371_v10 = vld [vmem:[#allocation58_spill] sm:$0xff]  ;;  %v2985_v52 = vld [vmem:[%s10176_s5 + $0x48] sm:$0xff] }
 0x2e4   : > { %v2627_v14 = vadd.f32 %v2626_v18, %v7194_v16  ;;  %v2293_v18 = vadd.f32 %v7123_v12, %v2180_v59  ;;  %v7263_v46 = vadd.f32 %v10371_v10, %v2400_v5  ;;  %v10373_v59 = vld [vmem:[#allocation34_spill] sm:$0xff]  ;;  %v2200_v17 = vpop.f32.mrf.mxu1  ;;  %4089 = vmatpush.msra.mxu1 %v2985_v52  ;;  %v2412_v5 = vadd.f32 %v7156_v50, %v2299_v48 }
 0x2e5   : > { %v10381_v52 = vld [vmem:[#allocation38_spill] sm:$0xff] }
 0x2e6   : > { %v2301_v31 = vpop.f32.mrf.mxu2  ;;  %v2628_v63 = vadd.f32 %v2627_v14, %v7202_v32  ;;  %v2406_v39 = vadd.f32 %v10372_v24, %v2293_v18 }
 0x2e7   : > { %v7190_v36 = vpop.f32.mrf.mxu3 }
 0x2e8   : > { %v2629_v29 = vadd.f32 %v2628_v63, %v7213_v33  ;;  %v2403_v63 = vadd.f32 %v10367_v34, %v2290_v19  ;;  %v10375_v19 = vld [vmem:[#allocation71_spill] sm:$0xff] }
 0x2e9   : > { %v2409_v55 = vadd.f32 %v10375_v19, %v2296_v56 }
 0x2ea   : > { %v2630_v51 = vadd.f32 %v2629_v29, %v7223_v28  ;;  %v2189_v29 = vadd.f32 %v10370_v4, %v10369_v25  ;;  %v7271_v26 = vadd.f32 %v10374_v61, %v2403_v63  ;;  %v7292_v25 = vadd.f32 %v7148_v0, %v2412_v5 }
 0x2eb   : > { %v7217_v11 = vpop.f32.mrf.mxu0 }
 0x2ec   : > { %v2631_v57 = vadd.f32 %v2630_v51, %v7231_v49  ;;  %v2192_v51 = vadd.f32 %v7144_v23, %v10373_v59  ;;  %v2302_v13 = vadd.f32 %v2301_v31, %v2189_v29  ;;  %v10377_v23 = vld [vmem:[#allocation66_spill] sm:$0xff] }
 0x2ed   : > { %v7281_v41 = vadd.f32 %v10377_v23, %v2406_v39  ;;  %v10380_v39 = vld [vmem:[#allocation37_spill] sm:$0xff] }
 0x2ee   : > { %v2304_v38 = vpop.f32.mrf.mxu2  ;;  %v2632_v14 = vadd.f32 %v2631_v57, %v7239_v27  ;;  %v10376_v57 = vld [vmem:[#allocation35_spill] sm:$0xff]  ;;  %v2415_v34 = vadd.f32 %v7190_v36, %v2302_v13  ;;  %v2201_v48 = vadd.f32 %v2200_v17, %v10380_v39 }
 0x2ef   : > { %v2417_v58 = vpop.f32.mrf.mxu3  ;;  %v2195_v2 = vadd.f32 %v7180_v42, %v10376_v57  ;;  %v2305_v18 = vadd.f32 %v2304_v38, %v2192_v51 }
 0x2f0   : > { %v2633_v12 = vadd.f32 %v2632_v14, %v7247_v53  ;;  %v10379_v14 = vld [vmem:[#allocation69_spill] sm:$0xff]  ;;  %v7296_v20 = vadd.f32 %v7176_v44, %v2415_v34 }
 0x2f1   : > { %v7287_v21 = vadd.f32 %v10379_v14, %v2409_v55  ;;  %v2418_v50 = vadd.f32 %v2417_v58, %v2305_v18 }
 0x2f2   : > { %v2634_v43 = vadd.f32 %v2633_v12, %v7255_v7  ;;  %v2203_v12 = vpop.f32.mrf.mxu1 }
 0x2f3   : > { %v2533_v45 = vpop.f32.mrf.mxu0  ;;  %v7300_v36 = vadd.f32 %v7217_v11, %v2418_v50  ;;  %v2984_v11 = vld [vmem:[%s10176_s5 + $0x40] sm:$0xff] }
 0x2f4   : > { %v2635_v37 = vadd.f32 %v2634_v43, %v7263_v46  ;;  %4090 = vmatpush.msra.mxu1 %v2984_v11 }
 0x2f6   : > { %v2307_v35 = vpop.f32.mrf.mxu2  ;;  %v2636_v31 = vadd.f32 %v2635_v37, %v7271_v26 }
 0x2f7   : > { %v2420_v1 = vpop.f32.mrf.mxu3  ;;  %v2308_v42 = vadd.f32 %v2307_v35, %v2195_v2 }
 0x2f8   : > { %v2637_v56 = vadd.f32 %v2636_v31, %v7281_v41 }
 0x2f9   : > { %v2421_v29 = vadd.f32 %v2420_v1, %v2308_v42 }
 0x2fa   : > { %v2638_v4 = vadd.f32 %v2637_v56, %v7287_v21  ;;  %v2206_v57 = vpop.f32.mrf.mxu1 }
 0x2fb   : > { %v2536_v30 = vpop.f32.mrf.mxu0  ;;  %v7304_v58 = vadd.f32 %v2533_v45, %v2421_v29  ;;  %v2204_v45 = vadd.f32 %v2203_v12, %v10381_v52 }
 0x2fc   : > { %v2639_v10 = vadd.f32 %v2638_v4, %v7292_v25 }
 0x2fe   : > { %v2310_v63 = vpop.f32.mrf.mxu2  ;;  %v2640_v0 = vadd.f32 %v2639_v10, %v7296_v20 }
 0x2ff   : > { %v2423_v6 = vpop.f32.mrf.mxu3  ;;  %v2311_v38 = vadd.f32 %v2310_v63, %v2198_v9  ;;  %v10382_v9 = vld [vmem:[#allocation39_spill] sm:$0xff] }
 0x300   : > { %v2641_v44 = vadd.f32 %v2640_v0, %v7300_v36  ;;  %v2207_v31 = vadd.f32 %v2206_v57, %v10382_v9 }
 0x301   : > { %v2424_v35 = vadd.f32 %v2423_v6, %v2311_v38  ;;  %v10383_v38 = vld [vmem:[#allocation40_spill] sm:$0xff] }
 0x302   : > { %v2642_v61 = vadd.f32 %v2641_v44, %v7304_v58  ;;  %v2209_v6 = vpop.f32.mrf.mxu1 }
 0x303   : > { %v2539_v24 = vpop.f32.mrf.mxu0  ;;  %v2537_v43 = vadd.f32 %v2536_v30, %v2424_v35  ;;  %v2210_v4 = vadd.f32 %v2209_v6, %v10383_v38 }
 0x305   : > { %v2643_v55 = vadd.f32 %v2642_v61, %v2537_v43 }
 0x306   : > { %v2313_v59 = vpop.f32.mrf.mxu2 }
 0x307   : > { %v2426_v51 = vpop.f32.mrf.mxu3  ;;  %v2314_v1 = vadd.f32 %v2313_v59, %v2201_v48  ;;  %v10384_v59 = vld [vmem:[#allocation41_spill] sm:$0xff] }
 0x309   : > { %v2427_v19 = vadd.f32 %v2426_v51, %v2314_v1 }
 0x30a   : > { %v2212_v48 = vpop.f32.mrf.mxu1 }
 0x30b   : > { %v2540_v17 = vadd.f32 %v2539_v24, %v2427_v19  ;;  %v2542_v13 = vpop.f32.mrf.mxu0  ;;  %v2213_v51 = vadd.f32 %v2212_v48, %v10384_v59 }
 0x30d   : > { %v2644_v2 = vadd.f32 %v2643_v55, %v2540_v17 }
 0x30e   : > { %v2316_v37 = vpop.f32.mrf.mxu2 }
 0x30f   : > { %v2429_v23 = vpop.f32.mrf.mxu3  ;;  %v2317_v5 = vadd.f32 %v2316_v37, %v2204_v45 }
 0x311   : > { %v2430_v18 = vadd.f32 %v2429_v23, %v2317_v5 }
 0x313   : > { %v2543_v30 = vadd.f32 %v2542_v13, %v2430_v18  ;;  %v2545_v62 = vpop.f32.mrf.mxu0 }
 0x315   : > { %v2645_v14 = vadd.f32 %v2644_v2, %v2543_v30 }
 0x316   : > { %v2319_v34 = vpop.f32.mrf.mxu2 }
 0x317   : > { %v2432_v42 = vpop.f32.mrf.mxu3  ;;  %v2320_v63 = vadd.f32 %v2319_v34, %v2207_v31 }
 0x319   : > { %v2433_v56 = vadd.f32 %v2432_v42, %v2320_v63  ;;  %v10385_v63 = vld [vmem:[#allocation48_spill] sm:$0xff] }
 0x31b   : > { %v2546_v50 = vadd.f32 %v2545_v62, %v2433_v56  ;;  %v2548_v12 = vpop.f32.mrf.mxu0 }
 0x31d   : > { %v2646_v29 = vadd.f32 %v2645_v14, %v2546_v50 }
 0x31e   : > { %v2322_v10 = vpop.f32.mrf.mxu2 }
 0x31f   : > { %v2435_v35 = vpop.f32.mrf.mxu3  ;;  %v2323_v24 = vadd.f32 %v2322_v10, %v2210_v4 }
 0x321   : > { %v2436_v39 = vadd.f32 %v2435_v35, %v2323_v24 }
 0x323   : > { %v2549_v0 = vadd.f32 %v2548_v12, %v2436_v39  ;;  %v2551_v11 = vpop.f32.mrf.mxu0 }
 0x325   : > { %v2647_v44 = vadd.f32 %v2646_v29, %v2549_v0 }
 0x326   : > { %v2325_v1 = vpop.f32.mrf.mxu2 }
 0x327   : > { %v2438_v61 = vpop.f32.mrf.mxu3  ;;  %v2326_v19 = vadd.f32 %v2325_v1, %v2213_v51 }
 0x329   : > { %v2439_v55 = vadd.f32 %v2438_v61, %v2326_v19 }
 0x32b   : > { %v2552_v13 = vadd.f32 %v2551_v11, %v2439_v55 }
 0x32d   : > { %v2648_v52 = vadd.f32 %v2647_v44, %v2552_v13 }
 0x32f   : > { %v2649_v45 = vrot.slane %v2648_v52, 4 }
 0x331   : > { %v2650_v57 = vadd.f32 %v2649_v45, %v2648_v52 }
 0x333   : > { %v2651_v2 = vrot.slane %v2650_v57, 2 }
 0x335   : > { %v2652_v37 = vadd.f32 %v2651_v2, %v2650_v57 }
 0x337   : > { %v2653_v23 = vrot.slane %v2652_v37, 1 }
 0x339   : > { %v2654_v5 = vadd.f32 %v2653_v23, %v2652_v37 }
 0x33b   : > { %v7315_v18 = vmul.f32 0.00390625, %v2654_v5 }
 0x33d   : > { %v7318_v62 = vsub.f32 %v2537_v43, %v7315_v18  ;;  %v7321_v9 = vsub.f32 %v2540_v17, %v7315_v18  ;;  %v7324_v31 = vsub.f32 %v2543_v30, %v7315_v18  ;;  %v7327_v14 = vsub.f32 %v2546_v50, %v7315_v18  ;;  %v10386_v43 = vld [vmem:[#allocation49_spill] sm:$0xff] }
 0x33e   : > { %v7330_v34 = vsub.f32 %v2549_v0, %v7315_v18  ;;  %v7333_v42 = vsub.f32 %v2552_v13, %v7315_v18  ;;  %v7337_v6 = vsub.f32 %v10385_v63, %v7315_v18  ;;  %v7341_v17 = vsub.f32 %v10386_v43, %v7315_v18 }
 0x33f   : > { %v7345_v30 = vsub.f32 %v6948_v15, %v7315_v18  ;;  %v7353_v38 = vsub.f32 %v6955_v47, %v7315_v18  ;;  %v7357_v4 = vsub.f32 %v6962_v8, %v7315_v18  ;;  %v7363_v15 = vsub.f32 %v6969_v60, %v7315_v18 }
 0x340   : > { %v2688_v56 = vmul.f32 %v7337_v6, %v7337_v6  ;;  %v2689_v50 = vmul.f32 %v7341_v17, %v7341_v17  ;;  %v7369_v47 = vsub.f32 %v6976_v54, %v7315_v18  ;;  %v7375_v39 = vsub.f32 %v6981_v22, %v7315_v18 }
 0x341   : > { %v2690_v29 = vmul.f32 %v7345_v30, %v7345_v30  ;;  %v2691_v10 = vmul.f32 %v7353_v38, %v7353_v38  ;;  %v2692_v8 = vmul.f32 %v7357_v4, %v7357_v4  ;;  %v2693_v60 = vmul.f32 %v7363_v15, %v7363_v15 }
 0x342   : > { %v2720_v12 = vadd.f32 %v2689_v50, %v2688_v56  ;;  %v7381_v0 = vsub.f32 %v7172_v40, %v7315_v18  ;;  %v2694_v54 = vmul.f32 %v7369_v47, %v7369_v47  ;;  %v7387_v51 = vsub.f32 %v7184_v3, %v7315_v18 }
 0x343   : > { %v2695_v22 = vmul.f32 %v7375_v39, %v7375_v39  ;;  %v7393_v1 = vsub.f32 %v7194_v16, %v7315_v18  ;;  %v7399_v19 = vsub.f32 %v7202_v32, %v7315_v18  ;;  %v7405_v55 = vsub.f32 %v7213_v33, %v7315_v18 }
 0x344   : > { %v2721_v35 = vadd.f32 %v2720_v12, %v2690_v29  ;;  %v2696_v40 = vmul.f32 %v7381_v0, %v7381_v0  ;;  %v2697_v3 = vmul.f32 %v7387_v51, %v7387_v51  ;;  %v7411_v52 = vsub.f32 %v7223_v28, %v7315_v18 }
 0x345   : > { %v2698_v16 = vmul.f32 %v7393_v1, %v7393_v1  ;;  %v2699_v32 = vmul.f32 %v7399_v19, %v7399_v19  ;;  %v7417_v57 = vsub.f32 %v7231_v49, %v7315_v18  ;;  %v2700_v33 = vmul.f32 %v7405_v55, %v7405_v55 }
 0x346   : > { %v2722_v24 = vadd.f32 %v2721_v35, %v2691_v10  ;;  %v7423_v37 = vsub.f32 %v7239_v27, %v7315_v18  ;;  %v2701_v28 = vmul.f32 %v7411_v52, %v7411_v52  ;;  %v7429_v5 = vsub.f32 %v7247_v53, %v7315_v18 }
 0x347   : > { %v2702_v49 = vmul.f32 %v7417_v57, %v7417_v57  ;;  %v7435_v43 = vsub.f32 %v7255_v7, %v7315_v18  ;;  %v7441_v50 = vsub.f32 %v7263_v46, %v7315_v18  ;;  %v7447_v12 = vsub.f32 %v7271_v26, %v7315_v18 }
 0x348   : > { %v2723_v48 = vadd.f32 %v2722_v24, %v2692_v8  ;;  %v2703_v27 = vmul.f32 %v7423_v37, %v7423_v37  ;;  %v2704_v53 = vmul.f32 %v7429_v5, %v7429_v5  ;;  %v7453_v35 = vsub.f32 %v7281_v41, %v7315_v18 }
 0x349   : > { %v2705_v7 = vmul.f32 %v7435_v43, %v7435_v43  ;;  %v2706_v46 = vmul.f32 %v7441_v50, %v7441_v50  ;;  %v7459_v24 = vsub.f32 %v7287_v21, %v7315_v18  ;;  %v2707_v26 = vmul.f32 %v7447_v12, %v7447_v12 }
 0x34a   : > { %v2724_v59 = vadd.f32 %v2723_v48, %v2693_v60  ;;  %v7465_v48 = vsub.f32 %v7292_v25, %v7315_v18  ;;  %v2708_v41 = vmul.f32 %v7453_v35, %v7453_v35 }
 0x34b   : > { %v2709_v21 = vmul.f32 %v7459_v24, %v7459_v24 }
 0x34c   : > { %v2725_v44 = vadd.f32 %v2724_v59, %v2694_v54  ;;  %v7471_v59 = vsub.f32 %v7296_v20, %v7315_v18  ;;  %v2710_v25 = vmul.f32 %v7465_v48, %v7465_v48 }
 0x34e   : > { %v2726_v61 = vadd.f32 %v2725_v44, %v2695_v22  ;;  %v7477_v44 = vsub.f32 %v7300_v36, %v7315_v18  ;;  %v2711_v20 = vmul.f32 %v7471_v59, %v7471_v59 }
 0x350   : > { %v2727_v11 = vadd.f32 %v2726_v61, %v2696_v40  ;;  %v7483_v61 = vsub.f32 %v7304_v58, %v7315_v18  ;;  %v2715_v58 = vmul.f32 %v7321_v9, %v7321_v9 }
 0x352   : > { %v2728_v13 = vadd.f32 %v2727_v11, %v2697_v3  ;;  %v2712_v11 = vmul.f32 %v7477_v44, %v7477_v44  ;;  %v2713_v36 = vmul.f32 %v7483_v61, %v7483_v61 }
 0x354   : > { %v2729_v45 = vadd.f32 %v2728_v13, %v2698_v16 }
 0x356   : > { %v2730_v2 = vadd.f32 %v2729_v45, %v2699_v32  ;;  %v2714_v32 = vmul.f32 %v7318_v62, %v7318_v62 }
 0x358   : > { %v2731_v23 = vadd.f32 %v2730_v2, %v2700_v33  ;;  %v2716_v33 = vmul.f32 %v7324_v31, %v7324_v31 }
 0x35a   : > { %v2732_v63 = vadd.f32 %v2731_v23, %v2701_v28  ;;  %v2717_v28 = vmul.f32 %v7327_v14, %v7327_v14 }
 0x35c   : > { %v2733_v56 = vadd.f32 %v2732_v63, %v2702_v49  ;;  %v2718_v49 = vmul.f32 %v7330_v34, %v7330_v34 }
 0x35e   : > { %v2734_v29 = vadd.f32 %v2733_v56, %v2703_v27  ;;  %v2719_v27 = vmul.f32 %v7333_v42, %v7333_v42 }
 0x360   : > { %v2735_v10 = vadd.f32 %v2734_v29, %v2704_v53 }
 0x362   : > { %v2736_v8 = vadd.f32 %v2735_v10, %v2705_v7 }
 0x364   : > { %v2737_v60 = vadd.f32 %v2736_v8, %v2706_v46 }
 0x366   : > { %v2738_v54 = vadd.f32 %v2737_v60, %v2707_v26 }
 0x368   : > { %v2739_v22 = vadd.f32 %v2738_v54, %v2708_v41 }
 0x36a   : > { %v2740_v40 = vadd.f32 %v2739_v22, %v2709_v21 }
 0x36c   : > { %v2741_v3 = vadd.f32 %v2740_v40, %v2710_v25  ;;  %v345_v40 = vld [vmem:[%s303_s10] sm:$0x3] }
 0x36e   : > { %v2742_v16 = vadd.f32 %v2741_v3, %v2711_v20 }
 0x370   : > { %v2743_v13 = vadd.f32 %v2742_v16, %v2712_v11  ;;  %v7509_v11 = vperm.slane %v345_v40, 0  ;;  %v7511_v16 = vperm.slane %v345_v40, 1 }
 0x372   : > { %v2744_v45 = vadd.f32 %v2743_v13, %v2713_v36 }
 0x374   : > { %v2745_v18 = vadd.f32 %v2744_v45, %v2714_v32 }
 0x376   : > { %v2746_v2 = vadd.f32 %v2745_v18, %v2715_v58 }
 0x378   : > { %v2747_v23 = vadd.f32 %v2746_v2, %v2716_v33 }
 0x37a   : > { %v2748_v63 = vadd.f32 %v2747_v23, %v2717_v28 }
 0x37c   : > { %v2749_v56 = vadd.f32 %v2748_v63, %v2718_v49 }
 0x37e   : > { %v2750_v53 = vadd.f32 %v2749_v56, %v2719_v27 }
 0x380   : > { %v2751_v29 = vrot.slane %v2750_v53, 4 }
 0x382   : > { %v2752_v7 = vadd.f32 %v2751_v29, %v2750_v53 }
 0x384   : > { %v2753_v10 = vrot.slane %v2752_v7, 2 }
 0x386   : > { %v2754_v46 = vadd.f32 %v2753_v10, %v2752_v7 }
 0x388   : > { %v2755_v8 = vrot.slane %v2754_v46, 1 }
 0x38a   : > { %v2756_v26 = vadd.f32 %v2755_v8, %v2754_v46 }
 0x38c   : > { %v2757_v60 = vmul.f32 0.00390625, %v2756_v26 }
 0x38e   : > { %v2758_v41 = vadd.f32 1e-05, %v2757_v60 }
 0x390   : > { %5613 = vrsqrt.f32 %v2758_v41  ;;  %vm2765_vm3 = vweird.f32 %v2758_v41 }
 0x396   : > { %v5614_v54 = vpop.eup %5613 }
 0x397   : > { %v2760_v21 = vmul.f32 %v5614_v54, %v2758_v41  ;;  %vm2766_vm2 = vweird.f32 %v5614_v54 }
 0x398   : > { %vm2767_vm4 = vmor %vm2765_vm3, %vm2766_vm2 }
 0x399   : > { %v2761_v22 = vmul.f32 %v5614_v54, %v2760_v21 }
 0x39b   : > { %v2762_v25 = vmul.f32 0.5, %v2761_v22 }
 0x39d   : > { %v2763_v20 = vsub.f32 1.5, %v2762_v25 }
 0x39f   : > { %v2764_v3 = vmul.f32 %v5614_v54, %v2763_v20 }
 0x3a1   : > { %v2768_v36 = vsel %vm2767_vm4, %v5614_v54, %v2764_v3 }
 0x3a2   : > { %v2800_v13 = vmul.f32 %v2768_v36, %v7333_v42  ;;  %v2769_v32 = vmul.f32 %v2768_v36, %v7337_v6  ;;  %v2770_v45 = vmul.f32 %v2768_v36, %v7341_v17  ;;  %v2771_v58 = vmul.f32 %v2768_v36, %v7345_v30 }
 0x3a3   : > { %v2772_v18 = vmul.f32 %v2768_v36, %v7353_v38  ;;  %v2773_v33 = vmul.f32 %v2768_v36, %v7357_v4  ;;  %v2774_v2 = vmul.f32 %v2768_v36, %v7363_v15  ;;  %v2775_v28 = vmul.f32 %v2768_v36, %v7369_v47 }
 0x3a4   : > { %v2833_v23 = vmul.f32 %v7509_v11, %v2800_v13  ;;  %v2776_v49 = vmul.f32 %v2768_v36, %v7375_v39  ;;  %v2777_v42 = vmul.f32 %v2768_v36, %v7381_v0  ;;  %v2778_v6 = vmul.f32 %v2768_v36, %v7387_v51 }
 0x3a5   : > { %v2779_v17 = vmul.f32 %v2768_v36, %v7393_v1  ;;  %v2780_v30 = vmul.f32 %v2768_v36, %v7399_v19  ;;  %v2781_v38 = vmul.f32 %v2768_v36, %v7405_v55  ;;  %v2782_v4 = vmul.f32 %v2768_v36, %v7411_v52 }
 0x3a6   : > { %v2866_v15 = vadd.f32 %v7511_v16, %v2833_v23  ;;  %v2783_v47 = vmul.f32 %v2768_v36, %v7417_v57  ;;  %v2784_v63 = vmul.f32 %v2768_v36, %v7423_v37  ;;  %v2785_v39 = vmul.f32 %v2768_v36, %v7429_v5 }
 0x3a7   : > { %v2786_v0 = vmul.f32 %v2768_v36, %v7435_v43  ;;  %v2787_v51 = vmul.f32 %v2768_v36, %v7441_v50  ;;  %v2788_v1 = vmul.f32 %v2768_v36, %v7447_v12  ;;  %v2789_v19 = vmul.f32 %v2768_v36, %v7453_v35 }
 0x3a8   : > { %v2898_v27 = vmax.f32 %v2866_v15, 0.0  ;;  %v2790_v55 = vmul.f32 %v2768_v36, %v7459_v24  ;;  %v2791_v52 = vmul.f32 %v2768_v36, %v7465_v48  ;;  %v2792_v56 = vmul.f32 %v2768_v36, %v7471_v59 }
 0x3a9   : > { %v2793_v57 = vmul.f32 %v2768_v36, %v7477_v44  ;;  %v2794_v37 = vmul.f32 %v2768_v36, %v7483_v61  ;;  %v2795_v5 = vmul.f32 %v2768_v36, %v7318_v62  ;;  %v2796_v43 = vmul.f32 %v2768_v36, %v7321_v9 }
 0x3aa   : > { %2931 = vst [vmem:[#allocation2 + $0x189] sm:$0xff] %v2898_v27  ;;  %v2797_v50 = vmul.f32 %v2768_v36, %v7324_v31  ;;  %v2798_v12 = vmul.f32 %v2768_v36, %v7327_v14  ;;  %v2799_v35 = vmul.f32 %v2768_v36, %v7330_v34  ;;  %v2802_v24 = vmul.f32 %v7509_v11, %v2769_v32 }
 0x3ab   : > { %2963 = vst [vmem:[#allocation2 + $0x18b] sm:$0x40] %v2898_v27  ;;  %v2803_v48 = vmul.f32 %v7509_v11, %v2770_v45  ;;  %v2804_v59 = vmul.f32 %v7509_v11, %v2771_v58  ;;  %v2805_v44 = vmul.f32 %v7509_v11, %v2772_v18  ;;  %v2806_v62 = vmul.f32 %v7509_v11, %v2773_v33 }
 0x3ac   : > { %v2807_v9 = vmul.f32 %v7509_v11, %v2774_v2  ;;  %v2808_v61 = vmul.f32 %v7509_v11, %v2775_v28  ;;  %v2809_v31 = vmul.f32 %v7509_v11, %v2776_v49  ;;  %v2810_v14 = vmul.f32 %v7509_v11, %v2777_v42 }
 0x3ad   : > { %v2811_v34 = vmul.f32 %v7509_v11, %v2778_v6  ;;  %v2812_v53 = vmul.f32 %v7509_v11, %v2779_v17  ;;  %v2813_v29 = vmul.f32 %v7509_v11, %v2780_v30  ;;  %v2814_v7 = vmul.f32 %v7509_v11, %v2781_v38 }
 0x3ae   : > { %v2815_v10 = vmul.f32 %v7509_v11, %v2782_v4  ;;  %v2816_v46 = vmul.f32 %v7509_v11, %v2783_v47  ;;  %v2817_v8 = vmul.f32 %v7509_v11, %v2784_v63  ;;  %v2818_v26 = vmul.f32 %v7509_v11, %v2785_v39 }
 0x3af   : > { %v2819_v60 = vmul.f32 %v7509_v11, %v2786_v0  ;;  %v2820_v41 = vmul.f32 %v7509_v11, %v2787_v51  ;;  %v2821_v54 = vmul.f32 %v7509_v11, %v2788_v1  ;;  %v2822_v21 = vmul.f32 %v7509_v11, %v2789_v19 }
 0x3b0   : > { %v2823_v22 = vmul.f32 %v7509_v11, %v2790_v55  ;;  %v2824_v25 = vmul.f32 %v7509_v11, %v2791_v52  ;;  %v2825_v40 = vmul.f32 %v7509_v11, %v2792_v56  ;;  %v2826_v20 = vmul.f32 %v7509_v11, %v2793_v57  ;;  %v2983_v55 = vld [vmem:[%s10176_s5 + $0x38] sm:$0xff] }
 0x3b1   : > { %v2827_v3 = vmul.f32 %v7509_v11, %v2794_v37  ;;  %v2828_v36 = vmul.f32 %v7509_v11, %v2795_v5  ;;  %v2829_v13 = vmul.f32 %v7509_v11, %v2796_v43  ;;  %v2830_v32 = vmul.f32 %v7509_v11, %v2797_v50  ;;  %4091 = vmatpush.msra.mxu1 %v2983_v55  ;;  %v3033_v55 = vld [vmem:[%s10176_s5 + $0x1c8] sm:$0xff] }
 0x3b2   : > { %v2831_v45 = vmul.f32 %v7509_v11, %v2798_v12  ;;  %v2832_v58 = vmul.f32 %v7509_v11, %v2799_v35  ;;  %v2835_v18 = vadd.f32 %v7511_v16, %v2802_v24  ;;  %v7580_v33 = vadd.f32 %v7511_v16, %v2803_v48 }
 0x3b3   : > { %v2837_v2 = vadd.f32 %v7511_v16, %v2804_v59  ;;  %v7584_v28 = vadd.f32 %v7511_v16, %v2805_v44  ;;  %v7587_v23 = vadd.f32 %v7511_v16, %v2806_v62  ;;  %v7590_v49 = vadd.f32 %v7511_v16, %v2807_v9 }
 0x3b4   : > { %v7593_v42 = vadd.f32 %v7511_v16, %v2808_v61  ;;  %v7596_v11 = vadd.f32 %v7511_v16, %v2809_v31  ;;  %v7599_v6 = vadd.f32 %v7511_v16, %v2810_v14  ;;  %v7602_v17 = vadd.f32 %v7511_v16, %v2811_v34  ;;  %v3039_v14 = vld [vmem:[%s10176_s5 + $0x1f8] sm:$0xff] }
 0x3b5   : > { %v7605_v30 = vadd.f32 %v7511_v16, %v2812_v53  ;;  %v7608_v38 = vadd.f32 %v7511_v16, %v2813_v29  ;;  %v7611_v4 = vadd.f32 %v7511_v16, %v2814_v7  ;;  %v7614_v15 = vadd.f32 %v7511_v16, %v2815_v10  ;;  %4422 = vmatpush.msrb.mxu0 %v3039_v14  ;;  %v3038_v53 = vld [vmem:[%s10176_s5 + $0x1f0] sm:$0xff]  ;;  %v3007_v7 = vld [vmem:[%s10176_s5 + $0xf8] sm:$0xff] }
 0x3b6   : > { %v7617_v47 = vadd.f32 %v7511_v16, %v2816_v46  ;;  %v7620_v63 = vadd.f32 %v7511_v16, %v2817_v8  ;;  %v7623_v39 = vadd.f32 %v7511_v16, %v2818_v26  ;;  %v7626_v0 = vadd.f32 %v7511_v16, %v2819_v60  ;;  %v3023_v10 = vld [vmem:[%s10176_s5 + $0x178] sm:$0xff]  ;;  %v3037_v8 = vld [vmem:[%s10176_s5 + $0x1e8] sm:$0xff]  ;;  %4196 = vmatpush.msrb.mxu2 %v3007_v7  ;;  %v3006_v60 = vld [vmem:[%s10176_s5 + $0xf0] sm:$0xff] }
 0x3b7   : > { %v7629_v51 = vadd.f32 %v7511_v16, %v2820_v41  ;;  %v7632_v1 = vadd.f32 %v7511_v16, %v2821_v54  ;;  %v7635_v19 = vadd.f32 %v7511_v16, %v2822_v21  ;;  %v7638_v27 = vadd.f32 %v7511_v16, %v2823_v22  ;;  %4423 = vmatpush.msrb.mxu0 %v3038_v53  ;;  %v3022_v41 = vld [vmem:[%s10176_s5 + $0x170] sm:$0xff]  ;;  %v3036_v21 = vld [vmem:[%s10176_s5 + $0x1e0] sm:$0xff] }
 0x3b8   : > { %v7644_v52 = vadd.f32 %v7511_v16, %v2824_v25  ;;  %v7647_v56 = vadd.f32 %v7511_v16, %v2825_v40  ;;  %v7650_v57 = vadd.f32 %v7511_v16, %v2826_v20  ;;  %v7653_v37 = vadd.f32 %v7511_v16, %v2827_v3  ;;  %4309 = vmatpush.msrb.mxu3 %v3023_v10  ;;  %v3005_v25 = vld [vmem:[%s10176_s5 + $0xe8] sm:$0xff]  ;;  %v3035_v3 = vld [vmem:[%s10176_s5 + $0x1d8] sm:$0xff]  ;;  %v3032_v53 = vld [vmem:[%s10176_s5 + $0x1c0] sm:$0xff] }
 0x3b9   : > { %v7656_v5 = vadd.f32 %v7511_v16, %v2828_v36  ;;  %v7659_v43 = vadd.f32 %v7511_v16, %v2829_v13  ;;  %v7662_v50 = vadd.f32 %v7511_v16, %v2830_v32  ;;  %v7665_v12 = vadd.f32 %v7511_v16, %v2831_v45  ;;  %4424 = vmatpush.msrb.mxu0 %v3037_v8  ;;  %v3021_v40 = vld [vmem:[%s10176_s5 + $0x168] sm:$0xff]  ;;  %v3004_v13 = vld [vmem:[%s10176_s5 + $0xe0] sm:$0xff] }
 0x3ba   : > { %v7668_v35 = vadd.f32 %v7511_v16, %v2832_v58  ;;  %v2867_v24 = vmax.f32 %v2835_v18, 0.0  ;;  %v2868_v48 = vmax.f32 %v7580_v33, 0.0  ;;  %v2869_v59 = vmax.f32 %v2837_v2, 0.0  ;;  %4197 = vmatpush.msrb.mxu2 %v3006_v60  ;;  %4310 = vmatpush.msrb.mxu3 %v3022_v41  ;;  %v3020_v32 = vld [vmem:[%s10176_s5 + $0x160] sm:$0xff]  ;;  %v3034_v58 = vld [vmem:[%s10176_s5 + $0x1d0] sm:$0xff]  ;;  %v3003_v18 = vld [vmem:[%s10176_s5 + $0xd8] sm:$0xff] }
 0x3bb   : > { %v2870_v44 = vmax.f32 %v7584_v28, 0.0  ;;  %v2871_v62 = vmax.f32 %v7587_v23, 0.0  ;;  %v2873_v9 = vmax.f32 %v7593_v42, 0.0  ;;  %v2875_v16 = vmax.f32 %v7599_v6, 0.0  ;;  %4425 = vmatpush.msrb.mxu0 %v3036_v21  ;;  %v3019_v2 = vld [vmem:[%s10176_s5 + $0x158] sm:$0xff]  ;;  %v3001_v10 = vld [vmem:[%s10176_s5 + $0xc8] sm:$0xff] }
 0x3bc   : > { %2900 = vst [vmem:[#allocation2 + $0x19] sm:$0xff] %v2867_v24  ;;  %v2897_v61 = vmax.f32 %v7668_v35, 0.0  ;;  %v2877_v31 = vmax.f32 %v7605_v30, 0.0  ;;  %v2879_v34 = vmax.f32 %v7611_v4, 0.0  ;;  %v2881_v29 = vmax.f32 %v7617_v47, 0.0  ;;  %4198 = vmatpush.msrb.mxu2 %v3005_v25  ;;  %4311 = vmatpush.msrb.mxu3 %v3021_v40  ;;  %v3017_v8 = vld [vmem:[%s10176_s5 + $0x148] sm:$0xff] }
 0x3bd   : > { %2901 = vst [vmem:[#allocation2 + $0x21] sm:$0xff] %v2868_v48  ;;  %v2883_v46 = vmax.f32 %v7623_v39, 0.0  ;;  %v2885_v26 = vmax.f32 %v7629_v51, 0.0  ;;  %v2887_v54 = vmax.f32 %v7635_v19, 0.0  ;;  %v2889_v22 = vmax.f32 %v7644_v52, 0.0  ;;  %4426 = vmatpush.msrb.mxu0 %v3035_v3  ;;  %v3031_v35 = vld [vmem:[%s10176_s5 + $0x1b8] sm:$0xff] }
 0x3be   : > { %2902 = vst [vmem:[#allocation2 + $0x31] sm:$0xff] %v2869_v59  ;;  %v2891_v20 = vmax.f32 %v7650_v57, 0.0  ;;  %v2893_v36 = vmax.f32 %v7656_v5, 0.0  ;;  %v2895_v45 = vmax.f32 %v7662_v50, 0.0  ;;  %4199 = vmatpush.msrb.mxu2 %v3004_v13  ;;  %4312 = vmatpush.msrb.mxu3 %v3020_v32  ;;  %v2872_v14 = vmax.f32 %v7590_v49, 0.0  ;;  %v3000_v41 = vld [vmem:[%s10176_s5 + $0xc0] sm:$0xff] }
 0x3bf   : > { %2903 = vst [vmem:[#allocation2 + $0x39] sm:$0xff] %v2870_v44  ;;  %4427 = vmatpush.msrb.mxu0 %v3034_v58  ;;  %v2874_v7 = vmax.f32 %v7596_v11, 0.0  ;;  %v2876_v60 = vmax.f32 %v7602_v17, 0.0  ;;  %v3016_v33 = vld [vmem:[%s10176_s5 + $0x140] sm:$0xff]  ;;  %v2982_v21 = vld [vmem:[%s10176_s5 + $0x30] sm:$0xff]  ;;  %v2999_v25 = vld [vmem:[%s10176_s5 + $0xb8] sm:$0xff] }
 0x3c0   : > { %2932 = vst [vmem:[#allocation2 + $0x17] sm:$0x2] %v2867_v24  ;;  %4200 = vmatpush.msrb.mxu2 %v3003_v18  ;;  %4313 = vmatpush.msrb.mxu3 %v3019_v2  ;;  %v3002_v24 = vld [vmem:[%s10176_s5 + $0xd0] sm:$0xff]  ;;  %v3015_v40 = vld [vmem:[%s10176_s5 + $0x138] sm:$0xff]  ;;  %v2884_v3 = vmax.f32 %v7626_v0, 0.0  ;;  %v2981_v13 = vld [vmem:[%s10176_s5 + $0x28] sm:$0xff] }
 0x3c1   : > { %2933 = vst [vmem:[#allocation2 + $0x2f] sm:$0x2] %v2869_v59  ;;  %v3018_v59 = vld [vmem:[%s10176_s5 + $0x150] sm:$0xff]  ;;  %4428 = vmatpush.msrb.mxu0 %v3033_v55  ;;  %4092 = vmatpush.msra.mxu1 %v2982_v21  ;;  %v3029_v32 = vld [vmem:[%s10176_s5 + $0x1a8] sm:$0xff]  ;;  %v2886_v58 = vmax.f32 %v7632_v1, 0.0  ;;  %v2888_v55 = vmax.f32 %v7638_v27, 0.0 }
 0x3c2   : > { %2934 = vst [vmem:[#allocation2 + $0x47] sm:$0x2] %v2871_v62  ;;  %4201 = vmatpush.msrb.mxu2 %v3002_v24  ;;  %4314 = vmatpush.msrb.mxu3 %v3018_v59  ;;  %v3030_v28 = vld [vmem:[%s10176_s5 + $0x1b0] sm:$0xff]  ;;  %v2980_v24 = vld [vmem:[%s10176_s5 + $0x20] sm:$0xff]  ;;  %v2894_v21 = vmax.f32 %v7659_v43, 0.0  ;;  %v3009_v23 = vld [vmem:[%s10176_s5 + $0x108] sm:$0xff] }
 0x3c3   : > { %2930 = vst [vmem:[#allocation2 + $0x181] sm:$0xff] %v2897_v61  ;;  %4429 = vmatpush.msrb.mxu0 %v3032_v53  ;;  %4093 = vmatpush.msra.mxu1 %v2981_v13  ;;  %v2998_v18 = vld [vmem:[%s10176_s5 + $0xb0] sm:$0xff]  ;;  %v3028_v59 = vld [vmem:[%s10176_s5 + $0x1a0] sm:$0xff]  ;;  %v2890_v53 = vmax.f32 %v7647_v56, 0.0  ;;  %v2977_v13 = vld [vmem:[%s10176_s5 + $0x8] sm:$0xff] }
 0x3c4   : > { %2935 = vst [vmem:[#allocation2 + $0x5f] sm:$0x2] %v2873_v9  ;;  %4202 = vmatpush.msrb.mxu2 %v3001_v10  ;;  %4315 = vmatpush.msrb.mxu3 %v3017_v8  ;;  %v3014_v2 = vld [vmem:[%s10176_s5 + $0x130] sm:$0xff]  ;;  %v2997_v10 = vld [vmem:[%s10176_s5 + $0xa8] sm:$0xff]  ;;  %v2992_v49 = vld [vmem:[%s10176_s5 + $0x80] sm:$0xff] }
 0x3c5   : > { %2936 = vst [vmem:[#allocation2 + $0x77] sm:$0x2] %v2875_v16  ;;  %4430 = vmatpush.msrb.mxu0 %v3031_v35  ;;  %4094 = vmatpush.msra.mxu1 %v2980_v24  ;;  %v3013_v8 = vld [vmem:[%s10176_s5 + $0x128] sm:$0xff]  ;;  %v2892_v35 = vmax.f32 %v7653_v37, 0.0  ;;  %v2976_v24 = vld [vmem:[%s10176_s5] sm:$0xff]  ;;  %v3054_v6 = vld [vmem:[%s10176_s5 + $0x270] sm:$0xff] }
 0x3c6   : > { %2937 = vst [vmem:[#allocation2 + $0x8f] sm:$0x2] %v2877_v31  ;;  %4203 = vmatpush.msrb.mxu2 %v3000_v41  ;;  %4316 = vmatpush.msrb.mxu3 %v3016_v33  ;;  %v2979_v41 = vld [vmem:[%s10176_s5 + $0x18] sm:$0xff]  ;;  %v2978_v33 = vld [vmem:[%s10176_s5 + $0x10] sm:$0xff]  ;;  %v3008_v42 = vld [vmem:[%s10176_s5 + $0x100] sm:$0xff] }
 0x3c7   : > { %2938 = vst [vmem:[#allocation2 + $0xa7] sm:$0x2] %v2879_v34  ;;  %4431 = vmatpush.msrb.mxu0 %v3030_v28  ;;  %4095 = vmatpush.msra.mxu1 %v2979_v41  ;;  %v3027_v28 = vld [vmem:[%s10176_s5 + $0x198] sm:$0xff]  ;;  %v2994_v41 = vld [vmem:[%s10176_s5 + $0x90] sm:$0xff]  ;;  %v3169_v17 = vld [vmem:[#allocation2 + $0x20] sm:$0xff] }
 0x3c8   : > { %2939 = vst [vmem:[#allocation2 + $0xbf] sm:$0x2] %v2881_v29  ;;  %4204 = vmatpush.msrb.mxu2 %v2999_v25  ;;  %4317 = vmatpush.msrb.mxu3 %v3015_v40  ;;  %v3026_v25 = vld [vmem:[%s10176_s5 + $0x190] sm:$0xff]  ;;  %v2896_v40 = vmax.f32 %v7665_v12, 0.0  ;;  %v3053_v30 = vld [vmem:[%s10176_s5 + $0x268] sm:$0xff]  ;;  %v8026_v19 = vrot.slane %v3169_v17, 1 }
 0x3c9   : > { %2940 = vst [vmem:[#allocation2 + $0xd7] sm:$0x2] %v2883_v46  ;;  %4432 = vmatpush.msrb.mxu0 %v3029_v32  ;;  %4096 = vmatpush.msra.mxu1 %v2978_v33  ;;  %v3025_v32 = vld [vmem:[%s10176_s5 + $0x188] sm:$0xff]  ;;  %v7911_v33 = vld [vmem:[#allocation2 + $0x30] sm:$0xff]  ;;  %v8028_v27 = vrot.slane %v3169_v17, 2  ;;  %v3052_v52 = vld [vmem:[%s10176_s5 + $0x260] sm:$0xff] }
 0x3ca   : > { %2941 = vst [vmem:[#allocation2 + $0xef] sm:$0x2] %v2885_v26  ;;  %4205 = vmatpush.msrb.mxu2 %v2998_v18  ;;  %4318 = vmatpush.msrb.mxu3 %v3014_v2  ;;  %v2996_v18 = vld [vmem:[%s10176_s5 + $0xa0] sm:$0xff] }
 0x3cb   : > { %2942 = vst [vmem:[#allocation2 + $0x107] sm:$0x2] %v2887_v54  ;;  %4433 = vmatpush.msrb.mxu0 %v3028_v59  ;;  %v3012_v2 = vld [vmem:[%s10176_s5 + $0x120] sm:$0xff]  ;;  %v2995_v59 = vld [vmem:[%s10176_s5 + $0x98] sm:$0xff]  ;;  %4097 = vmatpush.msra.mxu1 %v2977_v13  ;;  %v3312_v13 = vrot.slane %v7911_v33, 1 }
 0x3cc   : > { %2943 = vst [vmem:[#allocation2 + $0x11f] sm:$0x2] %v2889_v22  ;;  %4206 = vmatpush.msrb.mxu2 %v2997_v10  ;;  %4319 = vmatpush.msrb.mxu3 %v3013_v8  ;;  %v3011_v10 = vld [vmem:[%s10176_s5 + $0x118] sm:$0xff]  ;;  %v3024_v8 = vld [vmem:[%s10176_s5 + $0x180] sm:$0xff] }
 0x3cd   : > { %2944 = vst [vmem:[#allocation2 + $0x137] sm:$0x2] %v2891_v20  ;;  %4434 = vmatpush.msrb.mxu0 %v3027_v28  ;;  %v7915_v28 = vld [vmem:[#allocation2 + $0x18] sm:$0xff]  ;;  %4098 = vmatpush.msra.mxu1 %v2976_v24 }
 0x3ce   : > { %2945 = vst [vmem:[#allocation2 + $0x14f] sm:$0x2] %v2893_v36  ;;  %4207 = vmatpush.msrb.mxu2 %v2996_v18  ;;  %4320 = vmatpush.msrb.mxu3 %v3012_v2  ;;  %v3424_v18 = vrot.slane %v7911_v33, 2  ;;  %v7935_v2 = vld [vmem:[#allocation2 + $0x38] sm:$0xff]  ;;  %v3584_v51 = vrot.slane %v7915_v28, 1  ;;  %v3696_v1 = vrot.slane %v7915_v28, 2 }
 0x3cf   : > { %2946 = vst [vmem:[#allocation2 + $0x167] sm:$0x2] %v2895_v45  ;;  %4435 = vmatpush.msrb.mxu0 %v3026_v25  ;;  %v3010_v25 = vld [vmem:[%s10176_s5 + $0x110] sm:$0xff]  ;;  %v7947_v24 = vrot.slane %v7935_v2, 2  ;;  %4099 = vmatmul.f32.vlgmr.msra.gmra.mxu1 %v7911_v33 }
 0x3d0   : > { %2947 = vst [vmem:[#allocation2 + $0x17f] sm:$0x2] %v2897_v61  ;;  %v2878_v61 = vmax.f32 %v7608_v38, 0.0  ;;  %4208 = vmatpush.msrb.mxu2 %v2995_v59  ;;  %4321 = vmatpush.msrb.mxu3 %v3011_v10  ;;  %v8039_v57 = vsel %vm764_vm0, %v3584_v51, %v8026_v19  ;;  %v8043_v37 = vsel %vm877_vm1, %v3696_v1, %v8028_v27 }
 0x3d1   : > { %2948 = vst [vmem:[#allocation2 + $0x23] sm:$0x40] %v2868_v48  ;;  %v2880_v48 = vmax.f32 %v7614_v15, 0.0  ;;  %4436 = vmatpush.msrb.mxu0 %v3025_v32  ;;  %v2993_v32 = vld [vmem:[%s10176_s5 + $0x88] sm:$0xff]  ;;  %v7963_v11 = vsel %vm877_vm1, %v3424_v18, %v7947_v24 }
 0x3d2   : > { %2949 = vst [vmem:[#allocation2 + $0x3b] sm:$0x40] %v2870_v44  ;;  %v2882_v44 = vmax.f32 %v7620_v63, 0.0  ;;  %4209 = vmatpush.msrb.mxu2 %v2994_v41  ;;  %4322 = vmatpush.msrb.mxu3 %v3010_v25 }
 0x3d3   : > { %2950 = vst [vmem:[#allocation2 + $0x53] sm:$0x40] %v2872_v14  ;;  %4437 = vmatpush.msrb.mxu0 %v3024_v8 }
 0x3d4   : > { %2951 = vst [vmem:[#allocation2 + $0x6b] sm:$0x40] %v2874_v7  ;;  %4438 = vmatmul.f32.vlgmr.msrb.gmra.mxu0 %v7915_v28  ;;  %4210 = vmatpush.msrb.mxu2 %v2993_v32 }
 0x3d5   : > { %2952 = vst [vmem:[#allocation2 + $0x83] sm:$0x40] %v2876_v60  ;;  %4323 = vmatpush.msrb.mxu3 %v3009_v23 }
 0x3d6   : > { %2953 = vst [vmem:[#allocation2 + $0x9b] sm:$0x40] %v2878_v61  ;;  %4211 = vmatpush.msrb.mxu2 %v2992_v49 }
 0x3d7   : > { %2954 = vst [vmem:[#allocation2 + $0xb3] sm:$0x40] %v2880_v48  ;;  %4324 = vmatpush.msrb.mxu3 %v3008_v42  ;;  %4102 = vmatmul.f32.gmra.mxu1 %v7935_v2 }
 0x3d8   : > { %2955 = vst [vmem:[#allocation2 + $0xcb] sm:$0x40] %v2882_v44  ;;  %4325 = vmatmul.f32.vlgmr.msrb.gmra.mxu3 %v7963_v11 }
 0x3d9   : > { %2956 = vst [vmem:[#allocation2 + $0xe3] sm:$0x40] %v2884_v3  ;;  %v2966_v38 = vld [vmem:[#allocation2 + $0x40] sm:$0x3] }
 0x3da   : > { %2957 = vst [vmem:[#allocation2 + $0xfb] sm:$0x40] %v2886_v58 }
 0x3db   : > { %2958 = vst [vmem:[#allocation2 + $0x113] sm:$0x40] %v2888_v55 }
 0x3dc   : > { %2959 = vst [vmem:[#allocation2 + $0x12b] sm:$0x40] %v2890_v53  ;;  %4441 = vmatmul.f32.gmra.mxu0 %v3169_v17 }
 0x3dd   : > { %2960 = vst [vmem:[#allocation2 + $0x143] sm:$0x40] %v2892_v35 }
 0x3de   : > { %2961 = vst [vmem:[#allocation2 + $0x15b] sm:$0x40] %v2894_v21 }
 0x3df   : > { %2962 = vst [vmem:[#allocation2 + $0x173] sm:$0x40] %v2896_v40  ;;  %4105 = vmatmul.f32.gmra.mxu1 %v7915_v28 }
 0x3e0   : > { %2904 = vst [vmem:[#allocation2 + $0x49] sm:$0xff] %v2871_v62  ;;  %v3055_v62 = vld [vmem:[%s10176_s5 + $0x278] sm:$0xff] }
 0x3e1   : > { %2905 = vst [vmem:[#allocation2 + $0x51] sm:$0xff] %v2872_v14  ;;  %v7944_v14 = vrot.slane %v7935_v2, 1  ;;  %4535 = vmatpush.msrb.mxu1 %v3055_v62 }
 0x3e2   : > { %2906 = vst [vmem:[#allocation2 + $0x61] sm:$0xff] %v2873_v9 }
 0x3e3   : > { %10387 = vst [vmem:[#allocation52_spill] sm:$0xff] %v7944_v14  ;;  %v7959_v9 = vsel %vm764_vm0, %v3312_v13, %v7944_v14  ;;  %4536 = vmatpush.msrb.mxu1 %v3054_v6 }
 0x3e4   : > { %10388 = vst [vmem:[#allocation50_spill] sm:$0xff] %v7947_v24  ;;  %4212 = vmatmul.f32.vlgmr.msrb.gmra.mxu2 %v7959_v9  ;;  %4444 = vmatmul.f32.gmra.mxu0 %v7911_v33 }
 0x3e5   : > { %2907 = vst [vmem:[#allocation2 + $0x69] sm:$0xff] %v2874_v7  ;;  %4537 = vmatpush.msrb.mxu1 %v3053_v30 }
 0x3e6   : > { %2908 = vst [vmem:[#allocation2 + $0x79] sm:$0xff] %v2875_v16 }
 0x3e7   : > { %10389 = vst [vmem:[#allocation54_spill] sm:$0xff] %v7959_v9  ;;  %4108 = vmatmul.f32.gmra.mxu1 %v3169_v17  ;;  %v3174_v4 = vld [vmem:[#allocation2 + $0x48] sm:$0xff] }
 0x3e8   : > { %10390 = vst [vmem:[#allocation60_spill] sm:$0xff] %v7963_v11  ;;  %4538 = vmatpush.msrb.mxu1 %v3052_v52  ;;  %v8033_v56 = vld [vmem:[#allocation2 + $0x50] sm:$0xff]  ;;  %v3594_v5 = vrot.slane %v3174_v4, 1  ;;  %v3706_v16 = vrot.slane %v3174_v4, 2 }
 0x3e9   : > { %2909 = vst [vmem:[#allocation2 + $0x81] sm:$0xff] %v2876_v60  ;;  %v8046_v43 = vrot.slane %v8033_v56, 1  ;;  %v8048_v50 = vld [vmem:[#allocation2 + $0x60] sm:$0xff] }
 0x3ea   : > { %2910 = vst [vmem:[#allocation2 + $0x91] sm:$0xff] %v2877_v31  ;;  %v8053_v31 = vrot.slane %v8033_v56, 2 }
 0x3eb   : > { %2911 = vst [vmem:[#allocation2 + $0x99] sm:$0xff] %v2878_v61 }
 0x3ec   : > { %2912 = vst [vmem:[#allocation2 + $0xa9] sm:$0xff] %v2879_v34  ;;  %4447 = vmatmul.f32.gmra.mxu0 %v7935_v2  ;;  %v8050_v12 = vld [vmem:[#allocation2 + $0x68] sm:$0xff] }
 0x3ed   : > { %2913 = vst [vmem:[#allocation2 + $0xb1] sm:$0xff] %v2880_v48  ;;  %v3125_v34 = vld [vmem:[#allocation2 + $0x28] sm:$0x3]  ;;  %v8079_v48 = vsel %vm877_vm1, %v3706_v16, %v8053_v31 }
 0x3ee   : > { %2914 = vst [vmem:[#allocation2 + $0xc1] sm:$0xff] %v2881_v29  ;;  %v3599_v29 = vrot.slane %v8048_v50, 1  ;;  %v3432_v7 = vrot.slane %v3125_v34, 2 }
 0x3ef   : > { %2915 = vst [vmem:[#allocation2 + $0xc9] sm:$0xff] %v2882_v44  ;;  %4111 = vmatmul.f32.gmra.mxu1 %v7911_v33 }
 0x3f0   : > { %2916 = vst [vmem:[#allocation2 + $0xd9] sm:$0xff] %v2883_v46  ;;  %v8059_v46 = vrot.slane %v8050_v12, 1  ;;  %v3433_v18 = vsel %vm877_vm1, %v8028_v27, %v3432_v7 }
 0x3f1   : > { %2917 = vst [vmem:[#allocation2 + $0xe1] sm:$0xff] %v2884_v3  ;;  %v8073_v60 = vld [vmem:[#allocation2 + $0x90] sm:$0xff] }
 0x3f2   : > { %2918 = vst [vmem:[#allocation2 + $0xf1] sm:$0xff] %v2885_v26  ;;  %v8061_v26 = vld [vmem:[#allocation2 + $0x78] sm:$0xff]  ;;  %v3609_v59 = vrot.slane %v8073_v60, 1  ;;  %v3721_v28 = vrot.slane %v8073_v60, 2 }
 0x3f3   : > { %2919 = vst [vmem:[#allocation2 + $0xf9] sm:$0xff] %v2886_v58  ;;  %v8075_v61 = vld [vmem:[#allocation2 + $0x98] sm:$0xff]  ;;  %v3604_v44 = vrot.slane %v8061_v26, 1  ;;  %v3716_v3 = vrot.slane %v8061_v26, 2 }
 0x3f4   : > { %2920 = vst [vmem:[#allocation2 + $0x109] sm:$0xff] %v2887_v54  ;;  %4450 = vmatmul.f32.gmra.mxu0 %v3174_v4  ;;  %v8063_v54 = vld [vmem:[#allocation2 + $0x80] sm:$0xff]  ;;  %v8098_v10 = vrot.slane %v8075_v61, 1  ;;  %v8100_v8 = vld [vmem:[#allocation2 + $0xb0] sm:$0xff]  ;;  %v8110_v25 = vrot.slane %v8075_v61, 2 }
 0x3f5   : > { %2921 = vst [vmem:[#allocation2 + $0x111] sm:$0xff] %v2888_v55  ;;  %v8085_v58 = vrot.slane %v8063_v54, 1  ;;  %v8088_v55 = vrot.slane %v8063_v54, 2  ;;  %v8127_v49 = vrot.slane %v8100_v8, 1  ;;  %v8129_v42 = vld [vmem:[#allocation2 + $0xc0] sm:$0xff]  ;;  %v8135_v30 = vrot.slane %v8100_v8, 2 }
 0x3f6   : > { %2922 = vst [vmem:[#allocation2 + $0x121] sm:$0xff] %v2889_v22  ;;  %v3711_v22 = vrot.slane %v8048_v50, 2  ;;  %v8131_v6 = vld [vmem:[#allocation2 + $0xc8] sm:$0xff] }
 0x3f7   : > { %2923 = vst [vmem:[#allocation2 + $0x129] sm:$0xff] %v2890_v53  ;;  %4114 = vmatmul.f32.gmra.mxu1 %v7935_v2  ;;  %v8117_v23 = vsel %vm764_vm0, %v3604_v44, %v8085_v58  ;;  %v8121_v62 = vsel %vm877_vm1, %v3716_v3, %v8088_v55  ;;  %v3051_v2 = vld [vmem:[%s10176_s5 + $0x258] sm:$0xff]  ;;  %v8157_v51 = vrot.slane %v8131_v6, 2 }
 0x3f8   : > { %2924 = vst [vmem:[#allocation2 + $0x139] sm:$0xff] %v2891_v20  ;;  %v8067_v20 = vrot.slane %v8050_v12, 2  ;;  %4539 = vmatpush.msrb.mxu1 %v3051_v2 }
 0x3f9   : > { %2925 = vst [vmem:[#allocation2 + $0x141] sm:$0xff] %v2892_v35  ;;  %v8090_v35 = vld [vmem:[#allocation2 + $0xa8] sm:$0xff]  ;;  %v8163_v52 = vld [vmem:[#allocation2 + $0xf0] sm:$0xff] }
 0x3fa   : > { %2926 = vst [vmem:[#allocation2 + $0x151] sm:$0xff] %v2893_v36  ;;  %v8071_v36 = vsel %vm764_vm0, %v3594_v5, %v8046_v43  ;;  %v8104_v41 = vsel %vm877_vm1, %v3711_v22, %v8067_v20  ;;  %v3614_v32 = vrot.slane %v8090_v35, 1  ;;  %v3726_v17 = vrot.slane %v8090_v35, 2  ;;  %v8165_v5 = vld [vmem:[#allocation2 + $0xf8] sm:$0xff] }
 0x3fb   : > { %2927 = vst [vmem:[#allocation2 + $0x159] sm:$0xff] %v2894_v21  ;;  %v8094_v21 = vsel %vm764_vm0, %v3599_v29, %v8059_v46  ;;  %v3629_v44 = vrot.slane %v8163_v52, 1  ;;  %v8187_v3 = vrot.slane %v8165_v5, 1 }
 0x3fc   : > { %2928 = vst [vmem:[#allocation2 + $0x169] sm:$0xff] %v2895_v45  ;;  %4453 = vmatmul.f32.gmra.mxu0 %v8033_v56  ;;  %v3320_v45 = vrot.slane %v3125_v34, 1  ;;  %v8161_v1 = vsel %vm764_vm0, %v3614_v32, %v8127_v49  ;;  %v8169_v16 = vsel %vm877_vm1, %v3726_v17, %v8135_v30 }
 0x3fd   : > { %2929 = vst [vmem:[#allocation2 + $0x171] sm:$0xff] %v2896_v40 }
 0x3fe   : > { %2969 = vst [vmem:[#allocation2 + $0x10] sm:$0x3] %v2966_v38  ;;  %v3321_v33 = vsel %vm764_vm0, %v8026_v19, %v3320_v45  ;;  %v8139_v38 = vsel %vm764_vm0, %v3609_v59, %v8098_v10  ;;  %v3128_v45 = vld [vmem:[#allocation2 + $0x40] sm:$0x3] }
 0x3ff   : > { %10391 = vst [vmem:[#allocation44_spill] sm:$0xff] %v8026_v19  ;;  %4117 = vmatmul.f32.gmra.mxu1 %v3174_v4  ;;  %v8143_v4 = vsel %vm877_vm1, %v3721_v28, %v8110_v25  ;;  %v8199_v28 = vrot.slane %v8165_v5, 2  ;;  %v3437_v2 = vrot.slane %v3128_v45, 2  ;;  %v8237_v19 = vld [vmem:[#allocation2 + $0x138] sm:$0xff] }
 0x400   : > { %10392 = vst [vmem:[#allocation55_spill] sm:$0xff] %v8028_v27 }
 0x401   : > { %10393 = vst [vmem:[#allocation51_spill] sm:$0xff] %v8039_v57 }
 0x402   : > { %10394 = vst [vmem:[#allocation57_spill] sm:$0xff] %v8043_v37 }
 0x403   : > { %10395 = vst [vmem:[#allocation63_spill] sm:$0xff] %v8079_v48  ;;  %v3255_v53 = vld [vmem:[#allocation2 + $0x168] sm:$0xff] }
 0x404   : > { %4456 = vmatmul.f32.gmra.mxu0 %v8048_v50  ;;  %v3256_v40 = vld [vmem:[#allocation2 + $0x170] sm:$0xff]  ;;  %2973 = vst [vmem:[#allocation2 + $0x198] sm:$0xff] %v3255_v53  ;;  %v2972_v13 = vld [vmem:[#allocation2 + $0x178] sm:$0x3]  ;;  %v8189_v53 = vld [vmem:[#allocation2 + $0x108] sm:$0xff] }
 0x405   : > { %v3122_v15 = vld [vmem:[#allocation2 + $0x10] sm:$0x3]  ;;  %2974 = vst [vmem:[#allocation2 + $0x1a0] sm:$0xff] %v3256_v40  ;;  %v3634_v17 = vrot.slane %v8189_v53, 1 }
 0x406   : > { %v3315_v47 = vrot.slane %v3122_v15, 1  ;;  %v3427_v63 = vrot.slane %v3122_v15, 2  ;;  %2975 = vst [vmem:[#allocation2 + $0x1a8] sm:$0x3] %v2972_v13  ;;  %v3619_v15 = vrot.slane %v8129_v42, 1  ;;  %v8191_v40 = vld [vmem:[#allocation2 + $0x110] sm:$0xff] }
 0x407   : > { %10396 = vst [vmem:[#allocation45_spill] sm:$0xff] %v8135_v30  ;;  %4120 = vmatmul.f32.gmra.mxu1 %v8033_v56  ;;  %v3325_v13 = vrot.slane %v3128_v45, 1  ;;  %v8221_v27 = vrot.slane %v8191_v40, 2 }
 0x408   : > { %v3316_v39 = vsel %vm764_vm0, %v7944_v14, %v3315_v47  ;;  %v3428_v0 = vsel %vm877_vm1, %v7947_v24, %v3427_v63  ;;  %v8148_v47 = vrot.slane %v8131_v6, 1  ;;  %v8150_v63 = vld [vmem:[#allocation2 + $0xd8] sm:$0xff]  ;;  %10397 = vst [vmem:[#allocation59_spill] sm:$0xff] %v8157_v51 }
 0x409   : > { %4215 = vmatmul.f32.gmra.mxu2 %v3316_v39  ;;  %4328 = vmatmul.f32.gmra.mxu3 %v3428_v0  ;;  %v8152_v39 = vld [vmem:[#allocation2 + $0xe0] sm:$0xff]  ;;  %v3731_v0 = vrot.slane %v8129_v42, 2  ;;  %v3624_v34 = vrot.slane %v8150_v63, 1  ;;  %v3736_v56 = vrot.slane %v8150_v63, 2  ;;  %10399 = vst [vmem:[#allocation61_spill] sm:$0xff] %v8187_v3 }
 0x40a   : > { %v8174_v29 = vrot.slane %v8152_v39, 1  ;;  %v8177_v22 = vrot.slane %v8152_v39, 2  ;;  %v8181_v7 = vsel %vm764_vm0, %v3619_v15, %v8148_v47  ;;  %10401 = vst [vmem:[#allocation65_spill] sm:$0xff] %v8199_v28  ;;  %v8212_v15 = vrot.slane %v8191_v40, 1 }
 0x40b   : > { %v8195_v59 = vsel %vm877_vm1, %v3731_v0, %v8157_v51  ;;  %v8214_v0 = vld [vmem:[#allocation2 + $0x120] sm:$0xff]  ;;  %10405 = vst [vmem:[#allocation47_spill] sm:$0xff] %v8221_v27 }
 0x40c   : > { %4459 = vmatmul.f32.gmra.mxu0 %v8050_v12  ;;  %10398 = vst [vmem:[#allocation53_spill] sm:$0xff] %v8177_v22  ;;  %v8207_v32 = vsel %vm877_vm1, %v3736_v56, %v8177_v22  ;;  %v8225_v56 = vsel %vm764_vm0, %v3629_v44, %v8187_v3  ;;  %v3438_v44 = vsel %vm877_vm1, %v7947_v24, %v3437_v2  ;;  %v3751_v3 = vrot.slane %v8214_v0, 2 }
 0x40d   : > { %10400 = vst [vmem:[#allocation46_spill] sm:$0xff] %v8195_v59  ;;  %v3644_v24 = vrot.slane %v8237_v19, 1 }
 0x40e   : > { %10403 = vst [vmem:[#allocation64_spill] sm:$0xff] %v8207_v32 }
 0x40f   : > { %10404 = vst [vmem:[#allocation70_spill] sm:$0xff] %v8212_v15  ;;  %4123 = vmatmul.f32.gmra.mxu1 %v8048_v50 }
 0x410   : > { %10408 = vst [vmem:[#allocation67_spill] sm:$0xff] %v8237_v19 }
 0x411   : > { %4218 = vmatmul.f32.gmra.mxu2 %v8039_v57  ;;  %4331 = vmatmul.f32.gmra.mxu3 %v8043_v37  ;;  %v3326_v37 = vsel %vm764_vm0, %v7944_v14, %v3325_v13  ;;  %v8239_v57 = vld [vmem:[#allocation2 + $0x140] sm:$0xff]  ;;  %v8249_v13 = vsel %vm764_vm0, %v3634_v17, %v8212_v15  ;;  %v3050_v14 = vld [vmem:[%s10176_s5 + $0x250] sm:$0xff]  ;;  %v3756_v17 = vrot.slane %v8237_v19, 2 }
 0x412   : > { %10409 = vst [vmem:[#allocation34_spill] sm:$0xff] %v8239_v57  ;;  %4540 = vmatpush.msrb.mxu1 %v3050_v14 }
 0x413   : > { %10411 = vst [vmem:[#allocation71_spill] sm:$0xff] %v8249_v13 }
 0x414   : > { %4462 = vmatmul.f32.gmra.mxu0 %v8061_v26 }
 0x417   : > { %4126 = vmatmul.f32.gmra.mxu1 %v8050_v12 }
 0x419   : > { %4221 = vmatmul.f32.gmra.mxu2 %v3321_v33  ;;  %4334 = vmatmul.f32.gmra.mxu3 %v3433_v18  ;;  %v3741_v33 = vrot.slane %v8163_v52, 2  ;;  %v8203_v18 = vsel %vm764_vm0, %v3624_v34, %v8174_v29  ;;  %v3746_v34 = vrot.slane %v8189_v53, 2 }
 0x41a   : > { %10402 = vst [vmem:[#allocation56_spill] sm:$0xff] %v8203_v18 }
 0x41b   : > { %v8229_v45 = vsel %vm877_vm1, %v3741_v33, %v8199_v28  ;;  %v8254_v28 = vld [vmem:[#allocation2 + $0x150] sm:$0xff]  ;;  %v8260_v2 = vsel %vm877_vm1, %v3746_v34, %v8221_v27  ;;  %v8279_v27 = vld [vmem:[#allocation2 + $0x168] sm:$0xff] }
 0x41c   : > { %10406 = vst [vmem:[#allocation68_spill] sm:$0xff] %v8229_v45  ;;  %v8256_v45 = vld [vmem:[#allocation2 + $0x158] sm:$0xff]  ;;  %4465 = vmatmul.f32.gmra.mxu0 %v8063_v54  ;;  %v3649_v34 = vrot.slane %v8254_v28, 1  ;;  %v3654_v19 = vrot.slane %v8279_v27, 1  ;;  %v3766_v12 = vrot.slane %v8279_v27, 2 }
 0x41d   : > { %10412 = vst [vmem:[#allocation35_spill] sm:$0xff] %v8260_v2  ;;  %v8277_v14 = vrot.slane %v8256_v45, 1  ;;  %v8281_v2 = vld [vmem:[#allocation2 + $0x170] sm:$0xff] }
 0x41f   : > { %4129 = vmatmul.f32.gmra.mxu1 %v8061_v26  ;;  %v3134_v26 = vld [vmem:[#allocation2 + $0x70] sm:$0x3] }
 0x421   : > { %4224 = vmatmul.f32.gmra.mxu2 %v7959_v9  ;;  %4337 = vmatmul.f32.gmra.mxu3 %v7963_v11  ;;  %v8216_v11 = vld [vmem:[#allocation2 + $0x128] sm:$0xff]  ;;  %v3639_v9 = vrot.slane %v8214_v0, 1 }
 0x422   : > { %v8235_v50 = vrot.slane %v8216_v11, 1  ;;  %v8245_v33 = vrot.slane %v8216_v11, 2 }
 0x424   : > { %10407 = vst [vmem:[#allocation58_spill] sm:$0xff] %v8235_v50  ;;  %v8272_v15 = vsel %vm764_vm0, %v3639_v9, %v8235_v50  ;;  %v8285_v13 = vsel %vm877_vm1, %v3751_v3, %v8245_v33  ;;  %v3761_v9 = vrot.slane %v8254_v28, 2  ;;  %v8290_v50 = vrot.slane %v8256_v45, 2  ;;  %4468 = vmatmul.f32.gmra.mxu0 %v8073_v60 }
 0x425   : > { %10410 = vst [vmem:[#allocation62_spill] sm:$0xff] %v8245_v33  ;;  %v8302_v3 = vrot.slane %v8281_v2, 1  ;;  %v8306_v33 = vrot.slane %v8281_v2, 2 }
 0x426   : > { %10415 = vst [vmem:[#allocation69_spill] sm:$0xff] %v8272_v15 }
 0x427   : > { %10416 = vst [vmem:[#allocation37_spill] sm:$0xff] %v8285_v13  ;;  %v8310_v13 = vsel %vm764_vm0, %v3649_v34, %v8277_v14  ;;  %v8325_v34 = vsel %vm877_vm1, %v3766_v12, %v8306_v33  ;;  %4132 = vmatmul.f32.gmra.mxu1 %v8063_v54  ;;  %v3447_v12 = vrot.slane %v3134_v26, 2  ;;  %v3048_v54 = vld [vmem:[%s10176_s5 + $0x240] sm:$0xff] }
 0x428   : > { %10417 = vst [vmem:[#allocation38_spill] sm:$0xff] %v8290_v50 }
 0x429   : > { %4227 = vmatmul.f32.gmra.mxu2 %v3326_v37  ;;  %4340 = vmatmul.f32.gmra.mxu3 %v3438_v44  ;;  %v8265_v37 = vrot.slane %v8239_v57, 1  ;;  %v8268_v44 = vrot.slane %v8239_v57, 2  ;;  %10420 = vst [vmem:[#allocation41_spill] sm:$0xff] %v8306_v33 }
 0x42a   : > { %10421 = vst [vmem:[#allocation48_spill] sm:$0xff] %v8310_v13 }
 0x42b   : > { %10413 = vst [vmem:[#allocation66_spill] sm:$0xff] %v8265_v37  ;;  %v8294_v15 = vsel %vm764_vm0, %v3644_v24, %v8265_v37  ;;  %v8298_v57 = vsel %vm877_vm1, %v3756_v17, %v8268_v44  ;;  %v3131_v24 = vld [vmem:[#allocation2 + $0x58] sm:$0x3]  ;;  %v8316_v17 = vsel %vm877_vm1, %v3761_v9, %v8290_v50 }
 0x42c   : > { %10414 = vst [vmem:[#allocation36_spill] sm:$0xff] %v8268_v44  ;;  %v8320_v44 = vsel %vm764_vm0, %v3654_v19, %v8302_v3  ;;  %v3330_v37 = vrot.slane %v3131_v24, 1  ;;  %v3049_v19 = vld [vmem:[%s10176_s5 + $0x248] sm:$0xff]  ;;  %4471 = vmatmul.f32.gmra.mxu0 %v8075_v61 }
 0x42d   : > { %10418 = vst [vmem:[#allocation39_spill] sm:$0xff] %v8294_v15  ;;  %4541 = vmatpush.msrb.mxu1 %v3049_v19 }
 0x42e   : > { %10419 = vst [vmem:[#allocation40_spill] sm:$0xff] %v8298_v57  ;;  %v3442_v57 = vrot.slane %v3131_v24, 2 }
 0x42f   : > { %10422 = vst [vmem:[#allocation49_spill] sm:$0xff] %v8316_v17  ;;  %4135 = vmatmul.f32.gmra.mxu1 %v8073_v60  ;;  %v3137_v60 = vld [vmem:[#allocation2 + $0x88] sm:$0x3] }
 0x430   : > { %10423 = vst [vmem:[#allocation72_spill] sm:$0xff] %v8320_v44  ;;  %v3443_v9 = vsel %vm877_vm1, %v8053_v31, %v3442_v57  ;;  %4542 = vmatpush.msrb.mxu1 %v3048_v54  ;;  %v3340_v24 = vrot.slane %v3137_v60, 1 }
 0x431   : > { %4230 = vmatmul.f32.gmra.mxu2 %v8071_v36  ;;  %4343 = vmatmul.f32.gmra.mxu3 %v8079_v48  ;;  %10424 = vst [vmem:[#allocation73_spill] sm:$0xff] %v8325_v34  ;;  %v3331_v48 = vsel %vm764_vm0, %v8046_v43, %v3330_v37  ;;  %v3335_v37 = vrot.slane %v3134_v26, 1 }
 0x432   : > { %v3341_v19 = vsel %vm764_vm0, %v8085_v58, %v3340_v24 }
 0x433   : > { %v3336_v57 = vsel %vm764_vm0, %v8059_v46, %v3335_v37 }
 0x434   : > { %4474 = vmatmul.f32.gmra.mxu0 %v8090_v35 }
 0x437   : > { %4138 = vmatmul.f32.gmra.mxu1 %v8075_v61  ;;  %v3047_v61 = vld [vmem:[%s10176_s5 + $0x238] sm:$0xff] }
 0x438   : > { %4543 = vmatpush.msrb.mxu1 %v3047_v61 }
 0x439   : > { %4233 = vmatmul.f32.gmra.mxu2 %v3331_v48  ;;  %4346 = vmatmul.f32.gmra.mxu3 %v3443_v9  ;;  %v3448_v48 = vsel %vm877_vm1, %v8067_v20, %v3447_v12  ;;  %v3452_v9 = vrot.slane %v3137_v60, 2 }
 0x43b   : > { %v3453_v26 = vsel %vm877_vm1, %v8088_v55, %v3452_v9  ;;  %v3046_v9 = vld [vmem:[%s10176_s5 + $0x230] sm:$0xff] }
 0x43c   : > { %4477 = vmatmul.f32.gmra.mxu0 %v8100_v8  ;;  %4544 = vmatpush.msrb.mxu1 %v3046_v9  ;;  %v3146_v9 = vld [vmem:[#allocation2 + $0xd0] sm:$0x3] }
 0x43f   : > { %4141 = vmatmul.f32.gmra.mxu1 %v8090_v35  ;;  %v3140_v35 = vld [vmem:[#allocation2 + $0xa0] sm:$0x3] }
 0x441   : > { %4236 = vmatmul.f32.gmra.mxu2 %v8094_v21  ;;  %4349 = vmatmul.f32.gmra.mxu3 %v8104_v41 }
 0x444   : > { %4480 = vmatmul.f32.gmra.mxu0 %v8129_v42 }
 0x447   : > { %4144 = vmatmul.f32.gmra.mxu1 %v8100_v8 }
 0x449   : > { %4239 = vmatmul.f32.gmra.mxu2 %v3336_v57  ;;  %4352 = vmatmul.f32.gmra.mxu3 %v3448_v48  ;;  %v3345_v57 = vrot.slane %v3140_v35, 1  ;;  %v3457_v48 = vrot.slane %v3140_v35, 2 }
 0x44b   : > { %v3346_v54 = vsel %vm764_vm0, %v8098_v10, %v3345_v57  ;;  %v3458_v8 = vsel %vm877_vm1, %v8110_v25, %v3457_v48 }
 0x44c   : > { %4483 = vmatmul.f32.gmra.mxu0 %v8131_v6  ;;  %v8367_v12 = vpop.f32.mrf.mxu1 }
 0x44d   : > { %10426 = vst [vmem:[#allocation75_spill] sm:$0xff] %v8367_v12 }
 0x44f   : > { %4147 = vmatmul.f32.gmra.mxu1 %v8129_v42  ;;  %v3143_v42 = vld [vmem:[#allocation2 + $0xb8] sm:$0x3] }
 0x450   : > { %v3350_v61 = vrot.slane %v3143_v42, 1  ;;  %v3462_v35 = vrot.slane %v3143_v42, 2 }
 0x451   : > { %4242 = vmatmul.f32.gmra.mxu2 %v8117_v23  ;;  %4355 = vmatmul.f32.gmra.mxu3 %v8121_v62  ;;  %v8365_v37 = vpop.f32.mrf.mxu0 }
 0x452   : > { %10425 = vst [vmem:[#allocation74_spill] sm:$0xff] %v8365_v37  ;;  %v3463_v57 = vsel %vm877_vm1, %v8135_v30, %v3462_v35  ;;  %v8416_v37 = vld [vmem:[%s10177_s6] ss:$0 sm:$0xff] }
 0x454   : > { %4486 = vmatmul.f32.gmra.mxu0 %v8150_v63  ;;  %v4103_v24 = vpop.f32.mrf.mxu1 }
 0x457   : > { %4150 = vmatmul.f32.gmra.mxu1 %v8131_v6  ;;  %v3351_v6 = vsel %vm764_vm0, %v8127_v49, %v3350_v61 }
 0x459   : > { %4245 = vmatmul.f32.gmra.mxu2 %v3341_v19  ;;  %4358 = vmatmul.f32.gmra.mxu3 %v3453_v26  ;;  %v8375_v60 = vpop.f32.mrf.mxu0 }
 0x45b   : > { %v8405_v61 = vpop.f32.mrf.mxu3 }
 0x45c   : > { %4489 = vmatmul.f32.gmra.mxu0 %v8152_v39  ;;  %v4106_v26 = vpop.f32.mrf.mxu1  ;;  %10428 = vst [vmem:[#allocation77_spill] sm:$0xff] %v8405_v61 }
 0x45f   : > { %4153 = vmatmul.f32.gmra.mxu1 %v8150_v63 }
 0x461   : > { %4248 = vmatmul.f32.gmra.mxu2 %v8139_v38  ;;  %4361 = vmatmul.f32.gmra.mxu3 %v8143_v4  ;;  %v8384_v19 = vpop.f32.mrf.mxu0 }
 0x464   : > { %4492 = vmatmul.f32.gmra.mxu0 %v8163_v52 }
 0x467   : > { %4156 = vmatmul.f32.gmra.mxu1 %v8152_v39  ;;  %v8401_v63 = vpop.f32.mrf.mxu2 }
 0x468   : > { %10427 = vst [vmem:[#allocation76_spill] sm:$0xff] %v8401_v63  ;;  %v4104_v63 = vadd.f32 %v8416_v37, %v4103_v24 }
 0x469   : > { %4251 = vmatmul.f32.gmra.mxu2 %v3346_v54  ;;  %4364 = vmatmul.f32.gmra.mxu3 %v3458_v8  ;;  %v8392_v48 = vpop.f32.mrf.mxu0  ;;  %v4109_v54 = vpop.f32.mrf.mxu1  ;;  %v3045_v8 = vld [vmem:[%s10176_s5 + $0x228] sm:$0xff] }
 0x46a   : > { %4545 = vmatpush.msrb.mxu1 %v3045_v8 }
 0x46c   : > { %4495 = vmatmul.f32.gmra.mxu0 %v8165_v5 }
 0x46f   : > { %4159 = vmatmul.f32.gmra.mxu1 %v8163_v52 }
 0x471   : > { %4254 = vmatmul.f32.gmra.mxu2 %v8161_v1  ;;  %4367 = vmatmul.f32.gmra.mxu3 %v8169_v16  ;;  %v8403_v42 = vpop.f32.mrf.mxu0  ;;  %v4112_v35 = vpop.f32.mrf.mxu1 }
 0x474   : > { %4498 = vmatmul.f32.gmra.mxu0 %v8189_v53 }
 0x477   : > { %4162 = vmatmul.f32.gmra.mxu1 %v8165_v5 }
 0x479   : > { %4257 = vmatmul.f32.gmra.mxu2 %v3351_v6  ;;  %4370 = vmatmul.f32.gmra.mxu3 %v3463_v57  ;;  %v3355_v6 = vrot.slane %v3146_v9, 1  ;;  %v3467_v57 = vrot.slane %v3146_v9, 2  ;;  %v8418_v61 = vpop.f32.mrf.mxu0  ;;  %v4115_v9 = vpop.f32.mrf.mxu1 }
 0x47b   : > { %v3356_v39 = vsel %vm764_vm0, %v8148_v47, %v3355_v6  ;;  %v3468_v8 = vsel %vm877_vm1, %v8157_v51, %v3467_v57  ;;  %v3044_v51 = vld [vmem:[%s10176_s5 + $0x220] sm:$0xff] }
 0x47c   : > { %4501 = vmatmul.f32.gmra.mxu0 %v8191_v40  ;;  %4546 = vmatpush.msrb.mxu1 %v3044_v51 }
 0x47f   : > { %4165 = vmatmul.f32.gmra.mxu1 %v8189_v53 }
 0x481   : > { %4260 = vmatmul.f32.gmra.mxu2 %v8181_v7  ;;  %4373 = vmatmul.f32.gmra.mxu3 %v8195_v59  ;;  %v4118_v24 = vpop.f32.mrf.mxu1  ;;  %v4107_v59 = vadd.f32 %v8416_v37, %v4106_v26 }
 0x484   : > { %4504 = vmatmul.f32.gmra.mxu0 %v8214_v0 }
 0x487   : > { %4168 = vmatmul.f32.gmra.mxu1 %v8191_v40  ;;  %v4113_v40 = vadd.f32 %v8416_v37, %v4112_v35 }
 0x489   : > { %4263 = vmatmul.f32.gmra.mxu2 %v3356_v39  ;;  %4376 = vmatmul.f32.gmra.mxu3 %v3468_v8  ;;  %v3149_v39 = vld [vmem:[#allocation2 + $0xe8] sm:$0x3]  ;;  %v8428_v8 = vpop.f32.mrf.mxu0 }
 0x48a   : > { %v3472_v5 = vrot.slane %v3149_v39, 2 }
 0x48c   : > { %v4216_v12 = vpop.f32.mrf.mxu2  ;;  %v4329_v52 = vpop.f32.mrf.mxu3  ;;  %4507 = vmatmul.f32.gmra.mxu0 %v8216_v11 }
 0x48d   : > { %v4217_v6 = vadd.f32 %v4216_v12, %v4104_v63  ;;  %v3360_v63 = vrot.slane %v3149_v39, 1  ;;  %v8442_v39 = vpop.f32.mrf.mxu1 }
 0x48f   : > { %v4330_v57 = vadd.f32 %v4329_v52, %v4217_v6  ;;  %4171 = vmatmul.f32.gmra.mxu1 %v8214_v0 }
 0x491   : > { %4266 = vmatmul.f32.gmra.mxu2 %v8203_v18  ;;  %4379 = vmatmul.f32.gmra.mxu3 %v8207_v32  ;;  %v8434_v51 = vadd.f32 %v8375_v60, %v4330_v57  ;;  %v3361_v32 = vsel %vm764_vm0, %v8174_v29, %v3360_v63  ;;  %v3473_v18 = vsel %vm877_vm1, %v8177_v22, %v3472_v5  ;;  %v8440_v26 = vpop.f32.mrf.mxu0 }
 0x493   : > { %10429 = vst [vmem:[#allocation78_spill] sm:$0xff] %v8434_v51 }
 0x494   : > { %v4219_v30 = vpop.f32.mrf.mxu2  ;;  %v4332_v12 = vpop.f32.mrf.mxu3 }
 0x495   : > { %v4220_v52 = vadd.f32 %v4219_v30, %v4107_v59  ;;  %v4110_v30 = vadd.f32 %v8416_v37, %v4109_v54  ;;  %v3152_v54 = vld [vmem:[#allocation2 + $0x100] sm:$0x3]  ;;  %v8457_v5 = vpop.f32.mrf.mxu1 }
 0x497   : > { %v4333_v6 = vadd.f32 %v4332_v12, %v4220_v52  ;;  %v3043_v12 = vld [vmem:[%s10176_s5 + $0x218] sm:$0xff]  ;;  %4174 = vmatmul.f32.gmra.mxu1 %v8216_v11 }
 0x498   : > { %4547 = vmatpush.msrb.mxu1 %v3043_v12 }
 0x499   : > { %4269 = vmatmul.f32.gmra.mxu2 %v3361_v32  ;;  %4382 = vmatmul.f32.gmra.mxu3 %v3473_v18  ;;  %v8451_v18 = vadd.f32 %v8384_v19, %v4333_v6  ;;  %v10431_v32 = vld [vmem:[#allocation68_spill] sm:$0xff]  ;;  %v8455_v63 = vpop.f32.mrf.mxu0  ;;  %v10433_v6 = vld [vmem:[#allocation61_spill] sm:$0xff] }
 0x49b   : > { %10430 = vst [vmem:[#allocation79_spill] sm:$0xff] %v8451_v18 }
 0x49c   : > { %v4222_v59 = vpop.f32.mrf.mxu2  ;;  %v4335_v53 = vpop.f32.mrf.mxu3 }
 0x49d   : > { %v4223_v60 = vadd.f32 %v4222_v59, %v4110_v30  ;;  %v3365_v59 = vrot.slane %v3152_v54, 1 }
 0x49f   : > { %v4336_v57 = vadd.f32 %v4335_v53, %v4223_v60  ;;  %v3477_v53 = vrot.slane %v3152_v54, 2  ;;  %v10432_v60 = vld [vmem:[#allocation67_spill] sm:$0xff]  ;;  %v3366_v18 = vsel %vm764_vm0, %v10433_v6, %v3365_v59  ;;  %v8471_v54 = vpop.f32.mrf.mxu1 }
 0x4a0   : > { %4510 = vmatmul.f32.gmra.mxu0 %v10432_v60  ;;  %4177 = vmatmul.f32.gmra.mxu1 %v10432_v60  ;;  %v10441_v6 = vld [vmem:[#allocation47_spill] sm:$0xff]  ;;  %v3102_v60 = vld [vmem:[%s10176_s5 + $0x3f0] sm:$0xff] }
 0x4a1   : > { %4272 = vmatmul.f32.gmra.mxu2 %v8225_v56  ;;  %4385 = vmatmul.f32.gmra.mxu3 %v10431_v32  ;;  %v10434_v32 = vld [vmem:[#allocation65_spill] sm:$0xff]  ;;  %v8466_v22 = vpop.f32.mrf.mxu0  ;;  %v8469_v35 = vadd.f32 %v8392_v48, %v4336_v57  ;;  %v10438_v48 = vld [vmem:[#allocation35_spill] sm:$0xff] }
 0x4a2   : > { %v3478_v51 = vsel %vm877_vm1, %v10434_v32, %v3477_v53  ;;  %v3155_v57 = vld [vmem:[#allocation2 + $0x118] sm:$0x3] }
 0x4a3   : > { %10435 = vst [vmem:[#allocation67_spill] sm:$0xff] %v8469_v35  ;;  %v4119_v35 = vadd.f32 %v8416_v37, %v4118_v24  ;;  %v3103_v32 = vld [vmem:[%s10176_s5 + $0x3f8] sm:$0xff] }
 0x4a4   : > { %v4225_v52 = vpop.f32.mrf.mxu2  ;;  %v4338_v30 = vpop.f32.mrf.mxu3  ;;  %4874 = vmatpush.msra.mxu0 %v3103_v32 }
 0x4a5   : > { %v4226_v12 = vadd.f32 %v4225_v52, %v4113_v40  ;;  %v4116_v40 = vadd.f32 %v8416_v37, %v4115_v9 }
 0x4a6   : > { %4875 = vmatpush.msra.mxu0 %v3102_v60  ;;  %v3071_v60 = vld [vmem:[%s10176_s5 + $0x2f8] sm:$0xff] }
 0x4a7   : > { %v4339_v19 = vadd.f32 %v4338_v30, %v4226_v12  ;;  %v10436_v30 = vld [vmem:[#allocation34_spill] sm:$0xff]  ;;  %v8483_v9 = vpop.f32.mrf.mxu1  ;;  %4648 = vmatpush.msra.mxu2 %v3071_v60 }
 0x4a8   : > { %4513 = vmatmul.f32.gmra.mxu0 %v10436_v30  ;;  %4180 = vmatmul.f32.gmra.mxu1 %v10436_v30  ;;  %v3158_v30 = vld [vmem:[#allocation2 + $0x130] sm:$0x3] }
 0x4a9   : > { %4275 = vmatmul.f32.gmra.mxu2 %v3366_v18  ;;  %4388 = vmatmul.f32.gmra.mxu3 %v3478_v51  ;;  %v3042_v51 = vld [vmem:[%s10176_s5 + $0x210] sm:$0xff]  ;;  %v10437_v18 = vld [vmem:[#allocation71_spill] sm:$0xff]  ;;  %v8481_v53 = vpop.f32.mrf.mxu0 }
 0x4aa   : > { %4548 = vmatpush.msrb.mxu1 %v3042_v51 }
 0x4ac   : > { %v4228_v52 = vpop.f32.mrf.mxu2  ;;  %v4341_v0 = vpop.f32.mrf.mxu3 }
 0x4ad   : > { %v4229_v12 = vadd.f32 %v4228_v52, %v4116_v40  ;;  %v8487_v40 = vadd.f32 %v8403_v42, %v4339_v19 }
 0x4af   : > { %v4342_v59 = vadd.f32 %v4341_v0, %v4229_v12  ;;  %10439 = vst [vmem:[#allocation34_spill] sm:$0xff] %v8487_v40  ;;  %v3370_v0 = vrot.slane %v3155_v57, 1  ;;  %v3482_v12 = vrot.slane %v3155_v57, 2  ;;  %v3101_v57 = vld [vmem:[%s10176_s5 + $0x3e8] sm:$0xff] }
 0x4b0   : > { %4516 = vmatmul.f32.gmra.mxu0 %v8254_v28  ;;  %4183 = vmatmul.f32.gmra.mxu1 %v8254_v28  ;;  %v10446_v28 = vld [vmem:[#allocation58_spill] sm:$0xff] }
 0x4b1   : > { %4278 = vmatmul.f32.gmra.mxu2 %v10437_v18  ;;  %4391 = vmatmul.f32.gmra.mxu3 %v10438_v48  ;;  %v10440_v18 = vld [vmem:[#allocation70_spill] sm:$0xff]  ;;  %v3483_v42 = vsel %vm877_vm1, %v10441_v6, %v3482_v12  ;;  %v8498_v19 = vpop.f32.mrf.mxu0 }
 0x4b2   : > { %v3371_v24 = vsel %vm764_vm0, %v10440_v18, %v3370_v0  ;;  %v8512_v0 = vadd.f32 %v8418_v61, %v4342_v59  ;;  %4876 = vmatpush.msra.mxu0 %v3101_v57  ;;  %v10443_v61 = vld [vmem:[#allocation69_spill] sm:$0xff] }
 0x4b3   : > { %v10444_v59 = vld [vmem:[#allocation37_spill] sm:$0xff] }
 0x4b4   : > { %v4231_v11 = vpop.f32.mrf.mxu2  ;;  %v4344_v52 = vpop.f32.mrf.mxu3  ;;  %10442 = vst [vmem:[#allocation70_spill] sm:$0xff] %v8512_v0  ;;  %v3087_v57 = vld [vmem:[%s10176_s5 + $0x378] sm:$0xff]  ;;  %v3487_v0 = vrot.slane %v3158_v30, 2 }
 0x4b5   : > { %v4232_v51 = vadd.f32 %v4231_v11, %v4119_v35  ;;  %v8503_v35 = vpop.f32.mrf.mxu1  ;;  %v4122_v11 = vadd.f32 %v8416_v37, %v8442_v39  ;;  %v3041_v39 = vld [vmem:[%s10176_s5 + $0x208] sm:$0xff]  ;;  %4761 = vmatpush.msra.mxu3 %v3087_v57  ;;  %v3086_v57 = vld [vmem:[%s10176_s5 + $0x370] sm:$0xff] }
 0x4b6   : > { %4549 = vmatpush.msrb.mxu1 %v3041_v39 }
 0x4b7   : > { %v4345_v48 = vadd.f32 %v4344_v52, %v4232_v51  ;;  %4762 = vmatpush.msra.mxu3 %v3086_v57  ;;  %v3067_v57 = vld [vmem:[%s10176_s5 + $0x2d8] sm:$0xff] }
 0x4b8   : > { %4519 = vmatmul.f32.gmra.mxu0 %v8256_v45  ;;  %4186 = vmatmul.f32.gmra.mxu1 %v8256_v45  ;;  %v3066_v45 = vld [vmem:[%s10176_s5 + $0x2d0] sm:$0xff] }
 0x4b9   : > { %4281 = vmatmul.f32.gmra.mxu2 %v3371_v24  ;;  %4394 = vmatmul.f32.gmra.mxu3 %v3483_v42  ;;  %v3100_v24 = vld [vmem:[%s10176_s5 + $0x3e0] sm:$0xff]  ;;  %v3099_v42 = vld [vmem:[%s10176_s5 + $0x3d8] sm:$0xff]  ;;  %v8547_v60 = vadd.f32 %v8428_v8, %v4345_v48  ;;  %v3069_v48 = vld [vmem:[%s10176_s5 + $0x2e8] sm:$0xff] }
 0x4ba   : > { %4877 = vmatpush.msra.mxu0 %v3100_v24  ;;  %v10447_v8 = vld [vmem:[#allocation62_spill] sm:$0xff] }
 0x4bb   : > { %10445 = vst [vmem:[#allocation69_spill] sm:$0xff] %v8547_v60 }
 0x4bc   : > { %v4234_v52 = vpop.f32.mrf.mxu2  ;;  %v4347_v32 = vpop.f32.mrf.mxu3  ;;  %4878 = vmatpush.msra.mxu0 %v3099_v42  ;;  %v3097_v42 = vld [vmem:[%s10176_s5 + $0x3c8] sm:$0xff] }
 0x4bd   : > { %v4235_v12 = vadd.f32 %v4234_v52, %v4122_v11  ;;  %v8532_v11 = vpop.f32.mrf.mxu1  ;;  %v3098_v52 = vld [vmem:[%s10176_s5 + $0x3d0] sm:$0xff] }
 0x4be   : > { %4879 = vmatpush.msra.mxu0 %v3098_v52 }
 0x4bf   : > { %v4348_v51 = vadd.f32 %v4347_v32, %v4235_v12  ;;  %v4125_v32 = vadd.f32 %v8416_v37, %v8457_v5  ;;  %v8539_v12 = vpop.f32.mrf.mxu0 }
 0x4c0   : > { %4522 = vmatmul.f32.gmra.mxu0 %v8279_v27  ;;  %4189 = vmatmul.f32.gmra.mxu1 %v8279_v27  ;;  %v3062_v27 = vld [vmem:[%s10176_s5 + $0x2b0] sm:$0xff] }
 0x4c1   : > { %4284 = vmatmul.f32.gmra.mxu2 %v10443_v61  ;;  %4397 = vmatmul.f32.gmra.mxu3 %v10444_v59  ;;  %v3375_v59 = vrot.slane %v3158_v30, 1  ;;  %v3070_v30 = vld [vmem:[%s10176_s5 + $0x2f0] sm:$0xff] }
 0x4c2   : > { %4880 = vmatpush.msra.mxu0 %v3097_v42  ;;  %4649 = vmatpush.msra.mxu2 %v3070_v30  ;;  %v4128_v42 = vadd.f32 %v8416_v37, %v8471_v54  ;;  %v3084_v30 = vld [vmem:[%s10176_s5 + $0x360] sm:$0xff] }
 0x4c3   : > { %v3376_v52 = vsel %vm764_vm0, %v10446_v28, %v3375_v59 }
 0x4c4   : > { %v4237_v24 = vpop.f32.mrf.mxu2  ;;  %v4350_v39 = vpop.f32.mrf.mxu3  ;;  %4650 = vmatpush.msra.mxu2 %v3069_v48 }
 0x4c5   : > { %v4238_v6 = vadd.f32 %v4237_v24, %v4125_v32  ;;  %v3096_v32 = vld [vmem:[%s10176_s5 + $0x3c0] sm:$0xff]  ;;  %v3085_v24 = vld [vmem:[%s10176_s5 + $0x368] sm:$0xff]  ;;  %v8573_v59 = vpop.f32.mrf.mxu1 }
 0x4c6   : > { %4881 = vmatpush.msra.mxu0 %v3096_v32  ;;  %4763 = vmatpush.msra.mxu3 %v3085_v24  ;;  %v3094_v32 = vld [vmem:[%s10176_s5 + $0x3b0] sm:$0xff]  ;;  %v3083_v24 = vld [vmem:[%s10176_s5 + $0x358] sm:$0xff] }
 0x4c7   : > { %v8549_v5 = vadd.f32 %v4350_v39, %v4238_v6  ;;  %v3488_v6 = vsel %vm877_vm1, %v10447_v8, %v3487_v0  ;;  %v3068_v39 = vld [vmem:[%s10176_s5 + $0x2e0] sm:$0xff]  ;;  %v3095_v0 = vld [vmem:[%s10176_s5 + $0x3b8] sm:$0xff]  ;;  %v8590_v54 = vpop.f32.mrf.mxu0  ;;  %v8597_v8 = vadd.f32 %v8440_v26, %v4348_v51  ;;  %v3065_v51 = vld [vmem:[%s10176_s5 + $0x2c8] sm:$0xff] }
 0x4c8   : > { %4525 = vmatmul.f32.gmra.mxu0 %v8281_v2  ;;  %4651 = vmatpush.msra.mxu2 %v3068_v39  ;;  %v3040_v26 = vld [vmem:[%s10176_s5 + $0x200] sm:$0xff] }
 0x4c9   : > { %4287 = vmatmul.f32.gmra.mxu2 %v3376_v52  ;;  %4400 = vmatmul.f32.gmra.mxu3 %v3488_v6  ;;  %10448 = vst [vmem:[#allocation58_spill] sm:$0xff] %v8597_v8 }
 0x4ca   : > { %4882 = vmatpush.msra.mxu0 %v3095_v0  ;;  %4764 = vmatpush.msra.mxu3 %v3084_v30  ;;  %v3082_v0 = vld [vmem:[%s10176_s5 + $0x350] sm:$0xff] }
 0x4cb   : > { %4652 = vmatpush.msra.mxu2 %v3067_v57  ;;  %v10449_v30 = vld [vmem:[#allocation40_spill] sm:$0xff]  ;;  %v3161_v57 = vld [vmem:[#allocation2 + $0x148] sm:$0x3]  ;;  %4550 = vmatpush.msrb.mxu1 %v3040_v26 }
 0x4cc   : > { %v4240_v52 = vpop.f32.mrf.mxu2  ;;  %v4353_v6 = vpop.f32.mrf.mxu3  ;;  %4883 = vmatpush.msra.mxu0 %v3094_v32  ;;  %4765 = vmatpush.msra.mxu3 %v3083_v24  ;;  %v3092_v32 = vld [vmem:[%s10176_s5 + $0x3a0] sm:$0xff]  ;;  %v3380_v8 = vrot.slane %v3161_v57, 1  ;;  %v3492_v60 = vrot.slane %v3161_v57, 2 }
 0x4cd   : > { %v4241_v48 = vadd.f32 %v4240_v52, %v4128_v42  ;;  %v3093_v42 = vld [vmem:[%s10176_s5 + $0x3a8] sm:$0xff]  ;;  %4653 = vmatpush.msra.mxu2 %v3066_v45  ;;  %v3213_v24 = vld [vmem:[#allocation2 + $0x180] sm:$0xff]  ;;  %4192 = vmatmul.f32.gmra.mxu1 %v8281_v2  ;;  %v3075_v2 = vld [vmem:[%s10176_s5 + $0x318] sm:$0xff] }
 0x4ce   : > { %v3081_v52 = vld [vmem:[%s10176_s5 + $0x348] sm:$0xff]  ;;  %4884 = vmatpush.msra.mxu0 %v3093_v42  ;;  %4766 = vmatpush.msra.mxu3 %v3082_v0  ;;  %v3064_v45 = vld [vmem:[%s10176_s5 + $0x2c0] sm:$0xff] }
 0x4cf   : > { %v8599_v39 = vadd.f32 %v4353_v6, %v4241_v48  ;;  %v8621_v6 = vpop.f32.mrf.mxu1  ;;  %v4131_v48 = vadd.f32 %v8416_v37, %v8483_v9  ;;  %4654 = vmatpush.msra.mxu2 %v3065_v51  ;;  %v3091_v9 = vld [vmem:[%s10176_s5 + $0x398] sm:$0xff] }
 0x4d0   : > { %4528 = vmatmul.f32.gmra.mxu0 %v3213_v24  ;;  %4767 = vmatpush.msra.mxu3 %v3081_v52  ;;  %v3063_v51 = vld [vmem:[%s10176_s5 + $0x2b8] sm:$0xff]  ;;  %v8646_v52 = vpop.f32.mrf.mxu0 }
 0x4d1   : > { %4290 = vmatmul.f32.gmra.mxu2 %v8294_v15  ;;  %4403 = vmatmul.f32.gmra.mxu3 %v10449_v30  ;;  %v3080_v30 = vld [vmem:[%s10176_s5 + $0x340] sm:$0xff]  ;;  %v3079_v15 = vld [vmem:[%s10176_s5 + $0x338] sm:$0xff] }
 0x4d2   : > { %4885 = vmatpush.msra.mxu0 %v3092_v32  ;;  %4655 = vmatpush.msra.mxu2 %v3064_v45  ;;  %v3090_v32 = vld [vmem:[%s10176_s5 + $0x390] sm:$0xff] }
 0x4d3   : > { %4768 = vmatpush.msra.mxu3 %v3080_v30  ;;  %v3078_v30 = vld [vmem:[%s10176_s5 + $0x330] sm:$0xff] }
 0x4d4   : > { %v4243_v42 = vpop.f32.mrf.mxu2  ;;  %v4356_v0 = vpop.f32.mrf.mxu3  ;;  %4886 = vmatpush.msra.mxu0 %v3091_v9  ;;  %4656 = vmatpush.msra.mxu2 %v3063_v51  ;;  %v3061_v9 = vld [vmem:[%s10176_s5 + $0x2a8] sm:$0xff] }
 0x4d5   : > { %v4244_v26 = vadd.f32 %v4243_v42, %v4131_v48  ;;  %v10450_v48 = vld [vmem:[#allocation66_spill] sm:$0xff]  ;;  %v10451_v42 = vld [vmem:[#allocation36_spill] sm:$0xff]  ;;  %4769 = vmatpush.msra.mxu3 %v3079_v15  ;;  %v3089_v15 = vld [vmem:[%s10176_s5 + $0x388] sm:$0xff] }
 0x4d6   : > { %v3381_v24 = vsel %vm764_vm0, %v10450_v48, %v3380_v8  ;;  %v3493_v45 = vsel %vm877_vm1, %v10451_v42, %v3492_v60  ;;  %4887 = vmatpush.msra.mxu0 %v3090_v32  ;;  %4657 = vmatpush.msra.mxu2 %v3062_v27  ;;  %v4134_v60 = vadd.f32 %v8416_v37, %v8503_v35  ;;  %v3088_v27 = vld [vmem:[%s10176_s5 + $0x380] sm:$0xff]  ;;  %v8686_v35 = vld [vmem:[#allocation2 + $0x38] sm:$0xff] }
 0x4d7   : > { %v8644_v57 = vadd.f32 %v4356_v0, %v4244_v26  ;;  %v8663_v0 = vadd.f32 %v8455_v63, %v8549_v5  ;;  %v8668_v8 = vpop.f32.mrf.mxu1  ;;  %v3214_v26 = vld [vmem:[#allocation2 + $0x188] sm:$0xff]  ;;  %4770 = vmatpush.msra.mxu3 %v3078_v30  ;;  %v3060_v5 = vld [vmem:[%s10176_s5 + $0x2a0] sm:$0xff] }
 0x4d8   : > { %v3077_v63 = vld [vmem:[%s10176_s5 + $0x328] sm:$0xff]  ;;  %4531 = vmatmul.f32.gmra.mxu0 %v3214_v26  ;;  %4658 = vmatpush.msra.mxu2 %v3061_v9  ;;  %v3076_v30 = vld [vmem:[%s10176_s5 + $0x320] sm:$0xff]  ;;  %v3059_v26 = vld [vmem:[%s10176_s5 + $0x298] sm:$0xff] }
 0x4d9   : > { %10452 = vst [vmem:[#allocation80_spill] sm:$0xff] %v8663_v0  ;;  %4293 = vmatmul.f32.gmra.mxu2 %v3381_v24  ;;  %4406 = vmatmul.f32.gmra.mxu3 %v3493_v45  ;;  %v8684_v24 = vld [vmem:[#allocation2 + $0x30] sm:$0xff]  ;;  %v3073_v0 = vld [vmem:[%s10176_s5 + $0x308] sm:$0xff] }
 0x4da   : > { %4888 = vmatpush.msra.mxu0 %v3089_v15  ;;  %4771 = vmatpush.msra.mxu3 %v3077_v63  ;;  %v3856_v9 = vrot.slane %v8684_v24, 1  ;;  %v3058_v15 = vld [vmem:[%s10176_s5 + $0x290] sm:$0xff]  ;;  %v3119_v63 = vld [vmem:[%s10176_s5 + $0x478] sm:$0xff] }
 0x4db   : > { %4659 = vmatpush.msra.mxu2 %v3060_v5  ;;  %v3164_v5 = vld [vmem:[#allocation2 + $0x160] sm:$0x3]  ;;  %4987 = vmatpush.msra.mxu1 %v3119_v63  ;;  %v8737_v63 = vld [vmem:[#allocation2 + $0x28] sm:$0x3] }
 0x4dc   : > { %v4246_v51 = vpop.f32.mrf.mxu2  ;;  %v4359_v32 = vpop.f32.mrf.mxu3  ;;  %4889 = vmatpush.msra.mxu0 %v3088_v27  ;;  %4772 = vmatpush.msra.mxu3 %v3076_v30  ;;  %v8717_v27 = vadd.f32 %v8466_v22, %v8599_v39  ;;  %v3057_v30 = vld [vmem:[%s10176_s5 + $0x288] sm:$0xff] }
 0x4dd   : > { %v4247_v45 = vadd.f32 %v4246_v51, %v4134_v60  ;;  %v3857_v60 = vrot.slane %v8686_v35, 1  ;;  %4660 = vmatpush.msra.mxu2 %v3059_v26  ;;  %v8710_v51 = vpop.f32.mrf.mxu0  ;;  %v4137_v26 = vadd.f32 %v8416_v37, %v8532_v11  ;;  %v10454_v11 = vld [vmem:[#allocation51_spill] sm:$0xff] }
 0x4de   : > { %10453 = vst [vmem:[#allocation81_spill] sm:$0xff] %v8717_v27  ;;  %4773 = vmatpush.msra.mxu3 %v3075_v2  ;;  %v3385_v2 = vrot.slane %v3164_v5, 1  ;;  %v3497_v27 = vrot.slane %v3164_v5, 2  ;;  %4551 = vmatmul.f32.vlgmr.msrb.gmra.mxu1 %v10454_v11  ;;  %v8757_v11 = vld [vmem:[#allocation2 + $0x48] sm:$0xff] }
 0x4df   : > { %v8695_v42 = vadd.f32 %v4359_v32, %v4247_v45  ;;  %v3074_v32 = vld [vmem:[%s10176_s5 + $0x310] sm:$0xff]  ;;  %v8719_v45 = vpop.f32.mrf.mxu1  ;;  %4661 = vmatpush.msra.mxu2 %v3058_v15  ;;  %v3218_v15 = vld [vmem:[#allocation2 + $0x40] sm:$0x3] }
 0x4e0   : > { %4774 = vmatpush.msra.mxu3 %v3074_v32  ;;  %v3859_v5 = vrot.slane %v3218_v15, 1  ;;  %v3498_v32 = vsel %vm877_vm1, %v8290_v50, %v3497_v27  ;;  %v10457_v50 = vld [vmem:[#allocation54_spill] sm:$0xff] }
 0x4e1   : > { %4296 = vmatmul.f32.gmra.mxu2 %v8310_v13  ;;  %4409 = vmatmul.f32.gmra.mxu3 %v8316_v17  ;;  %v3858_v17 = vsel %vm764_vm0, %v3856_v9, %v3857_v60  ;;  %v3056_v13 = vld [vmem:[%s10176_s5 + $0x280] sm:$0xff] }
 0x4e2   : > { %4890 = vmatmul.f32.vlgmr.msra.gmra.mxu0 %v3858_v17  ;;  %4662 = vmatpush.msra.mxu2 %v3057_v30  ;;  %v3072_v9 = vld [vmem:[%s10176_s5 + $0x300] sm:$0xff]  ;;  %v3386_v17 = vsel %vm764_vm0, %v8277_v14, %v3385_v2  ;;  %v10456_v2 = vld [vmem:[#allocation44_spill] sm:$0xff] }
 0x4e3   : > { %4775 = vmatpush.msra.mxu3 %v3073_v0 }
 0x4e4   : > { %v4249_v22 = vpop.f32.mrf.mxu2  ;;  %v4362_v39 = vpop.f32.mrf.mxu3  ;;  %4663 = vmatpush.msra.mxu2 %v3056_v13  ;;  %v3860_v13 = vsel %vm764_vm0, %v3857_v60, %v3859_v5 }
 0x4e5   : > { %v4250_v48 = vadd.f32 %v4249_v22, %v4137_v26  ;;  %4776 = vmatpush.msra.mxu3 %v3072_v9  ;;  %v3587_v26 = vrot.slane %v8737_v63, 1  ;;  %v4140_v22 = vadd.f32 %v8416_v37, %v8573_v59  ;;  %v8748_v0 = vpop.f32.mrf.mxu0  ;;  %v8759_v9 = vld [vmem:[#allocation2 + $0x50] sm:$0xff] }
 0x4e6   : > { %v3862_v60 = vrot.slane %v8759_v9, 1 }
 0x4e7   : > { %v4363_v40 = vadd.f32 %v4362_v39, %v4250_v48  ;;  %v8744_v30 = vpop.f32.mrf.mxu1  ;;  %v8753_v48 = vadd.f32 %v8481_v53, %v8644_v57  ;;  %v3588_v15 = vsel %vm764_vm0, %v10456_v2, %v3587_v26  ;;  %v3118_v53 = vld [vmem:[%s10176_s5 + $0x470] sm:$0xff]  ;;  %v3167_v57 = vld [vmem:[#allocation2 + $0x178] sm:$0x3]  ;;  %v4143_v26 = vadd.f32 %v8416_v37, %v8621_v6 }
 0x4e8   : > { %4554 = vmatmul.f32.gmra.mxu1 %v3588_v15  ;;  %v3502_v2 = vrot.slane %v3167_v57, 2  ;;  %v3221_v15 = vld [vmem:[#allocation2 + $0x58] sm:$0x3] }
 0x4e9   : > { %4299 = vmatmul.f32.gmra.mxu2 %v3386_v17  ;;  %4412 = vmatmul.f32.gmra.mxu3 %v3498_v32  ;;  %10455 = vst [vmem:[#allocation51_spill] sm:$0xff] %v8753_v48  ;;  %v3861_v32 = vrot.slane %v8757_v11, 1  ;;  %v8780_v48 = vld [vmem:[#allocation2 + $0x40] sm:$0x3] }
 0x4ea   : > { %4893 = vmatmul.f32.gmra.mxu0 %v3860_v13  ;;  %4988 = vmatpush.msra.mxu1 %v3118_v53 }
 0x4ec   : > { %v4252_v39 = vpop.f32.mrf.mxu2  ;;  %v4365_v27 = vpop.f32.mrf.mxu3 }
 0x4ed   : > { %v4253_v17 = vadd.f32 %v4252_v39, %v4140_v22  ;;  %v3863_v22 = vsel %vm764_vm0, %v3861_v32, %v3862_v60 }
 0x4ef   : > { %v4366_v59 = vadd.f32 %v4365_v27, %v4253_v17  ;;  %v8768_v5 = vpop.f32.mrf.mxu1  ;;  %v3390_v27 = vrot.slane %v3167_v57, 1  ;;  %v8775_v17 = vadd.f32 %v8498_v19, %v8695_v42  ;;  %v3503_v57 = vsel %vm877_vm1, %v8306_v33, %v3502_v2  ;;  %v8796_v2 = vld [vmem:[#allocation2 + $0x68] sm:$0xff] }
 0x4f0   : > { %4557 = vmatmul.f32.gmra.mxu1 %v10457_v50  ;;  %v4146_v42 = vadd.f32 %v8416_v37, %v8668_v8  ;;  %v3867_v8 = vrot.slane %v8796_v2, 1 }
 0x4f1   : > { %4302 = vmatmul.f32.gmra.mxu2 %v8320_v44  ;;  %4415 = vmatmul.f32.gmra.mxu3 %v8325_v34  ;;  %v8777_v34 = vpop.f32.mrf.mxu0  ;;  %v3864_v44 = vrot.slane %v3221_v15, 1  ;;  %v3391_v32 = vsel %vm764_vm0, %v8302_v3, %v3390_v27  ;;  %v8794_v15 = vld [vmem:[#allocation2 + $0x60] sm:$0xff] }
 0x4f2   : > { %4896 = vmatmul.f32.gmra.mxu0 %v3863_v22  ;;  %v3592_v22 = vrot.slane %v8780_v48, 1 }
 0x4f3   : > { %v3865_v50 = vsel %vm764_vm0, %v3862_v60, %v3864_v44  ;;  %v3866_v44 = vrot.slane %v8794_v15, 1  ;;  %v3117_v60 = vld [vmem:[%s10176_s5 + $0x468] sm:$0xff] }
 0x4f4   : > { %v4255_v13 = vpop.f32.mrf.mxu2  ;;  %v4368_v39 = vpop.f32.mrf.mxu3  ;;  %4989 = vmatpush.msra.mxu1 %v3117_v60 }
 0x4f5   : > { %v4256_v53 = vadd.f32 %v4255_v13, %v4143_v26 }
 0x4f7   : > { %v4369_v6 = vadd.f32 %v4368_v39, %v4256_v53  ;;  %v8787_v19 = vpop.f32.mrf.mxu1  ;;  %v10458_v39 = vld [vmem:[#allocation52_spill] sm:$0xff] }
 0x4f8   : > { %v3593_v27 = vsel %vm764_vm0, %v10458_v39, %v3592_v22  ;;  %v10460_v22 = vld [vmem:[#allocation57_spill] sm:$0xff]  ;;  %v3224_v39 = vld [vmem:[#allocation2 + $0x70] sm:$0x3] }
 0x4f9   : > { %4305 = vmatmul.f32.gmra.mxu2 %v3391_v32  ;;  %4418 = vmatmul.f32.gmra.mxu3 %v3503_v57  ;;  %v8799_v32 = vadd.f32 %v8539_v12, %v4363_v40  ;;  %v8801_v33 = vpop.f32.mrf.mxu0  ;;  %v4149_v40 = vadd.f32 %v8416_v37, %v8719_v45  ;;  %v3868_v12 = vsel %vm764_vm0, %v3866_v44, %v3867_v8  ;;  %v10461_v45 = vld [vmem:[#allocation55_spill] sm:$0xff] }
 0x4fa   : > { %4899 = vmatmul.f32.gmra.mxu0 %v3865_v50  ;;  %4560 = vmatmul.f32.gmra.mxu1 %v3593_v27 }
 0x4fb   : > { %10459 = vst [vmem:[#allocation44_spill] sm:$0xff] %v8799_v32 }
 0x4fc   : > { %v4258_v26 = vpop.f32.mrf.mxu2  ;;  %v4371_v13 = vpop.f32.mrf.mxu3 }
 0x4fd   : > { %v4259_v53 = vadd.f32 %v4258_v26, %v4146_v42 }
 0x4ff   : > { %v4372_v57 = vadd.f32 %v4371_v13, %v4259_v53  ;;  %v8810_v42 = vpop.f32.mrf.mxu1  ;;  %v3699_v13 = vrot.slane %v8737_v63, 2  ;;  %v8817_v53 = vld [vmem:[#allocation2 + $0x58] sm:$0x3] }
 0x500   : > { %v3597_v32 = vrot.slane %v8817_v53, 1 }
 0x501   : > { %4664 = vmatmul.f32.vlgmr.msra.gmra.mxu2 %v10460_v22  ;;  %4777 = vmatmul.f32.vlgmr.msra.gmra.mxu3 %v8684_v24  ;;  %v3869_v24 = vrot.slane %v3224_v39, 1  ;;  %v8822_v22 = vadd.f32 %v8590_v54, %v4366_v59  ;;  %v3700_v44 = vsel %vm877_vm1, %v10461_v45, %v3699_v13  ;;  %v8828_v63 = vpop.f32.mrf.mxu0  ;;  %v8839_v13 = vld [vmem:[#allocation2 + $0x80] sm:$0xff]  ;;  %v4155_v45 = vadd.f32 %v8416_v37, %v8768_v5 }
 0x502   : > { %4902 = vmatmul.f32.gmra.mxu0 %v3868_v12  ;;  %4563 = vmatmul.f32.gmra.mxu1 %v8071_v36  ;;  %v4152_v36 = vadd.f32 %v8416_v37, %v8744_v30  ;;  %v3598_v59 = vsel %vm764_vm0, %v8046_v43, %v3597_v32  ;;  %v3872_v30 = vrot.slane %v8839_v13, 1  ;;  %v10462_v43 = vld [vmem:[#allocation60_spill] sm:$0xff] }
 0x503   : > { %v3870_v12 = vsel %vm764_vm0, %v3867_v8, %v3869_v24  ;;  %v3116_v8 = vld [vmem:[%s10176_s5 + $0x460] sm:$0xff]  ;;  %v8849_v24 = vadd.f32 %v8646_v52, %v4369_v6  ;;  %v3227_v52 = vld [vmem:[#allocation2 + $0x88] sm:$0x3] }
 0x504   : > { %v4261_v50 = vpop.f32.mrf.mxu2  ;;  %v4374_v26 = vpop.f32.mrf.mxu3  ;;  %4990 = vmatpush.msra.mxu1 %v3116_v8  ;;  %v10463_v8 = vld [vmem:[#allocation50_spill] sm:$0xff] }
 0x505   : > { %v4262_v27 = vadd.f32 %v4261_v50, %v4149_v40 }
 0x507   : > { %v8819_v60 = vadd.f32 %v4374_v26, %v4262_v27  ;;  %v8830_v40 = vpop.f32.mrf.mxu1  ;;  %v8837_v26 = vld [vmem:[#allocation2 + $0x78] sm:$0xff] }
 0x508   : > { %v3871_v27 = vrot.slane %v8837_v26, 1 }
 0x509   : > { %4667 = vmatmul.f32.gmra.mxu2 %v3700_v44  ;;  %4780 = vmatmul.f32.gmra.mxu3 %v8686_v35  ;;  %v8857_v44 = vpop.f32.mrf.mxu0 }
 0x50a   : > { %4905 = vmatmul.f32.gmra.mxu0 %v3870_v12  ;;  %4566 = vmatmul.f32.gmra.mxu1 %v3598_v59  ;;  %v8862_v59 = vld [vmem:[#allocation2 + $0x70] sm:$0x3] }
 0x50c   : > { %v4264_v50 = vpop.f32.mrf.mxu2  ;;  %v4377_v54 = vpop.f32.mrf.mxu3 }
 0x50d   : > { %v4265_v35 = vadd.f32 %v4264_v50, %v4152_v36  ;;  %v3873_v36 = vsel %vm764_vm0, %v3871_v27, %v3872_v30  ;;  %v8870_v27 = vadd.f32 %v8710_v51, %v4372_v57  ;;  %v8882_v51 = vld [vmem:[#allocation2 + $0x98] sm:$0xff] }
 0x50f   : > { %v8841_v39 = vadd.f32 %v4377_v54, %v4265_v35  ;;  %v8853_v32 = vpop.f32.mrf.mxu1  ;;  %v3704_v54 = vrot.slane %v8780_v48, 2  ;;  %v3874_v35 = vrot.slane %v3227_v52, 1 }
 0x511   : > { %4670 = vmatmul.f32.gmra.mxu2 %v10462_v43  ;;  %4783 = vmatmul.f32.gmra.mxu3 %v8757_v11  ;;  %v3705_v5 = vsel %vm877_vm1, %v10463_v8, %v3704_v54  ;;  %v3602_v43 = vrot.slane %v8862_v59, 1  ;;  %v8880_v54 = vld [vmem:[#allocation2 + $0x90] sm:$0xff]  ;;  %v8884_v57 = vpop.f32.mrf.mxu0  ;;  %v8899_v8 = vadd.f32 %v8748_v0, %v8819_v60 }
 0x512   : > { %4908 = vmatmul.f32.gmra.mxu0 %v3873_v36  ;;  %4569 = vmatmul.f32.gmra.mxu1 %v8094_v21  ;;  %v4158_v21 = vadd.f32 %v8416_v37, %v8787_v19  ;;  %v3876_v19 = vrot.slane %v8880_v54, 1 }
 0x514   : > { %v4267_v12 = vpop.f32.mrf.mxu2  ;;  %v4380_v50 = vpop.f32.mrf.mxu3 }
 0x515   : > { %v4268_v6 = vadd.f32 %v4267_v12, %v4155_v45  ;;  %v3875_v45 = vsel %vm764_vm0, %v3872_v30, %v3874_v35  ;;  %v3877_v30 = vrot.slane %v8882_v51, 1 }
 0x517   : > { %v8864_v11 = vadd.f32 %v4380_v50, %v4268_v6  ;;  %v8873_v48 = vpop.f32.mrf.mxu1  ;;  %v3603_v50 = vsel %vm764_vm0, %v8059_v46, %v3602_v43  ;;  %v3115_v6 = vld [vmem:[%s10176_s5 + $0x458] sm:$0xff]  ;;  %v10464_v46 = vld [vmem:[#allocation63_spill] sm:$0xff]  ;;  %v3878_v43 = vsel %vm764_vm0, %v3876_v19, %v3877_v30 }
 0x518   : > { %4991 = vmatpush.msra.mxu1 %v3115_v6 }
 0x519   : > { %4673 = vmatmul.f32.gmra.mxu2 %v3705_v5  ;;  %4786 = vmatmul.f32.gmra.mxu3 %v8759_v9  ;;  %v4161_v5 = vadd.f32 %v8416_v37, %v8810_v42 }
 0x51a   : > { %4911 = vmatmul.f32.gmra.mxu0 %v3875_v45  ;;  %4572 = vmatmul.f32.gmra.mxu1 %v3603_v50 }
 0x51c   : > { %v4270_v36 = vpop.f32.mrf.mxu2  ;;  %v4383_v12 = vpop.f32.mrf.mxu3 }
 0x51d   : > { %v4271_v9 = vadd.f32 %v4270_v36, %v4158_v21  ;;  %v3709_v36 = vrot.slane %v8817_v53, 2 }
 0x51f   : > { %v8886_v52 = vadd.f32 %v4383_v12, %v4271_v9  ;;  %v8895_v35 = vpop.f32.mrf.mxu1  ;;  %v3230_v12 = vld [vmem:[#allocation2 + $0xa0] sm:$0x3]  ;;  %v8908_v9 = vpop.f32.mrf.mxu0  ;;  %v3710_v42 = vsel %vm877_vm1, %v8053_v31, %v3709_v36 }
 0x520   : > { %v3879_v60 = vrot.slane %v3230_v12, 1  ;;  %v4167_v12 = vadd.f32 %v8416_v37, %v8853_v32 }
 0x521   : > { %4676 = vmatmul.f32.gmra.mxu2 %v10464_v46  ;;  %4789 = vmatmul.f32.gmra.mxu3 %v8794_v15  ;;  %v8906_v15 = vld [vmem:[#allocation2 + $0x88] sm:$0x3]  ;;  %v8923_v46 = vadd.f32 %v8777_v34, %v8841_v39  ;;  %v3114_v34 = vld [vmem:[%s10176_s5 + $0x450] sm:$0xff] }
 0x522   : > { %4914 = vmatmul.f32.gmra.mxu0 %v3878_v43  ;;  %4575 = vmatmul.f32.gmra.mxu1 %v8117_v23  ;;  %v3607_v19 = vrot.slane %v8906_v15, 1  ;;  %v4164_v23 = vadd.f32 %v8416_v37, %v8830_v40  ;;  %v3880_v6 = vsel %vm764_vm0, %v3877_v30, %v3879_v60  ;;  %v8949_v60 = vadd.f32 %v8801_v33, %v8864_v11 }
 0x523   : > { %4992 = vmatpush.msra.mxu1 %v3114_v34  ;;  %v8970_v34 = vld [vmem:[#allocation2 + $0xc0] sm:$0xff] }
 0x524   : > { %v4273_v21 = vpop.f32.mrf.mxu2  ;;  %v4386_v45 = vpop.f32.mrf.mxu3  ;;  %v3608_v31 = vsel %vm764_vm0, %v8085_v58, %v3607_v19 }
 0x525   : > { %v4274_v50 = vadd.f32 %v4273_v21, %v4161_v5  ;;  %v8927_v21 = vld [vmem:[#allocation2 + $0xa8] sm:$0xff] }
 0x526   : > { %v3881_v40 = vrot.slane %v8927_v21, 1 }
 0x527   : > { %v8910_v0 = vadd.f32 %v4386_v45, %v4274_v50  ;;  %v8916_v53 = vpop.f32.mrf.mxu1  ;;  %v8938_v39 = vpop.f32.mrf.mxu0 }
 0x529   : > { %4679 = vmatmul.f32.gmra.mxu2 %v3710_v42  ;;  %4792 = vmatmul.f32.gmra.mxu3 %v8796_v2  ;;  %v8929_v2 = vld [vmem:[#allocation2 + $0xb0] sm:$0xff] }
 0x52a   : > { %4917 = vmatmul.f32.gmra.mxu0 %v3880_v6  ;;  %4578 = vmatmul.f32.gmra.mxu1 %v3608_v31  ;;  %v3882_v30 = vrot.slane %v8929_v2, 1  ;;  %v3233_v6 = vld [vmem:[#allocation2 + $0xb8] sm:$0x3] }
 0x52b   : > { %v3884_v32 = vrot.slane %v3233_v6, 1 }
 0x52c   : > { %v4276_v5 = vpop.f32.mrf.mxu2  ;;  %v4389_v43 = vpop.f32.mrf.mxu3  ;;  %v3883_v50 = vsel %vm764_vm0, %v3881_v40, %v3882_v30 }
 0x52d   : > { %v4277_v45 = vadd.f32 %v4276_v5, %v4164_v23  ;;  %v3714_v23 = vrot.slane %v8862_v59, 2  ;;  %v4170_v59 = vadd.f32 %v8416_v37, %v8873_v48  ;;  %v3886_v48 = vrot.slane %v8970_v34, 1 }
 0x52f   : > { %v8931_v36 = vadd.f32 %v4389_v43, %v4277_v45  ;;  %v8942_v58 = vpop.f32.mrf.mxu1  ;;  %v3715_v43 = vsel %vm877_vm1, %v8067_v20, %v3714_v23  ;;  %v8965_v31 = vpop.f32.mrf.mxu0 }
 0x531   : > { %4682 = vmatmul.f32.gmra.mxu2 %v8104_v41  ;;  %4795 = vmatmul.f32.gmra.mxu3 %v8837_v26  ;;  %v8953_v26 = vld [vmem:[#allocation2 + $0xa0] sm:$0x3] }
 0x532   : > { %4920 = vmatmul.f32.gmra.mxu0 %v3883_v50  ;;  %4581 = vmatmul.f32.gmra.mxu1 %v8139_v38  ;;  %v3612_v33 = vrot.slane %v8953_v26, 1  ;;  %v3885_v38 = vsel %vm764_vm0, %v3882_v30, %v3884_v32 }
 0x534   : > { %v4279_v42 = vpop.f32.mrf.mxu2  ;;  %v4392_v19 = vpop.f32.mrf.mxu3  ;;  %v3613_v20 = vsel %vm764_vm0, %v8098_v10, %v3612_v33  ;;  %v3113_v10 = vld [vmem:[%s10176_s5 + $0x448] sm:$0xff]  ;;  %v9007_v33 = vld [vmem:[#allocation2 + $0xb8] sm:$0x3] }
 0x535   : > { %v4280_v41 = vadd.f32 %v4279_v42, %v4167_v12  ;;  %v8972_v12 = vld [vmem:[#allocation2 + $0xc8] sm:$0xff]  ;;  %4993 = vmatpush.msra.mxu1 %v3113_v10 }
 0x536   : > { %v3887_v30 = vrot.slane %v8972_v12, 1 }
 0x537   : > { %v8955_v5 = vadd.f32 %v4392_v19, %v4280_v41  ;;  %v8961_v11 = vpop.f32.mrf.mxu1  ;;  %v3719_v41 = vrot.slane %v8906_v15, 2  ;;  %v9004_v32 = vpop.f32.mrf.mxu0 }
 0x538   : > { %v3888_v19 = vsel %vm764_vm0, %v3886_v48, %v3887_v30 }
 0x539   : > { %4685 = vmatmul.f32.gmra.mxu2 %v3715_v43  ;;  %4798 = vmatmul.f32.gmra.mxu3 %v8839_v13  ;;  %v8976_v13 = vadd.f32 %v8828_v63, %v8886_v52  ;;  %v8992_v63 = vld [vmem:[%s10177_s6] ss:$0 sm:$0xff]  ;;  %v3720_v15 = vsel %vm877_vm1, %v8088_v55, %v3719_v41  ;;  %v3724_v41 = vrot.slane %v8953_v26, 2 }
 0x53a   : > { %4923 = vmatmul.f32.gmra.mxu0 %v3885_v38  ;;  %4584 = vmatmul.f32.gmra.mxu1 %v3613_v20  ;;  %v4173_v52 = vadd.f32 %v8992_v63, %v8895_v35  ;;  %v3617_v38 = vrot.slane %v9007_v33, 1  ;;  %v9025_v55 = vld [vmem:[#allocation2 + $0xe0] sm:$0xff] }
 0x53c   : > { %v4282_v45 = vpop.f32.mrf.mxu2  ;;  %v4395_v40 = vpop.f32.mrf.mxu3  ;;  %v3618_v20 = vsel %vm764_vm0, %v8127_v49, %v3617_v38  ;;  %v3112_v49 = vld [vmem:[%s10176_s5 + $0x440] sm:$0xff]  ;;  %v3725_v38 = vsel %vm877_vm1, %v8110_v25, %v3724_v41 }
 0x53d   : > { %v4283_v50 = vadd.f32 %v4282_v45, %v4170_v59  ;;  %4994 = vmatpush.msra.mxu1 %v3112_v49  ;;  %v9098_v41 = vld [vmem:[#allocation2 + $0x100] sm:$0x3] }
 0x53f   : > { %v8978_v37 = vadd.f32 %v4395_v40, %v4283_v50  ;;  %v8987_v42 = vpop.f32.mrf.mxu1  ;;  %v9023_v50 = vld [vmem:[#allocation2 + $0xd8] sm:$0xff]  ;;  %v9031_v10 = vpop.f32.mrf.mxu0 }
 0x541   : > { %4688 = vmatmul.f32.gmra.mxu2 %v8121_v62  ;;  %4801 = vmatmul.f32.gmra.mxu3 %v8880_v54  ;;  %v8998_v62 = vld [vmem:[#allocation2 + $0xd0] sm:$0x3]  ;;  %v9002_v54 = vadd.f32 %v8857_v44, %v8910_v0  ;;  %v4176_v0 = vadd.f32 %v8992_v63, %v8916_v53 }
 0x542   : > { %4926 = vmatmul.f32.gmra.mxu0 %v3888_v19  ;;  %4587 = vmatmul.f32.gmra.mxu1 %v8161_v1  ;;  %v3889_v59 = vrot.slane %v8998_v62, 1 }
 0x544   : > { %v4285_v23 = vpop.f32.mrf.mxu2  ;;  %v4398_v6 = vpop.f32.mrf.mxu3  ;;  %v3890_v1 = vsel %vm764_vm0, %v3887_v30, %v3889_v59  ;;  %v3891_v30 = vrot.slane %v9023_v50, 1 }
 0x545   : > { %v4286_v43 = vadd.f32 %v4285_v23, %v4173_v52  ;;  %v3892_v52 = vrot.slane %v9025_v55, 1 }
 0x547   : > { %v9009_v35 = vadd.f32 %v4398_v6, %v4286_v43  ;;  %v9016_v44 = vpop.f32.mrf.mxu1  ;;  %v9048_v43 = vld [vmem:[#allocation2 + $0xe8] sm:$0x3] }
 0x549   : > { %4691 = vmatmul.f32.gmra.mxu2 %v3720_v15  ;;  %4804 = vmatmul.f32.gmra.mxu3 %v8882_v51  ;;  %v9029_v51 = vadd.f32 %v8884_v57, %v8931_v36  ;;  %v4179_v57 = vadd.f32 %v8992_v63, %v8942_v58  ;;  %v3893_v36 = vsel %vm764_vm0, %v3891_v30, %v3892_v52  ;;  %v3894_v58 = vrot.slane %v9048_v43, 1 }
 0x54a   : > { %4929 = vmatmul.f32.gmra.mxu0 %v3890_v1  ;;  %4590 = vmatmul.f32.gmra.mxu1 %v3618_v20  ;;  %v9075_v20 = vld [vmem:[#allocation2 + $0xf8] sm:$0xff] }
 0x54b   : > { %10465 = vst [vmem:[#allocation54_spill] sm:$0xff] %v9029_v51  ;;  %v9337_v51 = vld [vmem:[#allocation2 + $0x160] sm:$0x3] }
 0x54c   : > { %v4288_v45 = vpop.f32.mrf.mxu2  ;;  %v4401_v40 = vpop.f32.mrf.mxu3 }
 0x54d   : > { %v4289_v48 = vadd.f32 %v4288_v45, %v4176_v0  ;;  %v9063_v0 = vpop.f32.mrf.mxu0 }
 0x54f   : > { %v9033_v53 = vadd.f32 %v4401_v40, %v4289_v48  ;;  %v9042_v19 = vpop.f32.mrf.mxu1  ;;  %v9073_v40 = vld [vmem:[#allocation2 + $0xf0] sm:$0xff] }
 0x551   : > { %4694 = vmatmul.f32.gmra.mxu2 %v8143_v4  ;;  %4807 = vmatmul.f32.gmra.mxu3 %v8927_v21  ;;  %v9051_v4 = vld [vmem:[#allocation2 + $0xd0] sm:$0x3]  ;;  %v9055_v21 = vadd.f32 %v8908_v9, %v8955_v5  ;;  %v4182_v9 = vadd.f32 %v8992_v63, %v8961_v11  ;;  %v3895_v5 = vsel %vm764_vm0, %v3892_v52, %v3894_v58  ;;  %v3896_v11 = vrot.slane %v9073_v40, 1  ;;  %v9101_v58 = vld [vmem:[#allocation2 + $0xe8] sm:$0x3] }
 0x552   : > { %4932 = vmatmul.f32.gmra.mxu0 %v3893_v36  ;;  %4593 = vmatmul.f32.gmra.mxu1 %v8181_v7  ;;  %v3622_v26 = vrot.slane %v9051_v4, 1  ;;  %v3897_v52 = vrot.slane %v9075_v20, 1 }
 0x553   : > { %10466 = vst [vmem:[#allocation52_spill] sm:$0xff] %v9055_v21  ;;  %v9312_v21 = vld [vmem:[#allocation2 + $0x1a0] sm:$0xff] }
 0x554   : > { %v4291_v23 = vpop.f32.mrf.mxu2  ;;  %v4404_v6 = vpop.f32.mrf.mxu3  ;;  %v3623_v25 = vsel %vm764_vm0, %v8148_v47, %v3622_v26  ;;  %v3111_v47 = vld [vmem:[%s10176_s5 + $0x438] sm:$0xff]  ;;  %v3899_v26 = vrot.slane %v9098_v41, 1 }
 0x555   : > { %v4292_v59 = vadd.f32 %v4291_v23, %v4179_v57  ;;  %4995 = vmatpush.msra.mxu1 %v3111_v47  ;;  %v9092_v57 = vpop.f32.mrf.mxu0  ;;  %v9123_v47 = vld [vmem:[#allocation2 + $0x110] sm:$0xff] }
 0x557   : > { %v9057_v15 = vadd.f32 %v4404_v6, %v4292_v59  ;;  %v9066_v7 = vpop.f32.mrf.mxu1  ;;  %v3729_v6 = vrot.slane %v9007_v33, 2  ;;  %v3627_v33 = vrot.slane %v9101_v58, 1 }
 0x559   : > { %4697 = vmatmul.f32.gmra.mxu2 %v3725_v38  ;;  %4810 = vmatmul.f32.gmra.mxu3 %v8929_v2  ;;  %v9079_v2 = vadd.f32 %v8938_v39, %v8978_v37  ;;  %v4185_v39 = vadd.f32 %v8992_v63, %v8987_v42  ;;  %v3898_v37 = vsel %vm764_vm0, %v3896_v11, %v3897_v52 }
 0x55a   : > { %4935 = vmatmul.f32.gmra.mxu0 %v3895_v5  ;;  %4596 = vmatmul.f32.gmra.mxu1 %v3623_v25  ;;  %v9108_v42 = vadd.f32 %v8965_v31, %v9009_v35  ;;  %v3900_v25 = vsel %vm764_vm0, %v3897_v52, %v3899_v26  ;;  %v3628_v31 = vsel %vm764_vm0, %v8174_v29, %v3627_v33  ;;  %v9121_v35 = vld [vmem:[#allocation2 + $0x108] sm:$0xff]  ;;  %v3902_v52 = vrot.slane %v9123_v47, 1 }
 0x55b   : > { %10467 = vst [vmem:[#allocation57_spill] sm:$0xff] %v9079_v2  ;;  %v9136_v29 = vadd.f32 %v9004_v32, %v9033_v53  ;;  %v3734_v33 = vrot.slane %v9051_v4, 2  ;;  %v9149_v53 = vld [vmem:[#allocation2 + $0x100] sm:$0x3] }
 0x55c   : > { %v4294_v1 = vpop.f32.mrf.mxu2  ;;  %v4407_v45 = vpop.f32.mrf.mxu3  ;;  %10469 = vst [vmem:[#allocation55_spill] sm:$0xff] %v9108_v42 }
 0x55d   : > { %v4295_v48 = vadd.f32 %v4294_v1, %v4182_v9  ;;  %v10470_v9 = vld [vmem:[#allocation45_spill] sm:$0xff]  ;;  %10473 = vst [vmem:[#allocation63_spill] sm:$0xff] %v9136_v29  ;;  %v10507_v29 = vld [vmem:[#allocation47_spill] sm:$0xff] }
 0x55e   : > { %v3730_v5 = vsel %vm877_vm1, %v10470_v9, %v3729_v6  ;;  %v10474_v6 = vld [vmem:[#allocation46_spill] sm:$0xff] }
 0x55f   : > { %v9081_v30 = vadd.f32 %v4407_v45, %v4295_v48  ;;  %v9090_v49 = vpop.f32.mrf.mxu1  ;;  %v4188_v45 = vadd.f32 %v8992_v63, %v9016_v44  ;;  %v3901_v44 = vrot.slane %v9121_v35, 1 }
 0x561   : > { %4700 = vmatmul.f32.gmra.mxu2 %v8169_v16  ;;  %4813 = vmatmul.f32.gmra.mxu3 %v8970_v34  ;;  %v10468_v16 = vld [vmem:[#allocation56_spill] sm:$0xff]  ;;  %v3903_v26 = vsel %vm764_vm0, %v3901_v44, %v3902_v52  ;;  %v3632_v44 = vrot.slane %v9149_v53, 1 }
 0x562   : > { %4938 = vmatmul.f32.gmra.mxu0 %v3898_v37  ;;  %4599 = vmatmul.f32.gmra.mxu1 %v10468_v16  ;;  %v4191_v16 = vadd.f32 %v8992_v63, %v9042_v19 }
 0x564   : > { %v4297_v36 = vpop.f32.mrf.mxu2  ;;  %v4410_v23 = vpop.f32.mrf.mxu3 }
 0x565   : > { %v4298_v59 = vadd.f32 %v4297_v36, %v4185_v39  ;;  %v9125_v39 = vpop.f32.mrf.mxu0 }
 0x566   : > { %10471 = vst [vmem:[#allocation60_spill] sm:$0xff] %v9125_v39  ;;  %v9265_v39 = vld [vmem:[#allocation2 + $0x150] sm:$0xff] }
 0x567   : > { %v9103_v38 = vadd.f32 %v4410_v23, %v4298_v59  ;;  %v9114_v1 = vpop.f32.mrf.mxu1  ;;  %v3110_v23 = vld [vmem:[%s10176_s5 + $0x430] sm:$0xff] }
 0x568   : > { %4996 = vmatpush.msra.mxu1 %v3110_v23  ;;  %v9163_v23 = vadd.f32 %v9031_v10, %v9057_v15  ;;  %v9174_v10 = vld [vmem:[#allocation2 + $0x120] sm:$0xff]  ;;  %v9176_v15 = vld [vmem:[#allocation2 + $0x128] sm:$0xff] }
 0x569   : > { %4703 = vmatmul.f32.gmra.mxu2 %v3730_v5  ;;  %4816 = vmatmul.f32.gmra.mxu3 %v8972_v12 }
 0x56a   : > { %4941 = vmatmul.f32.gmra.mxu0 %v3900_v25  ;;  %4602 = vmatmul.f32.gmra.mxu1 %v3628_v31  ;;  %v10475_v25 = vld [vmem:[#allocation75_spill] sm:$0xff]  ;;  %10479 = vst [vmem:[#allocation46_spill] sm:$0xff] %v9163_v23 }
 0x56c   : > { %v4300_v48 = vpop.f32.mrf.mxu2  ;;  %v4413_v11 = vpop.f32.mrf.mxu3 }
 0x56d   : > { %v4301_v37 = vadd.f32 %v4300_v48, %v4188_v45  ;;  %v9146_v45 = vld [vmem:[#allocation2 + $0x118] sm:$0x3]  ;;  %v4101_v48 = vadd.f32 %v8992_v63, %v10475_v25 }
 0x56e   : > { %v3904_v31 = vrot.slane %v9146_v45, 1 }
 0x56f   : > { %v9127_v36 = vadd.f32 %v4413_v11, %v4301_v37  ;;  %v9140_v59 = vpop.f32.mrf.mxu1  ;;  %v9153_v11 = vpop.f32.mrf.mxu0  ;;  %v10478_v37 = vld [vmem:[#allocation59_spill] sm:$0xff] }
 0x570   : > { %10476 = vst [vmem:[#allocation56_spill] sm:$0xff] %v9153_v11  ;;  %v3735_v4 = vsel %vm877_vm1, %v10478_v37, %v3734_v33 }
 0x571   : > { %10472 = vst [vmem:[#allocation50_spill] sm:$0xff] %v9127_v36  ;;  %4706 = vmatmul.f32.gmra.mxu2 %v10474_v6  ;;  %4819 = vmatmul.f32.gmra.mxu3 %v9023_v50 }
 0x572   : > { %4944 = vmatmul.f32.gmra.mxu0 %v3903_v26  ;;  %4605 = vmatmul.f32.gmra.mxu1 %v8225_v56  ;;  %v10480_v56 = vld [vmem:[#allocation76_spill] sm:$0xff]  ;;  %v4194_v26 = vadd.f32 %v8992_v63, %v9066_v7  ;;  %v3906_v63 = vrot.slane %v9174_v10, 1  ;;  %v3907_v7 = vrot.slane %v9176_v15, 1 }
 0x573   : > { %v4214_v6 = vadd.f32 %v10480_v56, %v4101_v48  ;;  %v10482_v48 = vld [vmem:[#allocation77_spill] sm:$0xff] }
 0x574   : > { %v4303_v9 = vpop.f32.mrf.mxu2  ;;  %v4416_v5 = vpop.f32.mrf.mxu3 }
 0x575   : > { %v4304_v32 = vadd.f32 %v4303_v9, %v4191_v16  ;;  %v3905_v9 = vsel %vm764_vm0, %v3902_v52, %v3904_v31  ;;  %v4327_v37 = vadd.f32 %v10482_v48, %v4214_v6  ;;  %v3109_v52 = vld [vmem:[%s10176_s5 + $0x428] sm:$0xff]  ;;  %v9193_v6 = vadd.f32 %v9063_v0, %v9081_v30 }
 0x576   : > { %4997 = vmatpush.msra.mxu1 %v3109_v52 }
 0x577   : > { %v9155_v19 = vadd.f32 %v4416_v5, %v4304_v32  ;;  %v9167_v16 = vpop.f32.mrf.mxu1  ;;  %v10481_v32 = vld [vmem:[#allocation61_spill] sm:$0xff]  ;;  %v9186_v31 = vpop.f32.mrf.mxu0  ;;  %10487 = vst [vmem:[#allocation76_spill] sm:$0xff] %v9193_v6 }
 0x578   : > { %v3633_v25 = vsel %vm764_vm0, %v10481_v32, %v3632_v44  ;;  %10484 = vst [vmem:[#allocation59_spill] sm:$0xff] %v9186_v31  ;;  %v10485_v44 = vld [vmem:[#allocation74_spill] sm:$0xff]  ;;  %v10486_v32 = vld [vmem:[#allocation64_spill] sm:$0xff]  ;;  %v10490_v31 = vld [vmem:[#allocation53_spill] sm:$0xff] }
 0x579   : > { %10477 = vst [vmem:[#allocation45_spill] sm:$0xff] %v9155_v19  ;;  %4709 = vmatmul.f32.gmra.mxu2 %v3735_v4  ;;  %4822 = vmatmul.f32.gmra.mxu3 %v9025_v55 }
 0x57a   : > { %4947 = vmatmul.f32.gmra.mxu0 %v3905_v9  ;;  %4608 = vmatmul.f32.gmra.mxu1 %v3633_v25  ;;  %v4440_v9 = vadd.f32 %v10485_v44, %v4327_v37  ;;  %v9200_v37 = vld [vmem:[#allocation2 + $0x130] sm:$0x3]  ;;  %v10488_v44 = vld [vmem:[#allocation71_spill] sm:$0xff] }
 0x57b   : > { %v3909_v30 = vrot.slane %v9200_v37, 1 }
 0x57c   : > { %v4306_v5 = vpop.f32.mrf.mxu2  ;;  %v4419_v33 = vpop.f32.mrf.mxu3 }
 0x57d   : > { %v4307_v4 = vadd.f32 %v4306_v5, %v4194_v26  ;;  %v4553_v5 = vadd.f32 %v9090_v49, %v4440_v9 }
 0x57f   : > { %v9179_v56 = vadd.f32 %v4419_v33, %v4307_v4  ;;  %v9195_v26 = vpop.f32.mrf.mxu1  ;;  %v3908_v33 = vsel %vm764_vm0, %v3906_v63, %v3907_v7  ;;  %v3739_v4 = vrot.slane %v9101_v58, 2  ;;  %v9214_v58 = vadd.f32 %v9092_v57, %v9103_v38 }
 0x581   : > { %10483 = vst [vmem:[#allocation75_spill] sm:$0xff] %v9179_v56  ;;  %4712 = vmatmul.f32.gmra.mxu2 %v10486_v32  ;;  %4825 = vmatmul.f32.gmra.mxu3 %v9073_v40  ;;  %v9203_v32 = vld [vmem:[#allocation2 + $0x118] sm:$0x3]  ;;  %v3740_v49 = vsel %vm877_vm1, %v10490_v31, %v3739_v4 }
 0x582   : > { %4950 = vmatmul.f32.gmra.mxu0 %v3908_v33  ;;  %4611 = vmatmul.f32.gmra.mxu1 %v10488_v44  ;;  %v3637_v63 = vrot.slane %v9203_v32, 1  ;;  %10491 = vst [vmem:[#allocation77_spill] sm:$0xff] %v9214_v58  ;;  %v10493_v33 = vld [vmem:[#allocation78_spill] sm:$0xff]  ;;  %v9225_v44 = vld [vmem:[#allocation2 + $0x138] sm:$0xff] }
 0x583   : > { %v3911_v56 = vrot.slane %v9225_v44, 1 }
 0x584   : > { %v4665_v25 = vpop.f32.mrf.mxu2  ;;  %v4778_v48 = vpop.f32.mrf.mxu3  ;;  %v3638_v4 = vsel %vm764_vm0, %v10440_v18, %v3637_v63  ;;  %v10496_v63 = vld [vmem:[#allocation79_spill] sm:$0xff] }
 0x585   : > { %v4666_v52 = vadd.f32 %v4665_v25, %v4553_v5  ;;  %v9218_v5 = vpop.f32.mrf.mxu0  ;;  %v4556_v25 = vadd.f32 %v9114_v1, %v10493_v33  ;;  %v4559_v33 = vadd.f32 %v9140_v59, %v10496_v63  ;;  %v10499_v63 = vld [vmem:[#allocation65_spill] sm:$0xff] }
 0x586   : > { %10492 = vst [vmem:[#allocation74_spill] sm:$0xff] %v9218_v5 }
 0x587   : > { %v9205_v0 = vadd.f32 %v4778_v48, %v4666_v52  ;;  %v9216_v9 = vpop.f32.mrf.mxu1  ;;  %v3910_v48 = vsel %vm764_vm0, %v3907_v7, %v3909_v30  ;;  %v3108_v7 = vld [vmem:[%s10176_s5 + $0x420] sm:$0xff]  ;;  %v10495_v30 = vld [vmem:[#allocation68_spill] sm:$0xff] }
 0x588   : > { %4998 = vmatpush.msra.mxu1 %v3108_v7 }
 0x589   : > { %10489 = vst [vmem:[#allocation61_spill] sm:$0xff] %v9205_v0  ;;  %4715 = vmatmul.f32.gmra.mxu2 %v3740_v49  ;;  %4828 = vmatmul.f32.gmra.mxu3 %v9075_v20  ;;  %v9227_v49 = vld [vmem:[#allocation2 + $0x140] sm:$0xff] }
 0x58a   : > { %4953 = vmatmul.f32.gmra.mxu0 %v3910_v48  ;;  %4614 = vmatmul.f32.gmra.mxu1 %v3638_v4  ;;  %v3912_v1 = vrot.slane %v9227_v49, 1  ;;  %v9244_v4 = vld [vmem:[#allocation2 + $0x148] sm:$0x3] }
 0x58b   : > { %v3914_v59 = vrot.slane %v9244_v4, 1 }
 0x58c   : > { %v4668_v52 = vpop.f32.mrf.mxu2  ;;  %v4781_v31 = vpop.f32.mrf.mxu3 }
 0x58d   : > { %v4669_v57 = vadd.f32 %v4668_v52, %v4556_v25  ;;  %v3913_v25 = vsel %vm764_vm0, %v3911_v56, %v3912_v1 }
 0x58f   : > { %v9229_v38 = vadd.f32 %v4781_v31, %v4669_v57  ;;  %v9238_v18 = vpop.f32.mrf.mxu1  ;;  %v3744_v31 = vrot.slane %v9149_v53, 2  ;;  %v9246_v57 = vpop.f32.mrf.mxu0 }
 0x590   : > { %10497 = vst [vmem:[#allocation71_spill] sm:$0xff] %v9246_v57  ;;  %v10532_v57 = vld [vmem:[#allocation38_spill] sm:$0xff] }
 0x591   : > { %10494 = vst [vmem:[#allocation64_spill] sm:$0xff] %v9229_v38  ;;  %4718 = vmatmul.f32.gmra.mxu2 %v10495_v30  ;;  %4831 = vmatmul.f32.gmra.mxu3 %v9121_v35  ;;  %v9249_v30 = vld [vmem:[#allocation2 + $0x130] sm:$0x3]  ;;  %v3745_v56 = vsel %vm877_vm1, %v10499_v63, %v3744_v31  ;;  %v9267_v31 = vld [vmem:[#allocation2 + $0x158] sm:$0xff] }
 0x592   : > { %4956 = vmatmul.f32.gmra.mxu0 %v3913_v25  ;;  %4617 = vmatmul.f32.gmra.mxu1 %v10443_v61  ;;  %v3642_v19 = vrot.slane %v9249_v30, 1  ;;  %v10500_v25 = vld [vmem:[#allocation67_spill] sm:$0xff]  ;;  %v3915_v61 = vsel %vm764_vm0, %v3912_v1, %v3914_v59  ;;  %v3917_v1 = vrot.slane %v9267_v31, 1  ;;  %v3107_v59 = vld [vmem:[%s10176_s5 + $0x418] sm:$0xff] }
 0x593   : > { %4999 = vmatpush.msra.mxu1 %v3107_v59  ;;  %v10505_v59 = vld [vmem:[#allocation39_spill] sm:$0xff]  ;;  %v5648_v38 = vld [vmem:[#allocation2 + $0x38] sm:$0xff] }
 0x594   : > { %v4671_v48 = vpop.f32.mrf.mxu2  ;;  %v4784_v52 = vpop.f32.mrf.mxu3 }
 0x595   : > { %v4672_v7 = vadd.f32 %v4671_v48, %v4559_v33  ;;  %v4562_v33 = vadd.f32 %v9167_v16, %v10500_v25  ;;  %v3916_v16 = vrot.slane %v9265_v39, 1  ;;  %v10504_v25 = vld [vmem:[#allocation34_spill] sm:$0xff] }
 0x597   : > { %v9251_v11 = vadd.f32 %v4784_v52, %v4672_v7  ;;  %v9258_v53 = vpop.f32.mrf.mxu1  ;;  %v3643_v7 = vsel %vm764_vm0, %v10446_v28, %v3642_v19  ;;  %v10503_v28 = vld [vmem:[#allocation35_spill] sm:$0xff] }
 0x599   : > { %10498 = vst [vmem:[#allocation53_spill] sm:$0xff] %v9251_v11  ;;  %4721 = vmatmul.f32.gmra.mxu2 %v3745_v56  ;;  %4834 = vmatmul.f32.gmra.mxu3 %v9123_v47  ;;  %v9269_v56 = vpop.f32.mrf.mxu0 }
 0x59a   : > { %4959 = vmatmul.f32.gmra.mxu0 %v3915_v61  ;;  %4620 = vmatmul.f32.gmra.mxu1 %v3643_v7  ;;  %10501 = vst [vmem:[#allocation78_spill] sm:$0xff] %v9269_v56  ;;  %v3918_v61 = vsel %vm764_vm0, %v3916_v16, %v3917_v1  ;;  %v3749_v7 = vrot.slane %v9203_v32, 2 }
 0x59c   : > { %v4674_v48 = vpop.f32.mrf.mxu2  ;;  %v4787_v52 = vpop.f32.mrf.mxu3 }
 0x59d   : > { %v4675_v63 = vadd.f32 %v4674_v48, %v4562_v33  ;;  %v4565_v33 = vadd.f32 %v9195_v26, %v10504_v25  ;;  %v3750_v26 = vsel %vm877_vm1, %v10507_v29, %v3749_v7 }
 0x59f   : > { %v9271_v36 = vadd.f32 %v4787_v52, %v4675_v63  ;;  %v9280_v19 = vpop.f32.mrf.mxu1  ;;  %v9286_v63 = vld [vmem:[#allocation2 + $0x160] sm:$0x3] }
 0x5a0   : > { %v3919_v23 = vrot.slane %v9286_v63, 1 }
 0x5a1   : > { %10502 = vst [vmem:[#allocation68_spill] sm:$0xff] %v9271_v36  ;;  %4724 = vmatmul.f32.gmra.mxu2 %v10503_v28  ;;  %4837 = vmatmul.f32.gmra.mxu3 %v9174_v10  ;;  %v9289_v28 = vld [vmem:[#allocation2 + $0x148] sm:$0x3]  ;;  %v9297_v25 = vpop.f32.mrf.mxu0 }
 0x5a2   : > { %4962 = vmatmul.f32.gmra.mxu0 %v3918_v61  ;;  %4623 = vmatmul.f32.gmra.mxu1 %v10505_v59  ;;  %v3647_v16 = vrot.slane %v9289_v28, 1  ;;  %10508 = vst [vmem:[#allocation65_spill] sm:$0xff] %v9297_v25  ;;  %v10510_v59 = vld [vmem:[#allocation66_spill] sm:$0xff] }
 0x5a4   : > { %v4677_v48 = vpop.f32.mrf.mxu2  ;;  %v4790_v52 = vpop.f32.mrf.mxu3  ;;  %v3648_v29 = vsel %vm764_vm0, %v10510_v59, %v3647_v16 }
 0x5a5   : > { %v4678_v58 = vadd.f32 %v4677_v48, %v4565_v33  ;;  %v10509_v33 = vld [vmem:[#allocation70_spill] sm:$0xff] }
 0x5a6   : > { %v4568_v61 = vadd.f32 %v9216_v9, %v10509_v33  ;;  %v9315_v9 = vrot.slane %v9312_v21, 1 }
 0x5a7   : > { %v9291_v6 = vadd.f32 %v4790_v52, %v4678_v58  ;;  %v9300_v32 = vpop.f32.mrf.mxu1  ;;  %v3920_v58 = vsel %vm764_vm0, %v3917_v1, %v3919_v23  ;;  %v3106_v23 = vld [vmem:[%s10176_s5 + $0x410] sm:$0xff]  ;;  %v10512_v1 = vld [vmem:[#allocation37_spill] sm:$0xff] }
 0x5a8   : > { %5000 = vmatpush.msra.mxu1 %v3106_v23 }
 0x5a9   : > { %10506 = vst [vmem:[#allocation79_spill] sm:$0xff] %v9291_v6  ;;  %4727 = vmatmul.f32.gmra.mxu2 %v3750_v26  ;;  %4840 = vmatmul.f32.gmra.mxu3 %v9176_v15  ;;  %v9309_v26 = vld [vmem:[#allocation2 + $0x198] sm:$0xff]  ;;  %v9324_v33 = vpop.f32.mrf.mxu0  ;;  %v10518_v6 = vld [vmem:[#allocation58_spill] sm:$0xff] }
 0x5aa   : > { %4965 = vmatmul.f32.gmra.mxu0 %v3920_v58  ;;  %4626 = vmatmul.f32.gmra.mxu1 %v3648_v29  ;;  %v3921_v2 = vrot.slane %v9309_v26, 1  ;;  %10513 = vst [vmem:[#allocation35_spill] sm:$0xff] %v9324_v33  ;;  %v3754_v29 = vrot.slane %v9249_v30, 2  ;;  %v3652_v33 = vrot.slane %v9337_v51, 1 }
 0x5ac   : > { %v4680_v48 = vpop.f32.mrf.mxu2  ;;  %v4793_v52 = vpop.f32.mrf.mxu3 }
 0x5ad   : > { %v4681_v7 = vadd.f32 %v4680_v48, %v4568_v61  ;;  %v10514_v61 = vld [vmem:[#allocation69_spill] sm:$0xff]  ;;  %v9330_v48 = vsel %vm764_vm0, %v3921_v2, %v9315_v9 }
 0x5ae   : > { %v4571_v58 = vadd.f32 %v9238_v18, %v10514_v61  ;;  %v10517_v61 = vld [vmem:[#allocation62_spill] sm:$0xff] }
 0x5af   : > { %v9307_v42 = vadd.f32 %v4793_v52, %v4681_v7  ;;  %v9322_v16 = vpop.f32.mrf.mxu1  ;;  %v9334_v7 = vld [vmem:[#allocation2 + $0x178] sm:$0x3]  ;;  %v3755_v2 = vsel %vm877_vm1, %v10517_v61, %v3754_v29  ;;  %v9354_v29 = vld [vmem:[#allocation2 + $0x180] sm:$0xff]  ;;  %v9356_v61 = vld [vmem:[#allocation2 + $0x188] sm:$0xff] }
 0x5b0   : > { %v3924_v18 = vrot.slane %v9334_v7, 1 }
 0x5b1   : > { %10511 = vst [vmem:[#allocation67_spill] sm:$0xff] %v9307_v42  ;;  %4730 = vmatmul.f32.gmra.mxu2 %v10512_v1  ;;  %4843 = vmatmul.f32.gmra.mxu3 %v9225_v44  ;;  %v10515_v1 = vld [vmem:[#allocation48_spill] sm:$0xff] }
 0x5b2   : > { %4968 = vmatmul.f32.gmra.mxu0 %v9330_v48  ;;  %4629 = vmatmul.f32.gmra.mxu1 %v10515_v1  ;;  %v3653_v1 = vsel %vm764_vm0, %v8277_v14, %v3652_v33  ;;  %v10521_v14 = vld [vmem:[#allocation40_spill] sm:$0xff] }
 0x5b4   : > { %v4683_v52 = vpop.f32.mrf.mxu2  ;;  %v4796_v59 = vpop.f32.mrf.mxu3 }
 0x5b5   : > { %v4684_v23 = vadd.f32 %v4683_v52, %v4571_v58  ;;  %v4574_v58 = vadd.f32 %v9258_v53, %v10518_v6  ;;  %v3925_v52 = vsel %vm764_vm0, %v9315_v9, %v3924_v18  ;;  %v3926_v6 = vrot.slane %v9354_v29, 1  ;;  %v3105_v18 = vld [vmem:[%s10176_s5 + $0x408] sm:$0xff] }
 0x5b6   : > { %v3927_v53 = vrot.slane %v9356_v61, 1  ;;  %5001 = vmatpush.msra.mxu1 %v3105_v18  ;;  %v10524_v18 = vld [vmem:[#allocation72_spill] sm:$0xff] }
 0x5b7   : > { %v9339_v42 = vadd.f32 %v4796_v59, %v4684_v23  ;;  %v9346_v30 = vpop.f32.mrf.mxu1 }
 0x5b9   : > { %10516 = vst [vmem:[#allocation34_spill] sm:$0xff] %v9339_v42  ;;  %4733 = vmatmul.f32.gmra.mxu2 %v3755_v2  ;;  %4846 = vmatmul.f32.gmra.mxu3 %v9227_v49  ;;  %v9358_v2 = vpop.f32.mrf.mxu0 }
 0x5ba   : > { %4971 = vmatmul.f32.gmra.mxu0 %v3925_v52  ;;  %10519 = vst [vmem:[#allocation39_spill] sm:$0xff] %v9358_v2  ;;  %4632 = vmatmul.f32.gmra.mxu1 %v3653_v1  ;;  %v10522_v52 = vld [vmem:[#allocation80_spill] sm:$0xff]  ;;  %v3759_v1 = vrot.slane %v9289_v28, 2 }
 0x5bc   : > { %v4686_v59 = vpop.f32.mrf.mxu2  ;;  %v4799_v23 = vpop.f32.mrf.mxu3 }
 0x5bd   : > { %v4687_v42 = vadd.f32 %v4686_v59, %v4574_v58  ;;  %v4577_v58 = vadd.f32 %v9280_v19, %v10522_v52  ;;  %v10526_v52 = vld [vmem:[#allocation36_spill] sm:$0xff] }
 0x5bf   : > { %v9360_v25 = vadd.f32 %v4799_v23, %v4687_v42  ;;  %v9369_v33 = vpop.f32.mrf.mxu1  ;;  %v3928_v42 = vsel %vm764_vm0, %v3926_v6, %v3927_v53  ;;  %v3760_v6 = vsel %vm877_vm1, %v10526_v52, %v3759_v1  ;;  %v3104_v52 = vld [vmem:[%s10176_s5 + $0x400] sm:$0xff] }
 0x5c0   : > { %5002 = vmatpush.msra.mxu1 %v3104_v52  ;;  %v9418_v52 = vld [vmem:[#allocation2 + $0x1a8] sm:$0x3] }
 0x5c1   : > { %10520 = vst [vmem:[#allocation47_spill] sm:$0xff] %v9360_v25  ;;  %4736 = vmatmul.f32.gmra.mxu2 %v10521_v14  ;;  %4849 = vmatmul.f32.gmra.mxu3 %v9265_v39  ;;  %v9375_v25 = vld [vmem:[#allocation2 + $0x190] sm:$0x3]  ;;  %v9378_v14 = vld [vmem:[#allocation2 + $0x178] sm:$0x3]  ;;  %v9380_v36 = vpop.f32.mrf.mxu0  ;;  %v3934_v0 = vrot.slane %v9418_v52, 1 }
 0x5c2   : > { %4974 = vmatmul.f32.gmra.mxu0 %v3928_v42  ;;  %10523 = vst [vmem:[#allocation70_spill] sm:$0xff] %v9375_v25  ;;  %4635 = vmatmul.f32.gmra.mxu1 %v10524_v18  ;;  %v3929_v19 = vrot.slane %v9375_v25, 1  ;;  %v3657_v11 = vrot.slane %v9378_v14, 1  ;;  %v10533_v25 = vld [vmem:[#allocation73_spill] sm:$0xff] }
 0x5c3   : > { %10525 = vst [vmem:[#allocation66_spill] sm:$0xff] %v9380_v36 }
 0x5c4   : > { %v4689_v59 = vpop.f32.mrf.mxu2  ;;  %v4802_v23 = vpop.f32.mrf.mxu3  ;;  %10531 = vst [vmem:[#allocation69_spill] sm:$0xff] %v9418_v52  ;;  %v3969_v52 = vrot.slane %v5648_v38, 2  ;;  %v10535_v38 = vld [vmem:[#allocation41_spill] sm:$0xff] }
 0x5c5   : > { %v4690_v2 = vadd.f32 %v4689_v59, %v4577_v58  ;;  %v10527_v58 = vld [vmem:[#allocation81_spill] sm:$0xff]  ;;  %v3930_v59 = vsel %vm764_vm0, %v3927_v53, %v3929_v19 }
 0x5c6   : > { %v4580_v42 = vadd.f32 %v9300_v32, %v10527_v58  ;;  %v9404_v58 = vld [vmem:[#allocation2 + $0x188] sm:$0xff] }
 0x5c7   : > { %v9382_v56 = vadd.f32 %v4802_v23, %v4690_v2  ;;  %v9389_v28 = vpop.f32.mrf.mxu1  ;;  %v3658_v23 = vsel %vm764_vm0, %v8302_v3, %v3657_v11  ;;  %v3660_v53 = vrot.slane %v9404_v58, 1  ;;  %v10529_v3 = vld [vmem:[#allocation49_spill] sm:$0xff]  ;;  %v10530_v11 = vld [vmem:[#allocation51_spill] sm:$0xff] }
 0x5c9   : > { %4739 = vmatmul.f32.gmra.mxu2 %v3760_v6  ;;  %4852 = vmatmul.f32.gmra.mxu3 %v9267_v31  ;;  %v9401_v6 = vld [vmem:[#allocation2 + $0x180] sm:$0xff]  ;;  %v9407_v19 = vpop.f32.mrf.mxu0 }
 0x5ca   : > { %4977 = vmatmul.f32.gmra.mxu0 %v3930_v59  ;;  %4638 = vmatmul.f32.gmra.mxu1 %v3658_v23  ;;  %v3659_v32 = vrot.slane %v9401_v6, 1  ;;  %10528 = vst [vmem:[#allocation37_spill] sm:$0xff] %v9407_v19 }
 0x5cc   : > { %v4692_v18 = vpop.f32.mrf.mxu2  ;;  %v4805_v2 = vpop.f32.mrf.mxu3  ;;  %v3661_v23 = vsel %vm764_vm0, %v3659_v32, %v3660_v53  ;;  %v4586_v32 = vadd.f32 %v9346_v30, %v8775_v17  ;;  %v10534_v30 = vld [vmem:[#allocation44_spill] sm:$0xff] }
 0x5cd   : > { %v4693_v36 = vadd.f32 %v4692_v18, %v4580_v42  ;;  %v4583_v42 = vadd.f32 %v9322_v16, %v10530_v11 }
 0x5cf   : > { %v9396_v1 = vadd.f32 %v4805_v2, %v4693_v36  ;;  %v9411_v36 = vpop.f32.mrf.mxu1  ;;  %v3764_v2 = vrot.slane %v9337_v51, 2 }
 0x5d1   : > { %4742 = vmatmul.f32.gmra.mxu2 %v10529_v3  ;;  %4855 = vmatmul.f32.gmra.mxu3 %v9309_v26  ;;  %v9420_v3 = vld [vmem:[#allocation2 + $0x190] sm:$0x3]  ;;  %v3765_v16 = vsel %vm877_vm1, %v10532_v57, %v3764_v2 }
 0x5d2   : > { %4980 = vmatmul.f32.gmra.mxu0 %v9330_v48  ;;  %4641 = vmatmul.f32.gmra.mxu1 %v3661_v23  ;;  %v3662_v11 = vrot.slane %v9420_v3, 1  ;;  %v9431_v48 = vpop.f32.mrf.mxu0  ;;  %v5647_v23 = vld [vmem:[#allocation2 + $0x30] sm:$0xff] }
 0x5d4   : > { %v4695_v59 = vpop.f32.mrf.mxu2  ;;  %v4808_v18 = vpop.f32.mrf.mxu3  ;;  %v3663_v57 = vsel %vm764_vm0, %v3660_v53, %v3662_v11  ;;  %v3769_v53 = vrot.slane %v9378_v14, 2  ;;  %v4592_v14 = vadd.f32 %v9389_v28, %v8822_v22 }
 0x5d5   : > { %v4696_v19 = vadd.f32 %v4695_v59, %v4583_v42 }
 0x5d7   : > { %v9422_v5 = vadd.f32 %v4808_v18, %v4696_v19  ;;  %v9429_v51 = vpop.f32.mrf.mxu1  ;;  %v3935_v19 = vsel %vm764_vm0, %v9315_v9, %v3934_v0  ;;  %v4589_v0 = vadd.f32 %v9369_v33, %v10534_v30 }
 0x5d9   : > { %4745 = vmatmul.f32.gmra.mxu2 %v3765_v16  ;;  %4858 = vmatmul.f32.gmra.mxu3 %v9312_v21  ;;  %v3968_v16 = vrot.slane %v5647_v23, 2  ;;  %v3771_v23 = vrot.slane %v9401_v6, 2  ;;  %v4595_v6 = vadd.f32 %v9411_v36, %v8849_v24  ;;  %v4598_v36 = vadd.f32 %v9429_v51, %v8870_v27 }
 0x5da   : > { %4983 = vmatmul.f32.gmra.mxu0 %v3935_v19  ;;  %4644 = vmatmul.f32.gmra.mxu1 %v3663_v57  ;;  %v5649_v57 = vld [vmem:[#allocation2 + $0x40] sm:$0x3] }
 0x5db   : > { %v3970_v11 = vsel %vm877_vm1, %v3968_v16, %v3969_v52  ;;  %v3772_v16 = vrot.slane %v9404_v58, 2 }
 0x5dc   : > { %v4698_v42 = vpop.f32.mrf.mxu2  ;;  %v4811_v59 = vpop.f32.mrf.mxu3 }
 0x5dd   : > { %v4699_v18 = vadd.f32 %v4698_v42, %v4586_v32  ;;  %v9446_v32 = vpop.f32.mrf.mxu0 }
 0x5df   : > { %v9438_v2 = vadd.f32 %v4811_v59, %v4699_v18  ;;  %v4600_v17 = vpop.f32.mrf.mxu1  ;;  %v3971_v18 = vrot.slane %v5649_v57, 2  ;;  %v5651_v57 = vld [vmem:[#allocation2 + $0x50] sm:$0xff] }
 0x5e0   : > { %v3974_v22 = vrot.slane %v5651_v57, 2 }
 0x5e1   : > { %4748 = vmatmul.f32.gmra.mxu2 %v10533_v25  ;;  %4861 = vmatmul.f32.gmra.mxu3 %v9354_v29  ;;  %v3770_v25 = vsel %vm877_vm1, %v10535_v38, %v3769_v53  ;;  %v5650_v38 = vld [vmem:[#allocation2 + $0x48] sm:$0xff] }
 0x5e2   : > { %5003 = vmatmul.f32.vlgmr.msra.gmra.mxu1 %v3970_v11 }
 0x5e4   : > { %v4701_v9 = vpop.f32.mrf.mxu2  ;;  %v4814_v19 = vpop.f32.mrf.mxu3 }
 0x5e5   : > { %v4702_v42 = vadd.f32 %v4701_v9, %v4589_v0  ;;  %v3972_v9 = vsel %vm877_vm1, %v3969_v52, %v3971_v18  ;;  %v9458_v53 = vpop.f32.mrf.mxu0  ;;  %v3774_v18 = vrot.slane %v9420_v3, 2 }
 0x5e7   : > { %v9448_v59 = vadd.f32 %v4814_v19, %v4702_v42  ;;  %v4603_v33 = vpop.f32.mrf.mxu1  ;;  %v3773_v42 = vsel %vm877_vm1, %v3771_v23, %v3772_v16 }
 0x5e9   : > { %4751 = vmatmul.f32.gmra.mxu2 %v3770_v25  ;;  %4864 = vmatmul.f32.gmra.mxu3 %v9356_v61  ;;  %v3973_v25 = vrot.slane %v5650_v38, 2 }
 0x5ea   : > { %5006 = vmatmul.f32.gmra.mxu1 %v3972_v9  ;;  %v5652_v9 = vld [vmem:[#allocation2 + $0x58] sm:$0x3] }
 0x5ec   : > { %v4704_v30 = vpop.f32.mrf.mxu2  ;;  %v4817_v0 = vpop.f32.mrf.mxu3 }
 0x5ed   : > { %v4705_v19 = vadd.f32 %v4704_v30, %v4592_v14  ;;  %v3975_v14 = vsel %vm877_vm1, %v3973_v25, %v3974_v22 }
 0x5ef   : > { %v9460_v11 = vadd.f32 %v4817_v0, %v4705_v19  ;;  %v4606_v28 = vpop.f32.mrf.mxu1  ;;  %v3775_v0 = vsel %vm877_vm1, %v3772_v16, %v3774_v18  ;;  %v3976_v19 = vrot.slane %v5652_v9, 2  ;;  %v5653_v16 = vld [vmem:[#allocation2 + $0x60] sm:$0xff] }
 0x5f1   : > { %4754 = vmatmul.f32.gmra.mxu2 %v3773_v42  ;;  %4867 = vmatmul.f32.gmra.mxu3 %v9309_v26  ;;  %v9471_v42 = vpop.f32.mrf.mxu0  ;;  %v3977_v25 = vsel %vm877_vm1, %v3974_v22, %v3976_v19  ;;  %v5655_v19 = vld [vmem:[#allocation2 + $0x70] sm:$0x3] }
 0x5f2   : > { %5009 = vmatmul.f32.gmra.mxu1 %v3975_v14 }
 0x5f4   : > { %v4707_v58 = vpop.f32.mrf.mxu2  ;;  %v4820_v52 = vpop.f32.mrf.mxu3 }
 0x5f5   : > { %v4708_v30 = vadd.f32 %v4707_v58, %v4595_v6  ;;  %v3978_v58 = vrot.slane %v5653_v16, 2 }
 0x5f7   : > { %v9468_v23 = vadd.f32 %v4820_v52, %v4708_v30  ;;  %v4609_v24 = vpop.f32.mrf.mxu1  ;;  %v5654_v52 = vld [vmem:[#allocation2 + $0x68] sm:$0xff] }
 0x5f8   : > { %v3979_v18 = vrot.slane %v5654_v52, 2 }
 0x5f9   : > { %10536 = vst [vmem:[#allocation48_spill] sm:$0xff] %v9468_v23  ;;  %4757 = vmatmul.f32.gmra.mxu2 %v3775_v0  ;;  %4870 = vmatmul.f32.gmra.mxu3 %v9312_v21  ;;  %v9479_v30 = vpop.f32.mrf.mxu0  ;;  %v4601_v0 = vadd.f32 %v4600_v17, %v8899_v8 }
 0x5fa   : > { %5012 = vmatmul.f32.gmra.mxu1 %v3977_v25  ;;  %v3980_v27 = vsel %vm877_vm1, %v3978_v58, %v3979_v18  ;;  %v5656_v58 = vld [vmem:[#allocation2 + $0x78] sm:$0xff] }
 0x5fc   : > { %v4710_v3 = vpop.f32.mrf.mxu2  ;;  %v4823_v38 = vpop.f32.mrf.mxu3 }
 0x5fd   : > { %v4711_v57 = vadd.f32 %v4710_v3, %v4598_v36  ;;  %v3981_v36 = vrot.slane %v5655_v19, 2 }
 0x5ff   : > { %v9477_v6 = vadd.f32 %v4823_v38, %v4711_v57  ;;  %v4612_v14 = vpop.f32.mrf.mxu1  ;;  %v4604_v38 = vadd.f32 %v4603_v33, %v8923_v46  ;;  %v3982_v16 = vsel %vm877_vm1, %v3979_v18, %v3981_v36 }
 0x601   : > { %v9489_v52 = vpop.f32.mrf.mxu0 }
 0x602   : > { %5015 = vmatmul.f32.gmra.mxu1 %v3980_v27 }
 0x604   : > { %v4713_v9 = vpop.f32.mrf.mxu2  ;;  %v4826_v23 = vpop.f32.mrf.mxu3 }
 0x605   : > { %v4714_v51 = vadd.f32 %v4713_v9, %v4601_v0  ;;  %v3983_v0 = vrot.slane %v5656_v58, 2 }
 0x607   : > { %v9483_v22 = vadd.f32 %v4826_v23, %v4714_v51  ;;  %v9485_v3 = vpop.f32.mrf.mxu1  ;;  %v5657_v23 = vld [vmem:[#allocation2 + $0x80] sm:$0xff]  ;;  %v4607_v51 = vadd.f32 %v4606_v28, %v8949_v60 }
 0x608   : > { %10537 = vst [vmem:[#allocation62_spill] sm:$0xff] %v9485_v3  ;;  %v3984_v9 = vrot.slane %v5657_v23, 2 }
 0x609   : > { %v9497_v18 = vpop.f32.mrf.mxu0 }
 0x60a   : > { %5018 = vmatmul.f32.gmra.mxu1 %v3982_v16  ;;  %v3985_v33 = vsel %vm877_vm1, %v3983_v0, %v3984_v9  ;;  %v4610_v16 = vadd.f32 %v4609_v24, %v8976_v13  ;;  %v5659_v0 = vld [vmem:[#allocation2 + $0x90] sm:$0xff] }
 0x60c   : > { %v4716_v25 = vpop.f32.mrf.mxu2  ;;  %v4829_v57 = vpop.f32.mrf.mxu3 }
 0x60d   : > { %v4717_v8 = vadd.f32 %v4716_v25, %v4604_v38  ;;  %v5658_v38 = vld [vmem:[#allocation2 + $0x88] sm:$0x3] }
 0x60e   : > { %v3986_v25 = vrot.slane %v5658_v38, 2  ;;  %v4613_v38 = vadd.f32 %v4612_v14, %v9002_v54 }
 0x60f   : > { %v9491_v17 = vadd.f32 %v4829_v57, %v4717_v8  ;;  %v9493_v27 = vpop.f32.mrf.mxu1 }
 0x610   : > { %v3987_v60 = vsel %vm877_vm1, %v3984_v9, %v3986_v25 }
 0x612   : > { %5021 = vmatmul.f32.gmra.mxu1 %v3985_v33 }
 0x614   : > { %v4719_v19 = vpop.f32.mrf.mxu2  ;;  %v4832_v46 = vpop.f32.mrf.mxu3 }
 0x615   : > { %v4720_v3 = vadd.f32 %v4719_v19, %v4607_v51  ;;  %v3988_v51 = vrot.slane %v5659_v0, 2  ;;  %v5660_v19 = vld [vmem:[#allocation2 + $0x98] sm:$0xff]  ;;  %v5662_v0 = vld [vmem:[#allocation2 + $0xa8] sm:$0xff] }
 0x616   : > { %v3989_v33 = vrot.slane %v5660_v19, 2  ;;  %v3993_v19 = vrot.slane %v5662_v0, 2  ;;  %v4001_v0 = vrot.slane %v8998_v62, 2  ;;  %v4006_v62 = vrot.slane %v9048_v43, 2 }
 0x617   : > { %v9499_v36 = vadd.f32 %v4832_v46, %v4720_v3  ;;  %v9501_v57 = vpop.f32.mrf.mxu1  ;;  %v9507_v3 = vpop.f32.mrf.mxu0 }
 0x618   : > { %10538 = vst [vmem:[#allocation58_spill] sm:$0xff] %v9501_v57  ;;  %v3990_v13 = vsel %vm877_vm1, %v3988_v51, %v3989_v33 }
 0x61a   : > { %5024 = vmatmul.f32.gmra.mxu1 %v3987_v60 }
 0x61c   : > { %v4722_v8 = vpop.f32.mrf.mxu2  ;;  %v4835_v58 = vpop.f32.mrf.mxu3 }
 0x61d   : > { %v4723_v28 = vadd.f32 %v4722_v8, %v4610_v16  ;;  %v5661_v16 = vld [vmem:[#allocation2 + $0xa0] sm:$0x3] }
 0x61e   : > { %v3991_v8 = vrot.slane %v5661_v16, 2  ;;  %v3998_v16 = vrot.slane %v8970_v34, 2  ;;  %v4004_v34 = vrot.slane %v9025_v55, 2 }
 0x61f   : > { %v9505_v23 = vadd.f32 %v4835_v58, %v4723_v28  ;;  %v9509_v46 = vpop.f32.mrf.mxu1  ;;  %v9515_v60 = vpop.f32.mrf.mxu0 }
 0x620   : > { %10539 = vst [vmem:[#allocation40_spill] sm:$0xff] %v9509_v46  ;;  %v3992_v28 = vsel %vm877_vm1, %v3989_v33, %v3991_v8  ;;  %v5663_v46 = vld [vmem:[#allocation2 + $0xb0] sm:$0xff] }
 0x621   : > { %v3994_v54 = vrot.slane %v5663_v46, 2  ;;  %v3999_v46 = vrot.slane %v8972_v12, 2 }
 0x622   : > { %5027 = vmatmul.f32.gmra.mxu1 %v3990_v13 }
 0x624   : > { %v4725_v57 = vpop.f32.mrf.mxu2  ;;  %v4838_v9 = vpop.f32.mrf.mxu3 }
 0x625   : > { %v4726_v24 = vadd.f32 %v4725_v57, %v4613_v38  ;;  %v3995_v57 = vsel %vm877_vm1, %v3993_v19, %v3994_v54  ;;  %v5664_v38 = vld [vmem:[#allocation2 + $0xb8] sm:$0x3] }
 0x626   : > { %v3996_v13 = vrot.slane %v5664_v38, 2  ;;  %v4003_v38 = vrot.slane %v9023_v50, 2  ;;  %v4009_v50 = vrot.slane %v9075_v20, 2  ;;  %v4016_v20 = vrot.slane %v9146_v45, 2 }
 0x627   : > { %v4839_v25 = vadd.f32 %v4838_v9, %v4726_v24  ;;  %v9513_v58 = vpop.f32.mrf.mxu1  ;;  %v9521_v51 = vpop.f32.mrf.mxu0 }
 0x628   : > { %v3997_v9 = vsel %vm877_vm1, %v3994_v54, %v3996_v13  ;;  %v4002_v54 = vsel %vm877_vm1, %v3999_v46, %v4001_v0 }
 0x62a   : > { %5030 = vmatmul.f32.gmra.mxu1 %v3992_v28  ;;  %v4000_v28 = vsel %vm877_vm1, %v3998_v16, %v3999_v46  ;;  %v4008_v46 = vrot.slane %v9073_v40, 2 }
 0x62c   : > { %v4010_v0 = vsel %vm877_vm1, %v4008_v46, %v4009_v50 }
 0x62f   : > { %v9518_v14 = vpop.f32.mrf.mxu1  ;;  %v9526_v33 = vpop.f32.mrf.mxu0 }
 0x632   : > { %5033 = vmatmul.f32.gmra.mxu1 %v3995_v57 }
 0x637   : > { %v9523_v24 = vpop.f32.mrf.mxu1  ;;  %v9534_v19 = vpop.f32.mrf.mxu0 }
 0x63a   : > { %5036 = vmatmul.f32.gmra.mxu1 %v3997_v9  ;;  %v4005_v9 = vsel %vm877_vm1, %v4003_v38, %v4004_v34  ;;  %v4013_v38 = vrot.slane %v9121_v35, 2 }
 0x63f   : > { %v9530_v8 = vpop.f32.mrf.mxu1  ;;  %v4951_v12 = vpop.f32.mrf.mxu0 }
 0x640   : > { %v9544_v16 = vadd.f32 %v4951_v12, %v4839_v25  ;;  %v4011_v25 = vrot.slane %v9098_v41, 2 }
 0x642   : > { %5039 = vmatmul.f32.gmra.mxu1 %v4000_v28  ;;  %v4012_v43 = vsel %vm877_vm1, %v4009_v50, %v4011_v25  ;;  %v4024_v25 = vrot.slane %v9227_v49, 2 }
 0x647   : > { %v9536_v57 = vpop.f32.mrf.mxu1 }
 0x648   : > { %10540 = vst [vmem:[#allocation80_spill] sm:$0xff] %v9536_v57  ;;  %v4007_v57 = vsel %vm877_vm1, %v4004_v34, %v4006_v62  ;;  %v4019_v62 = vrot.slane %v9176_v15, 2  ;;  %v4026_v15 = vrot.slane %v9244_v4, 2  ;;  %v4031_v4 = vrot.slane %v9286_v63, 2 }
 0x64a   : > { %5042 = vmatmul.f32.gmra.mxu1 %v4002_v54 }
 0x64f   : > { %v9541_v13 = vpop.f32.mrf.mxu1 }
 0x652   : > { %5045 = vmatmul.f32.gmra.mxu1 %v4005_v9  ;;  %v4018_v9 = vrot.slane %v9174_v10, 2 }
 0x654   : > { %v4020_v35 = vsel %vm877_vm1, %v4018_v9, %v4019_v62  ;;  %v4919_v9 = vadd.f32 %v9446_v32, %v9396_v1  ;;  %v4036_v1 = vrot.slane %v9334_v7, 2  ;;  %v4925_v32 = vadd.f32 %v9471_v42, %v9438_v2  ;;  %v10544_v2 = vld [vmem:[#allocation70_spill] sm:$0xff] }
 0x655   : > { %v4041_v42 = vrot.slane %v10544_v2, 2  ;;  %v10550_v2 = vld [vmem:[#allocation61_spill] sm:$0xff] }
 0x657   : > { %v9547_v28 = vpop.f32.mrf.mxu1 }
 0x65a   : > { %5048 = vmatmul.f32.gmra.mxu1 %v4007_v57  ;;  %v4014_v57 = vrot.slane %v9123_v47, 2  ;;  %v4021_v47 = vrot.slane %v9200_v37, 2  ;;  %v4027_v37 = vsel %vm877_vm1, %v4024_v25, %v4026_v15 }
 0x65c   : > { %v4015_v40 = vsel %vm877_vm1, %v4013_v38, %v4014_v57  ;;  %v4017_v41 = vsel %vm877_vm1, %v4014_v57, %v4016_v20  ;;  %v4022_v45 = vsel %vm877_vm1, %v4019_v62, %v4021_v47  ;;  %v4028_v57 = vrot.slane %v9265_v39, 2 }
 0x65f   : > { %v9552_v55 = vpop.f32.mrf.mxu1 }
 0x662   : > { %5051 = vmatmul.f32.gmra.mxu1 %v4010_v0  ;;  %v4023_v0 = vrot.slane %v9225_v44, 2  ;;  %v4916_v44 = vadd.f32 %v9431_v48, %v9382_v56  ;;  %v4034_v56 = vrot.slane %v9312_v21, 2  ;;  %v4922_v48 = vadd.f32 %v9458_v53, %v9422_v5 }
 0x663   : > { %v4038_v21 = vrot.slane %v9354_v29, 2  ;;  %v4039_v5 = vrot.slane %v9356_v61, 2  ;;  %v4928_v53 = vadd.f32 %v9479_v30, %v9448_v59  ;;  %v10546_v61 = vld [vmem:[#allocation48_spill] sm:$0xff] }
 0x664   : > { %v4025_v10 = vsel %vm877_vm1, %v4023_v0, %v4024_v25  ;;  %v4934_v59 = vadd.f32 %v9497_v18, %v10546_v61 }
 0x665   : > { %v4040_v7 = vsel %vm877_vm1, %v4038_v21, %v4039_v5  ;;  %v4042_v29 = vsel %vm877_vm1, %v4039_v5, %v4041_v42  ;;  %v10551_v42 = vld [vmem:[#allocation74_spill] sm:$0xff] }
 0x667   : > { %v9556_v54 = vpop.f32.mrf.mxu1 }
 0x66a   : > { %5054 = vmatmul.f32.gmra.mxu1 %v4012_v43 }
 0x66f   : > { %v9561_v34 = vpop.f32.mrf.mxu1 }
 0x672   : > { %5057 = vmatmul.f32.gmra.mxu1 %v4015_v40  ;;  %v4029_v40 = vrot.slane %v9267_v31, 2  ;;  %v4033_v31 = vrot.slane %v9309_v26, 2  ;;  %v4037_v26 = vsel %vm877_vm1, %v4034_v56, %v4036_v1  ;;  %v9647_v1 = vpop.f32.mrf.mxu0 }
 0x674   : > { %v4032_v39 = vsel %vm877_vm1, %v4029_v40, %v4031_v4  ;;  %v4035_v63 = vsel %vm877_vm1, %v4033_v31, %v4034_v56  ;;  %v4937_v4 = vadd.f32 %v9507_v3, %v9477_v6  ;;  %v4943_v31 = vadd.f32 %v9521_v51, %v9491_v17  ;;  %v9643_v6 = vpop.f32.mrf.mxu3 }
 0x675   : > { %v4946_v3 = vadd.f32 %v9526_v33, %v9499_v36  ;;  %v10549_v36 = vld [vmem:[#allocation71_spill] sm:$0xff] }
 0x677   : > { %v9565_v12 = vpop.f32.mrf.mxu1 }
 0x67a   : > { %5060 = vmatmul.f32.gmra.mxu1 %v4017_v41  ;;  %v4030_v41 = vsel %vm877_vm1, %v4028_v57, %v4029_v40 }
 0x67f   : > { %v9570_v46 = vpop.f32.mrf.mxu1 }
 0x682   : > { %5063 = vmatmul.f32.gmra.mxu1 %v4020_v35 }
 0x687   : > { %v9574_v50 = vpop.f32.mrf.mxu1 }
 0x68a   : > { %5066 = vmatmul.f32.gmra.mxu1 %v4022_v45 }
 0x68f   : > { %v9579_v43 = vpop.f32.mrf.mxu1 }
 0x692   : > { %5069 = vmatmul.f32.gmra.mxu1 %v4025_v10 }
 0x697   : > { %v9583_v38 = vpop.f32.mrf.mxu1 }
 0x69a   : > { %5072 = vmatmul.f32.gmra.mxu1 %v4027_v37  ;;  %v4931_v37 = vadd.f32 %v9489_v52, %v9460_v11 }
 0x69f   : > { %v5028_v49 = vpop.f32.mrf.mxu1 }
 0x6a0   : > { %v9590_v20 = vadd.f32 %v5028_v49, %v4916_v44  ;;  %v10547_v49 = vld [vmem:[#allocation69_spill] sm:$0xff] }
 0x6a2   : > { %5075 = vmatmul.f32.gmra.mxu1 %v4030_v41  ;;  %v4046_v41 = vrot.slane %v10547_v49, 2  ;;  %v10555_v49 = vld [vmem:[#allocation65_spill] sm:$0xff] }
 0x6a4   : > { %v4047_v52 = vsel %vm877_vm1, %v4034_v56, %v4046_v41 }
 0x6a7   : > { %v5031_v62 = vpop.f32.mrf.mxu1 }
 0x6a8   : > { %v9596_v35 = vadd.f32 %v5031_v62, %v4919_v9  ;;  %v4940_v62 = vadd.f32 %v9515_v60, %v9483_v22  ;;  %v4949_v60 = vadd.f32 %v9534_v19, %v9505_v23  ;;  %v10552_v19 = vld [vmem:[#allocation53_spill] sm:$0xff] }
 0x6aa   : > { %5078 = vmatmul.f32.gmra.mxu1 %v4032_v39 }
 0x6af   : > { %v5034_v47 = vpop.f32.mrf.mxu1 }
 0x6b0   : > { %v9603_v45 = vadd.f32 %v5034_v47, %v4922_v48  ;;  %v4728_v48 = vpop.f32.mrf.mxu2 }
 0x6b2   : > { %10541 = vst [vmem:[#allocation72_spill] sm:$0xff] %v9603_v45  ;;  %5081 = vmatmul.f32.gmra.mxu1 %v4035_v63 }
 0x6b7   : > { %v5037_v0 = vpop.f32.mrf.mxu1 }
 0x6b8   : > { %v9609_v25 = vadd.f32 %v5037_v0, %v4925_v32  ;;  %v4731_v22 = vpop.f32.mrf.mxu2  ;;  %v9653_v0 = vpop.f32.mrf.mxu3 }
 0x6ba   : > { %10542 = vst [vmem:[#allocation36_spill] sm:$0xff] %v9609_v25  ;;  %5084 = vmatmul.f32.gmra.mxu1 %v4037_v26  ;;  %v9657_v26 = vpop.f32.mrf.mxu0 }
 0x6bf   : > { %v5040_v10 = vpop.f32.mrf.mxu1 }
 0x6c0   : > { %v9616_v15 = vadd.f32 %v5040_v10, %v4928_v53  ;;  %v4734_v21 = vpop.f32.mrf.mxu2  ;;  %v10548_v53 = vld [vmem:[#allocation64_spill] sm:$0xff] }
 0x6c1   : > { %v4895_v33 = vadd.f32 %v10549_v36, %v10548_v53 }
 0x6c2   : > { %10543 = vst [vmem:[#allocation81_spill] sm:$0xff] %v9616_v15  ;;  %5087 = vmatmul.f32.gmra.mxu1 %v4040_v7  ;;  %v4847_v7 = vpop.f32.mrf.mxu3  ;;  %v9671_v61 = vpop.f32.mrf.mxu0 }
 0x6c3   : > { %v9667_v23 = vadd.f32 %v9556_v54, %v4895_v33 }
 0x6c7   : > { %v5043_v57 = vpop.f32.mrf.mxu1 }
 0x6c8   : > { %v9622_v40 = vadd.f32 %v5043_v57, %v4931_v37  ;;  %v4892_v37 = vadd.f32 %v10551_v42, %v10550_v2  ;;  %v10553_v57 = vld [vmem:[#allocation78_spill] sm:$0xff]  ;;  %v10562_v42 = vld [vmem:[#allocation47_spill] sm:$0xff] }
 0x6ca   : > { %10545 = vst [vmem:[#allocation49_spill] sm:$0xff] %v9622_v40  ;;  %5090 = vmatmul.f32.gmra.mxu1 %v4042_v29  ;;  %v4898_v29 = vadd.f32 %v10553_v57, %v10552_v19  ;;  %v4850_v36 = vpop.f32.mrf.mxu3  ;;  %v4963_v19 = vpop.f32.mrf.mxu0 }
 0x6cf   : > { %v5046_v30 = vpop.f32.mrf.mxu1 }
 0x6d0   : > { %v9627_v44 = vadd.f32 %v5046_v30, %v4934_v59  ;;  %v9674_v59 = vadd.f32 %v9552_v55, %v4892_v37  ;;  %v9677_v30 = vadd.f32 %v9561_v34, %v4898_v29  ;;  %v10558_v34 = vld [vmem:[#allocation67_spill] sm:$0xff] }
 0x6d2   : > { %5093 = vmatmul.f32.gmra.mxu1 %v4035_v63 }
 0x6d7   : > { %v5049_v9 = vpop.f32.mrf.mxu1 }
 0x6d8   : > { %v9632_v11 = vadd.f32 %v5049_v9, %v4937_v4  ;;  %v4737_v4 = vpop.f32.mrf.mxu2  ;;  %v5164_v9 = vadd.f32 %v9667_v23, %v9674_v59 }
 0x6da   : > { %5096 = vmatmul.f32.gmra.mxu1 %v4047_v52  ;;  %v10556_v52 = vld [vmem:[#allocation79_spill] sm:$0xff]  ;;  %v5165_v55 = vadd.f32 %v5164_v9, %v9677_v30 }
 0x6df   : > { %v5052_v39 = vpop.f32.mrf.mxu1 }
 0x6e0   : > { %v9637_v18 = vadd.f32 %v5052_v39, %v4940_v62  ;;  %v10557_v62 = vld [vmem:[#allocation35_spill] sm:$0xff] }
 0x6e1   : > { %v4904_v39 = vadd.f32 %v10557_v62, %v10556_v52  ;;  %v4853_v52 = vpop.f32.mrf.mxu3 }
 0x6e7   : > { %v5055_v47 = vpop.f32.mrf.mxu1 }
 0x6e8   : > { %v9641_v63 = vadd.f32 %v5055_v47, %v4943_v31  ;;  %v9690_v47 = vadd.f32 %v9570_v46, %v4904_v39  ;;  %v10563_v46 = vld [vmem:[#allocation37_spill] sm:$0xff]  ;;  %v4966_v39 = vpop.f32.mrf.mxu0 }
 0x6e9   : > { %v4913_v37 = vadd.f32 %v10563_v46, %v10562_v42  ;;  %v10566_v42 = vld [vmem:[#allocation52_spill] sm:$0xff] }
 0x6ea   : > { %v4619_v46 = vadd.f32 %v9493_v27, %v10566_v42  ;;  %v10572_v42 = vld [vmem:[#allocation46_spill] sm:$0xff] }
 0x6eb   : > { %v9708_v29 = vadd.f32 %v9583_v38, %v4913_v37 }
 0x6ef   : > { %v5058_v56 = vpop.f32.mrf.mxu1 }
 0x6f0   : > { %v9649_v32 = vadd.f32 %v5058_v56, %v4946_v3  ;;  %v10559_v3 = vld [vmem:[#allocation39_spill] sm:$0xff] }
 0x6f1   : > { %v4907_v56 = vadd.f32 %v10559_v3, %v10558_v34 }
 0x6f7   : > { %v5061_v17 = vpop.f32.mrf.mxu1 }
 0x6f8   : > { %v9655_v51 = vadd.f32 %v5061_v17, %v4949_v60  ;;  %v9696_v17 = vadd.f32 %v9574_v50, %v4907_v56  ;;  %v4740_v50 = vpop.f32.mrf.mxu2  ;;  %v10564_v56 = vld [vmem:[#allocation54_spill] sm:$0xff] }
 0x6ff   : > { %v5064_v5 = vpop.f32.mrf.mxu1 }
 0x700   : > { %v9662_v10 = vadd.f32 %v5064_v5, %v9544_v16  ;;  %v10554_v16 = vld [vmem:[#allocation68_spill] sm:$0xff]  ;;  %v10560_v5 = vld [vmem:[#allocation34_spill] sm:$0xff]  ;;  %v4743_v34 = vpop.f32.mrf.mxu2 }
 0x701   : > { %v4901_v41 = vadd.f32 %v10555_v49, %v10554_v16 }
 0x703   : > { %v9684_v54 = vadd.f32 %v9565_v12, %v4901_v41  ;;  %v10561_v12 = vld [vmem:[#allocation66_spill] sm:$0xff] }
 0x704   : > { %v4910_v53 = vadd.f32 %v10561_v12, %v10560_v5 }
 0x705   : > { %v5166_v60 = vadd.f32 %v5165_v55, %v9684_v54 }
 0x706   : > { %v9702_v2 = vadd.f32 %v9579_v43, %v4910_v53  ;;  %v4856_v53 = vpop.f32.mrf.mxu3 }
 0x707   : > { %v5067_v31 = vpop.f32.mrf.mxu1  ;;  %v5167_v33 = vadd.f32 %v5166_v60, %v9690_v47  ;;  %v10565_v60 = vld [vmem:[#allocation62_spill] sm:$0xff] }
 0x708   : > { %v4616_v5 = vadd.f32 %v10565_v60, %v10564_v56  ;;  %v10569_v60 = vld [vmem:[#allocation55_spill] sm:$0xff] }
 0x709   : > { %v5168_v57 = vadd.f32 %v5167_v33, %v9696_v17 }
 0x70a   : > { %v4729_v37 = vadd.f32 %v4728_v48, %v4616_v5  ;;  %v10571_v48 = vld [vmem:[#allocation63_spill] sm:$0xff] }
 0x70b   : > { %v5169_v49 = vadd.f32 %v5168_v57, %v9702_v2  ;;  %v4628_v5 = vadd.f32 %v9513_v58, %v10571_v48 }
 0x70c   : > { %v4842_v56 = vadd.f32 %v9643_v6, %v4729_v37 }
 0x70d   : > { %v5170_v41 = vadd.f32 %v5169_v49, %v9708_v29  ;;  %v10567_v49 = vld [vmem:[#allocation57_spill] sm:$0xff]  ;;  %v4741_v6 = vadd.f32 %v4740_v50, %v4628_v5 }
 0x70e   : > { %v10574_v5 = vld [vmem:[#allocation77_spill] sm:$0xff] }
 0x70f   : > { %v5070_v16 = vpop.f32.mrf.mxu1  ;;  %v5171_v9 = vadd.f32 %v5170_v41, %v9590_v20  ;;  %v10568_v41 = vld [vmem:[#allocation58_spill] sm:$0xff] }
 0x711   : > { %v5172_v43 = vadd.f32 %v5171_v9, %v9596_v35  ;;  %v4622_v9 = vadd.f32 %v10568_v41, %v10567_v49 }
 0x713   : > { %v5173_v55 = vadd.f32 %v5172_v43, %v9603_v45  ;;  %v4732_v43 = vadd.f32 %v4731_v22, %v4619_v46  ;;  %v4631_v46 = vadd.f32 %v9518_v14, %v10572_v42 }
 0x715   : > { %v5174_v3 = vadd.f32 %v5173_v55, %v9609_v25  ;;  %v4969_v55 = vpop.f32.mrf.mxu0  ;;  %v4735_v25 = vadd.f32 %v4734_v21, %v4622_v9  ;;  %v4845_v27 = vadd.f32 %v9653_v0, %v4732_v43  ;;  %v4955_v21 = vadd.f32 %v9647_v1, %v4842_v56  ;;  %v4859_v9 = vpop.f32.mrf.mxu3 }
 0x716   : > { %v4744_v41 = vadd.f32 %v4743_v34, %v4631_v46 }
 0x717   : > { %v5073_v62 = vpop.f32.mrf.mxu1  ;;  %v5175_v38 = vadd.f32 %v5174_v3, %v9616_v15  ;;  %v4746_v15 = vpop.f32.mrf.mxu2  ;;  %v4848_v49 = vadd.f32 %v4847_v7, %v4735_v25  ;;  %v9739_v43 = vadd.f32 %v5067_v31, %v4955_v21  ;;  %v4958_v58 = vadd.f32 %v9657_v26, %v4845_v27 }
 0x718   : > { %v4857_v50 = vadd.f32 %v4856_v53, %v4744_v41 }
 0x719   : > { %v5176_v12 = vadd.f32 %v5175_v38, %v9622_v40  ;;  %v10570_v38 = vld [vmem:[#allocation40_spill] sm:$0xff]  ;;  %v9745_v7 = vadd.f32 %v5070_v16, %v4958_v58  ;;  %v4961_v1 = vadd.f32 %v9671_v61, %v4848_v49 }
 0x71a   : > { %v4625_v40 = vadd.f32 %v10570_v38, %v10569_v60  ;;  %v4970_v61 = vadd.f32 %v4969_v55, %v4857_v50 }
 0x71b   : > { %v5177_v57 = vadd.f32 %v5176_v12, %v9627_v44  ;;  %v9749_v31 = vadd.f32 %v5073_v62, %v4961_v1  ;;  %v10578_v1 = vld [vmem:[#allocation45_spill] sm:$0xff] }
 0x71c   : > { %v4738_v12 = vadd.f32 %v4737_v4, %v4625_v40  ;;  %v4854_v4 = vadd.f32 %v4853_v52, %v4741_v6 }
 0x71d   : > { %v5178_v3 = vadd.f32 %v5177_v57, %v9632_v11  ;;  %v4972_v14 = vpop.f32.mrf.mxu0  ;;  %v4862_v53 = vpop.f32.mrf.mxu3 }
 0x71e   : > { %v4967_v52 = vadd.f32 %v4966_v39, %v4854_v4 }
 0x71f   : > { %v5076_v33 = vpop.f32.mrf.mxu1  ;;  %v5179_v45 = vadd.f32 %v5178_v3, %v9637_v18  ;;  %v4851_v3 = vadd.f32 %v4850_v36, %v4738_v12  ;;  %v4749_v34 = vpop.f32.mrf.mxu2 }
 0x721   : > { %v5180_v22 = vadd.f32 %v5179_v45, %v9641_v63  ;;  %v10573_v45 = vld [vmem:[#allocation76_spill] sm:$0xff]  ;;  %v4964_v60 = vadd.f32 %v4963_v19, %v4851_v3 }
 0x722   : > { %v4634_v40 = vadd.f32 %v9523_v24, %v10573_v45 }
 0x723   : > { %v5181_v37 = vadd.f32 %v5180_v22, %v9649_v32  ;;  %v9752_v24 = vadd.f32 %v5076_v33, %v4964_v60 }
 0x724   : > { %v4747_v36 = vadd.f32 %v4746_v15, %v4634_v40  ;;  %v4637_v15 = vadd.f32 %v9530_v8, %v10574_v5 }
 0x725   : > { %v5182_v0 = vadd.f32 %v5181_v37, %v9655_v51  ;;  %v4975_v19 = vpop.f32.mrf.mxu0  ;;  %v10575_v37 = vld [vmem:[#allocation50_spill] sm:$0xff]  ;;  %v4865_v8 = vpop.f32.mrf.mxu3 }
 0x726   : > { %v4860_v27 = vadd.f32 %v4859_v9, %v4747_v36  ;;  %v4750_v22 = vadd.f32 %v4749_v34, %v4637_v15  ;;  %v10577_v9 = vld [vmem:[#allocation80_spill] sm:$0xff] }
 0x727   : > { %v5079_v57 = vpop.f32.mrf.mxu1  ;;  %v5183_v25 = vadd.f32 %v5182_v0, %v9662_v10  ;;  %v4752_v46 = vpop.f32.mrf.mxu2 }
 0x728   : > { %v9755_v48 = vadd.f32 %v5079_v57, %v4967_v52  ;;  %v4973_v33 = vadd.f32 %v4972_v14, %v4860_v27  ;;  %v10576_v57 = vld [vmem:[#allocation60_spill] sm:$0xff]  ;;  %v4863_v55 = vadd.f32 %v4862_v53, %v4750_v22 }
 0x729   : > { %v5184_v56 = vadd.f32 %v5183_v25, %v9739_v43  ;;  %v4527_v21 = vadd.f32 %v10576_v57, %v10575_v37  ;;  %v10579_v14 = vld [vmem:[#allocation56_spill] sm:$0xff] }
 0x72a   : > { %v4976_v58 = vadd.f32 %v4975_v19, %v4863_v55  ;;  %v4530_v50 = vadd.f32 %v10579_v14, %v10578_v1 }
 0x72b   : > { %v5185_v38 = vadd.f32 %v5184_v56, %v9745_v7  ;;  %v4640_v3 = vadd.f32 %v10577_v9, %v4527_v21 }
 0x72c   : > { %v4643_v56 = vadd.f32 %v9541_v13, %v4530_v50 }
 0x72d   : > { %v5186_v16 = vadd.f32 %v5185_v38, %v9749_v31  ;;  %v4753_v0 = vadd.f32 %v4752_v46, %v4640_v3  ;;  %v4978_v4 = vpop.f32.mrf.mxu0  ;;  %v4868_v38 = vpop.f32.mrf.mxu3 }
 0x72f   : > { %v5082_v26 = vpop.f32.mrf.mxu1  ;;  %v5187_v62 = vadd.f32 %v5186_v16, %v9752_v24  ;;  %v4755_v25 = vpop.f32.mrf.mxu2  ;;  %v4866_v34 = vadd.f32 %v4865_v8, %v4753_v0  ;;  %v10580_v16 = vld [vmem:[#allocation75_spill] sm:$0xff] }
 0x730   : > { %v5083_v12 = vadd.f32 %v5082_v26, %v4970_v61  ;;  %v4756_v60 = vadd.f32 %v4755_v25, %v4643_v56  ;;  %v10581_v61 = vld [vmem:[#allocation59_spill] sm:$0xff] }
 0x731   : > { %v5188_v42 = vadd.f32 %v5187_v62, %v9755_v48  ;;  %v4979_v26 = vadd.f32 %v4978_v4, %v4866_v34  ;;  %v4533_v53 = vadd.f32 %v10581_v61, %v10580_v16 }
 0x732   : > { %v4869_v5 = vadd.f32 %v4868_v38, %v4756_v60 }
 0x733   : > { %v5189_v49 = vadd.f32 %v5188_v42, %v5083_v12  ;;  %v4646_v22 = vadd.f32 %v9547_v28, %v4533_v53 }
 0x735   : > { %v4981_v62 = vpop.f32.mrf.mxu0 }
 0x737   : > { %v5085_v39 = vpop.f32.mrf.mxu1  ;;  %v4758_v19 = vpop.f32.mrf.mxu2 }
 0x738   : > { %v5086_v6 = vadd.f32 %v5085_v39, %v4973_v33  ;;  %v4759_v42 = vadd.f32 %v4758_v19, %v4646_v22  ;;  %v4982_v33 = vadd.f32 %v4981_v62, %v4869_v5  ;;  %v10582_v22 = vld [vmem:[#allocation72_spill] sm:$0xff] }
 0x73a   : > { %v5190_v41 = vadd.f32 %v5189_v49, %v5086_v6  ;;  %v4871_v49 = vpop.f32.mrf.mxu3 }
 0x73b   : > { %v4872_v13 = vadd.f32 %v4871_v49, %v4759_v42 }
 0x73d   : > { %v4984_v57 = vpop.f32.mrf.mxu0 }
 0x73e   : > { %v4985_v21 = vadd.f32 %v4984_v57, %v4872_v13  ;;  %v10584_v13 = vld [vmem:[#allocation81_spill] sm:$0xff] }
 0x73f   : > { %v5088_v45 = vpop.f32.mrf.mxu1 }
 0x740   : > { %v5089_v40 = vadd.f32 %v5088_v45, %v4976_v58 }
 0x742   : > { %v5191_v36 = vadd.f32 %v5190_v41, %v5089_v40 }
 0x747   : > { %v5091_v52 = vpop.f32.mrf.mxu1 }
 0x748   : > { %v5092_v27 = vadd.f32 %v5091_v52, %v4979_v26 }
 0x74a   : > { %v5192_v15 = vadd.f32 %v5191_v36, %v5092_v27 }
 0x74f   : > { %v5094_v46 = vpop.f32.mrf.mxu1 }
 0x750   : > { %v5095_v39 = vadd.f32 %v5094_v46, %v4982_v33  ;;  %v10583_v46 = vld [vmem:[#allocation36_spill] sm:$0xff] }
 0x752   : > { %v5193_v37 = vadd.f32 %v5192_v15, %v5095_v39 }
 0x757   : > { %v5097_v55 = vpop.f32.mrf.mxu1 }
 0x758   : > { %v5098_v41 = vadd.f32 %v5097_v55, %v4985_v21  ;;  %v10585_v55 = vld [vmem:[#allocation49_spill] sm:$0xff] }
 0x75a   : > { %v5194_v9 = vadd.f32 %v5193_v37, %v5098_v41 }
 0x75c   : > { %v5195_v3 = vrot.slane %v5194_v9, 4 }
 0x75e   : > { %v5196_v8 = vadd.f32 %v5195_v3, %v5194_v9 }
 0x760   : > { %v5197_v0 = vrot.slane %v5196_v8, 2 }
 0x762   : > { %v5198_v58 = vadd.f32 %v5197_v0, %v5196_v8 }
 0x764   : > { %v5199_v45 = vrot.slane %v5198_v58, 1 }
 0x766   : > { %v5200_v4 = vadd.f32 %v5199_v45, %v5198_v58 }
 0x768   : > { %v9770_v25 = vmul.f32 0.00390625, %v5200_v4 }
 0x76a   : > { %v9773_v28 = vsub.f32 %v5083_v12, %v9770_v25  ;;  %v9776_v1 = vsub.f32 %v5086_v6, %v9770_v25  ;;  %v9779_v14 = vsub.f32 %v5089_v40, %v9770_v25  ;;  %v9782_v50 = vsub.f32 %v5092_v27, %v9770_v25 }
 0x76b   : > { %v9785_v34 = vsub.f32 %v5095_v39, %v9770_v25  ;;  %v9788_v36 = vsub.f32 %v5098_v41, %v9770_v25  ;;  %v9792_v56 = vsub.f32 %v9674_v59, %v9770_v25  ;;  %v9796_v12 = vsub.f32 %v9667_v23, %v9770_v25 }
 0x76c   : > { %v9800_v6 = vsub.f32 %v9677_v30, %v9770_v25  ;;  %v9808_v26 = vsub.f32 %v9684_v54, %v9770_v25  ;;  %v9812_v59 = vsub.f32 %v9690_v47, %v9770_v25  ;;  %v9818_v30 = vsub.f32 %v9696_v17, %v9770_v25 }
 0x76d   : > { %v5234_v40 = vmul.f32 %v9792_v56, %v9792_v56  ;;  %v5235_v60 = vmul.f32 %v9796_v12, %v9796_v12  ;;  %v9824_v54 = vsub.f32 %v9702_v2, %v9770_v25  ;;  %v9830_v61 = vsub.f32 %v9708_v29, %v9770_v25 }
 0x76e   : > { %v5236_v23 = vmul.f32 %v9800_v6, %v9800_v6  ;;  %v5237_v52 = vmul.f32 %v9808_v26, %v9808_v26  ;;  %v5238_v47 = vmul.f32 %v9812_v59, %v9812_v59  ;;  %v5239_v17 = vmul.f32 %v9818_v30, %v9818_v30 }
 0x76f   : > { %v5266_v38 = vadd.f32 %v5235_v60, %v5234_v40  ;;  %v9836_v5 = vsub.f32 %v9590_v20, %v9770_v25  ;;  %v5240_v2 = vmul.f32 %v9824_v54, %v9824_v54  ;;  %v9842_v62 = vsub.f32 %v9596_v35, %v9770_v25 }
 0x770   : > { %v5241_v29 = vmul.f32 %v9830_v61, %v9830_v61  ;;  %v9848_v42 = vsub.f32 %v10582_v22, %v9770_v25  ;;  %v9854_v39 = vsub.f32 %v10583_v46, %v9770_v25  ;;  %v9860_v37 = vsub.f32 %v10584_v13, %v9770_v25 }
 0x771   : > { %v5267_v27 = vadd.f32 %v5266_v38, %v5236_v23  ;;  %v5242_v20 = vmul.f32 %v9836_v5, %v9836_v5  ;;  %v5243_v35 = vmul.f32 %v9842_v62, %v9842_v62  ;;  %v9866_v41 = vsub.f32 %v10585_v55, %v9770_v25 }
 0x772   : > { %v5244_v57 = vmul.f32 %v9848_v42, %v9848_v42  ;;  %v5245_v9 = vmul.f32 %v9854_v39, %v9854_v39  ;;  %v9872_v8 = vsub.f32 %v9627_v44, %v9770_v25  ;;  %v5246_v0 = vmul.f32 %v9860_v37, %v9860_v37 }
 0x773   : > { %v5268_v16 = vadd.f32 %v5267_v27, %v5237_v52  ;;  %v9878_v45 = vsub.f32 %v9632_v11, %v9770_v25  ;;  %v5247_v4 = vmul.f32 %v9866_v41, %v9866_v41  ;;  %v9884_v60 = vsub.f32 %v9637_v18, %v9770_v25 }
 0x774   : > { %v5248_v44 = vmul.f32 %v9872_v8, %v9872_v8  ;;  %v9890_v38 = vsub.f32 %v9641_v63, %v9770_v25  ;;  %v9896_v27 = vsub.f32 %v9649_v32, %v9770_v25  ;;  %v9932_v46 = vsub.f32 %v9752_v24, %v9770_v25 }
 0x775   : > { %v5269_v53 = vadd.f32 %v5268_v16, %v5238_v47  ;;  %v5249_v11 = vmul.f32 %v9878_v45, %v9878_v45  ;;  %v5250_v18 = vmul.f32 %v9884_v60, %v9884_v60  ;;  %v9902_v16 = vsub.f32 %v9655_v51, %v9770_v25 }
 0x776   : > { %v5251_v63 = vmul.f32 %v9890_v38, %v9890_v38  ;;  %v5252_v32 = vmul.f32 %v9896_v27, %v9896_v27 }
 0x777   : > { %v5270_v15 = vadd.f32 %v5269_v53, %v5239_v17  ;;  %v9908_v53 = vsub.f32 %v9662_v10, %v9770_v25  ;;  %v5253_v51 = vmul.f32 %v9902_v16, %v9902_v16 }
 0x779   : > { %v5271_v19 = vadd.f32 %v5270_v15, %v5240_v2  ;;  %v9914_v15 = vsub.f32 %v9739_v43, %v9770_v25  ;;  %v5254_v10 = vmul.f32 %v9908_v53, %v9908_v53 }
 0x77b   : > { %v5272_v33 = vadd.f32 %v5271_v19, %v5241_v29  ;;  %v9920_v19 = vsub.f32 %v9745_v7, %v9770_v25  ;;  %v5255_v43 = vmul.f32 %v9914_v15, %v9914_v15 }
 0x77d   : > { %v5273_v49 = vadd.f32 %v5272_v33, %v5242_v20  ;;  %v9926_v20 = vsub.f32 %v9749_v31, %v9770_v25  ;;  %v5256_v7 = vmul.f32 %v9920_v19, %v9920_v19 }
 0x77f   : > { %v5274_v21 = vadd.f32 %v5273_v49, %v5243_v35  ;;  %v9938_v49 = vsub.f32 %v9755_v48, %v9770_v25  ;;  %v5257_v31 = vmul.f32 %v9926_v20, %v9926_v20  ;;  %v5261_v48 = vmul.f32 %v9776_v1, %v9776_v1 }
 0x781   : > { %v5275_v3 = vadd.f32 %v5274_v21, %v5244_v57  ;;  %v5258_v57 = vmul.f32 %v9932_v46, %v9932_v46  ;;  %v5259_v24 = vmul.f32 %v9938_v49, %v9938_v49 }
 0x783   : > { %v5276_v58 = vadd.f32 %v5275_v3, %v5245_v9  ;;  %v5260_v9 = vmul.f32 %v9773_v28, %v9773_v28 }
 0x785   : > { %v5277_v40 = vadd.f32 %v5276_v58, %v5246_v0  ;;  %v5262_v0 = vmul.f32 %v9779_v14, %v9779_v14 }
 0x787   : > { %v5278_v23 = vadd.f32 %v5277_v40, %v5247_v4  ;;  %v5263_v4 = vmul.f32 %v9782_v50, %v9782_v50 }
 0x789   : > { %v5279_v52 = vadd.f32 %v5278_v23, %v5248_v44  ;;  %v5264_v44 = vmul.f32 %v9785_v34, %v9785_v34 }
 0x78b   : > { %v5280_v47 = vadd.f32 %v5279_v52, %v5249_v11  ;;  %v5265_v11 = vmul.f32 %v9788_v36, %v9788_v36 }
 0x78d   : > { %v5281_v17 = vadd.f32 %v5280_v47, %v5250_v18 }
 0x78f   : > { %v5282_v2 = vadd.f32 %v5281_v17, %v5251_v63 }
 0x791   : > { %v5283_v29 = vadd.f32 %v5282_v2, %v5252_v32 }
 0x793   : > { %v5284_v22 = vadd.f32 %v5283_v29, %v5253_v51 }
 0x795   : > { %v5285_v33 = vadd.f32 %v5284_v22, %v5254_v10 }
 0x797   : > { %v5286_v35 = vadd.f32 %v5285_v33, %v5255_v43 }
 0x799   : > { %v5287_v13 = vadd.f32 %v5286_v35, %v5256_v7 }
 0x79b   : > { %v5288_v21 = vadd.f32 %v5287_v13, %v5257_v31  ;;  %v346_v13 = vld [vmem:[%s307_s26] sm:$0x3] }
 0x79d   : > { %v5289_v55 = vadd.f32 %v5288_v21, %v5258_v57  ;;  %v9965_v21 = vperm.slane %v346_v13, 0 }
 0x79f   : > { %v5290_v3 = vadd.f32 %v5289_v55, %v5259_v24 }
 0x7a1   : > { %v5291_v25 = vadd.f32 %v5290_v3, %v5260_v9 }
 0x7a3   : > { %v5292_v58 = vadd.f32 %v5291_v25, %v5261_v48  ;;  %v9977_v25 = vperm.slane %v346_v13, 1 }
 0x7a5   : > { %v5293_v40 = vadd.f32 %v5292_v58, %v5262_v0 }
 0x7a7   : > { %v5294_v23 = vadd.f32 %v5293_v40, %v5263_v4 }
 0x7a9   : > { %v5295_v52 = vadd.f32 %v5294_v23, %v5264_v44 }
 0x7ab   : > { %v5296_v18 = vadd.f32 %v5295_v52, %v5265_v11 }
 0x7ad   : > { %v5297_v47 = vrot.slane %v5296_v18, 4 }
 0x7af   : > { %v5298_v63 = vadd.f32 %v5297_v47, %v5296_v18 }
 0x7b1   : > { %v5299_v17 = vrot.slane %v5298_v63, 2 }
 0x7b3   : > { %v5300_v32 = vadd.f32 %v5299_v17, %v5298_v63 }
 0x7b5   : > { %v5301_v2 = vrot.slane %v5300_v32, 1 }
 0x7b7   : > { %v5302_v51 = vadd.f32 %v5301_v2, %v5300_v32 }
 0x7b9   : > { %v5303_v29 = vmul.f32 0.00390625, %v5302_v51  ;;  %v10586_v51 = vld [vmem:[#allocation10_spill] sm:$0xff] }
 0x7bb   : > { %v5304_v10 = vadd.f32 1e-05, %v5303_v29 }
 0x7bd   : > { %5615 = vrsqrt.f32 %v5304_v10  ;;  %vm5311_vm6 = vweird.f32 %v5304_v10 }
 0x7c3   : > { %v5616_v22 = vpop.eup %5615 }
 0x7c4   : > { %v5306_v43 = vmul.f32 %v5616_v22, %v5304_v10  ;;  %vm5312_vm5 = vweird.f32 %v5616_v22  ;;  %v10587_v10 = vld [vmem:[#allocation11_spill] sm:$0xff] }
 0x7c5   : > { %vm5313_vm7 = vmor %vm5311_vm6, %vm5312_vm5 }
 0x7c6   : > { %v5307_v33 = vmul.f32 %v5616_v22, %v5306_v43  ;;  %v10588_v43 = vld [vmem:[#allocation6_spill] sm:$0xff] }
 0x7c8   : > { %v5308_v7 = vmul.f32 0.5, %v5307_v33 }
 0x7ca   : > { %v5309_v35 = vsub.f32 1.5, %v5308_v7 }
 0x7cc   : > { %v5310_v31 = vmul.f32 %v5616_v22, %v5309_v35 }
 0x7ce   : > { %v9963_v57 = vsel %vm5313_vm7, %v5616_v22, %v5310_v31  ;;  %v10589_v31 = vld [vmem:[#allocation7_spill] sm:$0xff] }
 0x7cf   : > { %v5315_v24 = vmul.f32 %v9963_v57, %v9792_v56  ;;  %v5316_v55 = vmul.f32 %v9963_v57, %v9796_v12  ;;  %v5317_v9 = vmul.f32 %v9963_v57, %v9800_v6  ;;  %v5318_v3 = vmul.f32 %v9963_v57, %v9808_v26 }
 0x7d0   : > { %v5319_v48 = vmul.f32 %v9963_v57, %v9812_v59  ;;  %v5320_v0 = vmul.f32 %v9963_v57, %v9818_v30  ;;  %v5321_v56 = vmul.f32 %v9963_v57, %v9824_v54  ;;  %v5322_v26 = vmul.f32 %v9963_v57, %v9830_v61 }
 0x7d1   : > { %v5348_v58 = vmul.f32 %v9965_v21, %v5315_v24  ;;  %v5349_v12 = vmul.f32 %v9965_v21, %v5316_v55  ;;  %v5350_v6 = vmul.f32 %v9965_v21, %v5317_v9  ;;  %v5351_v4 = vmul.f32 %v9965_v21, %v5318_v3  ;;  %v10590_v3 = vld [vmem:[#allocation16_spill] sm:$0xff] }
 0x7d2   : > { %v5323_v59 = vmul.f32 %v9963_v57, %v9836_v5  ;;  %v5352_v30 = vmul.f32 %v9965_v21, %v5319_v48  ;;  %v5324_v54 = vmul.f32 %v9963_v57, %v9842_v62  ;;  %v5325_v40 = vmul.f32 %v9963_v57, %v9848_v42 }
 0x7d3   : > { %v5353_v44 = vmul.f32 %v9965_v21, %v5320_v0  ;;  %v5354_v23 = vmul.f32 %v9965_v21, %v5321_v56  ;;  %v5381_v61 = vadd.f32 %v9977_v25, %v5348_v58  ;;  %v5382_v11 = vadd.f32 %v9977_v25, %v5349_v12  ;;  %v10591_v58 = vld [vmem:[#allocation17_spill] sm:$0xff] }
 0x7d4   : > { %v5383_v52 = vadd.f32 %v9977_v25, %v5350_v6  ;;  %v5326_v5 = vmul.f32 %v9963_v57, %v9854_v39  ;;  %v5355_v18 = vmul.f32 %v9965_v21, %v5322_v26  ;;  %v5384_v62 = vadd.f32 %v9977_v25, %v5351_v4  ;;  %v10592_v4 = vld [vmem:[#allocation20_spill] sm:$0xff] }
 0x7d5   : > { %v5327_v42 = vmul.f32 %v9963_v57, %v9860_v37  ;;  %v5328_v47 = vmul.f32 %v9963_v57, %v9866_v41  ;;  %v5356_v63 = vmul.f32 %v9965_v21, %v5323_v59  ;;  %v5385_v17 = vadd.f32 %v9977_v25, %v5352_v30 }
 0x7d6   : > { %v5329_v39 = vmul.f32 %v9963_v57, %v9872_v8  ;;  %v5357_v32 = vmul.f32 %v9965_v21, %v5324_v54  ;;  %v5358_v37 = vmul.f32 %v9965_v21, %v5325_v40  ;;  %v5386_v41 = vadd.f32 %v9977_v25, %v5353_v44  ;;  %v10593_v40 = vld [vmem:[#allocation21_spill] sm:$0xff] }
 0x7d7   : > { %v5387_v2 = vadd.f32 %v9977_v25, %v5354_v23  ;;  %v5413_v29 = vadd.f32 %v5381_v61, %v10586_v51  ;;  %v5414_v22 = vadd.f32 %v5382_v11, %v10587_v10  ;;  %v5415_v33 = vadd.f32 %v5383_v52, %v10588_v43  ;;  %v10594_v11 = vld [vmem:[#allocation24_spill] sm:$0xff] }
 0x7d8   : > { %v5330_v7 = vmul.f32 %v9963_v57, %v9878_v45  ;;  %v5359_v8 = vmul.f32 %v9965_v21, %v5326_v5  ;;  %v5388_v35 = vadd.f32 %v9977_v25, %v5355_v18  ;;  %v5416_v13 = vadd.f32 %v5384_v62, %v10589_v31  ;;  %v10595_v62 = vld [vmem:[#allocation25_spill] sm:$0xff]  ;;  %v10598_v10 = vld [vmem:[#allocation32_spill] sm:$0xff] }
 0x7d9   : > { %v5331_v24 = vmul.f32 %v9963_v57, %v9884_v60  ;;  %v5360_v55 = vmul.f32 %v9965_v21, %v5327_v42  ;;  %v5389_v9 = vadd.f32 %v9977_v25, %v5356_v63  ;;  %v5417_v48 = vadd.f32 %v5385_v17, %v10590_v3  ;;  %5445 = vst [vmem:[%s10016_s29] sm:$0xff] %v5413_v29  ;;  %v10596_v17 = vld [vmem:[#allocation28_spill] sm:$0xff]  ;;  %v10601_v3 = vld [vmem:[#allocation5_spill] sm:$0xff] }
 0x7da   : > { %v5332_v45 = vmul.f32 %v9963_v57, %v9890_v38  ;;  %v5361_v0 = vmul.f32 %v9965_v21, %v5328_v47  ;;  %v5390_v56 = vadd.f32 %v9977_v25, %v5357_v32  ;;  %v5418_v12 = vadd.f32 %v5386_v41, %v10591_v58  ;;  %5446 = vst [vmem:[%s10016_s29 + $0x8] sm:$0xff] %v5414_v22  ;;  %v10597_v41 = vld [vmem:[#allocation29_spill] sm:$0xff] }
 0x7db   : > { %v5333_v60 = vmul.f32 %v9963_v57, %v9896_v27  ;;  %v5362_v6 = vmul.f32 %v9965_v21, %v5329_v39  ;;  %v5391_v26 = vadd.f32 %v9977_v25, %v5358_v37  ;;  %v5419_v59 = vadd.f32 %v5387_v2, %v10592_v4  ;;  %5447 = vst [vmem:[%s10016_s29 + $0x10] sm:$0xff] %v5415_v33 }
 0x7dc   : > { %v5334_v38 = vmul.f32 %v9963_v57, %v9902_v16  ;;  %v5363_v30 = vmul.f32 %v9965_v21, %v5330_v7  ;;  %v5392_v54 = vadd.f32 %v9977_v25, %v5359_v8  ;;  %v5420_v44 = vadd.f32 %v5388_v35, %v10593_v40  ;;  %5448 = vst [vmem:[%s10016_s29 + $0x18] sm:$0xff] %v5416_v13  ;;  %v10599_v7 = vld [vmem:[#allocation33_spill] sm:$0xff]  ;;  %v10600_v13 = vld [vmem:[#allocation4_spill] sm:$0xff] }
 0x7dd   : > { %v5335_v27 = vmul.f32 %v9963_v57, %v9908_v53  ;;  %v5364_v23 = vmul.f32 %v9965_v21, %v5331_v24  ;;  %v5393_v61 = vadd.f32 %v9977_v25, %v5360_v55  ;;  %v5421_v52 = vadd.f32 %v5389_v9, %v10594_v11  ;;  %5449 = vst [vmem:[%s10016_s29 + $0x20] sm:$0xff] %v5417_v48 }
 0x7de   : > { %v5336_v16 = vmul.f32 %v9963_v57, %v9914_v15  ;;  %v5365_v5 = vmul.f32 %v9965_v21, %v5332_v45  ;;  %v5394_v18 = vadd.f32 %v9977_v25, %v5361_v0  ;;  %v5422_v42 = vadd.f32 %v5390_v56, %v10595_v62  ;;  %5450 = vst [vmem:[%s10016_s29 + $0x28] sm:$0xff] %v5418_v12  ;;  %v10602_v56 = vld [vmem:[#allocation8_spill] sm:$0xff]  ;;  %v10608_v62 = vld [vmem:[#allocation18_spill] sm:$0xff] }
 0x7df   : > { %v5337_v53 = vmul.f32 %v9963_v57, %v9920_v19  ;;  %v5366_v47 = vmul.f32 %v9965_v21, %v5333_v60  ;;  %v5395_v63 = vadd.f32 %v9977_v25, %v5362_v6  ;;  %v5423_v39 = vadd.f32 %v5391_v26, %v10596_v17  ;;  %5451 = vst [vmem:[%s10016_s29 + $0x30] sm:$0xff] %v5419_v59  ;;  %v10603_v6 = vld [vmem:[#allocation9_spill] sm:$0xff] }
 0x7e0   : > { %v5338_v15 = vmul.f32 %v9963_v57, %v9926_v20  ;;  %v5367_v32 = vmul.f32 %v9965_v21, %v5334_v38  ;;  %v5396_v37 = vadd.f32 %v9977_v25, %v5363_v30  ;;  %v5424_v2 = vadd.f32 %v5392_v54, %v10597_v41  ;;  %5452 = vst [vmem:[%s10016_s29 + $0x38] sm:$0xff] %v5420_v44  ;;  %v10604_v38 = vld [vmem:[#allocation12_spill] sm:$0xff]  ;;  %v10605_v44 = vld [vmem:[#allocation13_spill] sm:$0xff]  ;;  %v10611_v41 = vld [vmem:[#allocation23_spill] sm:$0xff] }
 0x7e1   : > { %v5339_v19 = vmul.f32 %v9963_v57, %v9932_v46  ;;  %v5368_v51 = vmul.f32 %v9965_v21, %v5335_v27  ;;  %v5397_v29 = vadd.f32 %v9977_v25, %v5364_v23  ;;  %v5425_v22 = vadd.f32 %v5393_v61, %v10598_v10  ;;  %5453 = vst [vmem:[%s10016_s29 + $0x40] sm:$0xff] %v5421_v52  ;;  %v10606_v61 = vld [vmem:[#allocation14_spill] sm:$0xff]  ;;  %v10613_v10 = vld [vmem:[#allocation27_spill] sm:$0xff] }
 0x7e2   : > { %v5340_v20 = vmul.f32 %v9963_v57, %v9938_v49  ;;  %v5369_v43 = vmul.f32 %v9965_v21, %v5336_v16  ;;  %v5398_v33 = vadd.f32 %v9977_v25, %v5365_v5  ;;  %v5426_v8 = vadd.f32 %v5394_v18, %v10599_v7  ;;  %5454 = vst [vmem:[%s10016_s29 + $0x48] sm:$0xff] %v5422_v42 }
 0x7e3   : > { %v5341_v46 = vmul.f32 %v9963_v57, %v9773_v28  ;;  %v5370_v35 = vmul.f32 %v9965_v21, %v5337_v53  ;;  %v5399_v31 = vadd.f32 %v9977_v25, %v5366_v47  ;;  %v5427_v24 = vadd.f32 %v5395_v63, %v10600_v13  ;;  %5455 = vst [vmem:[%s10016_s29 + $0x50] sm:$0xff] %v5423_v39  ;;  %v10609_v63 = vld [vmem:[#allocation19_spill] sm:$0xff] }
 0x7e4   : > { %v5342_v49 = vmul.f32 %v9963_v57, %v9776_v1  ;;  %v5371_v55 = vmul.f32 %v9965_v21, %v5338_v15  ;;  %v5400_v9 = vadd.f32 %v9977_v25, %v5367_v32  ;;  %v5428_v48 = vadd.f32 %v5396_v37, %v10601_v3  ;;  %5456 = vst [vmem:[%s10016_s29 + $0x58] sm:$0xff] %v5424_v2  ;;  %v10610_v15 = vld [vmem:[#allocation22_spill] sm:$0xff] }
 0x7e5   : > { %v5343_v28 = vmul.f32 %v9963_v57, %v9779_v14  ;;  %v5372_v45 = vmul.f32 %v9965_v21, %v5339_v19  ;;  %v5401_v0 = vadd.f32 %v9977_v25, %v5368_v51  ;;  %v5429_v58 = vadd.f32 %v5397_v29, %v10602_v56  ;;  %5457 = vst [vmem:[%s10016_s29 + $0x60] sm:$0xff] %v5425_v22  ;;  %v10612_v19 = vld [vmem:[#allocation26_spill] sm:$0xff] }
 0x7e6   : > { %v5344_v1 = vmul.f32 %v9963_v57, %v9782_v50  ;;  %v5373_v12 = vmul.f32 %v9965_v21, %v5340_v20  ;;  %v5402_v60 = vadd.f32 %v9977_v25, %v5369_v43  ;;  %v5430_v26 = vadd.f32 %v5398_v33, %v10603_v6  ;;  %5458 = vst [vmem:[%s10016_s29 + $0x68] sm:$0xff] %v5426_v8  ;;  %v10614_v20 = vld [vmem:[#allocation30_spill] sm:$0xff]  ;;  %v10615_v33 = vld [vmem:[#allocation31_spill] sm:$0xff] }
 0x7e7   : > { %v5345_v14 = vmul.f32 %v9963_v57, %v9785_v34  ;;  %v5374_v4 = vmul.f32 %v9965_v21, %v5341_v46  ;;  %v5403_v59 = vadd.f32 %v9977_v25, %v5370_v35  ;;  %v5431_v30 = vadd.f32 %v5399_v31, %v10604_v38  ;;  %5459 = vst [vmem:[%s10016_s29 + $0x70] sm:$0xff] %v5427_v24  ;;  %v10616_v8 = vld [vmem:[#allocation42_spill] sm:$0xff]  ;;  %v10617_v35 = vld [vmem:[#allocation43_spill] sm:$0xff] }
 0x7e8   : > { %v5346_v50 = vmul.f32 %v9963_v57, %v9788_v36  ;;  %v5375_v54 = vmul.f32 %v9965_v21, %v5342_v49  ;;  %v5404_v40 = vadd.f32 %v9977_v25, %v5371_v55  ;;  %v5432_v27 = vadd.f32 %v5400_v9, %v10605_v44  ;;  %5460 = vst [vmem:[%s10016_s29 + $0x78] sm:$0xff] %v5428_v48  ;;  %v10607_v57 = vld [vmem:[#allocation15_spill] sm:$0xff] }
 0x7e9   : > { %v5376_v34 = vmul.f32 %v9965_v21, %v5343_v28  ;;  %v5405_v23 = vadd.f32 %v9977_v25, %v5372_v45  ;;  %v5433_v11 = vadd.f32 %v5401_v0, %v10606_v61  ;;  %5461 = vst [vmem:[%s10016_s29 + $0x80] sm:$0xff] %v5429_v58  ;;  %v5377_v52 = vmul.f32 %v9965_v21, %v5344_v1 }
 0x7ea   : > { %v5406_v36 = vadd.f32 %v9977_v25, %v5373_v12  ;;  %v5434_v16 = vadd.f32 %v5402_v60, %v10607_v57  ;;  %5462 = vst [vmem:[%s10016_s29 + $0x88] sm:$0xff] %v5430_v26  ;;  %v5378_v5 = vmul.f32 %v9965_v21, %v5345_v14  ;;  %v5407_v18 = vadd.f32 %v9977_v25, %v5374_v4 }
 0x7eb   : > { %v5435_v42 = vadd.f32 %v5403_v59, %v10608_v62  ;;  %5463 = vst [vmem:[%s10016_s29 + $0x90] sm:$0xff] %v5431_v30  ;;  %v5379_v53 = vmul.f32 %v9965_v21, %v5346_v50  ;;  %v5408_v47 = vadd.f32 %v9977_v25, %v5375_v54  ;;  %v5436_v17 = vadd.f32 %v5404_v40, %v10609_v63 }
 0x7ec   : > { %5464 = vst [vmem:[%s10016_s29 + $0x98] sm:$0xff] %v5432_v27  ;;  %v5409_v39 = vadd.f32 %v9977_v25, %v5376_v34  ;;  %v5437_v32 = vadd.f32 %v5405_v23, %v10610_v15  ;;  %v5410_v37 = vadd.f32 %v9977_v25, %v5377_v52  ;;  %v5438_v2 = vadd.f32 %v5406_v36, %v10611_v41 }
 0x7ed   : > { %5465 = vst [vmem:[%s10016_s29 + $0xa0] sm:$0xff] %v5433_v11  ;;  %v5411_v21 = vadd.f32 %v9977_v25, %v5378_v5  ;;  %v5439_v51 = vadd.f32 %v5407_v18, %v10612_v19  ;;  %v5412_v29 = vadd.f32 %v9977_v25, %v5379_v53  ;;  %v5440_v22 = vadd.f32 %v5408_v47, %v10613_v10 }
 0x7ee   : > { %5466 = vst [vmem:[%s10016_s29 + $0xa8] sm:$0xff] %v5434_v16  ;;  %v5441_v43 = vadd.f32 %v5409_v39, %v10614_v20  ;;  %v5442_v7 = vadd.f32 %v5410_v37, %v10615_v33 }
 0x7ef   : > { %5467 = vst [vmem:[%s10016_s29 + $0xb0] sm:$0xff] %v5435_v42  ;;  %v5443_v46 = vadd.f32 %v5411_v21, %v10616_v8  ;;  %v5444_v31 = vadd.f32 %v5412_v29, %v10617_v35 }
 0x7f0   : > { %5468 = vst [vmem:[%s10016_s29 + $0xb8] sm:$0xff] %v5436_v17 }
 0x7f1   : > { %5469 = vst [vmem:[%s10016_s29 + $0xc0] sm:$0xff] %v5437_v32 }
 0x7f2   : > { %5470 = vst [vmem:[%s10016_s29 + $0xc8] sm:$0xff] %v5438_v2 }
 0x7f3   : > { %5471 = vst [vmem:[%s10016_s29 + $0xd0] sm:$0xff] %v5439_v51 }
 0x7f4   : > { %5472 = vst [vmem:[%s10016_s29 + $0xd8] sm:$0xff] %v5440_v22 }
 0x7f5   : > { %5473 = vst [vmem:[%s10016_s29 + $0xe0] sm:$0xff] %v5441_v43 }
 0x7f6   : > { %5474 = vst [vmem:[%s10016_s29 + $0xe8] sm:$0xff] %v5442_v7 }
 0x7f7   : > { %5475 = vst [vmem:[%s10016_s29 + $0xf0] sm:$0xff] %v5443_v46 }
 0x7f8   : > { %5476 = vst [vmem:[%s10016_s29 + $0xf8] sm:$0xff] %v5444_v31 }
 0x7f9 PF: > { %s17_s24 = sadd.s32 1, %s5671_s24  }
 0x7fa   : > { %p14_p4 = scmp.ge.s32.totalorder %s17_s24, 4  }
 0x7fc   :  { %16 = sbr.rel (!%p14_p4) target bundleno = 1 (0x1), region = 88 }

</bundles_post_ra>
